<compile_context>
chip_gen: v7x
topology: tpu7x:2x2x1
jax: 0.10.0
libtpu: 0.0.40
codegen_flags: <defaults>
</compile_context>

<pallas_src>
import functools

import jax
import jax.numpy as jnp
from jax.experimental import pallas as pl
from jax.experimental.pallas import tpu as pltpu


def _round_up(x, m):
    return (x + m - 1) // m * m


# --------------------------------------------------------------------------
# Pallas kernel: grouped GEMM with fused bias + optional ReLU
#   grid = (G, row_tiles); per step: out = act(A[g, tile] @ W[g] + b[g])
# --------------------------------------------------------------------------
def _grouped_gemm_kernel(a_ref, w_ref, b_ref, o_ref, *, relu):
    acc = jnp.dot(a_ref[...], w_ref[...], preferred_element_type=jnp.float32)
    acc = acc + b_ref[...]
    if relu:
        acc = jnp.maximum(acc, 0.0)
    o_ref[...] = acc.astype(o_ref.dtype)


def grouped_gemm(a3, w3, b3, relu):
    """act(A[g] @ W[g] + b[g]) per group.

    a3: (G, R, K) bf16, w3: (G, K, N) bf16, b3: (G, 1, N) f32 -> (G, R, N) bf16.
    K and N are small (<= 288 / 64) so neither is tiled; the group axis and the
    row axis are both 'parallel' (megacore friendly).  Weight / bias blocks only
    change when g changes, so their DMAs are elided across row tiles.
    """
    G, R, K = a3.shape
    N = w3.shape[2]
    tm = min(512, _round_up(R, 16))          # adaptive row tile
    Rp = _round_up(R, tm)
    if Rp != R:
        a3 = jnp.pad(a3, ((0, 0), (0, Rp - R), (0, 0)))

    out = pl.pallas_call(
        functools.partial(_grouped_gemm_kernel, relu=relu),
        out_shape=jax.ShapeDtypeStruct((G, Rp, N), jnp.bfloat16),
        grid_spec=pltpu.PrefetchScalarGridSpec(
            num_scalar_prefetch=0,
            grid=(G, Rp // tm),
            in_specs=[
                pl.BlockSpec((None, tm, K), lambda g, i: (g, i, 0)),
                pl.BlockSpec((None, K, N), lambda g, i: (g, 0, 0)),
                pl.BlockSpec((None, 1, N), lambda g, i: (g, 0, 0)),
            ],
            out_specs=pl.BlockSpec((None, tm, N), lambda g, i: (g, i, 0)),
        ),
        compiler_params=pltpu.CompilerParams(
            dimension_semantics=("parallel", "parallel")),
    )(a3, w3, b3)
    if Rp != R:
        out = out[:, :R, :]
    return out


# --------------------------------------------------------------------------
# Conv wrappers (group gather / im2col glue in JAX, GEMM+bias+ReLU in Pallas)
# --------------------------------------------------------------------------
def conv3x3_grouped(x_parts, w3, b3, cin_group, relu=True):
    """Grouped 3x3 conv (padding=1).  Groups are contiguous `cin_group`-sized
    channel chunks taken, in order, from the tensors in `x_parts` (this folds
    the decoder skip-concat into the group gather).

    x_parts: list of (Nb, H, W, C_i) bf16.  Returns group-major (G, R, Og) bf16.
    """
    a_parts = []
    for xp_ in x_parts:
        Nb, H, W, C = xp_.shape
        g_part = C // cin_group
        xpad = jnp.pad(xp_, ((0, 0), (1, 1), (1, 1), (0, 0)))
        taps = jnp.stack(
            [xpad[:, dy:dy + H, dx:dx + W, :] for dy in range(3) for dx in range(3)],
            axis=3)                                        # (Nb, H, W, 9, C)
        a3 = taps.reshape(Nb, H, W, 9, g_part, cin_group)
        a3 = jnp.transpose(a3, (4, 0, 1, 2, 3, 5))
        a3 = a3.reshape(g_part, Nb * H * W, 9 * cin_group)
        a_parts.append(a3)
    a3 = a_parts[0] if len(a_parts) == 1 else jnp.concatenate(a_parts, axis=0)
    return grouped_gemm(a3, w3, b3, relu)


def conv1x1_group_major(a3, w3, b3, relu=True):
    """Grouped 1x1 conv on an already group-major activation (G, R, Kg)."""
    return grouped_gemm(a3, w3, b3, relu)


# --------------------------------------------------------------------------
# Glue ops (pure data movement)
# --------------------------------------------------------------------------
def maxpool2(x):
    N, H, W, C = x.shape
    return x.reshape(N, H // 2, 2, W // 2, 2, C).max(axis=(2, 4))


def upsample2(x):
    return jnp.repeat(jnp.repeat(x, 2, axis=1), 2, axis=2)


# --------------------------------------------------------------------------
# Weight packing (grouped, BN scale folded, bf16)
# --------------------------------------------------------------------------
def pack_grouped_3x3(w, groups, scale):
    """w: (Cout, Cin_g, 3, 3) torch layout -> (G, 9*Cin_g, Og), scale folded."""
    cout, cin_g, _, _ = w.shape
    og = cout // groups
    wg = w.reshape(groups, og, cin_g, 3, 3)
    wg = jnp.transpose(wg, (0, 3, 4, 2, 1)).reshape(groups, 9 * cin_g, og)
    wg = wg * scale.reshape(groups, 1, og)
    return wg.astype(jnp.bfloat16)


def pack_grouped_1x1(w, groups, scale):
    """w: (Cout, Cin_g, 1, 1) torch layout -> (G, Cin_g, Og), scale folded."""
    cout, cin_g = w.shape[:2]
    og = cout // groups
    wg = w[:, :, 0, 0].reshape(groups, og, cin_g)
    wg = jnp.transpose(wg, (0, 2, 1)) * scale.reshape(groups, 1, og)
    return wg.astype(jnp.bfloat16)


# --------------------------------------------------------------------------
# Parameter init (deterministic, synthetic; BN folded in inference mode)
# --------------------------------------------------------------------------
def init_bn_fold(key, ch):
    kg, kb = jax.random.split(key)
    gamma = 1.0 + 0.1 * jax.random.normal(kg, (ch,), jnp.float32)
    beta = 0.1 * jax.random.normal(kb, (ch,), jnp.float32)
    eps = 1e-5
    scale = gamma / jnp.sqrt(1.0 + eps)   # running_var=1, running_mean=0
    bias = beta
    return scale, bias


def init_igcv(key, ch_in, ch_out, M):
    k1, k2, k3, k4 = jax.random.split(key, 4)
    L = ch_in // M
    opg = ch_out // M
    w1 = jax.random.normal(k1, (ch_in, M, 3, 3), jnp.float32) * (2.0 / (M * 9)) ** 0.5
    w2 = jax.random.normal(k2, (ch_out, L, 1, 1), jnp.float32) * (2.0 / L) ** 0.5
    s1, b1 = init_bn_fold(k3, ch_in)
    s2, b2 = init_bn_fold(k4, ch_out)
    return dict(w1=pack_grouped_3x3(w1, L, s1), b1=b1.reshape(L, 1, M),
                w2=pack_grouped_1x1(w2, M, s2), b2=b2.reshape(M, 1, opg))


def init_conv3x3(key, ch_in, ch_out):
    k1, k2 = jax.random.split(key)
    w = jax.random.normal(k1, (ch_out, ch_in, 3, 3), jnp.float32) * (2.0 / (ch_in * 9)) ** 0.5
    s, b = init_bn_fold(k2, ch_out)
    return dict(w=pack_grouped_3x3(w, 1, s), b=b.reshape(1, 1, ch_out))


def init_final(key, ch_in, ch_out=1):
    kf, kb = jax.random.split(key)
    w = jax.random.normal(kf, (ch_out, ch_in, 1, 1), jnp.float32) * (1.0 / ch_in) ** 0.5
    b = 0.1 * jax.random.normal(kb, (ch_out,), jnp.float32)
    return dict(w=pack_grouped_1x1(w, 1, jnp.ones((ch_out,), jnp.float32)),
                b=b.reshape(1, 1, ch_out))


def init_model(key):
    ks = iter(jax.random.split(key, 32))
    p = {}
    p["conv1_c"] = init_conv3x3(next(ks), 1, 64)
    p["conv1_i"] = init_igcv(next(ks), 64, 64, 8)
    p["conv2"] = [init_igcv(next(ks), 64, 128, 8), init_igcv(next(ks), 128, 128, 8)]
    p["conv3"] = [init_igcv(next(ks), 128, 256, 16), init_igcv(next(ks), 256, 256, 16)]
    p["conv4"] = [init_igcv(next(ks), 256, 512, 16), init_igcv(next(ks), 512, 512, 16)]
    p["conv5"] = [init_igcv(next(ks), 512, 1024, 32), init_igcv(next(ks), 1024, 1024, 32)]
    p["up5"] = init_igcv(next(ks), 1024, 512, 32)
    p["upconv5"] = [init_igcv(next(ks), 1024, 512, 32), init_igcv(next(ks), 512, 512, 32)]
    p["up4"] = init_igcv(next(ks), 512, 256, 16)
    p["upconv4"] = [init_igcv(next(ks), 512, 256, 16), init_igcv(next(ks), 256, 256, 16)]
    p["up3"] = init_igcv(next(ks), 256, 128, 16)
    p["upconv3"] = [init_igcv(next(ks), 256, 128, 16), init_igcv(next(ks), 128, 128, 16)]
    p["up2"] = init_igcv(next(ks), 128, 64, 8)
    p["upconv2"] = [init_igcv(next(ks), 128, 64, 8), init_igcv(next(ks), 64, 64, 8)]
    p["final"] = init_final(next(ks), 64, 1)
    return p


# --------------------------------------------------------------------------
# Model blocks
# --------------------------------------------------------------------------
def apply_conv3x3_block(x, p):
    Nb, H, W, _ = x.shape
    o = conv3x3_grouped([x], p["w"], p["b"], cin_group=x.shape[-1], relu=True)
    return o[0].reshape(Nb, H, W, -1)


def apply_igcv(x_parts, p, M):
    """IGCV block: grouped 3x3 + BN + ReLU, (folded) interleave,
    grouped 1x1 + BN + ReLU.  Accepts a list of tensors (skip-concat folded)."""
    if not isinstance(x_parts, (list, tuple)):
        x_parts = [x_parts]
    Nb, H, W, _ = x_parts[0].shape
    # gconv1: groups = Cin // M, each with M in / M out channels.
    o1 = conv3x3_grouped(x_parts, p["w1"], p["b1"], cin_group=M, relu=True)   # (L, R, M)
    # channel_interleaved is exactly this group-major relayout (folded, free):
    a2 = jnp.transpose(o1, (2, 1, 0))                                         # (M, R, L)
    # gconv2: groups = M, each with L in / Cout//M out channels.
    o2 = conv1x1_group_major(a2, p["w2"], p["b2"], relu=True)                 # (M, R, Opg)
    opg = o2.shape[2]
    out = jnp.transpose(o2, (1, 0, 2)).reshape(Nb, H, W, M * opg)             # NHWC
    return out


def apply_double(x, plist, M):
    x = apply_igcv(x, plist[0], M)
    x = apply_igcv(x, plist[1], M)
    return x


def final_conv1x1(x, p):
    Nb, H, W, C = x.shape
    a3 = x.reshape(1, Nb * H * W, C)
    o = grouped_gemm(a3, p["w"], p["b"], relu=False)    # (1, R, 1)
    return o[0].reshape(Nb, H, W, -1)


def forward(params, x_nchw):
    x = jnp.transpose(x_nchw, (0, 2, 3, 1)).astype(jnp.bfloat16)   # NCHW -> NHWC

    x1 = apply_conv3x3_block(x, params["conv1_c"])
    x1 = apply_igcv(x1, params["conv1_i"], 8)

    x2 = maxpool2(x1)
    x2 = apply_double(x2, params["conv2"], 8)
    x3 = maxpool2(x2)
    x3 = apply_double(x3, params["conv3"], 16)
    x4 = maxpool2(x3)
    x4 = apply_double(x4, params["conv4"], 16)
    x5 = maxpool2(x4)
    x5 = apply_double(x5, params["conv5"], 32)

    d5 = apply_igcv(upsample2(x5), params["up5"], 32)
    d5 = apply_igcv([x4, d5], params["upconv5"][0], 32)     # concat folded into group gather
    d5 = apply_igcv(d5, params["upconv5"][1], 32)

    d4 = apply_igcv(upsample2(d5), params["up4"], 16)
    d4 = apply_igcv([x3, d4], params["upconv4"][0], 16)
    d4 = apply_igcv(d4, params["upconv4"][1], 16)

    d3 = apply_igcv(upsample2(d4), params["up3"], 16)
    d3 = apply_igcv([x2, d3], params["upconv3"][0], 16)
    d3 = apply_igcv(d3, params["upconv3"][1], 16)

    d2 = apply_igcv(upsample2(d3), params["up2"], 8)
    d2 = apply_igcv([x1, d2], params["upconv2"][0], 8)
    d2 = apply_igcv(d2, params["upconv2"][1], 8)

    d1 = final_conv1x1(d2, params["final"])
    return jnp.transpose(d1, (0, 3, 1, 2)).astype(jnp.float32)   # NHWC -> NCHW


if __name__ == "__main__":
    key = jax.random.PRNGKey(0)
    pkey, xkey = jax.random.split(key)
    params = init_model(pkey)
    # NCHW input as in the PyTorch module (img_ch=1); spatial must be /16.
    x = jax.random.normal(xkey, (2, 1, 16, 16), jnp.float32)
    out = jax.jit(forward)(params, x)
    out = jax.block_until_ready(out)
    assert out.shape == (2, 1, 16, 16), out.shape
    assert bool(jnp.all(jnp.isfinite(out)))
    print("KERNEL_OK")
</pallas_src>

<mosaic_0001>
module attributes {stable_mosaic.version = 11 : i64} {
  func.func @_grouped_gemm_kernel(%arg0: i32, %arg1: i32, %arg2: memref<1x512x9xbf16, #tpu.memory_space<vmem>>, %arg3: memref<1x9x64xbf16, #tpu.memory_space<vmem>>, %arg4: memref<1x1x64xf32, #tpu.memory_space<vmem>>, %arg5: memref<1x512x64xbf16, #tpu.memory_space<vmem>>) attributes {dimension_semantics = [#tpu.dimension_semantics<parallel>, #tpu.dimension_semantics<parallel>], iteration_bounds = array<i64: 1, 1>, scalar_prefetch = 0 : i64, scratch_operands = 0 : i64, tpu.core_type = #tpu.core_type<tc>, window_params = [{transform_indices = @transform_0, window_bounds = array<i64: 1, 512, 9>}, {transform_indices = @transform_1, window_bounds = array<i64: 1, 9, 64>}, {transform_indices = @transform_2, window_bounds = array<i64: 1, 1, 64>}, {transform_indices = @transform_3, window_bounds = array<i64: 1, 512, 64>}]} {
    %c0 = arith.constant 0 : index
    %c0_0 = arith.constant 0 : index
    %c0_1 = arith.constant 0 : index
    %0 = vector.load %arg2[%c0, %c0_0, %c0_1] : memref<1x512x9xbf16, #tpu.memory_space<vmem>>, vector<1x512x9xbf16>
    %1 = vector.shape_cast %0 : vector<1x512x9xbf16> to vector<512x9xbf16>
    %c0_2 = arith.constant 0 : index
    %c0_3 = arith.constant 0 : index
    %c0_4 = arith.constant 0 : index
    %2 = vector.load %arg3[%c0_2, %c0_3, %c0_4] : memref<1x9x64xbf16, #tpu.memory_space<vmem>>, vector<1x9x64xbf16>
    %3 = vector.shape_cast %2 : vector<1x9x64xbf16> to vector<9x64xbf16>
    %cst = arith.constant dense<0.000000e+00> : vector<512x64xf32>
    %4 = tpu.matmul %1, %3, %cst {dimension_numbers = #tpu.dot_dimension_numbers<[1], [0], [0], [1], [0, 0, 1, 1], [], []>} : vector<512x9xbf16>, vector<9x64xbf16>, vector<512x64xf32> -> vector<512x64xf32>
    %c0_5 = arith.constant 0 : index
    %c0_6 = arith.constant 0 : index
    %c0_7 = arith.constant 0 : index
    %5 = vector.load %arg4[%c0_5, %c0_6, %c0_7] : memref<1x1x64xf32, #tpu.memory_space<vmem>>, vector<1x1x64xf32>
    %6 = vector.shape_cast %5 : vector<1x1x64xf32> to vector<1x64xf32>
    %7 = vector.broadcast %6 : vector<1x64xf32> to vector<512x64xf32>
    %8 = arith.addf %4, %7 : vector<512x64xf32>
    %cst_8 = arith.constant 0.000000e+00 : f32
    %9 = vector.broadcast %cst_8 : f32 to vector<512x64xf32>
    %10 = arith.maximumf %8, %9 : vector<512x64xf32>
    %11 = arith.truncf %10 : vector<512x64xf32> to vector<512x64xbf16>
    %c0_9 = arith.constant 0 : index
    %c0_10 = arith.constant 0 : index
    %c0_11 = arith.constant 0 : index
    %12 = vector.load %arg5[%c0_9, %c0_10, %c0_11] : memref<1x512x64xbf16, #tpu.memory_space<vmem>>, vector<1x512x64xbf16>
    %13 = vector.shape_cast %12 : vector<1x512x64xbf16> to vector<512x64xbf16>
    %14 = vector.shape_cast %11 : vector<512x64xbf16> to vector<1x512x64xbf16>
    tpu.vector_store %arg5[%c0_9, %c0_10, %c0_11], %14 {strides = array<i32>} : memref<1x512x64xbf16, #tpu.memory_space<vmem>>, vector<1x512x64xbf16>,
    return
  }
  func.func @transform_0(%arg0: i32, %arg1: i32) -> (i32, i32, i32) {
    %c0_i32 = arith.constant 0 : i32
    %c0_i32_0 = arith.constant 0 : i32
    return %arg0, %arg1, %c0_i32 : i32, i32, i32
  }
  func.func @transform_1(%arg0: i32, %arg1: i32) -> (i32, i32, i32) {
    %c0_i32 = arith.constant 0 : i32
    %c0_i32_0 = arith.constant 0 : i32
    %c0_i32_1 = arith.constant 0 : i32
    return %arg0, %c0_i32, %c0_i32_0 : i32, i32, i32
  }
  func.func @transform_2(%arg0: i32, %arg1: i32) -> (i32, i32, i32) {
    %c0_i32 = arith.constant 0 : i32
    %c0_i32_0 = arith.constant 0 : i32
    %c0_i32_1 = arith.constant 0 : i32
    return %arg0, %c0_i32, %c0_i32_0 : i32, i32, i32
  }
  func.func @transform_3(%arg0: i32, %arg1: i32) -> (i32, i32, i32) {
    %c0_i32 = arith.constant 0 : i32
    %c0_i32_0 = arith.constant 0 : i32
    return %arg0, %arg1, %c0_i32 : i32, i32, i32
  }
}

module attributes {stable_mosaic.version = 11 : i64} {
  func.func @_grouped_gemm_kernel(%arg0: i32, %arg1: i32, %arg2: memref<1x512x72xbf16, #tpu.memory_space<vmem>>, %arg3: memref<1x72x8xbf16, #tpu.memory_space<vmem>>, %arg4: memref<1x1x8xf32, #tpu.memory_space<vmem>>, %arg5: memref<1x512x8xbf16, #tpu.memory_space<vmem>>) attributes {dimension_semantics = [#tpu.dimension_semantics<parallel>, #tpu.dimension_semantics<parallel>], iteration_bounds = array<i64: 8, 1>, scalar_prefetch = 0 : i64, scratch_operands = 0 : i64, tpu.core_type = #tpu.core_type<tc>, window_params = [{transform_indices = @transform_0, window_bounds = array<i64: 1, 512, 72>}, {transform_indices = @transform_1, window_bounds = array<i64: 1, 72, 8>}, {transform_indices = @transform_2, window_bounds = array<i64: 1, 1, 8>}, {transform_indices = @transform_3, window_bounds = array<i64: 1, 512, 8>}]} {
    %c0 = arith.constant 0 : index
    %c0_0 = arith.constant 0 : index
    %c0_1 = arith.constant 0 : index
    %0 = vector.load %arg2[%c0, %c0_0, %c0_1] : memref<1x512x72xbf16, #tpu.memory_space<vmem>>, vector<1x512x72xbf16>
    %1 = vector.shape_cast %0 : vector<1x512x72xbf16> to vector<512x72xbf16>
    %c0_2 = arith.constant 0 : index
    %c0_3 = arith.constant 0 : index
    %c0_4 = arith.constant 0 : index
    %2 = vector.load %arg3[%c0_2, %c0_3, %c0_4] : memref<1x72x8xbf16, #tpu.memory_space<vmem>>, vector<1x72x8xbf16>
    %3 = vector.shape_cast %2 : vector<1x72x8xbf16> to vector<72x8xbf16>
    %cst = arith.constant dense<0.000000e+00> : vector<512x8xf32>
    %4 = tpu.matmul %1, %3, %cst {dimension_numbers = #tpu.dot_dimension_numbers<[1], [0], [0], [1], [0, 0, 1, 1], [], []>} : vector<512x72xbf16>, vector<72x8xbf16>, vector<512x8xf32> -> vector<512x8xf32>
    %c0_5 = arith.constant 0 : index
    %c0_6 = arith.constant 0 : index
    %c0_7 = arith.constant 0 : index
    %5 = vector.load %arg4[%c0_5, %c0_6, %c0_7] : memref<1x1x8xf32, #tpu.memory_space<vmem>>, vector<1x1x8xf32>
    %6 = vector.shape_cast %5 : vector<1x1x8xf32> to vector<1x8xf32>
    %7 = vector.broadcast %6 : vector<1x8xf32> to vector<512x8xf32>
    %8 = arith.addf %4, %7 : vector<512x8xf32>
    %cst_8 = arith.constant 0.000000e+00 : f32
    %9 = vector.broadcast %cst_8 : f32 to vector<512x8xf32>
    %10 = arith.maximumf %8, %9 : vector<512x8xf32>
    %11 = arith.truncf %10 : vector<512x8xf32> to vector<512x8xbf16>
    %c0_9 = arith.constant 0 : index
    %c0_10 = arith.constant 0 : index
    %c0_11 = arith.constant 0 : index
    %12 = vector.load %arg5[%c0_9, %c0_10, %c0_11] : memref<1x512x8xbf16, #tpu.memory_space<vmem>>, vector<1x512x8xbf16>
    %13 = vector.shape_cast %12 : vector<1x512x8xbf16> to vector<512x8xbf16>
    %14 = vector.shape_cast %11 : vector<512x8xbf16> to vector<1x512x8xbf16>
    tpu.vector_store %arg5[%c0_9, %c0_10, %c0_11], %14 {strides = array<i32>} : memref<1x512x8xbf16, #tpu.memory_space<vmem>>, vector<1x512x8xbf16>,
    return
  }
  func.func @transform_0(%arg0: i32, %arg1: i32) -> (i32, i32, i32) {
    %c0_i32 = arith.constant 0 : i32
    %c0_i32_0 = arith.constant 0 : i32
    return %arg0, %arg1, %c0_i32 : i32, i32, i32
  }
  func.func @transform_1(%arg0: i32, %arg1: i32) -> (i32, i32, i32) {
    %c0_i32 = arith.constant 0 : i32
    %c0_i32_0 = arith.constant 0 : i32
    %c0_i32_1 = arith.constant 0 : i32
    return %arg0, %c0_i32, %c0_i32_0 : i32, i32, i32
  }
  func.func @transform_2(%arg0: i32, %arg1: i32) -> (i32, i32, i32) {
    %c0_i32 = arith.constant 0 : i32
    %c0_i32_0 = arith.constant 0 : i32
    %c0_i32_1 = arith.constant 0 : i32
    return %arg0, %c0_i32, %c0_i32_0 : i32, i32, i32
  }
  func.func @transform_3(%arg0: i32, %arg1: i32) -> (i32, i32, i32) {
    %c0_i32 = arith.constant 0 : i32
    %c0_i32_0 = arith.constant 0 : i32
    return %arg0, %arg1, %c0_i32 : i32, i32, i32
  }
}

module attributes {stable_mosaic.version = 11 : i64} {
  func.func @_grouped_gemm_kernel(%arg0: i32, %arg1: i32, %arg2: memref<1x512x8xbf16, #tpu.memory_space<vmem>>, %arg3: memref<1x8x8xbf16, #tpu.memory_space<vmem>>, %arg4: memref<1x1x8xf32, #tpu.memory_space<vmem>>, %arg5: memref<1x512x8xbf16, #tpu.memory_space<vmem>>) attributes {dimension_semantics = [#tpu.dimension_semantics<parallel>, #tpu.dimension_semantics<parallel>], iteration_bounds = array<i64: 8, 1>, scalar_prefetch = 0 : i64, scratch_operands = 0 : i64, tpu.core_type = #tpu.core_type<tc>, window_params = [{transform_indices = @transform_0, window_bounds = array<i64: 1, 512, 8>}, {transform_indices = @transform_1, window_bounds = array<i64: 1, 8, 8>}, {transform_indices = @transform_2, window_bounds = array<i64: 1, 1, 8>}, {transform_indices = @transform_3, window_bounds = array<i64: 1, 512, 8>}]} {
    %c0 = arith.constant 0 : index
    %c0_0 = arith.constant 0 : index
    %c0_1 = arith.constant 0 : index
    %0 = vector.load %arg2[%c0, %c0_0, %c0_1] : memref<1x512x8xbf16, #tpu.memory_space<vmem>>, vector<1x512x8xbf16>
    %1 = vector.shape_cast %0 : vector<1x512x8xbf16> to vector<512x8xbf16>
    %c0_2 = arith.constant 0 : index
    %c0_3 = arith.constant 0 : index
    %c0_4 = arith.constant 0 : index
    %2 = vector.load %arg3[%c0_2, %c0_3, %c0_4] : memref<1x8x8xbf16, #tpu.memory_space<vmem>>, vector<1x8x8xbf16>
    %3 = vector.shape_cast %2 : vector<1x8x8xbf16> to vector<8x8xbf16>
    %cst = arith.constant dense<0.000000e+00> : vector<512x8xf32>
    %4 = tpu.matmul %1, %3, %cst {dimension_numbers = #tpu.dot_dimension_numbers<[1], [0], [0], [1], [0, 0, 1, 1], [], []>} : vector<512x8xbf16>, vector<8x8xbf16>, vector<512x8xf32> -> vector<512x8xf32>
    %c0_5 = arith.constant 0 : index
    %c0_6 = arith.constant 0 : index
    %c0_7 = arith.constant 0 : index
    %5 = vector.load %arg4[%c0_5, %c0_6, %c0_7] : memref<1x1x8xf32, #tpu.memory_space<vmem>>, vector<1x1x8xf32>
    %6 = vector.shape_cast %5 : vector<1x1x8xf32> to vector<1x8xf32>
    %7 = vector.broadcast %6 : vector<1x8xf32> to vector<512x8xf32>
    %8 = arith.addf %4, %7 : vector<512x8xf32>
    %cst_8 = arith.constant 0.000000e+00 : f32
    %9 = vector.broadcast %cst_8 : f32 to vector<512x8xf32>
    %10 = arith.maximumf %8, %9 : vector<512x8xf32>
    %11 = arith.truncf %10 : vector<512x8xf32> to vector<512x8xbf16>
    %c0_9 = arith.constant 0 : index
    %c0_10 = arith.constant 0 : index
    %c0_11 = arith.constant 0 : index
    %12 = vector.load %arg5[%c0_9, %c0_10, %c0_11] : memref<1x512x8xbf16, #tpu.memory_space<vmem>>, vector<1x512x8xbf16>
    %13 = vector.shape_cast %12 : vector<1x512x8xbf16> to vector<512x8xbf16>
    %14 = vector.shape_cast %11 : vector<512x8xbf16> to vector<1x512x8xbf16>
    tpu.vector_store %arg5[%c0_9, %c0_10, %c0_11], %14 {strides = array<i32>} : memref<1x512x8xbf16, #tpu.memory_space<vmem>>, vector<1x512x8xbf16>,
    return
  }
  func.func @transform_0(%arg0: i32, %arg1: i32) -> (i32, i32, i32) {
    %c0_i32 = arith.constant 0 : i32
    %c0_i32_0 = arith.constant 0 : i32
    return %arg0, %arg1, %c0_i32 : i32, i32, i32
  }
  func.func @transform_1(%arg0: i32, %arg1: i32) -> (i32, i32, i32) {
    %c0_i32 = arith.constant 0 : i32
    %c0_i32_0 = arith.constant 0 : i32
    %c0_i32_1 = arith.constant 0 : i32
    return %arg0, %c0_i32, %c0_i32_0 : i32, i32, i32
  }
  func.func @transform_2(%arg0: i32, %arg1: i32) -> (i32, i32, i32) {
    %c0_i32 = arith.constant 0 : i32
    %c0_i32_0 = arith.constant 0 : i32
    %c0_i32_1 = arith.constant 0 : i32
    return %arg0, %c0_i32, %c0_i32_0 : i32, i32, i32
  }
  func.func @transform_3(%arg0: i32, %arg1: i32) -> (i32, i32, i32) {
    %c0_i32 = arith.constant 0 : i32
    %c0_i32_0 = arith.constant 0 : i32
    return %arg0, %arg1, %c0_i32 : i32, i32, i32
  }
}

module attributes {stable_mosaic.version = 11 : i64} {
  func.func @_grouped_gemm_kernel(%arg0: i32, %arg1: i32, %arg2: memref<1x128x72xbf16, #tpu.memory_space<vmem>>, %arg3: memref<1x72x8xbf16, #tpu.memory_space<vmem>>, %arg4: memref<1x1x8xf32, #tpu.memory_space<vmem>>, %arg5: memref<1x128x8xbf16, #tpu.memory_space<vmem>>) attributes {dimension_semantics = [#tpu.dimension_semantics<parallel>, #tpu.dimension_semantics<parallel>], iteration_bounds = array<i64: 8, 1>, scalar_prefetch = 0 : i64, scratch_operands = 0 : i64, tpu.core_type = #tpu.core_type<tc>, window_params = [{transform_indices = @transform_0, window_bounds = array<i64: 1, 128, 72>}, {transform_indices = @transform_1, window_bounds = array<i64: 1, 72, 8>}, {transform_indices = @transform_2, window_bounds = array<i64: 1, 1, 8>}, {transform_indices = @transform_3, window_bounds = array<i64: 1, 128, 8>}]} {
    %c0 = arith.constant 0 : index
    %c0_0 = arith.constant 0 : index
    %c0_1 = arith.constant 0 : index
    %0 = vector.load %arg2[%c0, %c0_0, %c0_1] : memref<1x128x72xbf16, #tpu.memory_space<vmem>>, vector<1x128x72xbf16>
    %1 = vector.shape_cast %0 : vector<1x128x72xbf16> to vector<128x72xbf16>
    %c0_2 = arith.constant 0 : index
    %c0_3 = arith.constant 0 : index
    %c0_4 = arith.constant 0 : index
    %2 = vector.load %arg3[%c0_2, %c0_3, %c0_4] : memref<1x72x8xbf16, #tpu.memory_space<vmem>>, vector<1x72x8xbf16>
    %3 = vector.shape_cast %2 : vector<1x72x8xbf16> to vector<72x8xbf16>
    %cst = arith.constant dense<0.000000e+00> : vector<128x8xf32>
    %4 = tpu.matmul %1, %3, %cst {dimension_numbers = #tpu.dot_dimension_numbers<[1], [0], [0], [1], [0, 0, 1, 1], [], []>} : vector<128x72xbf16>, vector<72x8xbf16>, vector<128x8xf32> -> vector<128x8xf32>
    %c0_5 = arith.constant 0 : index
    %c0_6 = arith.constant 0 : index
    %c0_7 = arith.constant 0 : index
    %5 = vector.load %arg4[%c0_5, %c0_6, %c0_7] : memref<1x1x8xf32, #tpu.memory_space<vmem>>, vector<1x1x8xf32>
    %6 = vector.shape_cast %5 : vector<1x1x8xf32> to vector<1x8xf32>
    %7 = vector.broadcast %6 : vector<1x8xf32> to vector<128x8xf32>
    %8 = arith.addf %4, %7 : vector<128x8xf32>
    %cst_8 = arith.constant 0.000000e+00 : f32
    %9 = vector.broadcast %cst_8 : f32 to vector<128x8xf32>
    %10 = arith.maximumf %8, %9 : vector<128x8xf32>
    %11 = arith.truncf %10 : vector<128x8xf32> to vector<128x8xbf16>
    %c0_9 = arith.constant 0 : index
    %c0_10 = arith.constant 0 : index
    %c0_11 = arith.constant 0 : index
    %12 = vector.load %arg5[%c0_9, %c0_10, %c0_11] : memref<1x128x8xbf16, #tpu.memory_space<vmem>>, vector<1x128x8xbf16>
    %13 = vector.shape_cast %12 : vector<1x128x8xbf16> to vector<128x8xbf16>
    %14 = vector.shape_cast %11 : vector<128x8xbf16> to vector<1x128x8xbf16>
    tpu.vector_store %arg5[%c0_9, %c0_10, %c0_11], %14 {strides = array<i32>} : memref<1x128x8xbf16, #tpu.memory_space<vmem>>, vector<1x128x8xbf16>,
    return
  }
  func.func @transform_0(%arg0: i32, %arg1: i32) -> (i32, i32, i32) {
    %c0_i32 = arith.constant 0 : i32
    %c0_i32_0 = arith.constant 0 : i32
    return %arg0, %arg1, %c0_i32 : i32, i32, i32
  }
  func.func @transform_1(%arg0: i32, %arg1: i32) -> (i32, i32, i32) {
    %c0_i32 = arith.constant 0 : i32
    %c0_i32_0 = arith.constant 0 : i32
    %c0_i32_1 = arith.constant 0 : i32
    return %arg0, %c0_i32, %c0_i32_0 : i32, i32, i32
  }
  func.func @transform_2(%arg0: i32, %arg1: i32) -> (i32, i32, i32) {
    %c0_i32 = arith.constant 0 : i32
    %c0_i32_0 = arith.constant 0 : i32
    %c0_i32_1 = arith.constant 0 : i32
    return %arg0, %c0_i32, %c0_i32_0 : i32, i32, i32
  }
  func.func @transform_3(%arg0: i32, %arg1: i32) -> (i32, i32, i32) {
    %c0_i32 = arith.constant 0 : i32
    %c0_i32_0 = arith.constant 0 : i32
    return %arg0, %arg1, %c0_i32 : i32, i32, i32
  }
}

module attributes {stable_mosaic.version = 11 : i64} {
  func.func @_grouped_gemm_kernel(%arg0: i32, %arg1: i32, %arg2: memref<1x128x8xbf16, #tpu.memory_space<vmem>>, %arg3: memref<1x8x16xbf16, #tpu.memory_space<vmem>>, %arg4: memref<1x1x16xf32, #tpu.memory_space<vmem>>, %arg5: memref<1x128x16xbf16, #tpu.memory_space<vmem>>) attributes {dimension_semantics = [#tpu.dimension_semantics<parallel>, #tpu.dimension_semantics<parallel>], iteration_bounds = array<i64: 8, 1>, scalar_prefetch = 0 : i64, scratch_operands = 0 : i64, tpu.core_type = #tpu.core_type<tc>, window_params = [{transform_indices = @transform_0, window_bounds = array<i64: 1, 128, 8>}, {transform_indices = @transform_1, window_bounds = array<i64: 1, 8, 16>}, {transform_indices = @transform_2, window_bounds = array<i64: 1, 1, 16>}, {transform_indices = @transform_3, window_bounds = array<i64: 1, 128, 16>}]} {
    %c0 = arith.constant 0 : index
    %c0_0 = arith.constant 0 : index
    %c0_1 = arith.constant 0 : index
    %0 = vector.load %arg2[%c0, %c0_0, %c0_1] : memref<1x128x8xbf16, #tpu.memory_space<vmem>>, vector<1x128x8xbf16>
    %1 = vector.shape_cast %0 : vector<1x128x8xbf16> to vector<128x8xbf16>
    %c0_2 = arith.constant 0 : index
    %c0_3 = arith.constant 0 : index
    %c0_4 = arith.constant 0 : index
    %2 = vector.load %arg3[%c0_2, %c0_3, %c0_4] : memref<1x8x16xbf16, #tpu.memory_space<vmem>>, vector<1x8x16xbf16>
    %3 = vector.shape_cast %2 : vector<1x8x16xbf16> to vector<8x16xbf16>
    %cst = arith.constant dense<0.000000e+00> : vector<128x16xf32>
    %4 = tpu.matmul %1, %3, %cst {dimension_numbers = #tpu.dot_dimension_numbers<[1], [0], [0], [1], [0, 0, 1, 1], [], []>} : vector<128x8xbf16>, vector<8x16xbf16>, vector<128x16xf32> -> vector<128x16xf32>
    %c0_5 = arith.constant 0 : index
    %c0_6 = arith.constant 0 : index
    %c0_7 = arith.constant 0 : index
    %5 = vector.load %arg4[%c0_5, %c0_6, %c0_7] : memref<1x1x16xf32, #tpu.memory_space<vmem>>, vector<1x1x16xf32>
    %6 = vector.shape_cast %5 : vector<1x1x16xf32> to vector<1x16xf32>
    %7 = vector.broadcast %6 : vector<1x16xf32> to vector<128x16xf32>
    %8 = arith.addf %4, %7 : vector<128x16xf32>
    %cst_8 = arith.constant 0.000000e+00 : f32
    %9 = vector.broadcast %cst_8 : f32 to vector<128x16xf32>
    %10 = arith.maximumf %8, %9 : vector<128x16xf32>
    %11 = arith.truncf %10 : vector<128x16xf32> to vector<128x16xbf16>
    %c0_9 = arith.constant 0 : index
    %c0_10 = arith.constant 0 : index
    %c0_11 = arith.constant 0 : index
    %12 = vector.load %arg5[%c0_9, %c0_10, %c0_11] : memref<1x128x16xbf16, #tpu.memory_space<vmem>>, vector<1x128x16xbf16>
    %13 = vector.shape_cast %12 : vector<1x128x16xbf16> to vector<128x16xbf16>
    %14 = vector.shape_cast %11 : vector<128x16xbf16> to vector<1x128x16xbf16>
    tpu.vector_store %arg5[%c0_9, %c0_10, %c0_11], %14 {strides = array<i32>} : memref<1x128x16xbf16, #tpu.memory_space<vmem>>, vector<1x128x16xbf16>,
    return
  }
  func.func @transform_0(%arg0: i32, %arg1: i32) -> (i32, i32, i32) {
    %c0_i32 = arith.constant 0 : i32
    %c0_i32_0 = arith.constant 0 : i32
    return %arg0, %arg1, %c0_i32 : i32, i32, i32
  }
  func.func @transform_1(%arg0: i32, %arg1: i32) -> (i32, i32, i32) {
    %c0_i32 = arith.constant 0 : i32
    %c0_i32_0 = arith.constant 0 : i32
    %c0_i32_1 = arith.constant 0 : i32
    return %arg0, %c0_i32, %c0_i32_0 : i32, i32, i32
  }
  func.func @transform_2(%arg0: i32, %arg1: i32) -> (i32, i32, i32) {
    %c0_i32 = arith.constant 0 : i32
    %c0_i32_0 = arith.constant 0 : i32
    %c0_i32_1 = arith.constant 0 : i32
    return %arg0, %c0_i32, %c0_i32_0 : i32, i32, i32
  }
  func.func @transform_3(%arg0: i32, %arg1: i32) -> (i32, i32, i32) {
    %c0_i32 = arith.constant 0 : i32
    %c0_i32_0 = arith.constant 0 : i32
    return %arg0, %arg1, %c0_i32 : i32, i32, i32
  }
}

module attributes {stable_mosaic.version = 11 : i64} {
  func.func @_grouped_gemm_kernel(%arg0: i32, %arg1: i32, %arg2: memref<1x128x72xbf16, #tpu.memory_space<vmem>>, %arg3: memref<1x72x8xbf16, #tpu.memory_space<vmem>>, %arg4: memref<1x1x8xf32, #tpu.memory_space<vmem>>, %arg5: memref<1x128x8xbf16, #tpu.memory_space<vmem>>) attributes {dimension_semantics = [#tpu.dimension_semantics<parallel>, #tpu.dimension_semantics<parallel>], iteration_bounds = array<i64: 16, 1>, scalar_prefetch = 0 : i64, scratch_operands = 0 : i64, tpu.core_type = #tpu.core_type<tc>, window_params = [{transform_indices = @transform_0, window_bounds = array<i64: 1, 128, 72>}, {transform_indices = @transform_1, window_bounds = array<i64: 1, 72, 8>}, {transform_indices = @transform_2, window_bounds = array<i64: 1, 1, 8>}, {transform_indices = @transform_3, window_bounds = array<i64: 1, 128, 8>}]} {
    %c0 = arith.constant 0 : index
    %c0_0 = arith.constant 0 : index
    %c0_1 = arith.constant 0 : index
    %0 = vector.load %arg2[%c0, %c0_0, %c0_1] : memref<1x128x72xbf16, #tpu.memory_space<vmem>>, vector<1x128x72xbf16>
    %1 = vector.shape_cast %0 : vector<1x128x72xbf16> to vector<128x72xbf16>
    %c0_2 = arith.constant 0 : index
    %c0_3 = arith.constant 0 : index
    %c0_4 = arith.constant 0 : index
    %2 = vector.load %arg3[%c0_2, %c0_3, %c0_4] : memref<1x72x8xbf16, #tpu.memory_space<vmem>>, vector<1x72x8xbf16>
    %3 = vector.shape_cast %2 : vector<1x72x8xbf16> to vector<72x8xbf16>
    %cst = arith.constant dense<0.000000e+00> : vector<128x8xf32>
    %4 = tpu.matmul %1, %3, %cst {dimension_numbers = #tpu.dot_dimension_numbers<[1], [0], [0], [1], [0, 0, 1, 1], [], []>} : vector<128x72xbf16>, vector<72x8xbf16>, vector<128x8xf32> -> vector<128x8xf32>
    %c0_5 = arith.constant 0 : index
    %c0_6 = arith.constant 0 : index
    %c0_7 = arith.constant 0 : index
    %5 = vector.load %arg4[%c0_5, %c0_6, %c0_7] : memref<1x1x8xf32, #tpu.memory_space<vmem>>, vector<1x1x8xf32>
    %6 = vector.shape_cast %5 : vector<1x1x8xf32> to vector<1x8xf32>
    %7 = vector.broadcast %6 : vector<1x8xf32> to vector<128x8xf32>
    %8 = arith.addf %4, %7 : vector<128x8xf32>
    %cst_8 = arith.constant 0.000000e+00 : f32
    %9 = vector.broadcast %cst_8 : f32 to vector<128x8xf32>
    %10 = arith.maximumf %8, %9 : vector<128x8xf32>
    %11 = arith.truncf %10 : vector<128x8xf32> to vector<128x8xbf16>
    %c0_9 = arith.constant 0 : index
    %c0_10 = arith.constant 0 : index
    %c0_11 = arith.constant 0 : index
    %12 = vector.load %arg5[%c0_9, %c0_10, %c0_11] : memref<1x128x8xbf16, #tpu.memory_space<vmem>>, vector<1x128x8xbf16>
    %13 = vector.shape_cast %12 : vector<1x128x8xbf16> to vector<128x8xbf16>
    %14 = vector.shape_cast %11 : vector<128x8xbf16> to vector<1x128x8xbf16>
    tpu.vector_store %arg5[%c0_9, %c0_10, %c0_11], %14 {strides = array<i32>} : memref<1x128x8xbf16, #tpu.memory_space<vmem>>, vector<1x128x8xbf16>,
    return
  }
  func.func @transform_0(%arg0: i32, %arg1: i32) -> (i32, i32, i32) {
    %c0_i32 = arith.constant 0 : i32
    %c0_i32_0 = arith.constant 0 : i32
    return %arg0, %arg1, %c0_i32 : i32, i32, i32
  }
  func.func @transform_1(%arg0: i32, %arg1: i32) -> (i32, i32, i32) {
    %c0_i32 = arith.constant 0 : i32
    %c0_i32_0 = arith.constant 0 : i32
    %c0_i32_1 = arith.constant 0 : i32
    return %arg0, %c0_i32, %c0_i32_0 : i32, i32, i32
  }
  func.func @transform_2(%arg0: i32, %arg1: i32) -> (i32, i32, i32) {
    %c0_i32 = arith.constant 0 : i32
    %c0_i32_0 = arith.constant 0 : i32
    %c0_i32_1 = arith.constant 0 : i32
    return %arg0, %c0_i32, %c0_i32_0 : i32, i32, i32
  }
  func.func @transform_3(%arg0: i32, %arg1: i32) -> (i32, i32, i32) {
    %c0_i32 = arith.constant 0 : i32
    %c0_i32_0 = arith.constant 0 : i32
    return %arg0, %arg1, %c0_i32 : i32, i32, i32
  }
}

module attributes {stable_mosaic.version = 11 : i64} {
  func.func @_grouped_gemm_kernel(%arg0: i32, %arg1: i32, %arg2: memref<1x128x16xbf16, #tpu.memory_space<vmem>>, %arg3: memref<1x16x16xbf16, #tpu.memory_space<vmem>>, %arg4: memref<1x1x16xf32, #tpu.memory_space<vmem>>, %arg5: memref<1x128x16xbf16, #tpu.memory_space<vmem>>) attributes {dimension_semantics = [#tpu.dimension_semantics<parallel>, #tpu.dimension_semantics<parallel>], iteration_bounds = array<i64: 8, 1>, scalar_prefetch = 0 : i64, scratch_operands = 0 : i64, tpu.core_type = #tpu.core_type<tc>, window_params = [{transform_indices = @transform_0, window_bounds = array<i64: 1, 128, 16>}, {transform_indices = @transform_1, window_bounds = array<i64: 1, 16, 16>}, {transform_indices = @transform_2, window_bounds = array<i64: 1, 1, 16>}, {transform_indices = @transform_3, window_bounds = array<i64: 1, 128, 16>}]} {
    %c0 = arith.constant 0 : index
    %c0_0 = arith.constant 0 : index
    %c0_1 = arith.constant 0 : index
    %0 = vector.load %arg2[%c0, %c0_0, %c0_1] : memref<1x128x16xbf16, #tpu.memory_space<vmem>>, vector<1x128x16xbf16>
    %1 = vector.shape_cast %0 : vector<1x128x16xbf16> to vector<128x16xbf16>
    %c0_2 = arith.constant 0 : index
    %c0_3 = arith.constant 0 : index
    %c0_4 = arith.constant 0 : index
    %2 = vector.load %arg3[%c0_2, %c0_3, %c0_4] : memref<1x16x16xbf16, #tpu.memory_space<vmem>>, vector<1x16x16xbf16>
    %3 = vector.shape_cast %2 : vector<1x16x16xbf16> to vector<16x16xbf16>
    %cst = arith.constant dense<0.000000e+00> : vector<128x16xf32>
    %4 = tpu.matmul %1, %3, %cst {dimension_numbers = #tpu.dot_dimension_numbers<[1], [0], [0], [1], [0, 0, 1, 1], [], []>} : vector<128x16xbf16>, vector<16x16xbf16>, vector<128x16xf32> -> vector<128x16xf32>
    %c0_5 = arith.constant 0 : index
    %c0_6 = arith.constant 0 : index
    %c0_7 = arith.constant 0 : index
    %5 = vector.load %arg4[%c0_5, %c0_6, %c0_7] : memref<1x1x16xf32, #tpu.memory_space<vmem>>, vector<1x1x16xf32>
    %6 = vector.shape_cast %5 : vector<1x1x16xf32> to vector<1x16xf32>
    %7 = vector.broadcast %6 : vector<1x16xf32> to vector<128x16xf32>
    %8 = arith.addf %4, %7 : vector<128x16xf32>
    %cst_8 = arith.constant 0.000000e+00 : f32
    %9 = vector.broadcast %cst_8 : f32 to vector<128x16xf32>
    %10 = arith.maximumf %8, %9 : vector<128x16xf32>
    %11 = arith.truncf %10 : vector<128x16xf32> to vector<128x16xbf16>
    %c0_9 = arith.constant 0 : index
    %c0_10 = arith.constant 0 : index
    %c0_11 = arith.constant 0 : index
    %12 = vector.load %arg5[%c0_9, %c0_10, %c0_11] : memref<1x128x16xbf16, #tpu.memory_space<vmem>>, vector<1x128x16xbf16>
    %13 = vector.shape_cast %12 : vector<1x128x16xbf16> to vector<128x16xbf16>
    %14 = vector.shape_cast %11 : vector<128x16xbf16> to vector<1x128x16xbf16>
    tpu.vector_store %arg5[%c0_9, %c0_10, %c0_11], %14 {strides = array<i32>} : memref<1x128x16xbf16, #tpu.memory_space<vmem>>, vector<1x128x16xbf16>,
    return
  }
  func.func @transform_0(%arg0: i32, %arg1: i32) -> (i32, i32, i32) {
    %c0_i32 = arith.constant 0 : i32
    %c0_i32_0 = arith.constant 0 : i32
    return %arg0, %arg1, %c0_i32 : i32, i32, i32
  }
  func.func @transform_1(%arg0: i32, %arg1: i32) -> (i32, i32, i32) {
    %c0_i32 = arith.constant 0 : i32
    %c0_i32_0 = arith.constant 0 : i32
    %c0_i32_1 = arith.constant 0 : i32
    return %arg0, %c0_i32, %c0_i32_0 : i32, i32, i32
  }
  func.func @transform_2(%arg0: i32, %arg1: i32) -> (i32, i32, i32) {
    %c0_i32 = arith.constant 0 : i32
    %c0_i32_0 = arith.constant 0 : i32
    %c0_i32_1 = arith.constant 0 : i32
    return %arg0, %c0_i32, %c0_i32_0 : i32, i32, i32
  }
  func.func @transform_3(%arg0: i32, %arg1: i32) -> (i32, i32, i32) {
    %c0_i32 = arith.constant 0 : i32
    %c0_i32_0 = arith.constant 0 : i32
    return %arg0, %arg1, %c0_i32 : i32, i32, i32
  }
}

module attributes {stable_mosaic.version = 11 : i64} {
  func.func @_grouped_gemm_kernel(%arg0: i32, %arg1: i32, %arg2: memref<1x32x144xbf16, #tpu.memory_space<vmem>>, %arg3: memref<1x144x16xbf16, #tpu.memory_space<vmem>>, %arg4: memref<1x1x16xf32, #tpu.memory_space<vmem>>, %arg5: memref<1x32x16xbf16, #tpu.memory_space<vmem>>) attributes {dimension_semantics = [#tpu.dimension_semantics<parallel>, #tpu.dimension_semantics<parallel>], iteration_bounds = array<i64: 8, 1>, scalar_prefetch = 0 : i64, scratch_operands = 0 : i64, tpu.core_type = #tpu.core_type<tc>, window_params = [{transform_indices = @transform_0, window_bounds = array<i64: 1, 32, 144>}, {transform_indices = @transform_1, window_bounds = array<i64: 1, 144, 16>}, {transform_indices = @transform_2, window_bounds = array<i64: 1, 1, 16>}, {transform_indices = @transform_3, window_bounds = array<i64: 1, 32, 16>}]} {
    %c0 = arith.constant 0 : index
    %c0_0 = arith.constant 0 : index
    %c0_1 = arith.constant 0 : index
    %0 = vector.load %arg2[%c0, %c0_0, %c0_1] : memref<1x32x144xbf16, #tpu.memory_space<vmem>>, vector<1x32x144xbf16>
    %1 = vector.shape_cast %0 : vector<1x32x144xbf16> to vector<32x144xbf16>
    %c0_2 = arith.constant 0 : index
    %c0_3 = arith.constant 0 : index
    %c0_4 = arith.constant 0 : index
    %2 = vector.load %arg3[%c0_2, %c0_3, %c0_4] : memref<1x144x16xbf16, #tpu.memory_space<vmem>>, vector<1x144x16xbf16>
    %3 = vector.shape_cast %2 : vector<1x144x16xbf16> to vector<144x16xbf16>
    %cst = arith.constant dense<0.000000e+00> : vector<32x16xf32>
    %4 = tpu.matmul %1, %3, %cst {dimension_numbers = #tpu.dot_dimension_numbers<[1], [0], [0], [1], [0, 0, 1, 1], [], []>} : vector<32x144xbf16>, vector<144x16xbf16>, vector<32x16xf32> -> vector<32x16xf32>
    %c0_5 = arith.constant 0 : index
    %c0_6 = arith.constant 0 : index
    %c0_7 = arith.constant 0 : index
    %5 = vector.load %arg4[%c0_5, %c0_6, %c0_7] : memref<1x1x16xf32, #tpu.memory_space<vmem>>, vector<1x1x16xf32>
    %6 = vector.shape_cast %5 : vector<1x1x16xf32> to vector<1x16xf32>
    %7 = vector.broadcast %6 : vector<1x16xf32> to vector<32x16xf32>
    %8 = arith.addf %4, %7 : vector<32x16xf32>
    %cst_8 = arith.constant 0.000000e+00 : f32
    %9 = vector.broadcast %cst_8 : f32 to vector<32x16xf32>
    %10 = arith.maximumf %8, %9 : vector<32x16xf32>
    %11 = arith.truncf %10 : vector<32x16xf32> to vector<32x16xbf16>
    %c0_9 = arith.constant 0 : index
    %c0_10 = arith.constant 0 : index
    %c0_11 = arith.constant 0 : index
    %12 = vector.load %arg5[%c0_9, %c0_10, %c0_11] : memref<1x32x16xbf16, #tpu.memory_space<vmem>>, vector<1x32x16xbf16>
    %13 = vector.shape_cast %12 : vector<1x32x16xbf16> to vector<32x16xbf16>
    %14 = vector.shape_cast %11 : vector<32x16xbf16> to vector<1x32x16xbf16>
    tpu.vector_store %arg5[%c0_9, %c0_10, %c0_11], %14 {strides = array<i32>} : memref<1x32x16xbf16, #tpu.memory_space<vmem>>, vector<1x32x16xbf16>,
    return
  }
  func.func @transform_0(%arg0: i32, %arg1: i32) -> (i32, i32, i32) {
    %c0_i32 = arith.constant 0 : i32
    %c0_i32_0 = arith.constant 0 : i32
    return %arg0, %arg1, %c0_i32 : i32, i32, i32
  }
  func.func @transform_1(%arg0: i32, %arg1: i32) -> (i32, i32, i32) {
    %c0_i32 = arith.constant 0 : i32
    %c0_i32_0 = arith.constant 0 : i32
    %c0_i32_1 = arith.constant 0 : i32
    return %arg0, %c0_i32, %c0_i32_0 : i32, i32, i32
  }
  func.func @transform_2(%arg0: i32, %arg1: i32) -> (i32, i32, i32) {
    %c0_i32 = arith.constant 0 : i32
    %c0_i32_0 = arith.constant 0 : i32
    %c0_i32_1 = arith.constant 0 : i32
    return %arg0, %c0_i32, %c0_i32_0 : i32, i32, i32
  }
  func.func @transform_3(%arg0: i32, %arg1: i32) -> (i32, i32, i32) {
    %c0_i32 = arith.constant 0 : i32
    %c0_i32_0 = arith.constant 0 : i32
    return %arg0, %arg1, %c0_i32 : i32, i32, i32
  }
}

module attributes {stable_mosaic.version = 11 : i64} {
  func.func @_grouped_gemm_kernel(%arg0: i32, %arg1: i32, %arg2: memref<1x32x8xbf16, #tpu.memory_space<vmem>>, %arg3: memref<1x8x16xbf16, #tpu.memory_space<vmem>>, %arg4: memref<1x1x16xf32, #tpu.memory_space<vmem>>, %arg5: memref<1x32x16xbf16, #tpu.memory_space<vmem>>) attributes {dimension_semantics = [#tpu.dimension_semantics<parallel>, #tpu.dimension_semantics<parallel>], iteration_bounds = array<i64: 16, 1>, scalar_prefetch = 0 : i64, scratch_operands = 0 : i64, tpu.core_type = #tpu.core_type<tc>, window_params = [{transform_indices = @transform_0, window_bounds = array<i64: 1, 32, 8>}, {transform_indices = @transform_1, window_bounds = array<i64: 1, 8, 16>}, {transform_indices = @transform_2, window_bounds = array<i64: 1, 1, 16>}, {transform_indices = @transform_3, window_bounds = array<i64: 1, 32, 16>}]} {
    %c0 = arith.constant 0 : index
    %c0_0 = arith.constant 0 : index
    %c0_1 = arith.constant 0 : index
    %0 = vector.load %arg2[%c0, %c0_0, %c0_1] : memref<1x32x8xbf16, #tpu.memory_space<vmem>>, vector<1x32x8xbf16>
    %1 = vector.shape_cast %0 : vector<1x32x8xbf16> to vector<32x8xbf16>
    %c0_2 = arith.constant 0 : index
    %c0_3 = arith.constant 0 : index
    %c0_4 = arith.constant 0 : index
    %2 = vector.load %arg3[%c0_2, %c0_3, %c0_4] : memref<1x8x16xbf16, #tpu.memory_space<vmem>>, vector<1x8x16xbf16>
    %3 = vector.shape_cast %2 : vector<1x8x16xbf16> to vector<8x16xbf16>
    %cst = arith.constant dense<0.000000e+00> : vector<32x16xf32>
    %4 = tpu.matmul %1, %3, %cst {dimension_numbers = #tpu.dot_dimension_numbers<[1], [0], [0], [1], [0, 0, 1, 1], [], []>} : vector<32x8xbf16>, vector<8x16xbf16>, vector<32x16xf32> -> vector<32x16xf32>
    %c0_5 = arith.constant 0 : index
    %c0_6 = arith.constant 0 : index
    %c0_7 = arith.constant 0 : index
    %5 = vector.load %arg4[%c0_5, %c0_6, %c0_7] : memref<1x1x16xf32, #tpu.memory_space<vmem>>, vector<1x1x16xf32>
    %6 = vector.shape_cast %5 : vector<1x1x16xf32> to vector<1x16xf32>
    %7 = vector.broadcast %6 : vector<1x16xf32> to vector<32x16xf32>
    %8 = arith.addf %4, %7 : vector<32x16xf32>
    %cst_8 = arith.constant 0.000000e+00 : f32
    %9 = vector.broadcast %cst_8 : f32 to vector<32x16xf32>
    %10 = arith.maximumf %8, %9 : vector<32x16xf32>
    %11 = arith.truncf %10 : vector<32x16xf32> to vector<32x16xbf16>
    %c0_9 = arith.constant 0 : index
    %c0_10 = arith.constant 0 : index
    %c0_11 = arith.constant 0 : index
    %12 = vector.load %arg5[%c0_9, %c0_10, %c0_11] : memref<1x32x16xbf16, #tpu.memory_space<vmem>>, vector<1x32x16xbf16>
    %13 = vector.shape_cast %12 : vector<1x32x16xbf16> to vector<32x16xbf16>
    %14 = vector.shape_cast %11 : vector<32x16xbf16> to vector<1x32x16xbf16>
    tpu.vector_store %arg5[%c0_9, %c0_10, %c0_11], %14 {strides = array<i32>} : memref<1x32x16xbf16, #tpu.memory_space<vmem>>, vector<1x32x16xbf16>,
    return
  }
  func.func @transform_0(%arg0: i32, %arg1: i32) -> (i32, i32, i32) {
    %c0_i32 = arith.constant 0 : i32
    %c0_i32_0 = arith.constant 0 : i32
    return %arg0, %arg1, %c0_i32 : i32, i32, i32
  }
  func.func @transform_1(%arg0: i32, %arg1: i32) -> (i32, i32, i32) {
    %c0_i32 = arith.constant 0 : i32
    %c0_i32_0 = arith.constant 0 : i32
    %c0_i32_1 = arith.constant 0 : i32
    return %arg0, %c0_i32, %c0_i32_0 : i32, i32, i32
  }
  func.func @transform_2(%arg0: i32, %arg1: i32) -> (i32, i32, i32) {
    %c0_i32 = arith.constant 0 : i32
    %c0_i32_0 = arith.constant 0 : i32
    %c0_i32_1 = arith.constant 0 : i32
    return %arg0, %c0_i32, %c0_i32_0 : i32, i32, i32
  }
  func.func @transform_3(%arg0: i32, %arg1: i32) -> (i32, i32, i32) {
    %c0_i32 = arith.constant 0 : i32
    %c0_i32_0 = arith.constant 0 : i32
    return %arg0, %arg1, %c0_i32 : i32, i32, i32
  }
}

module attributes {stable_mosaic.version = 11 : i64} {
  func.func @_grouped_gemm_kernel(%arg0: i32, %arg1: i32, %arg2: memref<1x32x144xbf16, #tpu.memory_space<vmem>>, %arg3: memref<1x144x16xbf16, #tpu.memory_space<vmem>>, %arg4: memref<1x1x16xf32, #tpu.memory_space<vmem>>, %arg5: memref<1x32x16xbf16, #tpu.memory_space<vmem>>) attributes {dimension_semantics = [#tpu.dimension_semantics<parallel>, #tpu.dimension_semantics<parallel>], iteration_bounds = array<i64: 16, 1>, scalar_prefetch = 0 : i64, scratch_operands = 0 : i64, tpu.core_type = #tpu.core_type<tc>, window_params = [{transform_indices = @transform_0, window_bounds = array<i64: 1, 32, 144>}, {transform_indices = @transform_1, window_bounds = array<i64: 1, 144, 16>}, {transform_indices = @transform_2, window_bounds = array<i64: 1, 1, 16>}, {transform_indices = @transform_3, window_bounds = array<i64: 1, 32, 16>}]} {
    %c0 = arith.constant 0 : index
    %c0_0 = arith.constant 0 : index
    %c0_1 = arith.constant 0 : index
    %0 = vector.load %arg2[%c0, %c0_0, %c0_1] : memref<1x32x144xbf16, #tpu.memory_space<vmem>>, vector<1x32x144xbf16>
    %1 = vector.shape_cast %0 : vector<1x32x144xbf16> to vector<32x144xbf16>
    %c0_2 = arith.constant 0 : index
    %c0_3 = arith.constant 0 : index
    %c0_4 = arith.constant 0 : index
    %2 = vector.load %arg3[%c0_2, %c0_3, %c0_4] : memref<1x144x16xbf16, #tpu.memory_space<vmem>>, vector<1x144x16xbf16>
    %3 = vector.shape_cast %2 : vector<1x144x16xbf16> to vector<144x16xbf16>
    %cst = arith.constant dense<0.000000e+00> : vector<32x16xf32>
    %4 = tpu.matmul %1, %3, %cst {dimension_numbers = #tpu.dot_dimension_numbers<[1], [0], [0], [1], [0, 0, 1, 1], [], []>} : vector<32x144xbf16>, vector<144x16xbf16>, vector<32x16xf32> -> vector<32x16xf32>
    %c0_5 = arith.constant 0 : index
    %c0_6 = arith.constant 0 : index
    %c0_7 = arith.constant 0 : index
    %5 = vector.load %arg4[%c0_5, %c0_6, %c0_7] : memref<1x1x16xf32, #tpu.memory_space<vmem>>, vector<1x1x16xf32>
    %6 = vector.shape_cast %5 : vector<1x1x16xf32> to vector<1x16xf32>
    %7 = vector.broadcast %6 : vector<1x16xf32> to vector<32x16xf32>
    %8 = arith.addf %4, %7 : vector<32x16xf32>
    %cst_8 = arith.constant 0.000000e+00 : f32
    %9 = vector.broadcast %cst_8 : f32 to vector<32x16xf32>
    %10 = arith.maximumf %8, %9 : vector<32x16xf32>
    %11 = arith.truncf %10 : vector<32x16xf32> to vector<32x16xbf16>
    %c0_9 = arith.constant 0 : index
    %c0_10 = arith.constant 0 : index
    %c0_11 = arith.constant 0 : index
    %12 = vector.load %arg5[%c0_9, %c0_10, %c0_11] : memref<1x32x16xbf16, #tpu.memory_space<vmem>>, vector<1x32x16xbf16>
    %13 = vector.shape_cast %12 : vector<1x32x16xbf16> to vector<32x16xbf16>
    %14 = vector.shape_cast %11 : vector<32x16xbf16> to vector<1x32x16xbf16>
    tpu.vector_store %arg5[%c0_9, %c0_10, %c0_11], %14 {strides = array<i32>} : memref<1x32x16xbf16, #tpu.memory_space<vmem>>, vector<1x32x16xbf16>,
    return
  }
  func.func @transform_0(%arg0: i32, %arg1: i32) -> (i32, i32, i32) {
    %c0_i32 = arith.constant 0 : i32
    %c0_i32_0 = arith.constant 0 : i32
    return %arg0, %arg1, %c0_i32 : i32, i32, i32
  }
  func.func @transform_1(%arg0: i32, %arg1: i32) -> (i32, i32, i32) {
    %c0_i32 = arith.constant 0 : i32
    %c0_i32_0 = arith.constant 0 : i32
    %c0_i32_1 = arith.constant 0 : i32
    return %arg0, %c0_i32, %c0_i32_0 : i32, i32, i32
  }
  func.func @transform_2(%arg0: i32, %arg1: i32) -> (i32, i32, i32) {
    %c0_i32 = arith.constant 0 : i32
    %c0_i32_0 = arith.constant 0 : i32
    %c0_i32_1 = arith.constant 0 : i32
    return %arg0, %c0_i32, %c0_i32_0 : i32, i32, i32
  }
  func.func @transform_3(%arg0: i32, %arg1: i32) -> (i32, i32, i32) {
    %c0_i32 = arith.constant 0 : i32
    %c0_i32_0 = arith.constant 0 : i32
    return %arg0, %arg1, %c0_i32 : i32, i32, i32
  }
}

module attributes {stable_mosaic.version = 11 : i64} {
  func.func @_grouped_gemm_kernel(%arg0: i32, %arg1: i32, %arg2: memref<1x32x16xbf16, #tpu.memory_space<vmem>>, %arg3: memref<1x16x16xbf16, #tpu.memory_space<vmem>>, %arg4: memref<1x1x16xf32, #tpu.memory_space<vmem>>, %arg5: memref<1x32x16xbf16, #tpu.memory_space<vmem>>) attributes {dimension_semantics = [#tpu.dimension_semantics<parallel>, #tpu.dimension_semantics<parallel>], iteration_bounds = array<i64: 16, 1>, scalar_prefetch = 0 : i64, scratch_operands = 0 : i64, tpu.core_type = #tpu.core_type<tc>, window_params = [{transform_indices = @transform_0, window_bounds = array<i64: 1, 32, 16>}, {transform_indices = @transform_1, window_bounds = array<i64: 1, 16, 16>}, {transform_indices = @transform_2, window_bounds = array<i64: 1, 1, 16>}, {transform_indices = @transform_3, window_bounds = array<i64: 1, 32, 16>}]} {
    %c0 = arith.constant 0 : index
    %c0_0 = arith.constant 0 : index
    %c0_1 = arith.constant 0 : index
    %0 = vector.load %arg2[%c0, %c0_0, %c0_1] : memref<1x32x16xbf16, #tpu.memory_space<vmem>>, vector<1x32x16xbf16>
    %1 = vector.shape_cast %0 : vector<1x32x16xbf16> to vector<32x16xbf16>
    %c0_2 = arith.constant 0 : index
    %c0_3 = arith.constant 0 : index
    %c0_4 = arith.constant 0 : index
    %2 = vector.load %arg3[%c0_2, %c0_3, %c0_4] : memref<1x16x16xbf16, #tpu.memory_space<vmem>>, vector<1x16x16xbf16>
    %3 = vector.shape_cast %2 : vector<1x16x16xbf16> to vector<16x16xbf16>
    %cst = arith.constant dense<0.000000e+00> : vector<32x16xf32>
    %4 = tpu.matmul %1, %3, %cst {dimension_numbers = #tpu.dot_dimension_numbers<[1], [0], [0], [1], [0, 0, 1, 1], [], []>} : vector<32x16xbf16>, vector<16x16xbf16>, vector<32x16xf32> -> vector<32x16xf32>
    %c0_5 = arith.constant 0 : index
    %c0_6 = arith.constant 0 : index
    %c0_7 = arith.constant 0 : index
    %5 = vector.load %arg4[%c0_5, %c0_6, %c0_7] : memref<1x1x16xf32, #tpu.memory_space<vmem>>, vector<1x1x16xf32>
    %6 = vector.shape_cast %5 : vector<1x1x16xf32> to vector<1x16xf32>
    %7 = vector.broadcast %6 : vector<1x16xf32> to vector<32x16xf32>
    %8 = arith.addf %4, %7 : vector<32x16xf32>
    %cst_8 = arith.constant 0.000000e+00 : f32
    %9 = vector.broadcast %cst_8 : f32 to vector<32x16xf32>
    %10 = arith.maximumf %8, %9 : vector<32x16xf32>
    %11 = arith.truncf %10 : vector<32x16xf32> to vector<32x16xbf16>
    %c0_9 = arith.constant 0 : index
    %c0_10 = arith.constant 0 : index
    %c0_11 = arith.constant 0 : index
    %12 = vector.load %arg5[%c0_9, %c0_10, %c0_11] : memref<1x32x16xbf16, #tpu.memory_space<vmem>>, vector<1x32x16xbf16>
    %13 = vector.shape_cast %12 : vector<1x32x16xbf16> to vector<32x16xbf16>
    %14 = vector.shape_cast %11 : vector<32x16xbf16> to vector<1x32x16xbf16>
    tpu.vector_store %arg5[%c0_9, %c0_10, %c0_11], %14 {strides = array<i32>} : memref<1x32x16xbf16, #tpu.memory_space<vmem>>, vector<1x32x16xbf16>,
    return
  }
  func.func @transform_0(%arg0: i32, %arg1: i32) -> (i32, i32, i32) {
    %c0_i32 = arith.constant 0 : i32
    %c0_i32_0 = arith.constant 0 : i32
    return %arg0, %arg1, %c0_i32 : i32, i32, i32
  }
  func.func @transform_1(%arg0: i32, %arg1: i32) -> (i32, i32, i32) {
    %c0_i32 = arith.constant 0 : i32
    %c0_i32_0 = arith.constant 0 : i32
    %c0_i32_1 = arith.constant 0 : i32
    return %arg0, %c0_i32, %c0_i32_0 : i32, i32, i32
  }
  func.func @transform_2(%arg0: i32, %arg1: i32) -> (i32, i32, i32) {
    %c0_i32 = arith.constant 0 : i32
    %c0_i32_0 = arith.constant 0 : i32
    %c0_i32_1 = arith.constant 0 : i32
    return %arg0, %c0_i32, %c0_i32_0 : i32, i32, i32
  }
  func.func @transform_3(%arg0: i32, %arg1: i32) -> (i32, i32, i32) {
    %c0_i32 = arith.constant 0 : i32
    %c0_i32_0 = arith.constant 0 : i32
    return %arg0, %arg1, %c0_i32 : i32, i32, i32
  }
}

module attributes {stable_mosaic.version = 11 : i64} {
  func.func @_grouped_gemm_kernel(%arg0: i32, %arg1: i32, %arg2: memref<1x16x144xbf16, #tpu.memory_space<vmem>>, %arg3: memref<1x144x16xbf16, #tpu.memory_space<vmem>>, %arg4: memref<1x1x16xf32, #tpu.memory_space<vmem>>, %arg5: memref<1x16x16xbf16, #tpu.memory_space<vmem>>) attributes {dimension_semantics = [#tpu.dimension_semantics<parallel>, #tpu.dimension_semantics<parallel>], iteration_bounds = array<i64: 16, 1>, scalar_prefetch = 0 : i64, scratch_operands = 0 : i64, tpu.core_type = #tpu.core_type<tc>, window_params = [{transform_indices = @transform_0, window_bounds = array<i64: 1, 16, 144>}, {transform_indices = @transform_1, window_bounds = array<i64: 1, 144, 16>}, {transform_indices = @transform_2, window_bounds = array<i64: 1, 1, 16>}, {transform_indices = @transform_3, window_bounds = array<i64: 1, 16, 16>}]} {
    %c0 = arith.constant 0 : index
    %c0_0 = arith.constant 0 : index
    %c0_1 = arith.constant 0 : index
    %0 = vector.load %arg2[%c0, %c0_0, %c0_1] : memref<1x16x144xbf16, #tpu.memory_space<vmem>>, vector<1x16x144xbf16>
    %1 = vector.shape_cast %0 : vector<1x16x144xbf16> to vector<16x144xbf16>
    %c0_2 = arith.constant 0 : index
    %c0_3 = arith.constant 0 : index
    %c0_4 = arith.constant 0 : index
    %2 = vector.load %arg3[%c0_2, %c0_3, %c0_4] : memref<1x144x16xbf16, #tpu.memory_space<vmem>>, vector<1x144x16xbf16>
    %3 = vector.shape_cast %2 : vector<1x144x16xbf16> to vector<144x16xbf16>
    %cst = arith.constant dense<0.000000e+00> : vector<16x16xf32>
    %4 = tpu.matmul %1, %3, %cst {dimension_numbers = #tpu.dot_dimension_numbers<[1], [0], [0], [1], [0, 0, 1, 1], [], []>} : vector<16x144xbf16>, vector<144x16xbf16>, vector<16x16xf32> -> vector<16x16xf32>
    %c0_5 = arith.constant 0 : index
    %c0_6 = arith.constant 0 : index
    %c0_7 = arith.constant 0 : index
    %5 = vector.load %arg4[%c0_5, %c0_6, %c0_7] : memref<1x1x16xf32, #tpu.memory_space<vmem>>, vector<1x1x16xf32>
    %6 = vector.shape_cast %5 : vector<1x1x16xf32> to vector<1x16xf32>
    %7 = vector.broadcast %6 : vector<1x16xf32> to vector<16x16xf32>
    %8 = arith.addf %4, %7 : vector<16x16xf32>
    %cst_8 = arith.constant 0.000000e+00 : f32
    %9 = vector.broadcast %cst_8 : f32 to vector<16x16xf32>
    %10 = arith.maximumf %8, %9 : vector<16x16xf32>
    %11 = arith.truncf %10 : vector<16x16xf32> to vector<16x16xbf16>
    %c0_9 = arith.constant 0 : index
    %c0_10 = arith.constant 0 : index
    %c0_11 = arith.constant 0 : index
    %12 = vector.load %arg5[%c0_9, %c0_10, %c0_11] : memref<1x16x16xbf16, #tpu.memory_space<vmem>>, vector<1x16x16xbf16>
    %13 = vector.shape_cast %12 : vector<1x16x16xbf16> to vector<16x16xbf16>
    %14 = vector.shape_cast %11 : vector<16x16xbf16> to vector<1x16x16xbf16>
    tpu.vector_store %arg5[%c0_9, %c0_10, %c0_11], %14 {strides = array<i32>} : memref<1x16x16xbf16, #tpu.memory_space<vmem>>, vector<1x16x16xbf16>,
    return
  }
  func.func @transform_0(%arg0: i32, %arg1: i32) -> (i32, i32, i32) {
    %c0_i32 = arith.constant 0 : i32
    %c0_i32_0 = arith.constant 0 : i32
    return %arg0, %arg1, %c0_i32 : i32, i32, i32
  }
  func.func @transform_1(%arg0: i32, %arg1: i32) -> (i32, i32, i32) {
    %c0_i32 = arith.constant 0 : i32
    %c0_i32_0 = arith.constant 0 : i32
    %c0_i32_1 = arith.constant 0 : i32
    return %arg0, %c0_i32, %c0_i32_0 : i32, i32, i32
  }
  func.func @transform_2(%arg0: i32, %arg1: i32) -> (i32, i32, i32) {
    %c0_i32 = arith.constant 0 : i32
    %c0_i32_0 = arith.constant 0 : i32
    %c0_i32_1 = arith.constant 0 : i32
    return %arg0, %c0_i32, %c0_i32_0 : i32, i32, i32
  }
  func.func @transform_3(%arg0: i32, %arg1: i32) -> (i32, i32, i32) {
    %c0_i32 = arith.constant 0 : i32
    %c0_i32_0 = arith.constant 0 : i32
    return %arg0, %arg1, %c0_i32 : i32, i32, i32
  }
}

module attributes {stable_mosaic.version = 11 : i64} {
  func.func @_grouped_gemm_kernel(%arg0: i32, %arg1: i32, %arg2: memref<1x16x16xbf16, #tpu.memory_space<vmem>>, %arg3: memref<1x16x32xbf16, #tpu.memory_space<vmem>>, %arg4: memref<1x1x32xf32, #tpu.memory_space<vmem>>, %arg5: memref<1x16x32xbf16, #tpu.memory_space<vmem>>) attributes {dimension_semantics = [#tpu.dimension_semantics<parallel>, #tpu.dimension_semantics<parallel>], iteration_bounds = array<i64: 16, 1>, scalar_prefetch = 0 : i64, scratch_operands = 0 : i64, tpu.core_type = #tpu.core_type<tc>, window_params = [{transform_indices = @transform_0, window_bounds = array<i64: 1, 16, 16>}, {transform_indices = @transform_1, window_bounds = array<i64: 1, 16, 32>}, {transform_indices = @transform_2, window_bounds = array<i64: 1, 1, 32>}, {transform_indices = @transform_3, window_bounds = array<i64: 1, 16, 32>}]} {
    %c0 = arith.constant 0 : index
    %c0_0 = arith.constant 0 : index
    %c0_1 = arith.constant 0 : index
    %0 = vector.load %arg2[%c0, %c0_0, %c0_1] : memref<1x16x16xbf16, #tpu.memory_space<vmem>>, vector<1x16x16xbf16>
    %1 = vector.shape_cast %0 : vector<1x16x16xbf16> to vector<16x16xbf16>
    %c0_2 = arith.constant 0 : index
    %c0_3 = arith.constant 0 : index
    %c0_4 = arith.constant 0 : index
    %2 = vector.load %arg3[%c0_2, %c0_3, %c0_4] : memref<1x16x32xbf16, #tpu.memory_space<vmem>>, vector<1x16x32xbf16>
    %3 = vector.shape_cast %2 : vector<1x16x32xbf16> to vector<16x32xbf16>
    %cst = arith.constant dense<0.000000e+00> : vector<16x32xf32>
    %4 = tpu.matmul %1, %3, %cst {dimension_numbers = #tpu.dot_dimension_numbers<[1], [0], [0], [1], [0, 0, 1, 1], [], []>} : vector<16x16xbf16>, vector<16x32xbf16>, vector<16x32xf32> -> vector<16x32xf32>
    %c0_5 = arith.constant 0 : index
    %c0_6 = arith.constant 0 : index
    %c0_7 = arith.constant 0 : index
    %5 = vector.load %arg4[%c0_5, %c0_6, %c0_7] : memref<1x1x32xf32, #tpu.memory_space<vmem>>, vector<1x1x32xf32>
    %6 = vector.shape_cast %5 : vector<1x1x32xf32> to vector<1x32xf32>
    %7 = vector.broadcast %6 : vector<1x32xf32> to vector<16x32xf32>
    %8 = arith.addf %4, %7 : vector<16x32xf32>
    %cst_8 = arith.constant 0.000000e+00 : f32
    %9 = vector.broadcast %cst_8 : f32 to vector<16x32xf32>
    %10 = arith.maximumf %8, %9 : vector<16x32xf32>
    %11 = arith.truncf %10 : vector<16x32xf32> to vector<16x32xbf16>
    %c0_9 = arith.constant 0 : index
    %c0_10 = arith.constant 0 : index
    %c0_11 = arith.constant 0 : index
    %12 = vector.load %arg5[%c0_9, %c0_10, %c0_11] : memref<1x16x32xbf16, #tpu.memory_space<vmem>>, vector<1x16x32xbf16>
    %13 = vector.shape_cast %12 : vector<1x16x32xbf16> to vector<16x32xbf16>
    %14 = vector.shape_cast %11 : vector<16x32xbf16> to vector<1x16x32xbf16>
    tpu.vector_store %arg5[%c0_9, %c0_10, %c0_11], %14 {strides = array<i32>} : memref<1x16x32xbf16, #tpu.memory_space<vmem>>, vector<1x16x32xbf16>,
    return
  }
  func.func @transform_0(%arg0: i32, %arg1: i32) -> (i32, i32, i32) {
    %c0_i32 = arith.constant 0 : i32
    %c0_i32_0 = arith.constant 0 : i32
    return %arg0, %arg1, %c0_i32 : i32, i32, i32
  }
  func.func @transform_1(%arg0: i32, %arg1: i32) -> (i32, i32, i32) {
    %c0_i32 = arith.constant 0 : i32
    %c0_i32_0 = arith.constant 0 : i32
    %c0_i32_1 = arith.constant 0 : i32
    return %arg0, %c0_i32, %c0_i32_0 : i32, i32, i32
  }
  func.func @transform_2(%arg0: i32, %arg1: i32) -> (i32, i32, i32) {
    %c0_i32 = arith.constant 0 : i32
    %c0_i32_0 = arith.constant 0 : i32
    %c0_i32_1 = arith.constant 0 : i32
    return %arg0, %c0_i32, %c0_i32_0 : i32, i32, i32
  }
  func.func @transform_3(%arg0: i32, %arg1: i32) -> (i32, i32, i32) {
    %c0_i32 = arith.constant 0 : i32
    %c0_i32_0 = arith.constant 0 : i32
    return %arg0, %arg1, %c0_i32 : i32, i32, i32
  }
}

module attributes {stable_mosaic.version = 11 : i64} {
  func.func @_grouped_gemm_kernel(%arg0: i32, %arg1: i32, %arg2: memref<1x16x144xbf16, #tpu.memory_space<vmem>>, %arg3: memref<1x144x16xbf16, #tpu.memory_space<vmem>>, %arg4: memref<1x1x16xf32, #tpu.memory_space<vmem>>, %arg5: memref<1x16x16xbf16, #tpu.memory_space<vmem>>) attributes {dimension_semantics = [#tpu.dimension_semantics<parallel>, #tpu.dimension_semantics<parallel>], iteration_bounds = array<i64: 32, 1>, scalar_prefetch = 0 : i64, scratch_operands = 0 : i64, tpu.core_type = #tpu.core_type<tc>, window_params = [{transform_indices = @transform_0, window_bounds = array<i64: 1, 16, 144>}, {transform_indices = @transform_1, window_bounds = array<i64: 1, 144, 16>}, {transform_indices = @transform_2, window_bounds = array<i64: 1, 1, 16>}, {transform_indices = @transform_3, window_bounds = array<i64: 1, 16, 16>}]} {
    %c0 = arith.constant 0 : index
    %c0_0 = arith.constant 0 : index
    %c0_1 = arith.constant 0 : index
    %0 = vector.load %arg2[%c0, %c0_0, %c0_1] : memref<1x16x144xbf16, #tpu.memory_space<vmem>>, vector<1x16x144xbf16>
    %1 = vector.shape_cast %0 : vector<1x16x144xbf16> to vector<16x144xbf16>
    %c0_2 = arith.constant 0 : index
    %c0_3 = arith.constant 0 : index
    %c0_4 = arith.constant 0 : index
    %2 = vector.load %arg3[%c0_2, %c0_3, %c0_4] : memref<1x144x16xbf16, #tpu.memory_space<vmem>>, vector<1x144x16xbf16>
    %3 = vector.shape_cast %2 : vector<1x144x16xbf16> to vector<144x16xbf16>
    %cst = arith.constant dense<0.000000e+00> : vector<16x16xf32>
    %4 = tpu.matmul %1, %3, %cst {dimension_numbers = #tpu.dot_dimension_numbers<[1], [0], [0], [1], [0, 0, 1, 1], [], []>} : vector<16x144xbf16>, vector<144x16xbf16>, vector<16x16xf32> -> vector<16x16xf32>
    %c0_5 = arith.constant 0 : index
    %c0_6 = arith.constant 0 : index
    %c0_7 = arith.constant 0 : index
    %5 = vector.load %arg4[%c0_5, %c0_6, %c0_7] : memref<1x1x16xf32, #tpu.memory_space<vmem>>, vector<1x1x16xf32>
    %6 = vector.shape_cast %5 : vector<1x1x16xf32> to vector<1x16xf32>
    %7 = vector.broadcast %6 : vector<1x16xf32> to vector<16x16xf32>
    %8 = arith.addf %4, %7 : vector<16x16xf32>
    %cst_8 = arith.constant 0.000000e+00 : f32
    %9 = vector.broadcast %cst_8 : f32 to vector<16x16xf32>
    %10 = arith.maximumf %8, %9 : vector<16x16xf32>
    %11 = arith.truncf %10 : vector<16x16xf32> to vector<16x16xbf16>
    %c0_9 = arith.constant 0 : index
    %c0_10 = arith.constant 0 : index
    %c0_11 = arith.constant 0 : index
    %12 = vector.load %arg5[%c0_9, %c0_10, %c0_11] : memref<1x16x16xbf16, #tpu.memory_space<vmem>>, vector<1x16x16xbf16>
    %13 = vector.shape_cast %12 : vector<1x16x16xbf16> to vector<16x16xbf16>
    %14 = vector.shape_cast %11 : vector<16x16xbf16> to vector<1x16x16xbf16>
    tpu.vector_store %arg5[%c0_9, %c0_10, %c0_11], %14 {strides = array<i32>} : memref<1x16x16xbf16, #tpu.memory_space<vmem>>, vector<1x16x16xbf16>,
    return
  }
  func.func @transform_0(%arg0: i32, %arg1: i32) -> (i32, i32, i32) {
    %c0_i32 = arith.constant 0 : i32
    %c0_i32_0 = arith.constant 0 : i32
    return %arg0, %arg1, %c0_i32 : i32, i32, i32
  }
  func.func @transform_1(%arg0: i32, %arg1: i32) -> (i32, i32, i32) {
    %c0_i32 = arith.constant 0 : i32
    %c0_i32_0 = arith.constant 0 : i32
    %c0_i32_1 = arith.constant 0 : i32
    return %arg0, %c0_i32, %c0_i32_0 : i32, i32, i32
  }
  func.func @transform_2(%arg0: i32, %arg1: i32) -> (i32, i32, i32) {
    %c0_i32 = arith.constant 0 : i32
    %c0_i32_0 = arith.constant 0 : i32
    %c0_i32_1 = arith.constant 0 : i32
    return %arg0, %c0_i32, %c0_i32_0 : i32, i32, i32
  }
  func.func @transform_3(%arg0: i32, %arg1: i32) -> (i32, i32, i32) {
    %c0_i32 = arith.constant 0 : i32
    %c0_i32_0 = arith.constant 0 : i32
    return %arg0, %arg1, %c0_i32 : i32, i32, i32
  }
}

module attributes {stable_mosaic.version = 11 : i64} {
  func.func @_grouped_gemm_kernel(%arg0: i32, %arg1: i32, %arg2: memref<1x16x32xbf16, #tpu.memory_space<vmem>>, %arg3: memref<1x32x32xbf16, #tpu.memory_space<vmem>>, %arg4: memref<1x1x32xf32, #tpu.memory_space<vmem>>, %arg5: memref<1x16x32xbf16, #tpu.memory_space<vmem>>) attributes {dimension_semantics = [#tpu.dimension_semantics<parallel>, #tpu.dimension_semantics<parallel>], iteration_bounds = array<i64: 16, 1>, scalar_prefetch = 0 : i64, scratch_operands = 0 : i64, tpu.core_type = #tpu.core_type<tc>, window_params = [{transform_indices = @transform_0, window_bounds = array<i64: 1, 16, 32>}, {transform_indices = @transform_1, window_bounds = array<i64: 1, 32, 32>}, {transform_indices = @transform_2, window_bounds = array<i64: 1, 1, 32>}, {transform_indices = @transform_3, window_bounds = array<i64: 1, 16, 32>}]} {
    %c0 = arith.constant 0 : index
    %c0_0 = arith.constant 0 : index
    %c0_1 = arith.constant 0 : index
    %0 = vector.load %arg2[%c0, %c0_0, %c0_1] : memref<1x16x32xbf16, #tpu.memory_space<vmem>>, vector<1x16x32xbf16>
    %1 = vector.shape_cast %0 : vector<1x16x32xbf16> to vector<16x32xbf16>
    %c0_2 = arith.constant 0 : index
    %c0_3 = arith.constant 0 : index
    %c0_4 = arith.constant 0 : index
    %2 = vector.load %arg3[%c0_2, %c0_3, %c0_4] : memref<1x32x32xbf16, #tpu.memory_space<vmem>>, vector<1x32x32xbf16>
    %3 = vector.shape_cast %2 : vector<1x32x32xbf16> to vector<32x32xbf16>
    %cst = arith.constant dense<0.000000e+00> : vector<16x32xf32>
    %4 = tpu.matmul %1, %3, %cst {dimension_numbers = #tpu.dot_dimension_numbers<[1], [0], [0], [1], [0, 0, 1, 1], [], []>} : vector<16x32xbf16>, vector<32x32xbf16>, vector<16x32xf32> -> vector<16x32xf32>
    %c0_5 = arith.constant 0 : index
    %c0_6 = arith.constant 0 : index
    %c0_7 = arith.constant 0 : index
    %5 = vector.load %arg4[%c0_5, %c0_6, %c0_7] : memref<1x1x32xf32, #tpu.memory_space<vmem>>, vector<1x1x32xf32>
    %6 = vector.shape_cast %5 : vector<1x1x32xf32> to vector<1x32xf32>
    %7 = vector.broadcast %6 : vector<1x32xf32> to vector<16x32xf32>
    %8 = arith.addf %4, %7 : vector<16x32xf32>
    %cst_8 = arith.constant 0.000000e+00 : f32
    %9 = vector.broadcast %cst_8 : f32 to vector<16x32xf32>
    %10 = arith.maximumf %8, %9 : vector<16x32xf32>
    %11 = arith.truncf %10 : vector<16x32xf32> to vector<16x32xbf16>
    %c0_9 = arith.constant 0 : index
    %c0_10 = arith.constant 0 : index
    %c0_11 = arith.constant 0 : index
    %12 = vector.load %arg5[%c0_9, %c0_10, %c0_11] : memref<1x16x32xbf16, #tpu.memory_space<vmem>>, vector<1x16x32xbf16>
    %13 = vector.shape_cast %12 : vector<1x16x32xbf16> to vector<16x32xbf16>
    %14 = vector.shape_cast %11 : vector<16x32xbf16> to vector<1x16x32xbf16>
    tpu.vector_store %arg5[%c0_9, %c0_10, %c0_11], %14 {strides = array<i32>} : memref<1x16x32xbf16, #tpu.memory_space<vmem>>, vector<1x16x32xbf16>,
    return
  }
  func.func @transform_0(%arg0: i32, %arg1: i32) -> (i32, i32, i32) {
    %c0_i32 = arith.constant 0 : i32
    %c0_i32_0 = arith.constant 0 : i32
    return %arg0, %arg1, %c0_i32 : i32, i32, i32
  }
  func.func @transform_1(%arg0: i32, %arg1: i32) -> (i32, i32, i32) {
    %c0_i32 = arith.constant 0 : i32
    %c0_i32_0 = arith.constant 0 : i32
    %c0_i32_1 = arith.constant 0 : i32
    return %arg0, %c0_i32, %c0_i32_0 : i32, i32, i32
  }
  func.func @transform_2(%arg0: i32, %arg1: i32) -> (i32, i32, i32) {
    %c0_i32 = arith.constant 0 : i32
    %c0_i32_0 = arith.constant 0 : i32
    %c0_i32_1 = arith.constant 0 : i32
    return %arg0, %c0_i32, %c0_i32_0 : i32, i32, i32
  }
  func.func @transform_3(%arg0: i32, %arg1: i32) -> (i32, i32, i32) {
    %c0_i32 = arith.constant 0 : i32
    %c0_i32_0 = arith.constant 0 : i32
    return %arg0, %arg1, %c0_i32 : i32, i32, i32
  }
}

module attributes {stable_mosaic.version = 11 : i64} {
  func.func @_grouped_gemm_kernel(%arg0: i32, %arg1: i32, %arg2: memref<1x16x288xbf16, #tpu.memory_space<vmem>>, %arg3: memref<1x288x32xbf16, #tpu.memory_space<vmem>>, %arg4: memref<1x1x32xf32, #tpu.memory_space<vmem>>, %arg5: memref<1x16x32xbf16, #tpu.memory_space<vmem>>) attributes {dimension_semantics = [#tpu.dimension_semantics<parallel>, #tpu.dimension_semantics<parallel>], iteration_bounds = array<i64: 16, 1>, scalar_prefetch = 0 : i64, scratch_operands = 0 : i64, tpu.core_type = #tpu.core_type<tc>, window_params = [{transform_indices = @transform_0, window_bounds = array<i64: 1, 16, 288>}, {transform_indices = @transform_1, window_bounds = array<i64: 1, 288, 32>}, {transform_indices = @transform_2, window_bounds = array<i64: 1, 1, 32>}, {transform_indices = @transform_3, window_bounds = array<i64: 1, 16, 32>}]} {
    %c0 = arith.constant 0 : index
    %c0_0 = arith.constant 0 : index
    %c0_1 = arith.constant 0 : index
    %0 = vector.load %arg2[%c0, %c0_0, %c0_1] : memref<1x16x288xbf16, #tpu.memory_space<vmem>>, vector<1x16x288xbf16>
    %1 = vector.shape_cast %0 : vector<1x16x288xbf16> to vector<16x288xbf16>
    %c0_2 = arith.constant 0 : index
    %c0_3 = arith.constant 0 : index
    %c0_4 = arith.constant 0 : index
    %2 = vector.load %arg3[%c0_2, %c0_3, %c0_4] : memref<1x288x32xbf16, #tpu.memory_space<vmem>>, vector<1x288x32xbf16>
    %3 = vector.shape_cast %2 : vector<1x288x32xbf16> to vector<288x32xbf16>
    %cst = arith.constant dense<0.000000e+00> : vector<16x32xf32>
    %4 = tpu.matmul %1, %3, %cst {dimension_numbers = #tpu.dot_dimension_numbers<[1], [0], [0], [1], [0, 0, 1, 1], [], []>} : vector<16x288xbf16>, vector<288x32xbf16>, vector<16x32xf32> -> vector<16x32xf32>
    %c0_5 = arith.constant 0 : index
    %c0_6 = arith.constant 0 : index
    %c0_7 = arith.constant 0 : index
    %5 = vector.load %arg4[%c0_5, %c0_6, %c0_7] : memref<1x1x32xf32, #tpu.memory_space<vmem>>, vector<1x1x32xf32>
    %6 = vector.shape_cast %5 : vector<1x1x32xf32> to vector<1x32xf32>
    %7 = vector.broadcast %6 : vector<1x32xf32> to vector<16x32xf32>
    %8 = arith.addf %4, %7 : vector<16x32xf32>
    %cst_8 = arith.constant 0.000000e+00 : f32
    %9 = vector.broadcast %cst_8 : f32 to vector<16x32xf32>
    %10 = arith.maximumf %8, %9 : vector<16x32xf32>
    %11 = arith.truncf %10 : vector<16x32xf32> to vector<16x32xbf16>
    %c0_9 = arith.constant 0 : index
    %c0_10 = arith.constant 0 : index
    %c0_11 = arith.constant 0 : index
    %12 = vector.load %arg5[%c0_9, %c0_10, %c0_11] : memref<1x16x32xbf16, #tpu.memory_space<vmem>>, vector<1x16x32xbf16>
    %13 = vector.shape_cast %12 : vector<1x16x32xbf16> to vector<16x32xbf16>
    %14 = vector.shape_cast %11 : vector<16x32xbf16> to vector<1x16x32xbf16>
    tpu.vector_store %arg5[%c0_9, %c0_10, %c0_11], %14 {strides = array<i32>} : memref<1x16x32xbf16, #tpu.memory_space<vmem>>, vector<1x16x32xbf16>,
    return
  }
  func.func @transform_0(%arg0: i32, %arg1: i32) -> (i32, i32, i32) {
    %c0_i32 = arith.constant 0 : i32
    %c0_i32_0 = arith.constant 0 : i32
    return %arg0, %arg1, %c0_i32 : i32, i32, i32
  }
  func.func @transform_1(%arg0: i32, %arg1: i32) -> (i32, i32, i32) {
    %c0_i32 = arith.constant 0 : i32
    %c0_i32_0 = arith.constant 0 : i32
    %c0_i32_1 = arith.constant 0 : i32
    return %arg0, %c0_i32, %c0_i32_0 : i32, i32, i32
  }
  func.func @transform_2(%arg0: i32, %arg1: i32) -> (i32, i32, i32) {
    %c0_i32 = arith.constant 0 : i32
    %c0_i32_0 = arith.constant 0 : i32
    %c0_i32_1 = arith.constant 0 : i32
    return %arg0, %c0_i32, %c0_i32_0 : i32, i32, i32
  }
  func.func @transform_3(%arg0: i32, %arg1: i32) -> (i32, i32, i32) {
    %c0_i32 = arith.constant 0 : i32
    %c0_i32_0 = arith.constant 0 : i32
    return %arg0, %arg1, %c0_i32 : i32, i32, i32
  }
}

module attributes {stable_mosaic.version = 11 : i64} {
  func.func @_grouped_gemm_kernel(%arg0: i32, %arg1: i32, %arg2: memref<1x16x16xbf16, #tpu.memory_space<vmem>>, %arg3: memref<1x16x32xbf16, #tpu.memory_space<vmem>>, %arg4: memref<1x1x32xf32, #tpu.memory_space<vmem>>, %arg5: memref<1x16x32xbf16, #tpu.memory_space<vmem>>) attributes {dimension_semantics = [#tpu.dimension_semantics<parallel>, #tpu.dimension_semantics<parallel>], iteration_bounds = array<i64: 32, 1>, scalar_prefetch = 0 : i64, scratch_operands = 0 : i64, tpu.core_type = #tpu.core_type<tc>, window_params = [{transform_indices = @transform_0, window_bounds = array<i64: 1, 16, 16>}, {transform_indices = @transform_1, window_bounds = array<i64: 1, 16, 32>}, {transform_indices = @transform_2, window_bounds = array<i64: 1, 1, 32>}, {transform_indices = @transform_3, window_bounds = array<i64: 1, 16, 32>}]} {
    %c0 = arith.constant 0 : index
    %c0_0 = arith.constant 0 : index
    %c0_1 = arith.constant 0 : index
    %0 = vector.load %arg2[%c0, %c0_0, %c0_1] : memref<1x16x16xbf16, #tpu.memory_space<vmem>>, vector<1x16x16xbf16>
    %1 = vector.shape_cast %0 : vector<1x16x16xbf16> to vector<16x16xbf16>
    %c0_2 = arith.constant 0 : index
    %c0_3 = arith.constant 0 : index
    %c0_4 = arith.constant 0 : index
    %2 = vector.load %arg3[%c0_2, %c0_3, %c0_4] : memref<1x16x32xbf16, #tpu.memory_space<vmem>>, vector<1x16x32xbf16>
    %3 = vector.shape_cast %2 : vector<1x16x32xbf16> to vector<16x32xbf16>
    %cst = arith.constant dense<0.000000e+00> : vector<16x32xf32>
    %4 = tpu.matmul %1, %3, %cst {dimension_numbers = #tpu.dot_dimension_numbers<[1], [0], [0], [1], [0, 0, 1, 1], [], []>} : vector<16x16xbf16>, vector<16x32xbf16>, vector<16x32xf32> -> vector<16x32xf32>
    %c0_5 = arith.constant 0 : index
    %c0_6 = arith.constant 0 : index
    %c0_7 = arith.constant 0 : index
    %5 = vector.load %arg4[%c0_5, %c0_6, %c0_7] : memref<1x1x32xf32, #tpu.memory_space<vmem>>, vector<1x1x32xf32>
    %6 = vector.shape_cast %5 : vector<1x1x32xf32> to vector<1x32xf32>
    %7 = vector.broadcast %6 : vector<1x32xf32> to vector<16x32xf32>
    %8 = arith.addf %4, %7 : vector<16x32xf32>
    %cst_8 = arith.constant 0.000000e+00 : f32
    %9 = vector.broadcast %cst_8 : f32 to vector<16x32xf32>
    %10 = arith.maximumf %8, %9 : vector<16x32xf32>
    %11 = arith.truncf %10 : vector<16x32xf32> to vector<16x32xbf16>
    %c0_9 = arith.constant 0 : index
    %c0_10 = arith.constant 0 : index
    %c0_11 = arith.constant 0 : index
    %12 = vector.load %arg5[%c0_9, %c0_10, %c0_11] : memref<1x16x32xbf16, #tpu.memory_space<vmem>>, vector<1x16x32xbf16>
    %13 = vector.shape_cast %12 : vector<1x16x32xbf16> to vector<16x32xbf16>
    %14 = vector.shape_cast %11 : vector<16x32xbf16> to vector<1x16x32xbf16>
    tpu.vector_store %arg5[%c0_9, %c0_10, %c0_11], %14 {strides = array<i32>} : memref<1x16x32xbf16, #tpu.memory_space<vmem>>, vector<1x16x32xbf16>,
    return
  }
  func.func @transform_0(%arg0: i32, %arg1: i32) -> (i32, i32, i32) {
    %c0_i32 = arith.constant 0 : i32
    %c0_i32_0 = arith.constant 0 : i32
    return %arg0, %arg1, %c0_i32 : i32, i32, i32
  }
  func.func @transform_1(%arg0: i32, %arg1: i32) -> (i32, i32, i32) {
    %c0_i32 = arith.constant 0 : i32
    %c0_i32_0 = arith.constant 0 : i32
    %c0_i32_1 = arith.constant 0 : i32
    return %arg0, %c0_i32, %c0_i32_0 : i32, i32, i32
  }
  func.func @transform_2(%arg0: i32, %arg1: i32) -> (i32, i32, i32) {
    %c0_i32 = arith.constant 0 : i32
    %c0_i32_0 = arith.constant 0 : i32
    %c0_i32_1 = arith.constant 0 : i32
    return %arg0, %c0_i32, %c0_i32_0 : i32, i32, i32
  }
  func.func @transform_3(%arg0: i32, %arg1: i32) -> (i32, i32, i32) {
    %c0_i32 = arith.constant 0 : i32
    %c0_i32_0 = arith.constant 0 : i32
    return %arg0, %arg1, %c0_i32 : i32, i32, i32
  }
}

module attributes {stable_mosaic.version = 11 : i64} {
  func.func @_grouped_gemm_kernel(%arg0: i32, %arg1: i32, %arg2: memref<1x16x288xbf16, #tpu.memory_space<vmem>>, %arg3: memref<1x288x32xbf16, #tpu.memory_space<vmem>>, %arg4: memref<1x1x32xf32, #tpu.memory_space<vmem>>, %arg5: memref<1x16x32xbf16, #tpu.memory_space<vmem>>) attributes {dimension_semantics = [#tpu.dimension_semantics<parallel>, #tpu.dimension_semantics<parallel>], iteration_bounds = array<i64: 32, 1>, scalar_prefetch = 0 : i64, scratch_operands = 0 : i64, tpu.core_type = #tpu.core_type<tc>, window_params = [{transform_indices = @transform_0, window_bounds = array<i64: 1, 16, 288>}, {transform_indices = @transform_1, window_bounds = array<i64: 1, 288, 32>}, {transform_indices = @transform_2, window_bounds = array<i64: 1, 1, 32>}, {transform_indices = @transform_3, window_bounds = array<i64: 1, 16, 32>}]} {
    %c0 = arith.constant 0 : index
    %c0_0 = arith.constant 0 : index
    %c0_1 = arith.constant 0 : index
    %0 = vector.load %arg2[%c0, %c0_0, %c0_1] : memref<1x16x288xbf16, #tpu.memory_space<vmem>>, vector<1x16x288xbf16>
    %1 = vector.shape_cast %0 : vector<1x16x288xbf16> to vector<16x288xbf16>
    %c0_2 = arith.constant 0 : index
    %c0_3 = arith.constant 0 : index
    %c0_4 = arith.constant 0 : index
    %2 = vector.load %arg3[%c0_2, %c0_3, %c0_4] : memref<1x288x32xbf16, #tpu.memory_space<vmem>>, vector<1x288x32xbf16>
    %3 = vector.shape_cast %2 : vector<1x288x32xbf16> to vector<288x32xbf16>
    %cst = arith.constant dense<0.000000e+00> : vector<16x32xf32>
    %4 = tpu.matmul %1, %3, %cst {dimension_numbers = #tpu.dot_dimension_numbers<[1], [0], [0], [1], [0, 0, 1, 1], [], []>} : vector<16x288xbf16>, vector<288x32xbf16>, vector<16x32xf32> -> vector<16x32xf32>
    %c0_5 = arith.constant 0 : index
    %c0_6 = arith.constant 0 : index
    %c0_7 = arith.constant 0 : index
    %5 = vector.load %arg4[%c0_5, %c0_6, %c0_7] : memref<1x1x32xf32, #tpu.memory_space<vmem>>, vector<1x1x32xf32>
    %6 = vector.shape_cast %5 : vector<1x1x32xf32> to vector<1x32xf32>
    %7 = vector.broadcast %6 : vector<1x32xf32> to vector<16x32xf32>
    %8 = arith.addf %4, %7 : vector<16x32xf32>
    %cst_8 = arith.constant 0.000000e+00 : f32
    %9 = vector.broadcast %cst_8 : f32 to vector<16x32xf32>
    %10 = arith.maximumf %8, %9 : vector<16x32xf32>
    %11 = arith.truncf %10 : vector<16x32xf32> to vector<16x32xbf16>
    %c0_9 = arith.constant 0 : index
    %c0_10 = arith.constant 0 : index
    %c0_11 = arith.constant 0 : index
    %12 = vector.load %arg5[%c0_9, %c0_10, %c0_11] : memref<1x16x32xbf16, #tpu.memory_space<vmem>>, vector<1x16x32xbf16>
    %13 = vector.shape_cast %12 : vector<1x16x32xbf16> to vector<16x32xbf16>
    %14 = vector.shape_cast %11 : vector<16x32xbf16> to vector<1x16x32xbf16>
    tpu.vector_store %arg5[%c0_9, %c0_10, %c0_11], %14 {strides = array<i32>} : memref<1x16x32xbf16, #tpu.memory_space<vmem>>, vector<1x16x32xbf16>,
    return
  }
  func.func @transform_0(%arg0: i32, %arg1: i32) -> (i32, i32, i32) {
    %c0_i32 = arith.constant 0 : i32
    %c0_i32_0 = arith.constant 0 : i32
    return %arg0, %arg1, %c0_i32 : i32, i32, i32
  }
  func.func @transform_1(%arg0: i32, %arg1: i32) -> (i32, i32, i32) {
    %c0_i32 = arith.constant 0 : i32
    %c0_i32_0 = arith.constant 0 : i32
    %c0_i32_1 = arith.constant 0 : i32
    return %arg0, %c0_i32, %c0_i32_0 : i32, i32, i32
  }
  func.func @transform_2(%arg0: i32, %arg1: i32) -> (i32, i32, i32) {
    %c0_i32 = arith.constant 0 : i32
    %c0_i32_0 = arith.constant 0 : i32
    %c0_i32_1 = arith.constant 0 : i32
    return %arg0, %c0_i32, %c0_i32_0 : i32, i32, i32
  }
  func.func @transform_3(%arg0: i32, %arg1: i32) -> (i32, i32, i32) {
    %c0_i32 = arith.constant 0 : i32
    %c0_i32_0 = arith.constant 0 : i32
    return %arg0, %arg1, %c0_i32 : i32, i32, i32
  }
}

module attributes {stable_mosaic.version = 11 : i64} {
  func.func @_grouped_gemm_kernel(%arg0: i32, %arg1: i32, %arg2: memref<1x16x32xbf16, #tpu.memory_space<vmem>>, %arg3: memref<1x32x32xbf16, #tpu.memory_space<vmem>>, %arg4: memref<1x1x32xf32, #tpu.memory_space<vmem>>, %arg5: memref<1x16x32xbf16, #tpu.memory_space<vmem>>) attributes {dimension_semantics = [#tpu.dimension_semantics<parallel>, #tpu.dimension_semantics<parallel>], iteration_bounds = array<i64: 32, 1>, scalar_prefetch = 0 : i64, scratch_operands = 0 : i64, tpu.core_type = #tpu.core_type<tc>, window_params = [{transform_indices = @transform_0, window_bounds = array<i64: 1, 16, 32>}, {transform_indices = @transform_1, window_bounds = array<i64: 1, 32, 32>}, {transform_indices = @transform_2, window_bounds = array<i64: 1, 1, 32>}, {transform_indices = @transform_3, window_bounds = array<i64: 1, 16, 32>}]} {
    %c0 = arith.constant 0 : index
    %c0_0 = arith.constant 0 : index
    %c0_1 = arith.constant 0 : index
    %0 = vector.load %arg2[%c0, %c0_0, %c0_1] : memref<1x16x32xbf16, #tpu.memory_space<vmem>>, vector<1x16x32xbf16>
    %1 = vector.shape_cast %0 : vector<1x16x32xbf16> to vector<16x32xbf16>
    %c0_2 = arith.constant 0 : index
    %c0_3 = arith.constant 0 : index
    %c0_4 = arith.constant 0 : index
    %2 = vector.load %arg3[%c0_2, %c0_3, %c0_4] : memref<1x32x32xbf16, #tpu.memory_space<vmem>>, vector<1x32x32xbf16>
    %3 = vector.shape_cast %2 : vector<1x32x32xbf16> to vector<32x32xbf16>
    %cst = arith.constant dense<0.000000e+00> : vector<16x32xf32>
    %4 = tpu.matmul %1, %3, %cst {dimension_numbers = #tpu.dot_dimension_numbers<[1], [0], [0], [1], [0, 0, 1, 1], [], []>} : vector<16x32xbf16>, vector<32x32xbf16>, vector<16x32xf32> -> vector<16x32xf32>
    %c0_5 = arith.constant 0 : index
    %c0_6 = arith.constant 0 : index
    %c0_7 = arith.constant 0 : index
    %5 = vector.load %arg4[%c0_5, %c0_6, %c0_7] : memref<1x1x32xf32, #tpu.memory_space<vmem>>, vector<1x1x32xf32>
    %6 = vector.shape_cast %5 : vector<1x1x32xf32> to vector<1x32xf32>
    %7 = vector.broadcast %6 : vector<1x32xf32> to vector<16x32xf32>
    %8 = arith.addf %4, %7 : vector<16x32xf32>
    %cst_8 = arith.constant 0.000000e+00 : f32
    %9 = vector.broadcast %cst_8 : f32 to vector<16x32xf32>
    %10 = arith.maximumf %8, %9 : vector<16x32xf32>
    %11 = arith.truncf %10 : vector<16x32xf32> to vector<16x32xbf16>
    %c0_9 = arith.constant 0 : index
    %c0_10 = arith.constant 0 : index
    %c0_11 = arith.constant 0 : index
    %12 = vector.load %arg5[%c0_9, %c0_10, %c0_11] : memref<1x16x32xbf16, #tpu.memory_space<vmem>>, vector<1x16x32xbf16>
    %13 = vector.shape_cast %12 : vector<1x16x32xbf16> to vector<16x32xbf16>
    %14 = vector.shape_cast %11 : vector<16x32xbf16> to vector<1x16x32xbf16>
    tpu.vector_store %arg5[%c0_9, %c0_10, %c0_11], %14 {strides = array<i32>} : memref<1x16x32xbf16, #tpu.memory_space<vmem>>, vector<1x16x32xbf16>,
    return
  }
  func.func @transform_0(%arg0: i32, %arg1: i32) -> (i32, i32, i32) {
    %c0_i32 = arith.constant 0 : i32
    %c0_i32_0 = arith.constant 0 : i32
    return %arg0, %arg1, %c0_i32 : i32, i32, i32
  }
  func.func @transform_1(%arg0: i32, %arg1: i32) -> (i32, i32, i32) {
    %c0_i32 = arith.constant 0 : i32
    %c0_i32_0 = arith.constant 0 : i32
    %c0_i32_1 = arith.constant 0 : i32
    return %arg0, %c0_i32, %c0_i32_0 : i32, i32, i32
  }
  func.func @transform_2(%arg0: i32, %arg1: i32) -> (i32, i32, i32) {
    %c0_i32 = arith.constant 0 : i32
    %c0_i32_0 = arith.constant 0 : i32
    %c0_i32_1 = arith.constant 0 : i32
    return %arg0, %c0_i32, %c0_i32_0 : i32, i32, i32
  }
  func.func @transform_3(%arg0: i32, %arg1: i32) -> (i32, i32, i32) {
    %c0_i32 = arith.constant 0 : i32
    %c0_i32_0 = arith.constant 0 : i32
    return %arg0, %arg1, %c0_i32 : i32, i32, i32
  }
}

module attributes {stable_mosaic.version = 11 : i64} {
  func.func @_grouped_gemm_kernel(%arg0: i32, %arg1: i32, %arg2: memref<1x16x32xbf16, #tpu.memory_space<vmem>>, %arg3: memref<1x32x16xbf16, #tpu.memory_space<vmem>>, %arg4: memref<1x1x16xf32, #tpu.memory_space<vmem>>, %arg5: memref<1x16x16xbf16, #tpu.memory_space<vmem>>) attributes {dimension_semantics = [#tpu.dimension_semantics<parallel>, #tpu.dimension_semantics<parallel>], iteration_bounds = array<i64: 32, 1>, scalar_prefetch = 0 : i64, scratch_operands = 0 : i64, tpu.core_type = #tpu.core_type<tc>, window_params = [{transform_indices = @transform_0, window_bounds = array<i64: 1, 16, 32>}, {transform_indices = @transform_1, window_bounds = array<i64: 1, 32, 16>}, {transform_indices = @transform_2, window_bounds = array<i64: 1, 1, 16>}, {transform_indices = @transform_3, window_bounds = array<i64: 1, 16, 16>}]} {
    %c0 = arith.constant 0 : index
    %c0_0 = arith.constant 0 : index
    %c0_1 = arith.constant 0 : index
    %0 = vector.load %arg2[%c0, %c0_0, %c0_1] : memref<1x16x32xbf16, #tpu.memory_space<vmem>>, vector<1x16x32xbf16>
    %1 = vector.shape_cast %0 : vector<1x16x32xbf16> to vector<16x32xbf16>
    %c0_2 = arith.constant 0 : index
    %c0_3 = arith.constant 0 : index
    %c0_4 = arith.constant 0 : index
    %2 = vector.load %arg3[%c0_2, %c0_3, %c0_4] : memref<1x32x16xbf16, #tpu.memory_space<vmem>>, vector<1x32x16xbf16>
    %3 = vector.shape_cast %2 : vector<1x32x16xbf16> to vector<32x16xbf16>
    %cst = arith.constant dense<0.000000e+00> : vector<16x16xf32>
    %4 = tpu.matmul %1, %3, %cst {dimension_numbers = #tpu.dot_dimension_numbers<[1], [0], [0], [1], [0, 0, 1, 1], [], []>} : vector<16x32xbf16>, vector<32x16xbf16>, vector<16x16xf32> -> vector<16x16xf32>
    %c0_5 = arith.constant 0 : index
    %c0_6 = arith.constant 0 : index
    %c0_7 = arith.constant 0 : index
    %5 = vector.load %arg4[%c0_5, %c0_6, %c0_7] : memref<1x1x16xf32, #tpu.memory_space<vmem>>, vector<1x1x16xf32>
    %6 = vector.shape_cast %5 : vector<1x1x16xf32> to vector<1x16xf32>
    %7 = vector.broadcast %6 : vector<1x16xf32> to vector<16x16xf32>
    %8 = arith.addf %4, %7 : vector<16x16xf32>
    %cst_8 = arith.constant 0.000000e+00 : f32
    %9 = vector.broadcast %cst_8 : f32 to vector<16x16xf32>
    %10 = arith.maximumf %8, %9 : vector<16x16xf32>
    %11 = arith.truncf %10 : vector<16x16xf32> to vector<16x16xbf16>
    %c0_9 = arith.constant 0 : index
    %c0_10 = arith.constant 0 : index
    %c0_11 = arith.constant 0 : index
    %12 = vector.load %arg5[%c0_9, %c0_10, %c0_11] : memref<1x16x16xbf16, #tpu.memory_space<vmem>>, vector<1x16x16xbf16>
    %13 = vector.shape_cast %12 : vector<1x16x16xbf16> to vector<16x16xbf16>
    %14 = vector.shape_cast %11 : vector<16x16xbf16> to vector<1x16x16xbf16>
    tpu.vector_store %arg5[%c0_9, %c0_10, %c0_11], %14 {strides = array<i32>} : memref<1x16x16xbf16, #tpu.memory_space<vmem>>, vector<1x16x16xbf16>,
    return
  }
  func.func @transform_0(%arg0: i32, %arg1: i32) -> (i32, i32, i32) {
    %c0_i32 = arith.constant 0 : i32
    %c0_i32_0 = arith.constant 0 : i32
    return %arg0, %arg1, %c0_i32 : i32, i32, i32
  }
  func.func @transform_1(%arg0: i32, %arg1: i32) -> (i32, i32, i32) {
    %c0_i32 = arith.constant 0 : i32
    %c0_i32_0 = arith.constant 0 : i32
    %c0_i32_1 = arith.constant 0 : i32
    return %arg0, %c0_i32, %c0_i32_0 : i32, i32, i32
  }
  func.func @transform_2(%arg0: i32, %arg1: i32) -> (i32, i32, i32) {
    %c0_i32 = arith.constant 0 : i32
    %c0_i32_0 = arith.constant 0 : i32
    %c0_i32_1 = arith.constant 0 : i32
    return %arg0, %c0_i32, %c0_i32_0 : i32, i32, i32
  }
  func.func @transform_3(%arg0: i32, %arg1: i32) -> (i32, i32, i32) {
    %c0_i32 = arith.constant 0 : i32
    %c0_i32_0 = arith.constant 0 : i32
    return %arg0, %arg1, %c0_i32 : i32, i32, i32
  }
}

module attributes {stable_mosaic.version = 11 : i64} {
  func.func @_grouped_gemm_kernel(%arg0: i32, %arg1: i32, %arg2: memref<1x16x16xbf16, #tpu.memory_space<vmem>>, %arg3: memref<1x16x16xbf16, #tpu.memory_space<vmem>>, %arg4: memref<1x1x16xf32, #tpu.memory_space<vmem>>, %arg5: memref<1x16x16xbf16, #tpu.memory_space<vmem>>) attributes {dimension_semantics = [#tpu.dimension_semantics<parallel>, #tpu.dimension_semantics<parallel>], iteration_bounds = array<i64: 32, 1>, scalar_prefetch = 0 : i64, scratch_operands = 0 : i64, tpu.core_type = #tpu.core_type<tc>, window_params = [{transform_indices = @transform_0, window_bounds = array<i64: 1, 16, 16>}, {transform_indices = @transform_1, window_bounds = array<i64: 1, 16, 16>}, {transform_indices = @transform_2, window_bounds = array<i64: 1, 1, 16>}, {transform_indices = @transform_3, window_bounds = array<i64: 1, 16, 16>}]} {
    %c0 = arith.constant 0 : index
    %c0_0 = arith.constant 0 : index
    %c0_1 = arith.constant 0 : index
    %0 = vector.load %arg2[%c0, %c0_0, %c0_1] : memref<1x16x16xbf16, #tpu.memory_space<vmem>>, vector<1x16x16xbf16>
    %1 = vector.shape_cast %0 : vector<1x16x16xbf16> to vector<16x16xbf16>
    %c0_2 = arith.constant 0 : index
    %c0_3 = arith.constant 0 : index
    %c0_4 = arith.constant 0 : index
    %2 = vector.load %arg3[%c0_2, %c0_3, %c0_4] : memref<1x16x16xbf16, #tpu.memory_space<vmem>>, vector<1x16x16xbf16>
    %3 = vector.shape_cast %2 : vector<1x16x16xbf16> to vector<16x16xbf16>
    %cst = arith.constant dense<0.000000e+00> : vector<16x16xf32>
    %4 = tpu.matmul %1, %3, %cst {dimension_numbers = #tpu.dot_dimension_numbers<[1], [0], [0], [1], [0, 0, 1, 1], [], []>} : vector<16x16xbf16>, vector<16x16xbf16>, vector<16x16xf32> -> vector<16x16xf32>
    %c0_5 = arith.constant 0 : index
    %c0_6 = arith.constant 0 : index
    %c0_7 = arith.constant 0 : index
    %5 = vector.load %arg4[%c0_5, %c0_6, %c0_7] : memref<1x1x16xf32, #tpu.memory_space<vmem>>, vector<1x1x16xf32>
    %6 = vector.shape_cast %5 : vector<1x1x16xf32> to vector<1x16xf32>
    %7 = vector.broadcast %6 : vector<1x16xf32> to vector<16x16xf32>
    %8 = arith.addf %4, %7 : vector<16x16xf32>
    %cst_8 = arith.constant 0.000000e+00 : f32
    %9 = vector.broadcast %cst_8 : f32 to vector<16x16xf32>
    %10 = arith.maximumf %8, %9 : vector<16x16xf32>
    %11 = arith.truncf %10 : vector<16x16xf32> to vector<16x16xbf16>
    %c0_9 = arith.constant 0 : index
    %c0_10 = arith.constant 0 : index
    %c0_11 = arith.constant 0 : index
    %12 = vector.load %arg5[%c0_9, %c0_10, %c0_11] : memref<1x16x16xbf16, #tpu.memory_space<vmem>>, vector<1x16x16xbf16>
    %13 = vector.shape_cast %12 : vector<1x16x16xbf16> to vector<16x16xbf16>
    %14 = vector.shape_cast %11 : vector<16x16xbf16> to vector<1x16x16xbf16>
    tpu.vector_store %arg5[%c0_9, %c0_10, %c0_11], %14 {strides = array<i32>} : memref<1x16x16xbf16, #tpu.memory_space<vmem>>, vector<1x16x16xbf16>,
    return
  }
  func.func @transform_0(%arg0: i32, %arg1: i32) -> (i32, i32, i32) {
    %c0_i32 = arith.constant 0 : i32
    %c0_i32_0 = arith.constant 0 : i32
    return %arg0, %arg1, %c0_i32 : i32, i32, i32
  }
  func.func @transform_1(%arg0: i32, %arg1: i32) -> (i32, i32, i32) {
    %c0_i32 = arith.constant 0 : i32
    %c0_i32_0 = arith.constant 0 : i32
    %c0_i32_1 = arith.constant 0 : i32
    return %arg0, %c0_i32, %c0_i32_0 : i32, i32, i32
  }
  func.func @transform_2(%arg0: i32, %arg1: i32) -> (i32, i32, i32) {
    %c0_i32 = arith.constant 0 : i32
    %c0_i32_0 = arith.constant 0 : i32
    %c0_i32_1 = arith.constant 0 : i32
    return %arg0, %c0_i32, %c0_i32_0 : i32, i32, i32
  }
  func.func @transform_3(%arg0: i32, %arg1: i32) -> (i32, i32, i32) {
    %c0_i32 = arith.constant 0 : i32
    %c0_i32_0 = arith.constant 0 : i32
    return %arg0, %arg1, %c0_i32 : i32, i32, i32
  }
}

module attributes {stable_mosaic.version = 11 : i64} {
  func.func @_grouped_gemm_kernel(%arg0: i32, %arg1: i32, %arg2: memref<1x32x144xbf16, #tpu.memory_space<vmem>>, %arg3: memref<1x144x16xbf16, #tpu.memory_space<vmem>>, %arg4: memref<1x1x16xf32, #tpu.memory_space<vmem>>, %arg5: memref<1x32x16xbf16, #tpu.memory_space<vmem>>) attributes {dimension_semantics = [#tpu.dimension_semantics<parallel>, #tpu.dimension_semantics<parallel>], iteration_bounds = array<i64: 32, 1>, scalar_prefetch = 0 : i64, scratch_operands = 0 : i64, tpu.core_type = #tpu.core_type<tc>, window_params = [{transform_indices = @transform_0, window_bounds = array<i64: 1, 32, 144>}, {transform_indices = @transform_1, window_bounds = array<i64: 1, 144, 16>}, {transform_indices = @transform_2, window_bounds = array<i64: 1, 1, 16>}, {transform_indices = @transform_3, window_bounds = array<i64: 1, 32, 16>}]} {
    %c0 = arith.constant 0 : index
    %c0_0 = arith.constant 0 : index
    %c0_1 = arith.constant 0 : index
    %0 = vector.load %arg2[%c0, %c0_0, %c0_1] : memref<1x32x144xbf16, #tpu.memory_space<vmem>>, vector<1x32x144xbf16>
    %1 = vector.shape_cast %0 : vector<1x32x144xbf16> to vector<32x144xbf16>
    %c0_2 = arith.constant 0 : index
    %c0_3 = arith.constant 0 : index
    %c0_4 = arith.constant 0 : index
    %2 = vector.load %arg3[%c0_2, %c0_3, %c0_4] : memref<1x144x16xbf16, #tpu.memory_space<vmem>>, vector<1x144x16xbf16>
    %3 = vector.shape_cast %2 : vector<1x144x16xbf16> to vector<144x16xbf16>
    %cst = arith.constant dense<0.000000e+00> : vector<32x16xf32>
    %4 = tpu.matmul %1, %3, %cst {dimension_numbers = #tpu.dot_dimension_numbers<[1], [0], [0], [1], [0, 0, 1, 1], [], []>} : vector<32x144xbf16>, vector<144x16xbf16>, vector<32x16xf32> -> vector<32x16xf32>
    %c0_5 = arith.constant 0 : index
    %c0_6 = arith.constant 0 : index
    %c0_7 = arith.constant 0 : index
    %5 = vector.load %arg4[%c0_5, %c0_6, %c0_7] : memref<1x1x16xf32, #tpu.memory_space<vmem>>, vector<1x1x16xf32>
    %6 = vector.shape_cast %5 : vector<1x1x16xf32> to vector<1x16xf32>
    %7 = vector.broadcast %6 : vector<1x16xf32> to vector<32x16xf32>
    %8 = arith.addf %4, %7 : vector<32x16xf32>
    %cst_8 = arith.constant 0.000000e+00 : f32
    %9 = vector.broadcast %cst_8 : f32 to vector<32x16xf32>
    %10 = arith.maximumf %8, %9 : vector<32x16xf32>
    %11 = arith.truncf %10 : vector<32x16xf32> to vector<32x16xbf16>
    %c0_9 = arith.constant 0 : index
    %c0_10 = arith.constant 0 : index
    %c0_11 = arith.constant 0 : index
    %12 = vector.load %arg5[%c0_9, %c0_10, %c0_11] : memref<1x32x16xbf16, #tpu.memory_space<vmem>>, vector<1x32x16xbf16>
    %13 = vector.shape_cast %12 : vector<1x32x16xbf16> to vector<32x16xbf16>
    %14 = vector.shape_cast %11 : vector<32x16xbf16> to vector<1x32x16xbf16>
    tpu.vector_store %arg5[%c0_9, %c0_10, %c0_11], %14 {strides = array<i32>} : memref<1x32x16xbf16, #tpu.memory_space<vmem>>, vector<1x32x16xbf16>,
    return
  }
  func.func @transform_0(%arg0: i32, %arg1: i32) -> (i32, i32, i32) {
    %c0_i32 = arith.constant 0 : i32
    %c0_i32_0 = arith.constant 0 : i32
    return %arg0, %arg1, %c0_i32 : i32, i32, i32
  }
  func.func @transform_1(%arg0: i32, %arg1: i32) -> (i32, i32, i32) {
    %c0_i32 = arith.constant 0 : i32
    %c0_i32_0 = arith.constant 0 : i32
    %c0_i32_1 = arith.constant 0 : i32
    return %arg0, %c0_i32, %c0_i32_0 : i32, i32, i32
  }
  func.func @transform_2(%arg0: i32, %arg1: i32) -> (i32, i32, i32) {
    %c0_i32 = arith.constant 0 : i32
    %c0_i32_0 = arith.constant 0 : i32
    %c0_i32_1 = arith.constant 0 : i32
    return %arg0, %c0_i32, %c0_i32_0 : i32, i32, i32
  }
  func.func @transform_3(%arg0: i32, %arg1: i32) -> (i32, i32, i32) {
    %c0_i32 = arith.constant 0 : i32
    %c0_i32_0 = arith.constant 0 : i32
    return %arg0, %arg1, %c0_i32 : i32, i32, i32
  }
}

module attributes {stable_mosaic.version = 11 : i64} {
  func.func @_grouped_gemm_kernel(%arg0: i32, %arg1: i32, %arg2: memref<1x32x32xbf16, #tpu.memory_space<vmem>>, %arg3: memref<1x32x16xbf16, #tpu.memory_space<vmem>>, %arg4: memref<1x1x16xf32, #tpu.memory_space<vmem>>, %arg5: memref<1x32x16xbf16, #tpu.memory_space<vmem>>) attributes {dimension_semantics = [#tpu.dimension_semantics<parallel>, #tpu.dimension_semantics<parallel>], iteration_bounds = array<i64: 16, 1>, scalar_prefetch = 0 : i64, scratch_operands = 0 : i64, tpu.core_type = #tpu.core_type<tc>, window_params = [{transform_indices = @transform_0, window_bounds = array<i64: 1, 32, 32>}, {transform_indices = @transform_1, window_bounds = array<i64: 1, 32, 16>}, {transform_indices = @transform_2, window_bounds = array<i64: 1, 1, 16>}, {transform_indices = @transform_3, window_bounds = array<i64: 1, 32, 16>}]} {
    %c0 = arith.constant 0 : index
    %c0_0 = arith.constant 0 : index
    %c0_1 = arith.constant 0 : index
    %0 = vector.load %arg2[%c0, %c0_0, %c0_1] : memref<1x32x32xbf16, #tpu.memory_space<vmem>>, vector<1x32x32xbf16>
    %1 = vector.shape_cast %0 : vector<1x32x32xbf16> to vector<32x32xbf16>
    %c0_2 = arith.constant 0 : index
    %c0_3 = arith.constant 0 : index
    %c0_4 = arith.constant 0 : index
    %2 = vector.load %arg3[%c0_2, %c0_3, %c0_4] : memref<1x32x16xbf16, #tpu.memory_space<vmem>>, vector<1x32x16xbf16>
    %3 = vector.shape_cast %2 : vector<1x32x16xbf16> to vector<32x16xbf16>
    %cst = arith.constant dense<0.000000e+00> : vector<32x16xf32>
    %4 = tpu.matmul %1, %3, %cst {dimension_numbers = #tpu.dot_dimension_numbers<[1], [0], [0], [1], [0, 0, 1, 1], [], []>} : vector<32x32xbf16>, vector<32x16xbf16>, vector<32x16xf32> -> vector<32x16xf32>
    %c0_5 = arith.constant 0 : index
    %c0_6 = arith.constant 0 : index
    %c0_7 = arith.constant 0 : index
    %5 = vector.load %arg4[%c0_5, %c0_6, %c0_7] : memref<1x1x16xf32, #tpu.memory_space<vmem>>, vector<1x1x16xf32>
    %6 = vector.shape_cast %5 : vector<1x1x16xf32> to vector<1x16xf32>
    %7 = vector.broadcast %6 : vector<1x16xf32> to vector<32x16xf32>
    %8 = arith.addf %4, %7 : vector<32x16xf32>
    %cst_8 = arith.constant 0.000000e+00 : f32
    %9 = vector.broadcast %cst_8 : f32 to vector<32x16xf32>
    %10 = arith.maximumf %8, %9 : vector<32x16xf32>
    %11 = arith.truncf %10 : vector<32x16xf32> to vector<32x16xbf16>
    %c0_9 = arith.constant 0 : index
    %c0_10 = arith.constant 0 : index
    %c0_11 = arith.constant 0 : index
    %12 = vector.load %arg5[%c0_9, %c0_10, %c0_11] : memref<1x32x16xbf16, #tpu.memory_space<vmem>>, vector<1x32x16xbf16>
    %13 = vector.shape_cast %12 : vector<1x32x16xbf16> to vector<32x16xbf16>
    %14 = vector.shape_cast %11 : vector<32x16xbf16> to vector<1x32x16xbf16>
    tpu.vector_store %arg5[%c0_9, %c0_10, %c0_11], %14 {strides = array<i32>} : memref<1x32x16xbf16, #tpu.memory_space<vmem>>, vector<1x32x16xbf16>,
    return
  }
  func.func @transform_0(%arg0: i32, %arg1: i32) -> (i32, i32, i32) {
    %c0_i32 = arith.constant 0 : i32
    %c0_i32_0 = arith.constant 0 : i32
    return %arg0, %arg1, %c0_i32 : i32, i32, i32
  }
  func.func @transform_1(%arg0: i32, %arg1: i32) -> (i32, i32, i32) {
    %c0_i32 = arith.constant 0 : i32
    %c0_i32_0 = arith.constant 0 : i32
    %c0_i32_1 = arith.constant 0 : i32
    return %arg0, %c0_i32, %c0_i32_0 : i32, i32, i32
  }
  func.func @transform_2(%arg0: i32, %arg1: i32) -> (i32, i32, i32) {
    %c0_i32 = arith.constant 0 : i32
    %c0_i32_0 = arith.constant 0 : i32
    %c0_i32_1 = arith.constant 0 : i32
    return %arg0, %c0_i32, %c0_i32_0 : i32, i32, i32
  }
  func.func @transform_3(%arg0: i32, %arg1: i32) -> (i32, i32, i32) {
    %c0_i32 = arith.constant 0 : i32
    %c0_i32_0 = arith.constant 0 : i32
    return %arg0, %arg1, %c0_i32 : i32, i32, i32
  }
}

module attributes {stable_mosaic.version = 11 : i64} {
  func.func @_grouped_gemm_kernel(%arg0: i32, %arg1: i32, %arg2: memref<1x128x144xbf16, #tpu.memory_space<vmem>>, %arg3: memref<1x144x16xbf16, #tpu.memory_space<vmem>>, %arg4: memref<1x1x16xf32, #tpu.memory_space<vmem>>, %arg5: memref<1x128x16xbf16, #tpu.memory_space<vmem>>) attributes {dimension_semantics = [#tpu.dimension_semantics<parallel>, #tpu.dimension_semantics<parallel>], iteration_bounds = array<i64: 16, 1>, scalar_prefetch = 0 : i64, scratch_operands = 0 : i64, tpu.core_type = #tpu.core_type<tc>, window_params = [{transform_indices = @transform_0, window_bounds = array<i64: 1, 128, 144>}, {transform_indices = @transform_1, window_bounds = array<i64: 1, 144, 16>}, {transform_indices = @transform_2, window_bounds = array<i64: 1, 1, 16>}, {transform_indices = @transform_3, window_bounds = array<i64: 1, 128, 16>}]} {
    %c0 = arith.constant 0 : index
    %c0_0 = arith.constant 0 : index
    %c0_1 = arith.constant 0 : index
    %0 = vector.load %arg2[%c0, %c0_0, %c0_1] : memref<1x128x144xbf16, #tpu.memory_space<vmem>>, vector<1x128x144xbf16>
    %1 = vector.shape_cast %0 : vector<1x128x144xbf16> to vector<128x144xbf16>
    %c0_2 = arith.constant 0 : index
    %c0_3 = arith.constant 0 : index
    %c0_4 = arith.constant 0 : index
    %2 = vector.load %arg3[%c0_2, %c0_3, %c0_4] : memref<1x144x16xbf16, #tpu.memory_space<vmem>>, vector<1x144x16xbf16>
    %3 = vector.shape_cast %2 : vector<1x144x16xbf16> to vector<144x16xbf16>
    %cst = arith.constant dense<0.000000e+00> : vector<128x16xf32>
    %4 = tpu.matmul %1, %3, %cst {dimension_numbers = #tpu.dot_dimension_numbers<[1], [0], [0], [1], [0, 0, 1, 1], [], []>} : vector<128x144xbf16>, vector<144x16xbf16>, vector<128x16xf32> -> vector<128x16xf32>
    %c0_5 = arith.constant 0 : index
    %c0_6 = arith.constant 0 : index
    %c0_7 = arith.constant 0 : index
    %5 = vector.load %arg4[%c0_5, %c0_6, %c0_7] : memref<1x1x16xf32, #tpu.memory_space<vmem>>, vector<1x1x16xf32>
    %6 = vector.shape_cast %5 : vector<1x1x16xf32> to vector<1x16xf32>
    %7 = vector.broadcast %6 : vector<1x16xf32> to vector<128x16xf32>
    %8 = arith.addf %4, %7 : vector<128x16xf32>
    %cst_8 = arith.constant 0.000000e+00 : f32
    %9 = vector.broadcast %cst_8 : f32 to vector<128x16xf32>
    %10 = arith.maximumf %8, %9 : vector<128x16xf32>
    %11 = arith.truncf %10 : vector<128x16xf32> to vector<128x16xbf16>
    %c0_9 = arith.constant 0 : index
    %c0_10 = arith.constant 0 : index
    %c0_11 = arith.constant 0 : index
    %12 = vector.load %arg5[%c0_9, %c0_10, %c0_11] : memref<1x128x16xbf16, #tpu.memory_space<vmem>>, vector<1x128x16xbf16>
    %13 = vector.shape_cast %12 : vector<1x128x16xbf16> to vector<128x16xbf16>
    %14 = vector.shape_cast %11 : vector<128x16xbf16> to vector<1x128x16xbf16>
    tpu.vector_store %arg5[%c0_9, %c0_10, %c0_11], %14 {strides = array<i32>} : memref<1x128x16xbf16, #tpu.memory_space<vmem>>, vector<1x128x16xbf16>,
    return
  }
  func.func @transform_0(%arg0: i32, %arg1: i32) -> (i32, i32, i32) {
    %c0_i32 = arith.constant 0 : i32
    %c0_i32_0 = arith.constant 0 : i32
    return %arg0, %arg1, %c0_i32 : i32, i32, i32
  }
  func.func @transform_1(%arg0: i32, %arg1: i32) -> (i32, i32, i32) {
    %c0_i32 = arith.constant 0 : i32
    %c0_i32_0 = arith.constant 0 : i32
    %c0_i32_1 = arith.constant 0 : i32
    return %arg0, %c0_i32, %c0_i32_0 : i32, i32, i32
  }
  func.func @transform_2(%arg0: i32, %arg1: i32) -> (i32, i32, i32) {
    %c0_i32 = arith.constant 0 : i32
    %c0_i32_0 = arith.constant 0 : i32
    %c0_i32_1 = arith.constant 0 : i32
    return %arg0, %c0_i32, %c0_i32_0 : i32, i32, i32
  }
  func.func @transform_3(%arg0: i32, %arg1: i32) -> (i32, i32, i32) {
    %c0_i32 = arith.constant 0 : i32
    %c0_i32_0 = arith.constant 0 : i32
    return %arg0, %arg1, %c0_i32 : i32, i32, i32
  }
}

module attributes {stable_mosaic.version = 11 : i64} {
  func.func @_grouped_gemm_kernel(%arg0: i32, %arg1: i32, %arg2: memref<1x128x16xbf16, #tpu.memory_space<vmem>>, %arg3: memref<1x16x8xbf16, #tpu.memory_space<vmem>>, %arg4: memref<1x1x8xf32, #tpu.memory_space<vmem>>, %arg5: memref<1x128x8xbf16, #tpu.memory_space<vmem>>) attributes {dimension_semantics = [#tpu.dimension_semantics<parallel>, #tpu.dimension_semantics<parallel>], iteration_bounds = array<i64: 16, 1>, scalar_prefetch = 0 : i64, scratch_operands = 0 : i64, tpu.core_type = #tpu.core_type<tc>, window_params = [{transform_indices = @transform_0, window_bounds = array<i64: 1, 128, 16>}, {transform_indices = @transform_1, window_bounds = array<i64: 1, 16, 8>}, {transform_indices = @transform_2, window_bounds = array<i64: 1, 1, 8>}, {transform_indices = @transform_3, window_bounds = array<i64: 1, 128, 8>}]} {
    %c0 = arith.constant 0 : index
    %c0_0 = arith.constant 0 : index
    %c0_1 = arith.constant 0 : index
    %0 = vector.load %arg2[%c0, %c0_0, %c0_1] : memref<1x128x16xbf16, #tpu.memory_space<vmem>>, vector<1x128x16xbf16>
    %1 = vector.shape_cast %0 : vector<1x128x16xbf16> to vector<128x16xbf16>
    %c0_2 = arith.constant 0 : index
    %c0_3 = arith.constant 0 : index
    %c0_4 = arith.constant 0 : index
    %2 = vector.load %arg3[%c0_2, %c0_3, %c0_4] : memref<1x16x8xbf16, #tpu.memory_space<vmem>>, vector<1x16x8xbf16>
    %3 = vector.shape_cast %2 : vector<1x16x8xbf16> to vector<16x8xbf16>
    %cst = arith.constant dense<0.000000e+00> : vector<128x8xf32>
    %4 = tpu.matmul %1, %3, %cst {dimension_numbers = #tpu.dot_dimension_numbers<[1], [0], [0], [1], [0, 0, 1, 1], [], []>} : vector<128x16xbf16>, vector<16x8xbf16>, vector<128x8xf32> -> vector<128x8xf32>
    %c0_5 = arith.constant 0 : index
    %c0_6 = arith.constant 0 : index
    %c0_7 = arith.constant 0 : index
    %5 = vector.load %arg4[%c0_5, %c0_6, %c0_7] : memref<1x1x8xf32, #tpu.memory_space<vmem>>, vector<1x1x8xf32>
    %6 = vector.shape_cast %5 : vector<1x1x8xf32> to vector<1x8xf32>
    %7 = vector.broadcast %6 : vector<1x8xf32> to vector<128x8xf32>
    %8 = arith.addf %4, %7 : vector<128x8xf32>
    %cst_8 = arith.constant 0.000000e+00 : f32
    %9 = vector.broadcast %cst_8 : f32 to vector<128x8xf32>
    %10 = arith.maximumf %8, %9 : vector<128x8xf32>
    %11 = arith.truncf %10 : vector<128x8xf32> to vector<128x8xbf16>
    %c0_9 = arith.constant 0 : index
    %c0_10 = arith.constant 0 : index
    %c0_11 = arith.constant 0 : index
    %12 = vector.load %arg5[%c0_9, %c0_10, %c0_11] : memref<1x128x8xbf16, #tpu.memory_space<vmem>>, vector<1x128x8xbf16>
    %13 = vector.shape_cast %12 : vector<1x128x8xbf16> to vector<128x8xbf16>
    %14 = vector.shape_cast %11 : vector<128x8xbf16> to vector<1x128x8xbf16>
    tpu.vector_store %arg5[%c0_9, %c0_10, %c0_11], %14 {strides = array<i32>} : memref<1x128x8xbf16, #tpu.memory_space<vmem>>, vector<1x128x8xbf16>,
    return
  }
  func.func @transform_0(%arg0: i32, %arg1: i32) -> (i32, i32, i32) {
    %c0_i32 = arith.constant 0 : i32
    %c0_i32_0 = arith.constant 0 : i32
    return %arg0, %arg1, %c0_i32 : i32, i32, i32
  }
  func.func @transform_1(%arg0: i32, %arg1: i32) -> (i32, i32, i32) {
    %c0_i32 = arith.constant 0 : i32
    %c0_i32_0 = arith.constant 0 : i32
    %c0_i32_1 = arith.constant 0 : i32
    return %arg0, %c0_i32, %c0_i32_0 : i32, i32, i32
  }
  func.func @transform_2(%arg0: i32, %arg1: i32) -> (i32, i32, i32) {
    %c0_i32 = arith.constant 0 : i32
    %c0_i32_0 = arith.constant 0 : i32
    %c0_i32_1 = arith.constant 0 : i32
    return %arg0, %c0_i32, %c0_i32_0 : i32, i32, i32
  }
  func.func @transform_3(%arg0: i32, %arg1: i32) -> (i32, i32, i32) {
    %c0_i32 = arith.constant 0 : i32
    %c0_i32_0 = arith.constant 0 : i32
    return %arg0, %arg1, %c0_i32 : i32, i32, i32
  }
}

module attributes {stable_mosaic.version = 11 : i64} {
  func.func @_grouped_gemm_kernel(%arg0: i32, %arg1: i32, %arg2: memref<1x128x144xbf16, #tpu.memory_space<vmem>>, %arg3: memref<1x144x16xbf16, #tpu.memory_space<vmem>>, %arg4: memref<1x1x16xf32, #tpu.memory_space<vmem>>, %arg5: memref<1x128x16xbf16, #tpu.memory_space<vmem>>) attributes {dimension_semantics = [#tpu.dimension_semantics<parallel>, #tpu.dimension_semantics<parallel>], iteration_bounds = array<i64: 8, 1>, scalar_prefetch = 0 : i64, scratch_operands = 0 : i64, tpu.core_type = #tpu.core_type<tc>, window_params = [{transform_indices = @transform_0, window_bounds = array<i64: 1, 128, 144>}, {transform_indices = @transform_1, window_bounds = array<i64: 1, 144, 16>}, {transform_indices = @transform_2, window_bounds = array<i64: 1, 1, 16>}, {transform_indices = @transform_3, window_bounds = array<i64: 1, 128, 16>}]} {
    %c0 = arith.constant 0 : index
    %c0_0 = arith.constant 0 : index
    %c0_1 = arith.constant 0 : index
    %0 = vector.load %arg2[%c0, %c0_0, %c0_1] : memref<1x128x144xbf16, #tpu.memory_space<vmem>>, vector<1x128x144xbf16>
    %1 = vector.shape_cast %0 : vector<1x128x144xbf16> to vector<128x144xbf16>
    %c0_2 = arith.constant 0 : index
    %c0_3 = arith.constant 0 : index
    %c0_4 = arith.constant 0 : index
    %2 = vector.load %arg3[%c0_2, %c0_3, %c0_4] : memref<1x144x16xbf16, #tpu.memory_space<vmem>>, vector<1x144x16xbf16>
    %3 = vector.shape_cast %2 : vector<1x144x16xbf16> to vector<144x16xbf16>
    %cst = arith.constant dense<0.000000e+00> : vector<128x16xf32>
    %4 = tpu.matmul %1, %3, %cst {dimension_numbers = #tpu.dot_dimension_numbers<[1], [0], [0], [1], [0, 0, 1, 1], [], []>} : vector<128x144xbf16>, vector<144x16xbf16>, vector<128x16xf32> -> vector<128x16xf32>
    %c0_5 = arith.constant 0 : index
    %c0_6 = arith.constant 0 : index
    %c0_7 = arith.constant 0 : index
    %5 = vector.load %arg4[%c0_5, %c0_6, %c0_7] : memref<1x1x16xf32, #tpu.memory_space<vmem>>, vector<1x1x16xf32>
    %6 = vector.shape_cast %5 : vector<1x1x16xf32> to vector<1x16xf32>
    %7 = vector.broadcast %6 : vector<1x16xf32> to vector<128x16xf32>
    %8 = arith.addf %4, %7 : vector<128x16xf32>
    %cst_8 = arith.constant 0.000000e+00 : f32
    %9 = vector.broadcast %cst_8 : f32 to vector<128x16xf32>
    %10 = arith.maximumf %8, %9 : vector<128x16xf32>
    %11 = arith.truncf %10 : vector<128x16xf32> to vector<128x16xbf16>
    %c0_9 = arith.constant 0 : index
    %c0_10 = arith.constant 0 : index
    %c0_11 = arith.constant 0 : index
    %12 = vector.load %arg5[%c0_9, %c0_10, %c0_11] : memref<1x128x16xbf16, #tpu.memory_space<vmem>>, vector<1x128x16xbf16>
    %13 = vector.shape_cast %12 : vector<1x128x16xbf16> to vector<128x16xbf16>
    %14 = vector.shape_cast %11 : vector<128x16xbf16> to vector<1x128x16xbf16>
    tpu.vector_store %arg5[%c0_9, %c0_10, %c0_11], %14 {strides = array<i32>} : memref<1x128x16xbf16, #tpu.memory_space<vmem>>, vector<1x128x16xbf16>,
    return
  }
  func.func @transform_0(%arg0: i32, %arg1: i32) -> (i32, i32, i32) {
    %c0_i32 = arith.constant 0 : i32
    %c0_i32_0 = arith.constant 0 : i32
    return %arg0, %arg1, %c0_i32 : i32, i32, i32
  }
  func.func @transform_1(%arg0: i32, %arg1: i32) -> (i32, i32, i32) {
    %c0_i32 = arith.constant 0 : i32
    %c0_i32_0 = arith.constant 0 : i32
    %c0_i32_1 = arith.constant 0 : i32
    return %arg0, %c0_i32, %c0_i32_0 : i32, i32, i32
  }
  func.func @transform_2(%arg0: i32, %arg1: i32) -> (i32, i32, i32) {
    %c0_i32 = arith.constant 0 : i32
    %c0_i32_0 = arith.constant 0 : i32
    %c0_i32_1 = arith.constant 0 : i32
    return %arg0, %c0_i32, %c0_i32_0 : i32, i32, i32
  }
  func.func @transform_3(%arg0: i32, %arg1: i32) -> (i32, i32, i32) {
    %c0_i32 = arith.constant 0 : i32
    %c0_i32_0 = arith.constant 0 : i32
    return %arg0, %arg1, %c0_i32 : i32, i32, i32
  }
}

module attributes {stable_mosaic.version = 11 : i64} {
  func.func @_grouped_gemm_kernel(%arg0: i32, %arg1: i32, %arg2: memref<1x128x8xbf16, #tpu.memory_space<vmem>>, %arg3: memref<1x8x8xbf16, #tpu.memory_space<vmem>>, %arg4: memref<1x1x8xf32, #tpu.memory_space<vmem>>, %arg5: memref<1x128x8xbf16, #tpu.memory_space<vmem>>) attributes {dimension_semantics = [#tpu.dimension_semantics<parallel>, #tpu.dimension_semantics<parallel>], iteration_bounds = array<i64: 16, 1>, scalar_prefetch = 0 : i64, scratch_operands = 0 : i64, tpu.core_type = #tpu.core_type<tc>, window_params = [{transform_indices = @transform_0, window_bounds = array<i64: 1, 128, 8>}, {transform_indices = @transform_1, window_bounds = array<i64: 1, 8, 8>}, {transform_indices = @transform_2, window_bounds = array<i64: 1, 1, 8>}, {transform_indices = @transform_3, window_bounds = array<i64: 1, 128, 8>}]} {
    %c0 = arith.constant 0 : index
    %c0_0 = arith.constant 0 : index
    %c0_1 = arith.constant 0 : index
    %0 = vector.load %arg2[%c0, %c0_0, %c0_1] : memref<1x128x8xbf16, #tpu.memory_space<vmem>>, vector<1x128x8xbf16>
    %1 = vector.shape_cast %0 : vector<1x128x8xbf16> to vector<128x8xbf16>
    %c0_2 = arith.constant 0 : index
    %c0_3 = arith.constant 0 : index
    %c0_4 = arith.constant 0 : index
    %2 = vector.load %arg3[%c0_2, %c0_3, %c0_4] : memref<1x8x8xbf16, #tpu.memory_space<vmem>>, vector<1x8x8xbf16>
    %3 = vector.shape_cast %2 : vector<1x8x8xbf16> to vector<8x8xbf16>
    %cst = arith.constant dense<0.000000e+00> : vector<128x8xf32>
    %4 = tpu.matmul %1, %3, %cst {dimension_numbers = #tpu.dot_dimension_numbers<[1], [0], [0], [1], [0, 0, 1, 1], [], []>} : vector<128x8xbf16>, vector<8x8xbf16>, vector<128x8xf32> -> vector<128x8xf32>
    %c0_5 = arith.constant 0 : index
    %c0_6 = arith.constant 0 : index
    %c0_7 = arith.constant 0 : index
    %5 = vector.load %arg4[%c0_5, %c0_6, %c0_7] : memref<1x1x8xf32, #tpu.memory_space<vmem>>, vector<1x1x8xf32>
    %6 = vector.shape_cast %5 : vector<1x1x8xf32> to vector<1x8xf32>
    %7 = vector.broadcast %6 : vector<1x8xf32> to vector<128x8xf32>
    %8 = arith.addf %4, %7 : vector<128x8xf32>
    %cst_8 = arith.constant 0.000000e+00 : f32
    %9 = vector.broadcast %cst_8 : f32 to vector<128x8xf32>
    %10 = arith.maximumf %8, %9 : vector<128x8xf32>
    %11 = arith.truncf %10 : vector<128x8xf32> to vector<128x8xbf16>
    %c0_9 = arith.constant 0 : index
    %c0_10 = arith.constant 0 : index
    %c0_11 = arith.constant 0 : index
    %12 = vector.load %arg5[%c0_9, %c0_10, %c0_11] : memref<1x128x8xbf16, #tpu.memory_space<vmem>>, vector<1x128x8xbf16>
    %13 = vector.shape_cast %12 : vector<1x128x8xbf16> to vector<128x8xbf16>
    %14 = vector.shape_cast %11 : vector<128x8xbf16> to vector<1x128x8xbf16>
    tpu.vector_store %arg5[%c0_9, %c0_10, %c0_11], %14 {strides = array<i32>} : memref<1x128x8xbf16, #tpu.memory_space<vmem>>, vector<1x128x8xbf16>,
    return
  }
  func.func @transform_0(%arg0: i32, %arg1: i32) -> (i32, i32, i32) {
    %c0_i32 = arith.constant 0 : i32
    %c0_i32_0 = arith.constant 0 : i32
    return %arg0, %arg1, %c0_i32 : i32, i32, i32
  }
  func.func @transform_1(%arg0: i32, %arg1: i32) -> (i32, i32, i32) {
    %c0_i32 = arith.constant 0 : i32
    %c0_i32_0 = arith.constant 0 : i32
    %c0_i32_1 = arith.constant 0 : i32
    return %arg0, %c0_i32, %c0_i32_0 : i32, i32, i32
  }
  func.func @transform_2(%arg0: i32, %arg1: i32) -> (i32, i32, i32) {
    %c0_i32 = arith.constant 0 : i32
    %c0_i32_0 = arith.constant 0 : i32
    %c0_i32_1 = arith.constant 0 : i32
    return %arg0, %c0_i32, %c0_i32_0 : i32, i32, i32
  }
  func.func @transform_3(%arg0: i32, %arg1: i32) -> (i32, i32, i32) {
    %c0_i32 = arith.constant 0 : i32
    %c0_i32_0 = arith.constant 0 : i32
    return %arg0, %arg1, %c0_i32 : i32, i32, i32
  }
}

module attributes {stable_mosaic.version = 11 : i64} {
  func.func @_grouped_gemm_kernel(%arg0: i32, %arg1: i32, %arg2: memref<1x512x72xbf16, #tpu.memory_space<vmem>>, %arg3: memref<1x72x8xbf16, #tpu.memory_space<vmem>>, %arg4: memref<1x1x8xf32, #tpu.memory_space<vmem>>, %arg5: memref<1x512x8xbf16, #tpu.memory_space<vmem>>) attributes {dimension_semantics = [#tpu.dimension_semantics<parallel>, #tpu.dimension_semantics<parallel>], iteration_bounds = array<i64: 16, 1>, scalar_prefetch = 0 : i64, scratch_operands = 0 : i64, tpu.core_type = #tpu.core_type<tc>, window_params = [{transform_indices = @transform_0, window_bounds = array<i64: 1, 512, 72>}, {transform_indices = @transform_1, window_bounds = array<i64: 1, 72, 8>}, {transform_indices = @transform_2, window_bounds = array<i64: 1, 1, 8>}, {transform_indices = @transform_3, window_bounds = array<i64: 1, 512, 8>}]} {
    %c0 = arith.constant 0 : index
    %c0_0 = arith.constant 0 : index
    %c0_1 = arith.constant 0 : index
    %0 = vector.load %arg2[%c0, %c0_0, %c0_1] : memref<1x512x72xbf16, #tpu.memory_space<vmem>>, vector<1x512x72xbf16>
    %1 = vector.shape_cast %0 : vector<1x512x72xbf16> to vector<512x72xbf16>
    %c0_2 = arith.constant 0 : index
    %c0_3 = arith.constant 0 : index
    %c0_4 = arith.constant 0 : index
    %2 = vector.load %arg3[%c0_2, %c0_3, %c0_4] : memref<1x72x8xbf16, #tpu.memory_space<vmem>>, vector<1x72x8xbf16>
    %3 = vector.shape_cast %2 : vector<1x72x8xbf16> to vector<72x8xbf16>
    %cst = arith.constant dense<0.000000e+00> : vector<512x8xf32>
    %4 = tpu.matmul %1, %3, %cst {dimension_numbers = #tpu.dot_dimension_numbers<[1], [0], [0], [1], [0, 0, 1, 1], [], []>} : vector<512x72xbf16>, vector<72x8xbf16>, vector<512x8xf32> -> vector<512x8xf32>
    %c0_5 = arith.constant 0 : index
    %c0_6 = arith.constant 0 : index
    %c0_7 = arith.constant 0 : index
    %5 = vector.load %arg4[%c0_5, %c0_6, %c0_7] : memref<1x1x8xf32, #tpu.memory_space<vmem>>, vector<1x1x8xf32>
    %6 = vector.shape_cast %5 : vector<1x1x8xf32> to vector<1x8xf32>
    %7 = vector.broadcast %6 : vector<1x8xf32> to vector<512x8xf32>
    %8 = arith.addf %4, %7 : vector<512x8xf32>
    %cst_8 = arith.constant 0.000000e+00 : f32
    %9 = vector.broadcast %cst_8 : f32 to vector<512x8xf32>
    %10 = arith.maximumf %8, %9 : vector<512x8xf32>
    %11 = arith.truncf %10 : vector<512x8xf32> to vector<512x8xbf16>
    %c0_9 = arith.constant 0 : index
    %c0_10 = arith.constant 0 : index
    %c0_11 = arith.constant 0 : index
    %12 = vector.load %arg5[%c0_9, %c0_10, %c0_11] : memref<1x512x8xbf16, #tpu.memory_space<vmem>>, vector<1x512x8xbf16>
    %13 = vector.shape_cast %12 : vector<1x512x8xbf16> to vector<512x8xbf16>
    %14 = vector.shape_cast %11 : vector<512x8xbf16> to vector<1x512x8xbf16>
    tpu.vector_store %arg5[%c0_9, %c0_10, %c0_11], %14 {strides = array<i32>} : memref<1x512x8xbf16, #tpu.memory_space<vmem>>, vector<1x512x8xbf16>,
    return
  }
  func.func @transform_0(%arg0: i32, %arg1: i32) -> (i32, i32, i32) {
    %c0_i32 = arith.constant 0 : i32
    %c0_i32_0 = arith.constant 0 : i32
    return %arg0, %arg1, %c0_i32 : i32, i32, i32
  }
  func.func @transform_1(%arg0: i32, %arg1: i32) -> (i32, i32, i32) {
    %c0_i32 = arith.constant 0 : i32
    %c0_i32_0 = arith.constant 0 : i32
    %c0_i32_1 = arith.constant 0 : i32
    return %arg0, %c0_i32, %c0_i32_0 : i32, i32, i32
  }
  func.func @transform_2(%arg0: i32, %arg1: i32) -> (i32, i32, i32) {
    %c0_i32 = arith.constant 0 : i32
    %c0_i32_0 = arith.constant 0 : i32
    %c0_i32_1 = arith.constant 0 : i32
    return %arg0, %c0_i32, %c0_i32_0 : i32, i32, i32
  }
  func.func @transform_3(%arg0: i32, %arg1: i32) -> (i32, i32, i32) {
    %c0_i32 = arith.constant 0 : i32
    %c0_i32_0 = arith.constant 0 : i32
    return %arg0, %arg1, %c0_i32 : i32, i32, i32
  }
}

module attributes {stable_mosaic.version = 11 : i64} {
  func.func @_grouped_gemm_kernel(%arg0: i32, %arg1: i32, %arg2: memref<1x512x16xbf16, #tpu.memory_space<vmem>>, %arg3: memref<1x16x8xbf16, #tpu.memory_space<vmem>>, %arg4: memref<1x1x8xf32, #tpu.memory_space<vmem>>, %arg5: memref<1x512x8xbf16, #tpu.memory_space<vmem>>) attributes {dimension_semantics = [#tpu.dimension_semantics<parallel>, #tpu.dimension_semantics<parallel>], iteration_bounds = array<i64: 8, 1>, scalar_prefetch = 0 : i64, scratch_operands = 0 : i64, tpu.core_type = #tpu.core_type<tc>, window_params = [{transform_indices = @transform_0, window_bounds = array<i64: 1, 512, 16>}, {transform_indices = @transform_1, window_bounds = array<i64: 1, 16, 8>}, {transform_indices = @transform_2, window_bounds = array<i64: 1, 1, 8>}, {transform_indices = @transform_3, window_bounds = array<i64: 1, 512, 8>}]} {
    %c0 = arith.constant 0 : index
    %c0_0 = arith.constant 0 : index
    %c0_1 = arith.constant 0 : index
    %0 = vector.load %arg2[%c0, %c0_0, %c0_1] : memref<1x512x16xbf16, #tpu.memory_space<vmem>>, vector<1x512x16xbf16>
    %1 = vector.shape_cast %0 : vector<1x512x16xbf16> to vector<512x16xbf16>
    %c0_2 = arith.constant 0 : index
    %c0_3 = arith.constant 0 : index
    %c0_4 = arith.constant 0 : index
    %2 = vector.load %arg3[%c0_2, %c0_3, %c0_4] : memref<1x16x8xbf16, #tpu.memory_space<vmem>>, vector<1x16x8xbf16>
    %3 = vector.shape_cast %2 : vector<1x16x8xbf16> to vector<16x8xbf16>
    %cst = arith.constant dense<0.000000e+00> : vector<512x8xf32>
    %4 = tpu.matmul %1, %3, %cst {dimension_numbers = #tpu.dot_dimension_numbers<[1], [0], [0], [1], [0, 0, 1, 1], [], []>} : vector<512x16xbf16>, vector<16x8xbf16>, vector<512x8xf32> -> vector<512x8xf32>
    %c0_5 = arith.constant 0 : index
    %c0_6 = arith.constant 0 : index
    %c0_7 = arith.constant 0 : index
    %5 = vector.load %arg4[%c0_5, %c0_6, %c0_7] : memref<1x1x8xf32, #tpu.memory_space<vmem>>, vector<1x1x8xf32>
    %6 = vector.shape_cast %5 : vector<1x1x8xf32> to vector<1x8xf32>
    %7 = vector.broadcast %6 : vector<1x8xf32> to vector<512x8xf32>
    %8 = arith.addf %4, %7 : vector<512x8xf32>
    %cst_8 = arith.constant 0.000000e+00 : f32
    %9 = vector.broadcast %cst_8 : f32 to vector<512x8xf32>
    %10 = arith.maximumf %8, %9 : vector<512x8xf32>
    %11 = arith.truncf %10 : vector<512x8xf32> to vector<512x8xbf16>
    %c0_9 = arith.constant 0 : index
    %c0_10 = arith.constant 0 : index
    %c0_11 = arith.constant 0 : index
    %12 = vector.load %arg5[%c0_9, %c0_10, %c0_11] : memref<1x512x8xbf16, #tpu.memory_space<vmem>>, vector<1x512x8xbf16>
    %13 = vector.shape_cast %12 : vector<1x512x8xbf16> to vector<512x8xbf16>
    %14 = vector.shape_cast %11 : vector<512x8xbf16> to vector<1x512x8xbf16>
    tpu.vector_store %arg5[%c0_9, %c0_10, %c0_11], %14 {strides = array<i32>} : memref<1x512x8xbf16, #tpu.memory_space<vmem>>, vector<1x512x8xbf16>,
    return
  }
  func.func @transform_0(%arg0: i32, %arg1: i32) -> (i32, i32, i32) {
    %c0_i32 = arith.constant 0 : i32
    %c0_i32_0 = arith.constant 0 : i32
    return %arg0, %arg1, %c0_i32 : i32, i32, i32
  }
  func.func @transform_1(%arg0: i32, %arg1: i32) -> (i32, i32, i32) {
    %c0_i32 = arith.constant 0 : i32
    %c0_i32_0 = arith.constant 0 : i32
    %c0_i32_1 = arith.constant 0 : i32
    return %arg0, %c0_i32, %c0_i32_0 : i32, i32, i32
  }
  func.func @transform_2(%arg0: i32, %arg1: i32) -> (i32, i32, i32) {
    %c0_i32 = arith.constant 0 : i32
    %c0_i32_0 = arith.constant 0 : i32
    %c0_i32_1 = arith.constant 0 : i32
    return %arg0, %c0_i32, %c0_i32_0 : i32, i32, i32
  }
  func.func @transform_3(%arg0: i32, %arg1: i32) -> (i32, i32, i32) {
    %c0_i32 = arith.constant 0 : i32
    %c0_i32_0 = arith.constant 0 : i32
    return %arg0, %arg1, %c0_i32 : i32, i32, i32
  }
}

module attributes {stable_mosaic.version = 11 : i64} {
  func.func @_grouped_gemm_kernel(%arg0: i32, %arg1: i32, %arg2: memref<1x512x64xbf16, #tpu.memory_space<vmem>>, %arg3: memref<1x64x1xbf16, #tpu.memory_space<vmem>>, %arg4: memref<1x1x1xf32, #tpu.memory_space<vmem>>, %arg5: memref<1x512x1xbf16, #tpu.memory_space<vmem>>) attributes {dimension_semantics = [#tpu.dimension_semantics<parallel>, #tpu.dimension_semantics<parallel>], iteration_bounds = array<i64: 1, 1>, scalar_prefetch = 0 : i64, scratch_operands = 0 : i64, tpu.core_type = #tpu.core_type<tc>, window_params = [{transform_indices = @transform_0, window_bounds = array<i64: 1, 512, 64>}, {transform_indices = @transform_1, window_bounds = array<i64: 1, 64, 1>}, {transform_indices = @transform_2, window_bounds = array<i64: 1, 1, 1>}, {transform_indices = @transform_3, window_bounds = array<i64: 1, 512, 1>}]} {
    %c0 = arith.constant 0 : index
    %c0_0 = arith.constant 0 : index
    %c0_1 = arith.constant 0 : index
    %0 = vector.load %arg2[%c0, %c0_0, %c0_1] : memref<1x512x64xbf16, #tpu.memory_space<vmem>>, vector<1x512x64xbf16>
    %1 = vector.shape_cast %0 : vector<1x512x64xbf16> to vector<512x64xbf16>
    %c0_2 = arith.constant 0 : index
    %c0_3 = arith.constant 0 : index
    %c0_4 = arith.constant 0 : index
    %2 = vector.load %arg3[%c0_2, %c0_3, %c0_4] : memref<1x64x1xbf16, #tpu.memory_space<vmem>>, vector<1x64x1xbf16>
    %3 = vector.shape_cast %2 : vector<1x64x1xbf16> to vector<64x1xbf16>
    %cst = arith.constant dense<0.000000e+00> : vector<512x1xf32>
    %4 = tpu.matmul %1, %3, %cst {dimension_numbers = #tpu.dot_dimension_numbers<[1], [0], [0], [1], [0, 0, 1, 1], [], []>} : vector<512x64xbf16>, vector<64x1xbf16>, vector<512x1xf32> -> vector<512x1xf32>
    %c0_5 = arith.constant 0 : index
    %c0_6 = arith.constant 0 : index
    %c0_7 = arith.constant 0 : index
    %5 = vector.load %arg4[%c0_5, %c0_6, %c0_7] : memref<1x1x1xf32, #tpu.memory_space<vmem>>, vector<1x1x1xf32>
    %6 = vector.shape_cast %5 : vector<1x1x1xf32> to vector<1x1xf32>
    %7 = vector.broadcast %6 : vector<1x1xf32> to vector<512x1xf32>
    %8 = arith.addf %4, %7 : vector<512x1xf32>
    %9 = arith.truncf %8 : vector<512x1xf32> to vector<512x1xbf16>
    %c0_8 = arith.constant 0 : index
    %c0_9 = arith.constant 0 : index
    %c0_10 = arith.constant 0 : index
    %10 = vector.load %arg5[%c0_8, %c0_9, %c0_10] : memref<1x512x1xbf16, #tpu.memory_space<vmem>>, vector<1x512x1xbf16>
    %11 = vector.shape_cast %10 : vector<1x512x1xbf16> to vector<512x1xbf16>
    %12 = vector.shape_cast %9 : vector<512x1xbf16> to vector<1x512x1xbf16>
    tpu.vector_store %arg5[%c0_8, %c0_9, %c0_10], %12 {strides = array<i32>} : memref<1x512x1xbf16, #tpu.memory_space<vmem>>, vector<1x512x1xbf16>,
    return
  }
  func.func @transform_0(%arg0: i32, %arg1: i32) -> (i32, i32, i32) {
    %c0_i32 = arith.constant 0 : i32
    %c0_i32_0 = arith.constant 0 : i32
    return %arg0, %arg1, %c0_i32 : i32, i32, i32
  }
  func.func @transform_1(%arg0: i32, %arg1: i32) -> (i32, i32, i32) {
    %c0_i32 = arith.constant 0 : i32
    %c0_i32_0 = arith.constant 0 : i32
    %c0_i32_1 = arith.constant 0 : i32
    return %arg0, %c0_i32, %c0_i32_0 : i32, i32, i32
  }
  func.func @transform_2(%arg0: i32, %arg1: i32) -> (i32, i32, i32) {
    %c0_i32 = arith.constant 0 : i32
    %c0_i32_0 = arith.constant 0 : i32
    %c0_i32_1 = arith.constant 0 : i32
    return %arg0, %c0_i32, %c0_i32_0 : i32, i32, i32
  }
  func.func @transform_3(%arg0: i32, %arg1: i32) -> (i32, i32, i32) {
    %c0_i32 = arith.constant 0 : i32
    %c0_i32_0 = arith.constant 0 : i32
    return %arg0, %arg1, %c0_i32 : i32, i32, i32
  }
}

</mosaic_0001>

<bundles_post_ra>
// kernel: forward.44
= control target key start
LH: loop header
LB: loop body
LE: loop exit
PB: predicated region body
PF: predicated region fallthrough
CT: control target
= control target key end

     0   :  { %8 = vsyncpa [#allocation3], 0  ;;  %s1943_s0 = inlined_call_operand.vmem [shape: bf16[1,512,9], index: 0, kind: input, shape index: {}]   ;;  %s1944_s1 = inlined_call_operand.hbm [shape: bf16[1,9,64], index: 1, kind: input, shape index: {}]   ;;  %s1945_s2 = inlined_call_operand.hbm [shape: f32[1,1,64], index: 2, kind: input, shape index: {}]   ;;  %s1946_s3 = inlined_call_operand.vmem [shape: bf16[1,512,64], index: 3, kind: output, shape index: {}]  }
   0x1   :  { %9 = vsyncpa [#allocation5], 0  ;;  %s1444_s12 = smov [#allocation2]   ;;  %s1396_s16 = scalar_lea.hbm %s1944_s1, 128 }
   0x2   :  { %s17_s13 = sshll.u32 %s1444_s12, 4  ;;  %p1397_p0 = scmp.ne.s32.totalorder %s1944_s1, %s1396_s16  ;;  %s18_s13 = int_to_ptr.vmem [resolvable:$true] %s17_s13 }
   0x3   :  { %p1400_p1 = scmp.lt.u32.totalorder %s1396_s16, %s1944_s1 }
   0x5   :  { %p1402_p2 = pnand %p1400_p1, %p1397_p0 }
   0x7   :  { %1405 = shalt.err (!%p1402_p2)
}
   0x8   :  { %s1406_s21 = scalar_lea.vmem %s18_s13, 128  ;;  %p1411_p4 = scmp.lt.s32.totalorder %s18_s13, %s18_s13 }
   0x9   :  { %p1407_p3 = scmp.ne.s32.totalorder %s18_s13, %s1406_s21  ;;  %p1412_p5 = scmp.lt.s32.totalorder %s1406_s21, %s1406_s21 }
   0xb   :  { %p1413_p6 = por %p1412_p5, %p1411_p4 }
   0xd   :  { %p1414_p7 = pnand %p1413_p6, %p1407_p3 }
   0xf   :  { %1417 = shalt.err (!%p1414_p7)
}
  0x10   :  { %s1445_s22 = smov 64   ;;  %s1446_s23 = smov 4  }
  0x11   :  { %23 = dma.hbm_to_vmem [thread:$0]  %s1944_s1, 128, %s18_s13, [#allocation3], %s1445_s22, %s1445_s22, %s1446_s23  }
  0x12   :  { %s1447_s26 = smov [#allocation4]   ;;  %s1418_s30 = scalar_lea.hbm %s1945_s2, 16 }
  0x13   :  { %s30_s27 = sshll.u32 %s1447_s26, 4  ;;  %p1419_p8 = scmp.ne.s32.totalorder %s1945_s2, %s1418_s30  ;;  %s31_s27 = int_to_ptr.vmem [resolvable:$true] %s30_s27 }
  0x14   :  { %p1422_p9 = scmp.lt.u32.totalorder %s1418_s30, %s1945_s2 }
  0x16   :  { %p1424_p10 = pnand %p1422_p9, %p1419_p8 }
  0x18   :  { %1427 = shalt.err (!%p1424_p10)
}
  0x19   :  { %s1428_s8 = scalar_lea.vmem %s31_s27, 16  ;;  %s1432_s1 = scalar_lea.vmem %s31_s27, 32 }
  0x1a   :  { %p1429_p11 = scmp.ne.s32.totalorder %s31_s27, %s1428_s8  ;;  %p1433_p12 = scmp.lt.s32.totalorder %s31_s27, %s31_s27 }
  0x1b   :  { %p1434_p13 = scmp.lt.s32.totalorder %s1432_s1, %s1428_s8 }
  0x1d   :  { %p1435_p0 = por %p1434_p13, %p1433_p12 }
  0x1f   :  { %p1436_p1 = pnand %p1435_p0, %p1429_p11 }
  0x21   :  { %1439 = shalt.err (!%p1436_p1)
}
  0x22   :  { %33 = dma.hbm_to_vmem [thread:$0]  %s1945_s2, 16, %s31_s27, [#allocation5]  }
  0x23   :  { %1440 = dma.done.wait [#allocation3], 128  }
  0x24   :  { %1441 = vsyncadd [#allocation3], 4294967168 }
  0x25   :  { %1442 = dma.done.wait [#allocation5], 16  }
  0x26   :  { %1443 = vsyncadd [#allocation5], 4294967280  ;;  %vm376_vm0 = vcmask 1043456   ;;  %vm377_vm1 = vcmask 1044480   ;;  %v1448_v0 = vmov 65535   ;;  %vm279_vm2 = vcmask 72704  }
  0x27   :  { %v378_v1 = vsel %vm376_vm0, 4294967295, %v1448_v0  ;;  %v1363_v3 = vld [vmem:[#allocation2] sm:$0x1f]   ;;  %v1366_v7 = vld [vmem:[%s1943_s0 + $0x8] sm:$0xff]   ;;  %v1368_v9 = vld [vmem:[%s1943_s0 + $0x10] sm:$0xff]   ;;  %vm992_vm3 = vcmask 519168  }
  0x28   :  { %v379_v2 = vsel %vm377_vm1, %v378_v1, 0  ;;  %v1364_v4 = vld [vmem:[%s1943_s0] sm:$0xff]   ;;  %v1367_v8 = vld [vmem:[%s1943_s0 + $0x88] sm:$0xff]   ;;  %v1369_v10 = vld [vmem:[%s1943_s0 + $0x90] sm:$0xff]  }
  0x29   :  { %v381_v5 = vand.u32 %v1363_v3, %v379_v2  ;;  %v1365_v6 = vld [vmem:[%s1943_s0 + $0x80] sm:$0xff]   ;;  %1292 = vmatprep.mubr.msk.bf16.mxu0 %vm279_vm2, %v1364_v4  ;;  %v1370_v11 = vld [vmem:[%s1943_s0 + $0x18] sm:$0xff]   ;;  %v1374_v15 = vld [vmem:[%s1943_s0 + $0x28] sm:$0xff]  }
  0x2a   :  { %1324 = vmatprep.mubr.msk.bf16.mxu1 %vm279_vm2, %v1365_v6  ;;  %v1371_v12 = vld [vmem:[%s1943_s0 + $0x98] sm:$0xff]   ;;  %v1372_v13 = vld [vmem:[%s1943_s0 + $0x20] sm:$0xff]   ;;  %v1375_v16 = vld [vmem:[%s1943_s0 + $0xa8] sm:$0xff]  }
  0x2b   :  { %1290 = vmatprep.subr.bf16.mxu0 %v381_v5  ;;  %1356 = vmatprep.subr.bf16.mxu1 %v381_v5  ;;  %v1373_v14 = vld [vmem:[%s1943_s0 + $0xa0] sm:$0xff]   ;;  %v1376_v17 = vld [vmem:[%s1943_s0 + $0x30] sm:$0xff]   ;;  %v1378_v19 = vld [vmem:[%s1943_s0 + $0x38] sm:$0xff]  }
  0x2c   :  { %1291 = vmatpush3.bf16.msra.mxu0 %v381_v5  ;;  %1357 = vmatpush3.bf16.msra.mxu1 %v381_v5  ;;  %v1377_v18 = vld [vmem:[%s1943_s0 + $0xb0] sm:$0xff]   ;;  %v1379_v20 = vld [vmem:[%s1943_s0 + $0xb8] sm:$0xff]   ;;  %v1380_v21 = vld [vmem:[%s1943_s0 + $0x40] sm:$0xff]  }
  0x2d   :  { %v1381_v22 = vld [vmem:[%s1943_s0 + $0xc0] sm:$0xff]   ;;  %v1382_v23 = vld [vmem:[%s1943_s0 + $0x48] sm:$0xff]   ;;  %v1384_v25 = vld [vmem:[%s1943_s0 + $0x50] sm:$0xff]  }
  0x2e   :  { %v1383_v24 = vld [vmem:[%s1943_s0 + $0xc8] sm:$0xff]   ;;  %v1385_v26 = vld [vmem:[%s1943_s0 + $0xd0] sm:$0xff]   ;;  %v1386_v27 = vld [vmem:[%s1943_s0 + $0x58] sm:$0xff]  }
  0x2f   :  { %1293 = vmatmul.mubr.msk.bf16.vlgmr.msra.gmra.mrb[0].mxu0 %vm279_vm2, %v1366_v7  ;;  %1325 = vmatmul.mubr.msk.bf16.vlgmr.msra.gmra.mrb[0].mxu1 %vm279_vm2, %v1367_v8  ;;  %v1387_v28 = vld [vmem:[%s1943_s0 + $0xd8] sm:$0xff]   ;;  %v1388_v29 = vld [vmem:[%s1943_s0 + $0x60] sm:$0xff]   ;;  %v1390_v31 = vld [vmem:[%s1943_s0 + $0x68] sm:$0xff]  }
  0x30   :  { %1296 = vmatprep.mubr.msk.bf16.mxu0 %vm279_vm2, %v1368_v9  ;;  %1328 = vmatprep.mubr.msk.bf16.mxu1 %vm279_vm2, %v1369_v10  ;;  %v1389_v30 = vld [vmem:[%s1943_s0 + $0xe0] sm:$0xff]   ;;  %v1391_v32 = vld [vmem:[%s1943_s0 + $0xe8] sm:$0xff]   ;;  %v1392_v33 = vld [vmem:[%s1943_s0 + $0x70] sm:$0xff]  }
  0x31   :  { %v1393_v34 = vld [vmem:[%s1943_s0 + $0xf0] sm:$0xff]   ;;  %v1394_v35 = vld [vmem:[%s1943_s0 + $0x78] sm:$0xff]   ;;  %v1621_v37 = vld [vmem:[#allocation4] ss:$0 sm:$0xff] }
  0x32   :  { %v1395_v36 = vld [vmem:[%s1943_s0 + $0xf8] sm:$0xff]  }
  0x37   :  { %1297 = vmatmul.mubr.msk.bf16.gmra.mrb[4].mxu0 %vm279_vm2, %v1370_v11  ;;  %1329 = vmatmul.mubr.msk.bf16.gmra.mrb[4].mxu1 %vm279_vm2, %v1371_v12 }
  0x38   :  { %1300 = vmatprep.mubr.msk.bf16.mxu0 %vm279_vm2, %v1372_v13  ;;  %1332 = vmatprep.mubr.msk.bf16.mxu1 %vm279_vm2, %v1373_v14 }
  0x3f   :  { %1301 = vmatmul.mubr.msk.bf16.gmra.mrb[8].mxu0 %vm279_vm2, %v1374_v15  ;;  %1333 = vmatmul.mubr.msk.bf16.gmra.mrb[8].mxu1 %vm279_vm2, %v1375_v16 }
  0x40   :  { %1304 = vmatprep.mubr.msk.bf16.mxu0 %vm279_vm2, %v1376_v17  ;;  %1336 = vmatprep.mubr.msk.bf16.mxu1 %vm279_vm2, %v1377_v18 }
  0x47   :  { %1305 = vmatmul.mubr.msk.bf16.gmra.mrb[12].mxu0 %vm279_vm2, %v1378_v19  ;;  %1337 = vmatmul.mubr.msk.bf16.gmra.mrb[12].mxu1 %vm279_vm2, %v1379_v20 }
  0x48   :  { %1308 = vmatprep.mubr.msk.bf16.mxu0 %vm279_vm2, %v1380_v21  ;;  %1340 = vmatprep.mubr.msk.bf16.mxu1 %vm279_vm2, %v1381_v22 }
  0x4f   :  { %1309 = vmatmul.mubr.msk.bf16.gmra.mrb[16].mxu0 %vm279_vm2, %v1382_v23  ;;  %1341 = vmatmul.mubr.msk.bf16.gmra.mrb[16].mxu1 %vm279_vm2, %v1383_v24 }
  0x50   :  { %1312 = vmatprep.mubr.msk.bf16.mxu0 %vm279_vm2, %v1384_v25  ;;  %1344 = vmatprep.mubr.msk.bf16.mxu1 %vm279_vm2, %v1385_v26 }
  0x57   :  { %1313 = vmatmul.mubr.msk.bf16.gmra.mrb[20].mxu0 %vm279_vm2, %v1386_v27  ;;  %1345 = vmatmul.mubr.msk.bf16.gmra.mrb[20].mxu1 %vm279_vm2, %v1387_v28 }
  0x58   :  { %1316 = vmatprep.mubr.msk.bf16.mxu0 %vm279_vm2, %v1388_v29  ;;  %1348 = vmatprep.mubr.msk.bf16.mxu1 %vm279_vm2, %v1389_v30 }
  0x5f   :  { %1317 = vmatmul.mubr.msk.bf16.gmra.mrb[24].mxu0 %vm279_vm2, %v1390_v31  ;;  %1349 = vmatmul.mubr.msk.bf16.gmra.mrb[24].mxu1 %vm279_vm2, %v1391_v32 }
  0x60   :  { %1320 = vmatprep.mubr.msk.bf16.mxu0 %vm279_vm2, %v1392_v33  ;;  %1352 = vmatprep.mubr.msk.bf16.mxu1 %vm279_vm2, %v1393_v34 }
  0x67   :  { %1321 = vmatmul.mubr.msk.bf16.gmra.mrb[28].mxu0 %vm279_vm2, %v1394_v35  ;;  %1353 = vmatmul.mubr.msk.bf16.gmra.mrb[28].mxu1 %vm279_vm2, %v1395_v36 }
 0x102   :  { %v1294_v38 = vpop.f32.mrb[0].mxu0  ;;  %v1326_v39 = vpop.f32.mrb[0].mxu1 }
 0x103   :  { %v426_v40 = vadd.f32 %v1294_v38, %v1621_v37  ;;  %v554_v41 = vadd.f32 %v1326_v39, %v1621_v37  ;;  %v417_v42 = vpop.f32.mrb[1].mxu0  ;;  %v545_v43 = vpop.f32.mrb[1].mxu1 }
 0x104   :  { %v418_v44 = vadd.f32 %v1621_v37, %v417_v42  ;;  %v546_v45 = vadd.f32 %v1621_v37, %v545_v43  ;;  %v1295_v46 = vpop.f32.mrb[2].mxu0  ;;  %v1327_v47 = vpop.f32.mrb[2].mxu1 }
 0x105   :  { %v674_v48 = vmax.f32 %v426_v40, 0.0  ;;  %v706_v49 = vmax.f32 %v554_v41, 0.0  ;;  %v429_v50 = vadd.f32 %v1295_v46, %v1621_v37  ;;  %v557_v51 = vadd.f32 %v1327_v47, %v1621_v37  ;;  %v420_v52 = vpop.f32.mrb[3].mxu0  ;;  %v548_v53 = vpop.f32.mrb[3].mxu1 }
 0x106   :  { %v672_v54 = vmax.f32 %v418_v44, 0.0  ;;  %v704_v55 = vmax.f32 %v546_v45, 0.0  ;;  %v421_v56 = vadd.f32 %v1621_v37, %v420_v52  ;;  %v549_v57 = vadd.f32 %v1621_v37, %v548_v53 }
 0x107   :  { %v1195_v58 = vpack.c.bf16 %v674_v48, %v674_v48  ;;  %v1227_v59 = vpack.c.bf16 %v706_v49, %v706_v49  ;;  %v675_v60 = vmax.f32 %v429_v50, 0.0  ;;  %v707_v61 = vmax.f32 %v557_v51, 0.0 }
 0x108   :  { %v1193_v62 = vpack.c.bf16 %v672_v54, %v672_v54  ;;  %v1225_v63 = vpack.c.bf16 %v704_v55, %v704_v55  ;;  %v673_v0 = vmax.f32 %v421_v56, 0.0  ;;  %v705_v1 = vmax.f32 %v549_v57, 0.0 }
 0x109   :  { %995 = vst.msk [vmem:[%s1946_s3 + $0x8] sm:$0xf] %vm992_vm3, %v1195_v58  ;;  %1027 = vst.msk [vmem:[%s1946_s3 + $0x88] sm:$0xf] %vm992_vm3, %v1227_v59  ;;  %v1196_v2 = vpack.c.bf16 %v675_v60, %v675_v60  ;;  %v1228_v3 = vpack.c.bf16 %v707_v61, %v707_v61 }
 0x10a   :  { %993 = vst.msk [vmem:[%s1946_s3] sm:$0xf] %vm992_vm3, %v1193_v62  ;;  %1025 = vst.msk [vmem:[%s1946_s3 + $0x80] sm:$0xf] %vm992_vm3, %v1225_v63  ;;  %v1194_v4 = vpack.c.bf16 %v673_v0, %v673_v0  ;;  %v1226_v5 = vpack.c.bf16 %v705_v1, %v705_v1  ;;  %v1298_v6 = vpop.f32.mrb[4].mxu0  ;;  %v1330_v7 = vpop.f32.mrb[4].mxu1 }
 0x10b   :  { %996 = vst.msk [vmem:[%s1946_s3 + $0xc] sm:$0xf] %vm992_vm3, %v1196_v2  ;;  %1028 = vst.msk [vmem:[%s1946_s3 + $0x8c] sm:$0xf] %vm992_vm3, %v1228_v3  ;;  %v442_v8 = vadd.f32 %v1298_v6, %v1621_v37  ;;  %v570_v9 = vadd.f32 %v1330_v7, %v1621_v37  ;;  %v433_v10 = vpop.f32.mrb[5].mxu0  ;;  %v561_v11 = vpop.f32.mrb[5].mxu1 }
 0x10c   :  { %994 = vst.msk [vmem:[%s1946_s3 + $0x4] sm:$0xf] %vm992_vm3, %v1194_v4  ;;  %1026 = vst.msk [vmem:[%s1946_s3 + $0x84] sm:$0xf] %vm992_vm3, %v1226_v5  ;;  %v434_v12 = vadd.f32 %v1621_v37, %v433_v10  ;;  %v562_v13 = vadd.f32 %v1621_v37, %v561_v11  ;;  %v1299_v14 = vpop.f32.mrb[6].mxu0  ;;  %v1331_v15 = vpop.f32.mrb[6].mxu1 }
 0x10d   :  { %v678_v16 = vmax.f32 %v442_v8, 0.0  ;;  %v710_v17 = vmax.f32 %v570_v9, 0.0  ;;  %v445_v18 = vadd.f32 %v1299_v14, %v1621_v37  ;;  %v573_v19 = vadd.f32 %v1331_v15, %v1621_v37  ;;  %v436_v20 = vpop.f32.mrb[7].mxu0  ;;  %v564_v21 = vpop.f32.mrb[7].mxu1 }
 0x10e   :  { %v676_v22 = vmax.f32 %v434_v12, 0.0  ;;  %v708_v23 = vmax.f32 %v562_v13, 0.0  ;;  %v437_v24 = vadd.f32 %v1621_v37, %v436_v20  ;;  %v565_v25 = vadd.f32 %v1621_v37, %v564_v21 }
 0x10f   :  { %v1199_v26 = vpack.c.bf16 %v678_v16, %v678_v16  ;;  %v1231_v27 = vpack.c.bf16 %v710_v17, %v710_v17  ;;  %v679_v28 = vmax.f32 %v445_v18, 0.0  ;;  %v711_v29 = vmax.f32 %v573_v19, 0.0 }
 0x110   :  { %v1197_v30 = vpack.c.bf16 %v676_v22, %v676_v22  ;;  %v1229_v31 = vpack.c.bf16 %v708_v23, %v708_v23  ;;  %v677_v32 = vmax.f32 %v437_v24, 0.0  ;;  %v709_v33 = vmax.f32 %v565_v25, 0.0 }
 0x111   :  { %999 = vst.msk [vmem:[%s1946_s3 + $0x18] sm:$0xf] %vm992_vm3, %v1199_v26  ;;  %1031 = vst.msk [vmem:[%s1946_s3 + $0x98] sm:$0xf] %vm992_vm3, %v1231_v27  ;;  %v1200_v34 = vpack.c.bf16 %v679_v28, %v679_v28  ;;  %v1232_v35 = vpack.c.bf16 %v711_v29, %v711_v29 }
 0x112   :  { %997 = vst.msk [vmem:[%s1946_s3 + $0x10] sm:$0xf] %vm992_vm3, %v1197_v30  ;;  %1029 = vst.msk [vmem:[%s1946_s3 + $0x90] sm:$0xf] %vm992_vm3, %v1229_v31  ;;  %v1198_v36 = vpack.c.bf16 %v677_v32, %v677_v32  ;;  %v1230_v38 = vpack.c.bf16 %v709_v33, %v709_v33  ;;  %v1302_v39 = vpop.f32.mrb[8].mxu0  ;;  %v1334_v40 = vpop.f32.mrb[8].mxu1 }
 0x113   :  { %1000 = vst.msk [vmem:[%s1946_s3 + $0x1c] sm:$0xf] %vm992_vm3, %v1200_v34  ;;  %1032 = vst.msk [vmem:[%s1946_s3 + $0x9c] sm:$0xf] %vm992_vm3, %v1232_v35  ;;  %v458_v41 = vadd.f32 %v1302_v39, %v1621_v37  ;;  %v586_v42 = vadd.f32 %v1334_v40, %v1621_v37  ;;  %v449_v43 = vpop.f32.mrb[9].mxu0  ;;  %v577_v44 = vpop.f32.mrb[9].mxu1 }
 0x114   :  { %998 = vst.msk [vmem:[%s1946_s3 + $0x14] sm:$0xf] %vm992_vm3, %v1198_v36  ;;  %1030 = vst.msk [vmem:[%s1946_s3 + $0x94] sm:$0xf] %vm992_vm3, %v1230_v38  ;;  %v450_v45 = vadd.f32 %v1621_v37, %v449_v43  ;;  %v578_v46 = vadd.f32 %v1621_v37, %v577_v44  ;;  %v1303_v47 = vpop.f32.mrb[10].mxu0  ;;  %v1335_v48 = vpop.f32.mrb[10].mxu1 }
 0x115   :  { %v682_v49 = vmax.f32 %v458_v41, 0.0  ;;  %v714_v50 = vmax.f32 %v586_v42, 0.0  ;;  %v461_v51 = vadd.f32 %v1303_v47, %v1621_v37  ;;  %v589_v52 = vadd.f32 %v1335_v48, %v1621_v37  ;;  %v452_v53 = vpop.f32.mrb[11].mxu0  ;;  %v580_v54 = vpop.f32.mrb[11].mxu1 }
 0x116   :  { %v680_v55 = vmax.f32 %v450_v45, 0.0  ;;  %v712_v56 = vmax.f32 %v578_v46, 0.0  ;;  %v453_v57 = vadd.f32 %v1621_v37, %v452_v53  ;;  %v581_v58 = vadd.f32 %v1621_v37, %v580_v54 }
 0x117   :  { %v1203_v59 = vpack.c.bf16 %v682_v49, %v682_v49  ;;  %v1235_v60 = vpack.c.bf16 %v714_v50, %v714_v50  ;;  %v683_v61 = vmax.f32 %v461_v51, 0.0  ;;  %v715_v62 = vmax.f32 %v589_v52, 0.0 }
 0x118   :  { %v1201_v63 = vpack.c.bf16 %v680_v55, %v680_v55  ;;  %v1233_v0 = vpack.c.bf16 %v712_v56, %v712_v56  ;;  %v681_v1 = vmax.f32 %v453_v57, 0.0  ;;  %v713_v2 = vmax.f32 %v581_v58, 0.0 }
 0x119   :  { %1003 = vst.msk [vmem:[%s1946_s3 + $0x28] sm:$0xf] %vm992_vm3, %v1203_v59  ;;  %1035 = vst.msk [vmem:[%s1946_s3 + $0xa8] sm:$0xf] %vm992_vm3, %v1235_v60  ;;  %v1204_v3 = vpack.c.bf16 %v683_v61, %v683_v61  ;;  %v1236_v4 = vpack.c.bf16 %v715_v62, %v715_v62 }
 0x11a   :  { %1001 = vst.msk [vmem:[%s1946_s3 + $0x20] sm:$0xf] %vm992_vm3, %v1201_v63  ;;  %1033 = vst.msk [vmem:[%s1946_s3 + $0xa0] sm:$0xf] %vm992_vm3, %v1233_v0  ;;  %v1202_v5 = vpack.c.bf16 %v681_v1, %v681_v1  ;;  %v1234_v6 = vpack.c.bf16 %v713_v2, %v713_v2  ;;  %v1306_v7 = vpop.f32.mrb[12].mxu0  ;;  %v1338_v8 = vpop.f32.mrb[12].mxu1 }
 0x11b   :  { %1004 = vst.msk [vmem:[%s1946_s3 + $0x2c] sm:$0xf] %vm992_vm3, %v1204_v3  ;;  %1036 = vst.msk [vmem:[%s1946_s3 + $0xac] sm:$0xf] %vm992_vm3, %v1236_v4  ;;  %v474_v9 = vadd.f32 %v1306_v7, %v1621_v37  ;;  %v602_v10 = vadd.f32 %v1338_v8, %v1621_v37  ;;  %v465_v11 = vpop.f32.mrb[13].mxu0  ;;  %v593_v12 = vpop.f32.mrb[13].mxu1 }
 0x11c   :  { %1002 = vst.msk [vmem:[%s1946_s3 + $0x24] sm:$0xf] %vm992_vm3, %v1202_v5  ;;  %1034 = vst.msk [vmem:[%s1946_s3 + $0xa4] sm:$0xf] %vm992_vm3, %v1234_v6  ;;  %v466_v13 = vadd.f32 %v1621_v37, %v465_v11  ;;  %v594_v14 = vadd.f32 %v1621_v37, %v593_v12  ;;  %v1307_v15 = vpop.f32.mrb[14].mxu0  ;;  %v1339_v16 = vpop.f32.mrb[14].mxu1 }
 0x11d   :  { %v686_v17 = vmax.f32 %v474_v9, 0.0  ;;  %v718_v18 = vmax.f32 %v602_v10, 0.0  ;;  %v477_v19 = vadd.f32 %v1307_v15, %v1621_v37  ;;  %v605_v20 = vadd.f32 %v1339_v16, %v1621_v37  ;;  %v468_v21 = vpop.f32.mrb[15].mxu0  ;;  %v596_v22 = vpop.f32.mrb[15].mxu1 }
 0x11e   :  { %v684_v23 = vmax.f32 %v466_v13, 0.0  ;;  %v716_v24 = vmax.f32 %v594_v14, 0.0  ;;  %v469_v25 = vadd.f32 %v1621_v37, %v468_v21  ;;  %v597_v26 = vadd.f32 %v1621_v37, %v596_v22 }
 0x11f   :  { %v1207_v27 = vpack.c.bf16 %v686_v17, %v686_v17  ;;  %v1239_v28 = vpack.c.bf16 %v718_v18, %v718_v18  ;;  %v687_v29 = vmax.f32 %v477_v19, 0.0  ;;  %v719_v30 = vmax.f32 %v605_v20, 0.0 }
 0x120   :  { %v1205_v31 = vpack.c.bf16 %v684_v23, %v684_v23  ;;  %v1237_v32 = vpack.c.bf16 %v716_v24, %v716_v24  ;;  %v685_v33 = vmax.f32 %v469_v25, 0.0  ;;  %v717_v34 = vmax.f32 %v597_v26, 0.0 }
 0x121   :  { %1007 = vst.msk [vmem:[%s1946_s3 + $0x38] sm:$0xf] %vm992_vm3, %v1207_v27  ;;  %1039 = vst.msk [vmem:[%s1946_s3 + $0xb8] sm:$0xf] %vm992_vm3, %v1239_v28  ;;  %v1208_v35 = vpack.c.bf16 %v687_v29, %v687_v29  ;;  %v1240_v36 = vpack.c.bf16 %v719_v30, %v719_v30 }
 0x122   :  { %1005 = vst.msk [vmem:[%s1946_s3 + $0x30] sm:$0xf] %vm992_vm3, %v1205_v31  ;;  %1037 = vst.msk [vmem:[%s1946_s3 + $0xb0] sm:$0xf] %vm992_vm3, %v1237_v32  ;;  %v1206_v38 = vpack.c.bf16 %v685_v33, %v685_v33  ;;  %v1238_v39 = vpack.c.bf16 %v717_v34, %v717_v34  ;;  %v1310_v40 = vpop.f32.mrb[16].mxu0  ;;  %v1342_v41 = vpop.f32.mrb[16].mxu1 }
 0x123   :  { %1008 = vst.msk [vmem:[%s1946_s3 + $0x3c] sm:$0xf] %vm992_vm3, %v1208_v35  ;;  %1040 = vst.msk [vmem:[%s1946_s3 + $0xbc] sm:$0xf] %vm992_vm3, %v1240_v36  ;;  %v490_v42 = vadd.f32 %v1310_v40, %v1621_v37  ;;  %v618_v43 = vadd.f32 %v1342_v41, %v1621_v37  ;;  %v481_v44 = vpop.f32.mrb[17].mxu0  ;;  %v609_v45 = vpop.f32.mrb[17].mxu1 }
 0x124   :  { %1006 = vst.msk [vmem:[%s1946_s3 + $0x34] sm:$0xf] %vm992_vm3, %v1206_v38  ;;  %1038 = vst.msk [vmem:[%s1946_s3 + $0xb4] sm:$0xf] %vm992_vm3, %v1238_v39  ;;  %v482_v46 = vadd.f32 %v1621_v37, %v481_v44  ;;  %v610_v47 = vadd.f32 %v1621_v37, %v609_v45  ;;  %v1311_v48 = vpop.f32.mrb[18].mxu0  ;;  %v1343_v49 = vpop.f32.mrb[18].mxu1 }
 0x125   :  { %v690_v50 = vmax.f32 %v490_v42, 0.0  ;;  %v722_v51 = vmax.f32 %v618_v43, 0.0  ;;  %v493_v52 = vadd.f32 %v1311_v48, %v1621_v37  ;;  %v621_v53 = vadd.f32 %v1343_v49, %v1621_v37  ;;  %v484_v54 = vpop.f32.mrb[19].mxu0  ;;  %v612_v55 = vpop.f32.mrb[19].mxu1 }
 0x126   :  { %v688_v56 = vmax.f32 %v482_v46, 0.0  ;;  %v720_v57 = vmax.f32 %v610_v47, 0.0  ;;  %v485_v58 = vadd.f32 %v1621_v37, %v484_v54  ;;  %v613_v59 = vadd.f32 %v1621_v37, %v612_v55 }
 0x127   :  { %v1211_v60 = vpack.c.bf16 %v690_v50, %v690_v50  ;;  %v1243_v61 = vpack.c.bf16 %v722_v51, %v722_v51  ;;  %v691_v62 = vmax.f32 %v493_v52, 0.0  ;;  %v723_v63 = vmax.f32 %v621_v53, 0.0 }
 0x128   :  { %v1209_v0 = vpack.c.bf16 %v688_v56, %v688_v56  ;;  %v1241_v1 = vpack.c.bf16 %v720_v57, %v720_v57  ;;  %v689_v2 = vmax.f32 %v485_v58, 0.0  ;;  %v721_v3 = vmax.f32 %v613_v59, 0.0 }
 0x129   :  { %1011 = vst.msk [vmem:[%s1946_s3 + $0x48] sm:$0xf] %vm992_vm3, %v1211_v60  ;;  %1043 = vst.msk [vmem:[%s1946_s3 + $0xc8] sm:$0xf] %vm992_vm3, %v1243_v61  ;;  %v1212_v4 = vpack.c.bf16 %v691_v62, %v691_v62  ;;  %v1244_v5 = vpack.c.bf16 %v723_v63, %v723_v63 }
 0x12a   :  { %1009 = vst.msk [vmem:[%s1946_s3 + $0x40] sm:$0xf] %vm992_vm3, %v1209_v0  ;;  %1041 = vst.msk [vmem:[%s1946_s3 + $0xc0] sm:$0xf] %vm992_vm3, %v1241_v1  ;;  %v1210_v6 = vpack.c.bf16 %v689_v2, %v689_v2  ;;  %v1242_v7 = vpack.c.bf16 %v721_v3, %v721_v3  ;;  %v1314_v8 = vpop.f32.mrb[20].mxu0  ;;  %v1346_v9 = vpop.f32.mrb[20].mxu1 }
 0x12b   :  { %1012 = vst.msk [vmem:[%s1946_s3 + $0x4c] sm:$0xf] %vm992_vm3, %v1212_v4  ;;  %1044 = vst.msk [vmem:[%s1946_s3 + $0xcc] sm:$0xf] %vm992_vm3, %v1244_v5  ;;  %v506_v10 = vadd.f32 %v1314_v8, %v1621_v37  ;;  %v634_v11 = vadd.f32 %v1346_v9, %v1621_v37  ;;  %v497_v12 = vpop.f32.mrb[21].mxu0  ;;  %v625_v13 = vpop.f32.mrb[21].mxu1 }
 0x12c   :  { %1010 = vst.msk [vmem:[%s1946_s3 + $0x44] sm:$0xf] %vm992_vm3, %v1210_v6  ;;  %1042 = vst.msk [vmem:[%s1946_s3 + $0xc4] sm:$0xf] %vm992_vm3, %v1242_v7  ;;  %v498_v14 = vadd.f32 %v1621_v37, %v497_v12  ;;  %v626_v15 = vadd.f32 %v1621_v37, %v625_v13  ;;  %v1315_v16 = vpop.f32.mrb[22].mxu0  ;;  %v1347_v17 = vpop.f32.mrb[22].mxu1 }
 0x12d   :  { %v694_v18 = vmax.f32 %v506_v10, 0.0  ;;  %v726_v19 = vmax.f32 %v634_v11, 0.0  ;;  %v509_v20 = vadd.f32 %v1315_v16, %v1621_v37  ;;  %v637_v21 = vadd.f32 %v1347_v17, %v1621_v37  ;;  %v500_v22 = vpop.f32.mrb[23].mxu0  ;;  %v628_v23 = vpop.f32.mrb[23].mxu1 }
 0x12e   :  { %v692_v24 = vmax.f32 %v498_v14, 0.0  ;;  %v724_v25 = vmax.f32 %v626_v15, 0.0  ;;  %v501_v26 = vadd.f32 %v1621_v37, %v500_v22  ;;  %v629_v27 = vadd.f32 %v1621_v37, %v628_v23 }
 0x12f   :  { %v1215_v28 = vpack.c.bf16 %v694_v18, %v694_v18  ;;  %v1247_v29 = vpack.c.bf16 %v726_v19, %v726_v19  ;;  %v695_v30 = vmax.f32 %v509_v20, 0.0  ;;  %v727_v31 = vmax.f32 %v637_v21, 0.0 }
 0x130   :  { %v1213_v32 = vpack.c.bf16 %v692_v24, %v692_v24  ;;  %v1245_v33 = vpack.c.bf16 %v724_v25, %v724_v25  ;;  %v693_v34 = vmax.f32 %v501_v26, 0.0  ;;  %v725_v35 = vmax.f32 %v629_v27, 0.0 }
 0x131   :  { %1015 = vst.msk [vmem:[%s1946_s3 + $0x58] sm:$0xf] %vm992_vm3, %v1215_v28  ;;  %1047 = vst.msk [vmem:[%s1946_s3 + $0xd8] sm:$0xf] %vm992_vm3, %v1247_v29  ;;  %v1216_v36 = vpack.c.bf16 %v695_v30, %v695_v30  ;;  %v1248_v38 = vpack.c.bf16 %v727_v31, %v727_v31 }
 0x132   :  { %1013 = vst.msk [vmem:[%s1946_s3 + $0x50] sm:$0xf] %vm992_vm3, %v1213_v32  ;;  %1045 = vst.msk [vmem:[%s1946_s3 + $0xd0] sm:$0xf] %vm992_vm3, %v1245_v33  ;;  %v1214_v39 = vpack.c.bf16 %v693_v34, %v693_v34  ;;  %v1246_v40 = vpack.c.bf16 %v725_v35, %v725_v35  ;;  %v1318_v41 = vpop.f32.mrb[24].mxu0  ;;  %v1350_v42 = vpop.f32.mrb[24].mxu1 }
 0x133   :  { %1016 = vst.msk [vmem:[%s1946_s3 + $0x5c] sm:$0xf] %vm992_vm3, %v1216_v36  ;;  %1048 = vst.msk [vmem:[%s1946_s3 + $0xdc] sm:$0xf] %vm992_vm3, %v1248_v38  ;;  %v522_v43 = vadd.f32 %v1318_v41, %v1621_v37  ;;  %v650_v44 = vadd.f32 %v1350_v42, %v1621_v37  ;;  %v513_v45 = vpop.f32.mrb[25].mxu0  ;;  %v641_v46 = vpop.f32.mrb[25].mxu1 }
 0x134   :  { %1014 = vst.msk [vmem:[%s1946_s3 + $0x54] sm:$0xf] %vm992_vm3, %v1214_v39  ;;  %1046 = vst.msk [vmem:[%s1946_s3 + $0xd4] sm:$0xf] %vm992_vm3, %v1246_v40  ;;  %v514_v47 = vadd.f32 %v1621_v37, %v513_v45  ;;  %v642_v48 = vadd.f32 %v1621_v37, %v641_v46  ;;  %v1319_v49 = vpop.f32.mrb[26].mxu0  ;;  %v1351_v50 = vpop.f32.mrb[26].mxu1 }
 0x135   :  { %v698_v51 = vmax.f32 %v522_v43, 0.0  ;;  %v730_v52 = vmax.f32 %v650_v44, 0.0  ;;  %v525_v53 = vadd.f32 %v1319_v49, %v1621_v37  ;;  %v653_v54 = vadd.f32 %v1351_v50, %v1621_v37  ;;  %v516_v55 = vpop.f32.mrb[27].mxu0  ;;  %v644_v56 = vpop.f32.mrb[27].mxu1 }
 0x136   :  { %v696_v57 = vmax.f32 %v514_v47, 0.0  ;;  %v728_v58 = vmax.f32 %v642_v48, 0.0  ;;  %v517_v59 = vadd.f32 %v1621_v37, %v516_v55  ;;  %v645_v60 = vadd.f32 %v1621_v37, %v644_v56 }
 0x137   :  { %v1219_v61 = vpack.c.bf16 %v698_v51, %v698_v51  ;;  %v1251_v62 = vpack.c.bf16 %v730_v52, %v730_v52  ;;  %v699_v63 = vmax.f32 %v525_v53, 0.0  ;;  %v731_v0 = vmax.f32 %v653_v54, 0.0 }
 0x138   :  { %v1217_v1 = vpack.c.bf16 %v696_v57, %v696_v57  ;;  %v1249_v2 = vpack.c.bf16 %v728_v58, %v728_v58  ;;  %v697_v3 = vmax.f32 %v517_v59, 0.0  ;;  %v729_v4 = vmax.f32 %v645_v60, 0.0 }
 0x139   :  { %1019 = vst.msk [vmem:[%s1946_s3 + $0x68] sm:$0xf] %vm992_vm3, %v1219_v61  ;;  %1051 = vst.msk [vmem:[%s1946_s3 + $0xe8] sm:$0xf] %vm992_vm3, %v1251_v62  ;;  %v1220_v5 = vpack.c.bf16 %v699_v63, %v699_v63  ;;  %v1252_v6 = vpack.c.bf16 %v731_v0, %v731_v0 }
 0x13a   :  { %1017 = vst.msk [vmem:[%s1946_s3 + $0x60] sm:$0xf] %vm992_vm3, %v1217_v1  ;;  %1049 = vst.msk [vmem:[%s1946_s3 + $0xe0] sm:$0xf] %vm992_vm3, %v1249_v2  ;;  %v1218_v7 = vpack.c.bf16 %v697_v3, %v697_v3  ;;  %v1250_v8 = vpack.c.bf16 %v729_v4, %v729_v4  ;;  %v1322_v9 = vpop.f32.mrb[28].mxu0  ;;  %v1354_v10 = vpop.f32.mrb[28].mxu1 }
 0x13b   :  { %1020 = vst.msk [vmem:[%s1946_s3 + $0x6c] sm:$0xf] %vm992_vm3, %v1220_v5  ;;  %1052 = vst.msk [vmem:[%s1946_s3 + $0xec] sm:$0xf] %vm992_vm3, %v1252_v6  ;;  %v538_v11 = vadd.f32 %v1322_v9, %v1621_v37  ;;  %v666_v12 = vadd.f32 %v1354_v10, %v1621_v37  ;;  %v529_v13 = vpop.f32.mrb[29].mxu0  ;;  %v657_v14 = vpop.f32.mrb[29].mxu1 }
 0x13c   :  { %1018 = vst.msk [vmem:[%s1946_s3 + $0x64] sm:$0xf] %vm992_vm3, %v1218_v7  ;;  %1050 = vst.msk [vmem:[%s1946_s3 + $0xe4] sm:$0xf] %vm992_vm3, %v1250_v8  ;;  %v530_v15 = vadd.f32 %v1621_v37, %v529_v13  ;;  %v658_v16 = vadd.f32 %v1621_v37, %v657_v14  ;;  %v1323_v17 = vpop.f32.mrb[30].mxu0  ;;  %v1355_v18 = vpop.f32.mrb[30].mxu1 }
 0x13d   :  { %v702_v19 = vmax.f32 %v538_v11, 0.0  ;;  %v734_v20 = vmax.f32 %v666_v12, 0.0  ;;  %v541_v21 = vadd.f32 %v1323_v17, %v1621_v37  ;;  %v669_v22 = vadd.f32 %v1355_v18, %v1621_v37  ;;  %v532_v23 = vpop.f32.mrb[31].mxu0  ;;  %v660_v24 = vpop.f32.mrb[31].mxu1 }
 0x13e   :  { %v700_v25 = vmax.f32 %v530_v15, 0.0  ;;  %v732_v26 = vmax.f32 %v658_v16, 0.0  ;;  %v533_v27 = vadd.f32 %v1621_v37, %v532_v23  ;;  %v661_v28 = vadd.f32 %v1621_v37, %v660_v24 }
 0x13f   :  { %v1223_v29 = vpack.c.bf16 %v702_v19, %v702_v19  ;;  %v1255_v30 = vpack.c.bf16 %v734_v20, %v734_v20  ;;  %v703_v31 = vmax.f32 %v541_v21, 0.0  ;;  %v735_v32 = vmax.f32 %v669_v22, 0.0 }
 0x140   :  { %v1221_v33 = vpack.c.bf16 %v700_v25, %v700_v25  ;;  %v1253_v34 = vpack.c.bf16 %v732_v26, %v732_v26  ;;  %v701_v35 = vmax.f32 %v533_v27, 0.0  ;;  %v733_v36 = vmax.f32 %v661_v28, 0.0 }
 0x141   :  { %1023 = vst.msk [vmem:[%s1946_s3 + $0x78] sm:$0xf] %vm992_vm3, %v1223_v29  ;;  %1055 = vst.msk [vmem:[%s1946_s3 + $0xf8] sm:$0xf] %vm992_vm3, %v1255_v30  ;;  %v1224_v38 = vpack.c.bf16 %v703_v31, %v703_v31  ;;  %v1256_v37 = vpack.c.bf16 %v735_v32, %v735_v32 }
 0x142   :  { %1021 = vst.msk [vmem:[%s1946_s3 + $0x70] sm:$0xf] %vm992_vm3, %v1221_v33  ;;  %1053 = vst.msk [vmem:[%s1946_s3 + $0xf0] sm:$0xf] %vm992_vm3, %v1253_v34  ;;  %v1222_v39 = vpack.c.bf16 %v701_v35, %v701_v35  ;;  %v1254_v40 = vpack.c.bf16 %v733_v36, %v733_v36 }
 0x143   :  { %1024 = vst.msk [vmem:[%s1946_s3 + $0x7c] sm:$0xf] %vm992_vm3, %v1224_v38  ;;  %1056 = vst.msk [vmem:[%s1946_s3 + $0xfc] sm:$0xf] %vm992_vm3, %v1256_v37 }
 0x144   :  { %1022 = vst.msk [vmem:[%s1946_s3 + $0x74] sm:$0xf] %vm992_vm3, %v1222_v39  ;;  %1054 = vst.msk [vmem:[%s1946_s3 + $0xf4] sm:$0xf] %vm992_vm3, %v1254_v40 }
 0x145   :  { %1061 = vsyncpa [#allocation3], 1 }
 0x146   :  { %1062 = vsyncpa [#allocation5], 1 }

// kernel: forward.45
= control target key start
LH: loop header
LB: loop body
LE: loop exit
PB: predicated region body
PF: predicated region fallthrough
CT: control target
= control target key end

     0   :  { %s1836_s12 = smov 0   ;;  %s1838_s13 = smov 0   ;;  %s2146_s0 = inlined_call_operand.vmem [shape: bf16[8,512,72], index: 0, kind: input, shape index: {}]   ;;  %s2147_s1 = inlined_call_operand.vmem [shape: bf16[8,72,8], index: 1, kind: input, shape index: {}]   ;;  %s2148_s2 = inlined_call_operand.vmem [shape: f32[8,1,8], index: 2, kind: input, shape index: {}]   ;;  %s2149_s3 = inlined_call_operand.vmem [shape: bf16[8,512,8], index: 3, kind: output, shape index: {}]  }
   0x1   :  { %s1840_s14 = smov 0  }
   0x2 LB: > { %s25_s15 = sadd.s32 1, %s1810_s13  ;;  %p1399_p0 = scmp.ge.s32.totalorder %s1814_s14, 1  ;;  %s1814_s14 = sphi %s1840_s14, %s13_s14   ;;  %s1810_s13 = sphi %s1838_s13, %s2151_s13   ;;  %s1806_s12 = sphi %s1836_s12, %s2150_s12  }
   0x3   : > { %p27_p1 = scmp.ge.s32.totalorder %s25_s15, 8  ;;  %p176_p2 = scmp.lt.s32.totalorder %s1814_s14, 9 }
   0x5   : > { %s2153_s15 = smov (%p27_p1, %s25_s15), 0  ;;  %p177_p3 = pnand %p1399_p0, %p176_p2 }
   0x6   : > { %p217_p4 = scmp.lt.s32.totalorder (!%p177_p3), %s1806_s12, 7  ;;  %vm512_vm0 = vcmask (!%p177_p3), 588800   ;;  %vm609_vm1 = vcmask (!%p177_p3), 1043456   ;;  %vm1222_vm2 = vcmask (!%p177_p3), 60416  }
   0x7   : > { %180 = sbr.rel (%p177_p3) target bundleno = 317 (0x13d), region = 32 }
   0xe   : > { %s2155_s12 = smov (!%p217_p4, %s1806_s12), 7 }
   0xf   : > { %s1541_s16 = sshll.u32 %s2155_s12, 8  ;;  %s1730_s17 = smul.u32 36, %s2155_s12 }
  0x10   : > { %s1863_s20 = scalar_lea.vmem %s2146_s0, %s1541_s16  ;;  %s233_s26 = scalar_lea.vmem %s2148_s2, %s2155_s12 }
  0x11   : > { %s230_s23 = scalar_lea.vmem %s2147_s1, %s1730_s17  ;;  %v1760_v3 = vld [vmem:[%s1863_s20] sm:$0xff]   ;;  %v1762_v8 = vld [vmem:[%s1863_s20 + $0x8] sm:$0xff]   ;;  %v1764_v10 = vld [vmem:[%s1863_s20 + $0x10] sm:$0xff]   ;;  %s1949_s29 = scalar_lea.vmem %s2149_s3, %s1541_s16 }
  0x12   : > { %v1755_v0 = vld [vmem:[%s230_s23] sm:$0xff]   ;;  %v1756_v1 = vld [vmem:[%s230_s23 + $0x8] sm:$0xff]   ;;  %v1757_v2 = vld [vmem:[%s230_s23 + $0x10] sm:$0xff]   ;;  %1654 = vmatprep.mubr.msk.bf16.mxu0 %vm512_vm0, %v1760_v3 }
  0x13   : > { %1644 = vmatprep.subr.bf16.mxu0 %v1755_v0  ;;  %1718 = vmatprep.subr.bf16.mxu1 %v1755_v0  ;;  %v1761_v4 = vld [vmem:[%s1863_s20 + $0x80] sm:$0xff]   ;;  %v1758_v5 = vld [vmem:[%s230_s23 + $0x18] sm:$0xff]   ;;  %v1763_v9 = vld [vmem:[%s1863_s20 + $0x88] sm:$0xff]  }
  0x14   : > { %1645 = vmatpush3.bf16.msra.mxu0 %v1755_v0  ;;  %1723 = vmatpush3.bf16.msra.mxu1 %v1755_v0  ;;  %v1759_v6 = vld [vmem:[%s230_s23 + $0x20] ss:$0 sps:$4 sm:$0xff]   ;;  %v1765_v11 = vld [vmem:[%s1863_s20 + $0x90] sm:$0xff]   ;;  %v1766_v12 = vld [vmem:[%s1863_s20 + $0x18] sm:$0xff]  }
  0x15   : > { %1646 = vmatprep.subr.bf16.mxu0 %v1756_v1  ;;  %1719 = vmatprep.subr.bf16.mxu1 %v1756_v1  ;;  %v611_v7 = vsel %vm609_vm1, %v1759_v6, 0  ;;  %v1767_v13 = vld [vmem:[%s1863_s20 + $0x98] sm:$0xff]   ;;  %v1768_v14 = vld [vmem:[%s1863_s20 + $0x20] sm:$0xff]   ;;  %v1770_v16 = vld [vmem:[%s1863_s20 + $0x28] sm:$0xff]  }
  0x16   : > { %1686 = vmatprep.mubr.msk.bf16.mxu1 %vm512_vm0, %v1761_v4  ;;  %v1769_v15 = vld [vmem:[%s1863_s20 + $0xa0] sm:$0xff]   ;;  %v1771_v17 = vld [vmem:[%s1863_s20 + $0xa8] sm:$0xff]   ;;  %v1772_v18 = vld [vmem:[%s1863_s20 + $0x30] sm:$0xff]  }
  0x17   : > { %v1773_v19 = vld [vmem:[%s1863_s20 + $0xb0] sm:$0xff]   ;;  %v1774_v20 = vld [vmem:[%s1863_s20 + $0x38] sm:$0xff]   ;;  %v1776_v22 = vld [vmem:[%s1863_s20 + $0x40] sm:$0xff]  }
  0x18   : > { %1647 = vmatpush3.bf16.msra.mxu0 %v1756_v1  ;;  %1724 = vmatpush3.bf16.msra.mxu1 %v1756_v1  ;;  %v1775_v21 = vld [vmem:[%s1863_s20 + $0xb8] sm:$0xff]   ;;  %v1777_v23 = vld [vmem:[%s1863_s20 + $0xc0] sm:$0xff]   ;;  %v1778_v24 = vld [vmem:[%s1863_s20 + $0x48] sm:$0xff]  }
  0x19   : > { %1648 = vmatprep.subr.bf16.mxu0 %v1757_v2  ;;  %1720 = vmatprep.subr.bf16.mxu1 %v1757_v2  ;;  %v1779_v25 = vld [vmem:[%s1863_s20 + $0xc8] sm:$0xff]   ;;  %v1780_v26 = vld [vmem:[%s1863_s20 + $0x50] sm:$0xff]   ;;  %v1782_v28 = vld [vmem:[%s1863_s20 + $0x58] sm:$0xff]  }
  0x1a   : > { %v1781_v27 = vld [vmem:[%s1863_s20 + $0xd0] sm:$0xff]   ;;  %v1783_v29 = vld [vmem:[%s1863_s20 + $0xd8] sm:$0xff]   ;;  %v1784_v30 = vld [vmem:[%s1863_s20 + $0x60] sm:$0xff]  }
  0x1b   : > { %v1785_v31 = vld [vmem:[%s1863_s20 + $0xe0] sm:$0xff]   ;;  %v1786_v32 = vld [vmem:[%s1863_s20 + $0x68] sm:$0xff]   ;;  %v1788_v34 = vld [vmem:[%s1863_s20 + $0x70] sm:$0xff]  }
  0x1c   : > { %1649 = vmatpush3.bf16.msra.mxu0 %v1757_v2  ;;  %1725 = vmatpush3.bf16.msra.mxu1 %v1757_v2  ;;  %v1787_v33 = vld [vmem:[%s1863_s20 + $0xe8] sm:$0xff]   ;;  %v1789_v35 = vld [vmem:[%s1863_s20 + $0xf0] sm:$0xff]   ;;  %v1790_v36 = vld [vmem:[%s1863_s20 + $0x78] sm:$0xff]  }
  0x1d   : > { %1650 = vmatprep.subr.bf16.mxu0 %v1758_v5  ;;  %1721 = vmatprep.subr.bf16.mxu1 %v1758_v5  ;;  %v1791_v37 = vld [vmem:[%s1863_s20 + $0xf8] sm:$0xff]   ;;  %v1936_v38 = vld [vmem:[%s233_s26] ss:$0 sm:$0xff] }
  0x20   : > { %1651 = vmatpush3.bf16.msra.mxu0 %v1758_v5  ;;  %1726 = vmatpush3.bf16.msra.mxu1 %v1758_v5 }
  0x21   : > { %1728 = vmatprep.subr.msk.bf16.mxu0 %vm609_vm1, %v1759_v6  ;;  %1729 = vmatprep.subr.msk.bf16.mxu1 %vm609_vm1, %v1759_v6 }
  0x24   : > { %1653 = vmatpush3.bf16.msra.mxu0 %v611_v7  ;;  %1727 = vmatpush3.bf16.msra.mxu1 %v611_v7 }
  0x27   : > { %1655 = vmatmul.mubr.msk.bf16.vlgmr.msra.gmra.mrb[0].mxu0 %vm512_vm0, %v1762_v8  ;;  %1687 = vmatmul.mubr.msk.bf16.vlgmr.msra.gmra.mrb[0].mxu1 %vm512_vm0, %v1763_v9 }
  0x28   : > { %1658 = vmatprep.mubr.msk.bf16.mxu0 %vm512_vm0, %v1764_v10  ;;  %1690 = vmatprep.mubr.msk.bf16.mxu1 %vm512_vm0, %v1765_v11 }
  0x2f   : > { %1659 = vmatmul.mubr.msk.bf16.gmra.mrb[4].mxu0 %vm512_vm0, %v1766_v12  ;;  %1691 = vmatmul.mubr.msk.bf16.gmra.mrb[4].mxu1 %vm512_vm0, %v1767_v13 }
  0x30   : > { %1662 = vmatprep.mubr.msk.bf16.mxu0 %vm512_vm0, %v1768_v14  ;;  %1694 = vmatprep.mubr.msk.bf16.mxu1 %vm512_vm0, %v1769_v15 }
  0x37   : > { %1663 = vmatmul.mubr.msk.bf16.gmra.mrb[8].mxu0 %vm512_vm0, %v1770_v16  ;;  %1695 = vmatmul.mubr.msk.bf16.gmra.mrb[8].mxu1 %vm512_vm0, %v1771_v17 }
  0x38   : > { %1666 = vmatprep.mubr.msk.bf16.mxu0 %vm512_vm0, %v1772_v18  ;;  %1698 = vmatprep.mubr.msk.bf16.mxu1 %vm512_vm0, %v1773_v19 }
  0x3f   : > { %1667 = vmatmul.mubr.msk.bf16.gmra.mrb[12].mxu0 %vm512_vm0, %v1774_v20  ;;  %1699 = vmatmul.mubr.msk.bf16.gmra.mrb[12].mxu1 %vm512_vm0, %v1775_v21 }
  0x40   : > { %1670 = vmatprep.mubr.msk.bf16.mxu0 %vm512_vm0, %v1776_v22  ;;  %1702 = vmatprep.mubr.msk.bf16.mxu1 %vm512_vm0, %v1777_v23 }
  0x47   : > { %1671 = vmatmul.mubr.msk.bf16.gmra.mrb[16].mxu0 %vm512_vm0, %v1778_v24  ;;  %1703 = vmatmul.mubr.msk.bf16.gmra.mrb[16].mxu1 %vm512_vm0, %v1779_v25 }
  0x48   : > { %1674 = vmatprep.mubr.msk.bf16.mxu0 %vm512_vm0, %v1780_v26  ;;  %1706 = vmatprep.mubr.msk.bf16.mxu1 %vm512_vm0, %v1781_v27 }
  0x4f   : > { %1675 = vmatmul.mubr.msk.bf16.gmra.mrb[20].mxu0 %vm512_vm0, %v1782_v28  ;;  %1707 = vmatmul.mubr.msk.bf16.gmra.mrb[20].mxu1 %vm512_vm0, %v1783_v29 }
  0x50   : > { %1678 = vmatprep.mubr.msk.bf16.mxu0 %vm512_vm0, %v1784_v30  ;;  %1710 = vmatprep.mubr.msk.bf16.mxu1 %vm512_vm0, %v1785_v31 }
  0x57   : > { %1679 = vmatmul.mubr.msk.bf16.gmra.mrb[24].mxu0 %vm512_vm0, %v1786_v32  ;;  %1711 = vmatmul.mubr.msk.bf16.gmra.mrb[24].mxu1 %vm512_vm0, %v1787_v33 }
  0x58   : > { %1682 = vmatprep.mubr.msk.bf16.mxu0 %vm512_vm0, %v1788_v34  ;;  %1714 = vmatprep.mubr.msk.bf16.mxu1 %vm512_vm0, %v1789_v35 }
  0x5f   : > { %1683 = vmatmul.mubr.msk.bf16.gmra.mrb[28].mxu0 %vm512_vm0, %v1790_v36  ;;  %1715 = vmatmul.mubr.msk.bf16.gmra.mrb[28].mxu1 %vm512_vm0, %v1791_v37 }
  0xfa   : > { %v1656_v39 = vpop.f32.mrb[0].mxu0  ;;  %v1688_v40 = vpop.f32.mrb[0].mxu1 }
  0xfb   : > { %v656_v41 = vadd.f32 %v1656_v39, %v1936_v38  ;;  %v784_v42 = vadd.f32 %v1688_v40, %v1936_v38  ;;  %v647_v43 = vpop.f32.mrb[1].mxu0  ;;  %v775_v44 = vpop.f32.mrb[1].mxu1 }
  0xfc   : > { %v648_v45 = vadd.f32 %v1936_v38, %v647_v43  ;;  %v776_v46 = vadd.f32 %v1936_v38, %v775_v44  ;;  %v1657_v47 = vpop.f32.mrb[2].mxu0  ;;  %v1689_v48 = vpop.f32.mrb[2].mxu1 }
  0xfd   : > { %v904_v49 = vmax.f32 %v656_v41, 0.0  ;;  %v936_v50 = vmax.f32 %v784_v42, 0.0  ;;  %v659_v51 = vadd.f32 %v1657_v47, %v1936_v38  ;;  %v787_v52 = vadd.f32 %v1689_v48, %v1936_v38  ;;  %v650_v53 = vpop.f32.mrb[3].mxu0  ;;  %v778_v54 = vpop.f32.mrb[3].mxu1 }
  0xfe   : > { %v902_v55 = vmax.f32 %v648_v45, 0.0  ;;  %v934_v56 = vmax.f32 %v776_v46, 0.0  ;;  %v651_v57 = vadd.f32 %v1936_v38, %v650_v53  ;;  %v779_v58 = vadd.f32 %v1936_v38, %v778_v54 }
  0xff   : > { %v1545_v59 = vpack.c.bf16 %v904_v49, %v904_v49  ;;  %v1577_v60 = vpack.c.bf16 %v936_v50, %v936_v50  ;;  %v905_v61 = vmax.f32 %v659_v51, 0.0  ;;  %v937_v62 = vmax.f32 %v787_v52, 0.0 }
 0x100   : > { %v1543_v63 = vpack.c.bf16 %v902_v55, %v902_v55  ;;  %v1575_v0 = vpack.c.bf16 %v934_v56, %v934_v56  ;;  %v903_v1 = vmax.f32 %v651_v57, 0.0  ;;  %v935_v2 = vmax.f32 %v779_v58, 0.0 }
 0x101   : > { %1225 = vst.msk [vmem:[%s1949_s29 + $0x8] sm:$0xf] %vm1222_vm2, %v1545_v59  ;;  %1257 = vst.msk [vmem:[%s1949_s29 + $0x88] sm:$0xf] %vm1222_vm2, %v1577_v60  ;;  %v1546_v3 = vpack.c.bf16 %v905_v61, %v905_v61  ;;  %v1578_v4 = vpack.c.bf16 %v937_v62, %v937_v62 }
 0x102   : > { %1223 = vst.msk [vmem:[%s1949_s29] sm:$0xf] %vm1222_vm2, %v1543_v63  ;;  %1255 = vst.msk [vmem:[%s1949_s29 + $0x80] sm:$0xf] %vm1222_vm2, %v1575_v0  ;;  %v1544_v5 = vpack.c.bf16 %v903_v1, %v903_v1  ;;  %v1576_v6 = vpack.c.bf16 %v935_v2, %v935_v2  ;;  %v1660_v7 = vpop.f32.mrb[4].mxu0  ;;  %v1692_v8 = vpop.f32.mrb[4].mxu1 }
 0x103   : > { %1226 = vst.msk [vmem:[%s1949_s29 + $0xc] sm:$0xf] %vm1222_vm2, %v1546_v3  ;;  %1258 = vst.msk [vmem:[%s1949_s29 + $0x8c] sm:$0xf] %vm1222_vm2, %v1578_v4  ;;  %v672_v9 = vadd.f32 %v1660_v7, %v1936_v38  ;;  %v800_v10 = vadd.f32 %v1692_v8, %v1936_v38  ;;  %v663_v11 = vpop.f32.mrb[5].mxu0  ;;  %v791_v12 = vpop.f32.mrb[5].mxu1 }
 0x104   : > { %1224 = vst.msk [vmem:[%s1949_s29 + $0x4] sm:$0xf] %vm1222_vm2, %v1544_v5  ;;  %1256 = vst.msk [vmem:[%s1949_s29 + $0x84] sm:$0xf] %vm1222_vm2, %v1576_v6  ;;  %v664_v13 = vadd.f32 %v1936_v38, %v663_v11  ;;  %v792_v14 = vadd.f32 %v1936_v38, %v791_v12  ;;  %v1661_v15 = vpop.f32.mrb[6].mxu0  ;;  %v1693_v16 = vpop.f32.mrb[6].mxu1 }
 0x105   : > { %v908_v17 = vmax.f32 %v672_v9, 0.0  ;;  %v940_v18 = vmax.f32 %v800_v10, 0.0  ;;  %v675_v19 = vadd.f32 %v1661_v15, %v1936_v38  ;;  %v803_v20 = vadd.f32 %v1693_v16, %v1936_v38  ;;  %v666_v21 = vpop.f32.mrb[7].mxu0  ;;  %v794_v22 = vpop.f32.mrb[7].mxu1 }
 0x106   : > { %v906_v23 = vmax.f32 %v664_v13, 0.0  ;;  %v938_v24 = vmax.f32 %v792_v14, 0.0  ;;  %v667_v25 = vadd.f32 %v1936_v38, %v666_v21  ;;  %v795_v26 = vadd.f32 %v1936_v38, %v794_v22 }
 0x107   : > { %v1549_v27 = vpack.c.bf16 %v908_v17, %v908_v17  ;;  %v1581_v28 = vpack.c.bf16 %v940_v18, %v940_v18  ;;  %v909_v29 = vmax.f32 %v675_v19, 0.0  ;;  %v941_v30 = vmax.f32 %v803_v20, 0.0 }
 0x108   : > { %v1547_v31 = vpack.c.bf16 %v906_v23, %v906_v23  ;;  %v1579_v32 = vpack.c.bf16 %v938_v24, %v938_v24  ;;  %v907_v33 = vmax.f32 %v667_v25, 0.0  ;;  %v939_v34 = vmax.f32 %v795_v26, 0.0 }
 0x109   : > { %1229 = vst.msk [vmem:[%s1949_s29 + $0x18] sm:$0xf] %vm1222_vm2, %v1549_v27  ;;  %1261 = vst.msk [vmem:[%s1949_s29 + $0x98] sm:$0xf] %vm1222_vm2, %v1581_v28  ;;  %v1550_v35 = vpack.c.bf16 %v909_v29, %v909_v29  ;;  %v1582_v36 = vpack.c.bf16 %v941_v30, %v941_v30 }
 0x10a   : > { %1227 = vst.msk [vmem:[%s1949_s29 + $0x10] sm:$0xf] %vm1222_vm2, %v1547_v31  ;;  %1259 = vst.msk [vmem:[%s1949_s29 + $0x90] sm:$0xf] %vm1222_vm2, %v1579_v32  ;;  %v1548_v37 = vpack.c.bf16 %v907_v33, %v907_v33  ;;  %v1580_v39 = vpack.c.bf16 %v939_v34, %v939_v34  ;;  %v1664_v40 = vpop.f32.mrb[8].mxu0  ;;  %v1696_v41 = vpop.f32.mrb[8].mxu1 }
 0x10b   : > { %1230 = vst.msk [vmem:[%s1949_s29 + $0x1c] sm:$0xf] %vm1222_vm2, %v1550_v35  ;;  %1262 = vst.msk [vmem:[%s1949_s29 + $0x9c] sm:$0xf] %vm1222_vm2, %v1582_v36  ;;  %v688_v42 = vadd.f32 %v1664_v40, %v1936_v38  ;;  %v816_v43 = vadd.f32 %v1696_v41, %v1936_v38  ;;  %v679_v44 = vpop.f32.mrb[9].mxu0  ;;  %v807_v45 = vpop.f32.mrb[9].mxu1 }
 0x10c   : > { %1228 = vst.msk [vmem:[%s1949_s29 + $0x14] sm:$0xf] %vm1222_vm2, %v1548_v37  ;;  %1260 = vst.msk [vmem:[%s1949_s29 + $0x94] sm:$0xf] %vm1222_vm2, %v1580_v39  ;;  %v680_v46 = vadd.f32 %v1936_v38, %v679_v44  ;;  %v808_v47 = vadd.f32 %v1936_v38, %v807_v45  ;;  %v1665_v48 = vpop.f32.mrb[10].mxu0  ;;  %v1697_v49 = vpop.f32.mrb[10].mxu1 }
 0x10d   : > { %v912_v50 = vmax.f32 %v688_v42, 0.0  ;;  %v944_v51 = vmax.f32 %v816_v43, 0.0  ;;  %v691_v52 = vadd.f32 %v1665_v48, %v1936_v38  ;;  %v819_v53 = vadd.f32 %v1697_v49, %v1936_v38  ;;  %v682_v54 = vpop.f32.mrb[11].mxu0  ;;  %v810_v55 = vpop.f32.mrb[11].mxu1 }
 0x10e   : > { %v910_v56 = vmax.f32 %v680_v46, 0.0  ;;  %v942_v57 = vmax.f32 %v808_v47, 0.0  ;;  %v683_v58 = vadd.f32 %v1936_v38, %v682_v54  ;;  %v811_v59 = vadd.f32 %v1936_v38, %v810_v55 }
 0x10f   : > { %v1553_v60 = vpack.c.bf16 %v912_v50, %v912_v50  ;;  %v1585_v61 = vpack.c.bf16 %v944_v51, %v944_v51  ;;  %v913_v62 = vmax.f32 %v691_v52, 0.0  ;;  %v945_v63 = vmax.f32 %v819_v53, 0.0 }
 0x110   : > { %v1551_v0 = vpack.c.bf16 %v910_v56, %v910_v56  ;;  %v1583_v1 = vpack.c.bf16 %v942_v57, %v942_v57  ;;  %v911_v2 = vmax.f32 %v683_v58, 0.0  ;;  %v943_v3 = vmax.f32 %v811_v59, 0.0 }
 0x111   : > { %1233 = vst.msk [vmem:[%s1949_s29 + $0x28] sm:$0xf] %vm1222_vm2, %v1553_v60  ;;  %1265 = vst.msk [vmem:[%s1949_s29 + $0xa8] sm:$0xf] %vm1222_vm2, %v1585_v61  ;;  %v1554_v4 = vpack.c.bf16 %v913_v62, %v913_v62  ;;  %v1586_v5 = vpack.c.bf16 %v945_v63, %v945_v63 }
 0x112   : > { %1231 = vst.msk [vmem:[%s1949_s29 + $0x20] sm:$0xf] %vm1222_vm2, %v1551_v0  ;;  %1263 = vst.msk [vmem:[%s1949_s29 + $0xa0] sm:$0xf] %vm1222_vm2, %v1583_v1  ;;  %v1552_v6 = vpack.c.bf16 %v911_v2, %v911_v2  ;;  %v1584_v7 = vpack.c.bf16 %v943_v3, %v943_v3  ;;  %v1668_v8 = vpop.f32.mrb[12].mxu0  ;;  %v1700_v9 = vpop.f32.mrb[12].mxu1 }
 0x113   : > { %1234 = vst.msk [vmem:[%s1949_s29 + $0x2c] sm:$0xf] %vm1222_vm2, %v1554_v4  ;;  %1266 = vst.msk [vmem:[%s1949_s29 + $0xac] sm:$0xf] %vm1222_vm2, %v1586_v5  ;;  %v704_v10 = vadd.f32 %v1668_v8, %v1936_v38  ;;  %v832_v11 = vadd.f32 %v1700_v9, %v1936_v38  ;;  %v695_v12 = vpop.f32.mrb[13].mxu0  ;;  %v823_v13 = vpop.f32.mrb[13].mxu1 }
 0x114   : > { %1232 = vst.msk [vmem:[%s1949_s29 + $0x24] sm:$0xf] %vm1222_vm2, %v1552_v6  ;;  %1264 = vst.msk [vmem:[%s1949_s29 + $0xa4] sm:$0xf] %vm1222_vm2, %v1584_v7  ;;  %v696_v14 = vadd.f32 %v1936_v38, %v695_v12  ;;  %v824_v15 = vadd.f32 %v1936_v38, %v823_v13  ;;  %v1669_v16 = vpop.f32.mrb[14].mxu0  ;;  %v1701_v17 = vpop.f32.mrb[14].mxu1 }
 0x115   : > { %v916_v18 = vmax.f32 %v704_v10, 0.0  ;;  %v948_v19 = vmax.f32 %v832_v11, 0.0  ;;  %v707_v20 = vadd.f32 %v1669_v16, %v1936_v38  ;;  %v835_v21 = vadd.f32 %v1701_v17, %v1936_v38  ;;  %v698_v22 = vpop.f32.mrb[15].mxu0  ;;  %v826_v23 = vpop.f32.mrb[15].mxu1 }
 0x116   : > { %v914_v24 = vmax.f32 %v696_v14, 0.0  ;;  %v946_v25 = vmax.f32 %v824_v15, 0.0  ;;  %v699_v26 = vadd.f32 %v1936_v38, %v698_v22  ;;  %v827_v27 = vadd.f32 %v1936_v38, %v826_v23 }
 0x117   : > { %v1557_v28 = vpack.c.bf16 %v916_v18, %v916_v18  ;;  %v1589_v29 = vpack.c.bf16 %v948_v19, %v948_v19  ;;  %v917_v30 = vmax.f32 %v707_v20, 0.0  ;;  %v949_v31 = vmax.f32 %v835_v21, 0.0 }
 0x118   : > { %v1555_v32 = vpack.c.bf16 %v914_v24, %v914_v24  ;;  %v1587_v33 = vpack.c.bf16 %v946_v25, %v946_v25  ;;  %v915_v34 = vmax.f32 %v699_v26, 0.0  ;;  %v947_v35 = vmax.f32 %v827_v27, 0.0 }
 0x119   : > { %1237 = vst.msk [vmem:[%s1949_s29 + $0x38] sm:$0xf] %vm1222_vm2, %v1557_v28  ;;  %1269 = vst.msk [vmem:[%s1949_s29 + $0xb8] sm:$0xf] %vm1222_vm2, %v1589_v29  ;;  %v1558_v36 = vpack.c.bf16 %v917_v30, %v917_v30  ;;  %v1590_v37 = vpack.c.bf16 %v949_v31, %v949_v31 }
 0x11a   : > { %1235 = vst.msk [vmem:[%s1949_s29 + $0x30] sm:$0xf] %vm1222_vm2, %v1555_v32  ;;  %1267 = vst.msk [vmem:[%s1949_s29 + $0xb0] sm:$0xf] %vm1222_vm2, %v1587_v33  ;;  %v1556_v39 = vpack.c.bf16 %v915_v34, %v915_v34  ;;  %v1588_v40 = vpack.c.bf16 %v947_v35, %v947_v35  ;;  %v1672_v41 = vpop.f32.mrb[16].mxu0  ;;  %v1704_v42 = vpop.f32.mrb[16].mxu1 }
 0x11b   : > { %1238 = vst.msk [vmem:[%s1949_s29 + $0x3c] sm:$0xf] %vm1222_vm2, %v1558_v36  ;;  %1270 = vst.msk [vmem:[%s1949_s29 + $0xbc] sm:$0xf] %vm1222_vm2, %v1590_v37  ;;  %v720_v43 = vadd.f32 %v1672_v41, %v1936_v38  ;;  %v848_v44 = vadd.f32 %v1704_v42, %v1936_v38  ;;  %v711_v45 = vpop.f32.mrb[17].mxu0  ;;  %v839_v46 = vpop.f32.mrb[17].mxu1 }
 0x11c   : > { %1236 = vst.msk [vmem:[%s1949_s29 + $0x34] sm:$0xf] %vm1222_vm2, %v1556_v39  ;;  %1268 = vst.msk [vmem:[%s1949_s29 + $0xb4] sm:$0xf] %vm1222_vm2, %v1588_v40  ;;  %v712_v47 = vadd.f32 %v1936_v38, %v711_v45  ;;  %v840_v48 = vadd.f32 %v1936_v38, %v839_v46  ;;  %v1673_v49 = vpop.f32.mrb[18].mxu0  ;;  %v1705_v50 = vpop.f32.mrb[18].mxu1 }
 0x11d   : > { %v920_v51 = vmax.f32 %v720_v43, 0.0  ;;  %v952_v52 = vmax.f32 %v848_v44, 0.0  ;;  %v723_v53 = vadd.f32 %v1673_v49, %v1936_v38  ;;  %v851_v54 = vadd.f32 %v1705_v50, %v1936_v38  ;;  %v714_v55 = vpop.f32.mrb[19].mxu0  ;;  %v842_v56 = vpop.f32.mrb[19].mxu1 }
 0x11e   : > { %v918_v57 = vmax.f32 %v712_v47, 0.0  ;;  %v950_v58 = vmax.f32 %v840_v48, 0.0  ;;  %v715_v59 = vadd.f32 %v1936_v38, %v714_v55  ;;  %v843_v60 = vadd.f32 %v1936_v38, %v842_v56 }
 0x11f   : > { %v1561_v61 = vpack.c.bf16 %v920_v51, %v920_v51  ;;  %v1593_v62 = vpack.c.bf16 %v952_v52, %v952_v52  ;;  %v921_v63 = vmax.f32 %v723_v53, 0.0  ;;  %v953_v0 = vmax.f32 %v851_v54, 0.0 }
 0x120   : > { %v1559_v1 = vpack.c.bf16 %v918_v57, %v918_v57  ;;  %v1591_v2 = vpack.c.bf16 %v950_v58, %v950_v58  ;;  %v919_v3 = vmax.f32 %v715_v59, 0.0  ;;  %v951_v4 = vmax.f32 %v843_v60, 0.0 }
 0x121   : > { %1241 = vst.msk [vmem:[%s1949_s29 + $0x48] sm:$0xf] %vm1222_vm2, %v1561_v61  ;;  %1273 = vst.msk [vmem:[%s1949_s29 + $0xc8] sm:$0xf] %vm1222_vm2, %v1593_v62  ;;  %v1562_v5 = vpack.c.bf16 %v921_v63, %v921_v63  ;;  %v1594_v6 = vpack.c.bf16 %v953_v0, %v953_v0 }
 0x122   : > { %1239 = vst.msk [vmem:[%s1949_s29 + $0x40] sm:$0xf] %vm1222_vm2, %v1559_v1  ;;  %1271 = vst.msk [vmem:[%s1949_s29 + $0xc0] sm:$0xf] %vm1222_vm2, %v1591_v2  ;;  %v1560_v7 = vpack.c.bf16 %v919_v3, %v919_v3  ;;  %v1592_v8 = vpack.c.bf16 %v951_v4, %v951_v4  ;;  %v1676_v9 = vpop.f32.mrb[20].mxu0  ;;  %v1708_v10 = vpop.f32.mrb[20].mxu1 }
 0x123   : > { %1242 = vst.msk [vmem:[%s1949_s29 + $0x4c] sm:$0xf] %vm1222_vm2, %v1562_v5  ;;  %1274 = vst.msk [vmem:[%s1949_s29 + $0xcc] sm:$0xf] %vm1222_vm2, %v1594_v6  ;;  %v736_v11 = vadd.f32 %v1676_v9, %v1936_v38  ;;  %v864_v12 = vadd.f32 %v1708_v10, %v1936_v38  ;;  %v727_v13 = vpop.f32.mrb[21].mxu0  ;;  %v855_v14 = vpop.f32.mrb[21].mxu1 }
 0x124   : > { %1240 = vst.msk [vmem:[%s1949_s29 + $0x44] sm:$0xf] %vm1222_vm2, %v1560_v7  ;;  %1272 = vst.msk [vmem:[%s1949_s29 + $0xc4] sm:$0xf] %vm1222_vm2, %v1592_v8  ;;  %v728_v15 = vadd.f32 %v1936_v38, %v727_v13  ;;  %v856_v16 = vadd.f32 %v1936_v38, %v855_v14  ;;  %v1677_v17 = vpop.f32.mrb[22].mxu0  ;;  %v1709_v18 = vpop.f32.mrb[22].mxu1 }
 0x125   : > { %v924_v19 = vmax.f32 %v736_v11, 0.0  ;;  %v956_v20 = vmax.f32 %v864_v12, 0.0  ;;  %v739_v21 = vadd.f32 %v1677_v17, %v1936_v38  ;;  %v867_v22 = vadd.f32 %v1709_v18, %v1936_v38  ;;  %v730_v23 = vpop.f32.mrb[23].mxu0  ;;  %v858_v24 = vpop.f32.mrb[23].mxu1 }
 0x126   : > { %v922_v25 = vmax.f32 %v728_v15, 0.0  ;;  %v954_v26 = vmax.f32 %v856_v16, 0.0  ;;  %v731_v27 = vadd.f32 %v1936_v38, %v730_v23  ;;  %v859_v28 = vadd.f32 %v1936_v38, %v858_v24 }
 0x127   : > { %v1565_v29 = vpack.c.bf16 %v924_v19, %v924_v19  ;;  %v1597_v30 = vpack.c.bf16 %v956_v20, %v956_v20  ;;  %v925_v31 = vmax.f32 %v739_v21, 0.0  ;;  %v957_v32 = vmax.f32 %v867_v22, 0.0 }
 0x128   : > { %v1563_v33 = vpack.c.bf16 %v922_v25, %v922_v25  ;;  %v1595_v34 = vpack.c.bf16 %v954_v26, %v954_v26  ;;  %v923_v35 = vmax.f32 %v731_v27, 0.0  ;;  %v955_v36 = vmax.f32 %v859_v28, 0.0 }
 0x129   : > { %1245 = vst.msk [vmem:[%s1949_s29 + $0x58] sm:$0xf] %vm1222_vm2, %v1565_v29  ;;  %1277 = vst.msk [vmem:[%s1949_s29 + $0xd8] sm:$0xf] %vm1222_vm2, %v1597_v30  ;;  %v1566_v37 = vpack.c.bf16 %v925_v31, %v925_v31  ;;  %v1598_v39 = vpack.c.bf16 %v957_v32, %v957_v32 }
 0x12a   : > { %1243 = vst.msk [vmem:[%s1949_s29 + $0x50] sm:$0xf] %vm1222_vm2, %v1563_v33  ;;  %1275 = vst.msk [vmem:[%s1949_s29 + $0xd0] sm:$0xf] %vm1222_vm2, %v1595_v34  ;;  %v1564_v40 = vpack.c.bf16 %v923_v35, %v923_v35  ;;  %v1596_v41 = vpack.c.bf16 %v955_v36, %v955_v36  ;;  %v1680_v42 = vpop.f32.mrb[24].mxu0  ;;  %v1712_v43 = vpop.f32.mrb[24].mxu1 }
 0x12b   : > { %1246 = vst.msk [vmem:[%s1949_s29 + $0x5c] sm:$0xf] %vm1222_vm2, %v1566_v37  ;;  %1278 = vst.msk [vmem:[%s1949_s29 + $0xdc] sm:$0xf] %vm1222_vm2, %v1598_v39  ;;  %v752_v44 = vadd.f32 %v1680_v42, %v1936_v38  ;;  %v880_v45 = vadd.f32 %v1712_v43, %v1936_v38  ;;  %v743_v46 = vpop.f32.mrb[25].mxu0  ;;  %v871_v47 = vpop.f32.mrb[25].mxu1 }
 0x12c   : > { %1244 = vst.msk [vmem:[%s1949_s29 + $0x54] sm:$0xf] %vm1222_vm2, %v1564_v40  ;;  %1276 = vst.msk [vmem:[%s1949_s29 + $0xd4] sm:$0xf] %vm1222_vm2, %v1596_v41  ;;  %v744_v48 = vadd.f32 %v1936_v38, %v743_v46  ;;  %v872_v49 = vadd.f32 %v1936_v38, %v871_v47  ;;  %v1681_v50 = vpop.f32.mrb[26].mxu0  ;;  %v1713_v51 = vpop.f32.mrb[26].mxu1 }
 0x12d   : > { %v928_v52 = vmax.f32 %v752_v44, 0.0  ;;  %v960_v53 = vmax.f32 %v880_v45, 0.0  ;;  %v755_v54 = vadd.f32 %v1681_v50, %v1936_v38  ;;  %v883_v55 = vadd.f32 %v1713_v51, %v1936_v38  ;;  %v746_v56 = vpop.f32.mrb[27].mxu0  ;;  %v874_v57 = vpop.f32.mrb[27].mxu1 }
 0x12e   : > { %v926_v58 = vmax.f32 %v744_v48, 0.0  ;;  %v958_v59 = vmax.f32 %v872_v49, 0.0  ;;  %v747_v60 = vadd.f32 %v1936_v38, %v746_v56  ;;  %v875_v61 = vadd.f32 %v1936_v38, %v874_v57 }
 0x12f   : > { %v1569_v62 = vpack.c.bf16 %v928_v52, %v928_v52  ;;  %v1601_v63 = vpack.c.bf16 %v960_v53, %v960_v53  ;;  %v929_v0 = vmax.f32 %v755_v54, 0.0  ;;  %v961_v1 = vmax.f32 %v883_v55, 0.0 }
 0x130   : > { %v1567_v2 = vpack.c.bf16 %v926_v58, %v926_v58  ;;  %v1599_v3 = vpack.c.bf16 %v958_v59, %v958_v59  ;;  %v927_v4 = vmax.f32 %v747_v60, 0.0  ;;  %v959_v5 = vmax.f32 %v875_v61, 0.0 }
 0x131   : > { %1249 = vst.msk [vmem:[%s1949_s29 + $0x68] sm:$0xf] %vm1222_vm2, %v1569_v62  ;;  %1281 = vst.msk [vmem:[%s1949_s29 + $0xe8] sm:$0xf] %vm1222_vm2, %v1601_v63  ;;  %v1570_v6 = vpack.c.bf16 %v929_v0, %v929_v0  ;;  %v1602_v7 = vpack.c.bf16 %v961_v1, %v961_v1 }
 0x132   : > { %1247 = vst.msk [vmem:[%s1949_s29 + $0x60] sm:$0xf] %vm1222_vm2, %v1567_v2  ;;  %1279 = vst.msk [vmem:[%s1949_s29 + $0xe0] sm:$0xf] %vm1222_vm2, %v1599_v3  ;;  %v1568_v8 = vpack.c.bf16 %v927_v4, %v927_v4  ;;  %v1600_v9 = vpack.c.bf16 %v959_v5, %v959_v5  ;;  %v1684_v10 = vpop.f32.mrb[28].mxu0  ;;  %v1716_v11 = vpop.f32.mrb[28].mxu1 }
 0x133   : > { %1250 = vst.msk [vmem:[%s1949_s29 + $0x6c] sm:$0xf] %vm1222_vm2, %v1570_v6  ;;  %1282 = vst.msk [vmem:[%s1949_s29 + $0xec] sm:$0xf] %vm1222_vm2, %v1602_v7  ;;  %v768_v12 = vadd.f32 %v1684_v10, %v1936_v38  ;;  %v896_v13 = vadd.f32 %v1716_v11, %v1936_v38  ;;  %v759_v14 = vpop.f32.mrb[29].mxu0  ;;  %v887_v15 = vpop.f32.mrb[29].mxu1 }
 0x134   : > { %1248 = vst.msk [vmem:[%s1949_s29 + $0x64] sm:$0xf] %vm1222_vm2, %v1568_v8  ;;  %1280 = vst.msk [vmem:[%s1949_s29 + $0xe4] sm:$0xf] %vm1222_vm2, %v1600_v9  ;;  %v760_v16 = vadd.f32 %v1936_v38, %v759_v14  ;;  %v888_v17 = vadd.f32 %v1936_v38, %v887_v15  ;;  %v1685_v18 = vpop.f32.mrb[30].mxu0  ;;  %v1717_v19 = vpop.f32.mrb[30].mxu1 }
 0x135   : > { %v932_v20 = vmax.f32 %v768_v12, 0.0  ;;  %v964_v21 = vmax.f32 %v896_v13, 0.0  ;;  %v771_v22 = vadd.f32 %v1685_v18, %v1936_v38  ;;  %v899_v23 = vadd.f32 %v1717_v19, %v1936_v38  ;;  %v762_v24 = vpop.f32.mrb[31].mxu0  ;;  %v890_v25 = vpop.f32.mrb[31].mxu1 }
 0x136   : > { %v930_v26 = vmax.f32 %v760_v16, 0.0  ;;  %v962_v27 = vmax.f32 %v888_v17, 0.0  ;;  %v763_v28 = vadd.f32 %v1936_v38, %v762_v24  ;;  %v891_v29 = vadd.f32 %v1936_v38, %v890_v25 }
 0x137   : > { %v1573_v30 = vpack.c.bf16 %v932_v20, %v932_v20  ;;  %v1605_v31 = vpack.c.bf16 %v964_v21, %v964_v21  ;;  %v933_v32 = vmax.f32 %v771_v22, 0.0  ;;  %v965_v33 = vmax.f32 %v899_v23, 0.0 }
 0x138   : > { %v1571_v34 = vpack.c.bf16 %v930_v26, %v930_v26  ;;  %v1603_v35 = vpack.c.bf16 %v962_v27, %v962_v27  ;;  %v931_v36 = vmax.f32 %v763_v28, 0.0  ;;  %v963_v37 = vmax.f32 %v891_v29, 0.0 }
 0x139   : > { %1253 = vst.msk [vmem:[%s1949_s29 + $0x78] sm:$0xf] %vm1222_vm2, %v1573_v30  ;;  %1285 = vst.msk [vmem:[%s1949_s29 + $0xf8] sm:$0xf] %vm1222_vm2, %v1605_v31  ;;  %v1574_v39 = vpack.c.bf16 %v933_v32, %v933_v32  ;;  %v1606_v40 = vpack.c.bf16 %v965_v33, %v965_v33 }
 0x13a   : > { %1251 = vst.msk [vmem:[%s1949_s29 + $0x70] sm:$0xf] %vm1222_vm2, %v1571_v34  ;;  %1283 = vst.msk [vmem:[%s1949_s29 + $0xf0] sm:$0xf] %vm1222_vm2, %v1603_v35  ;;  %v1572_v38 = vpack.c.bf16 %v931_v36, %v931_v36  ;;  %v1604_v41 = vpack.c.bf16 %v963_v37, %v963_v37 }
 0x13b   : > { %1254 = vst.msk [vmem:[%s1949_s29 + $0x7c] sm:$0xf] %vm1222_vm2, %v1574_v39  ;;  %1286 = vst.msk [vmem:[%s1949_s29 + $0xfc] sm:$0xf] %vm1222_vm2, %v1606_v40 }
 0x13c   : > { %1252 = vst.msk [vmem:[%s1949_s29 + $0x74] sm:$0xf] %vm1222_vm2, %v1572_v38  ;;  %1284 = vst.msk [vmem:[%s1949_s29 + $0xf4] sm:$0xf] %vm1222_vm2, %v1604_v41 }
 0x13d PF: > { %s13_s14 = sadd.s32 1, %s1814_s14   ;;  %s2150_s12 = smov %s1810_s13 }
 0x13e   : > { %p10_p5 = scmp.ge.s32.totalorder %s13_s14, 10   ;;  %s2151_s13 = smov %s2153_s15 }
 0x140   :  { %12 = sbr.rel (!%p10_p5) target bundleno = 2 (0x2), region = 68 }

// kernel: forward.46
= control target key start
LH: loop header
LB: loop body
LE: loop exit
PB: predicated region body
PF: predicated region fallthrough
CT: control target
= control target key end

     0   :  { %s1767_s12 = smov 0   ;;  %s1769_s13 = smov 0   ;;  %s2077_s0 = inlined_call_operand.vmem [shape: bf16[8,512,8], index: 0, kind: input, shape index: {}]   ;;  %s2078_s1 = inlined_call_operand.vmem [shape: bf16[8,8,8], index: 1, kind: input, shape index: {}]   ;;  %s2079_s2 = inlined_call_operand.vmem [shape: f32[8,1,8], index: 2, kind: input, shape index: {}]   ;;  %s2080_s3 = inlined_call_operand.vmem [shape: bf16[8,512,8], index: 3, kind: output, shape index: {}]  }
   0x1   :  { %s1771_s14 = smov 0  }
   0x2 LB: > { %s25_s15 = sadd.s32 1, %s1741_s13  ;;  %p1361_p0 = scmp.ge.s32.totalorder %s1745_s14, 1  ;;  %s1745_s14 = sphi %s1771_s14, %s13_s14   ;;  %s1741_s13 = sphi %s1769_s13, %s2082_s13   ;;  %s1737_s12 = sphi %s1767_s12, %s2081_s12  }
   0x3   : > { %p27_p1 = scmp.ge.s32.totalorder %s25_s15, 8  ;;  %p175_p2 = scmp.lt.s32.totalorder %s1745_s14, 9 }
   0x5   : > { %s2084_s15 = smov (%p27_p1, %s25_s15), 0  ;;  %p176_p3 = pnand %p1361_p0, %p175_p2 }
   0x6   : > { %p215_p4 = scmp.lt.s32.totalorder (!%p176_p3), %s1737_s12, 7  ;;  %vm571_vm0 = vcmask (!%p176_p3), 1043456   ;;  %vm474_vm1 = vcmask (!%p176_p3), 64512   ;;  %vm1184_vm2 = vcmask (!%p176_p3), 60416  }
   0x7   : > { %179 = sbr.rel (%p176_p3) target bundleno = 300 (0x12c), region = 32 }
   0xe   : > { %s2086_s12 = smov (!%p215_p4, %s1737_s12), 7 }
   0xf   : > { %s1498_s16 = sshll.u32 %s2086_s12, 8  ;;  %s1364_s17 = sshll.u32 %s2086_s12, 2 }
  0x10   : > { %s1794_s20 = scalar_lea.vmem %s2077_s0, %s1498_s16  ;;  %s227_s23 = scalar_lea.vmem %s2078_s1, %s1364_s17 }
  0x11   : > { %v306_v0 = vld [vmem:[%s227_s23] sm:$0xf]  ;;  %v1693_v4 = vld [vmem:[%s1794_s20 + $0x8] sm:$0xff]   ;;  %v1695_v6 = vld [vmem:[%s1794_s20 + $0x10] sm:$0xff]   ;;  %s230_s26 = scalar_lea.vmem %s2079_s2, %s2086_s12  ;;  %s1879_s29 = scalar_lea.vmem %s2080_s3, %s1498_s16 }
  0x12   : > { %1665 = vmatprep.subr.msk.bf16.mxu0 %vm571_vm0, %v306_v0  ;;  %1666 = vmatprep.subr.msk.bf16.mxu1 %vm571_vm0, %v306_v0  ;;  %v573_v1 = vsel %vm571_vm0, %v306_v0, 0  ;;  %v1691_v2 = vld [vmem:[%s1794_s20] sm:$0xff]   ;;  %v1694_v5 = vld [vmem:[%s1794_s20 + $0x88] sm:$0xff]   ;;  %v1696_v7 = vld [vmem:[%s1794_s20 + $0x90] sm:$0xff]  }
  0x13   : > { %1598 = vmatpush3.bf16.msra.mxu0 %v573_v1  ;;  %1664 = vmatpush3.bf16.msra.mxu1 %v573_v1  ;;  %v1692_v3 = vld [vmem:[%s1794_s20 + $0x80] sm:$0xff]   ;;  %v1697_v8 = vld [vmem:[%s1794_s20 + $0x18] sm:$0xff]   ;;  %v1701_v12 = vld [vmem:[%s1794_s20 + $0x28] sm:$0xff]  }
  0x14   : > { %1599 = vmatprep.mubr.msk.bf16.mxu0 %vm474_vm1, %v1691_v2  ;;  %1631 = vmatprep.mubr.msk.bf16.mxu1 %vm474_vm1, %v1692_v3  ;;  %v1698_v9 = vld [vmem:[%s1794_s20 + $0x98] sm:$0xff]   ;;  %v1699_v10 = vld [vmem:[%s1794_s20 + $0x20] sm:$0xff]   ;;  %v1702_v13 = vld [vmem:[%s1794_s20 + $0xa8] sm:$0xff]  }
  0x15   : > { %v1700_v11 = vld [vmem:[%s1794_s20 + $0xa0] sm:$0xff]   ;;  %v1703_v14 = vld [vmem:[%s1794_s20 + $0x30] sm:$0xff]   ;;  %v1705_v16 = vld [vmem:[%s1794_s20 + $0x38] sm:$0xff]  }
  0x16   : > { %1600 = vmatmul.mubr.msk.bf16.vlgmr.msra.gmra.mrb[0].mxu0 %vm474_vm1, %v1693_v4  ;;  %1632 = vmatmul.mubr.msk.bf16.vlgmr.msra.gmra.mrb[0].mxu1 %vm474_vm1, %v1694_v5  ;;  %v1704_v15 = vld [vmem:[%s1794_s20 + $0xb0] sm:$0xff]   ;;  %v1706_v17 = vld [vmem:[%s1794_s20 + $0xb8] sm:$0xff]   ;;  %v1707_v18 = vld [vmem:[%s1794_s20 + $0x40] sm:$0xff]  }
  0x17   : > { %1603 = vmatprep.mubr.msk.bf16.mxu0 %vm474_vm1, %v1695_v6  ;;  %1635 = vmatprep.mubr.msk.bf16.mxu1 %vm474_vm1, %v1696_v7  ;;  %v1708_v19 = vld [vmem:[%s1794_s20 + $0xc0] sm:$0xff]   ;;  %v1709_v20 = vld [vmem:[%s1794_s20 + $0x48] sm:$0xff]   ;;  %v1711_v22 = vld [vmem:[%s1794_s20 + $0x50] sm:$0xff]  }
  0x18   : > { %v1710_v21 = vld [vmem:[%s1794_s20 + $0xc8] sm:$0xff]   ;;  %v1712_v23 = vld [vmem:[%s1794_s20 + $0xd0] sm:$0xff]   ;;  %v1713_v24 = vld [vmem:[%s1794_s20 + $0x58] sm:$0xff]  }
  0x19   : > { %v1714_v25 = vld [vmem:[%s1794_s20 + $0xd8] sm:$0xff]   ;;  %v1715_v26 = vld [vmem:[%s1794_s20 + $0x60] sm:$0xff]   ;;  %v1717_v28 = vld [vmem:[%s1794_s20 + $0x68] sm:$0xff]  }
  0x1a   : > { %v1716_v27 = vld [vmem:[%s1794_s20 + $0xe0] sm:$0xff]   ;;  %v1718_v29 = vld [vmem:[%s1794_s20 + $0xe8] sm:$0xff]   ;;  %v1719_v30 = vld [vmem:[%s1794_s20 + $0x70] sm:$0xff]  }
  0x1b   : > { %v1720_v31 = vld [vmem:[%s1794_s20 + $0xf0] sm:$0xff]   ;;  %v1721_v32 = vld [vmem:[%s1794_s20 + $0x78] sm:$0xff]   ;;  %v1867_v34 = vld [vmem:[%s230_s26] ss:$0 sm:$0xff] }
  0x1c   : > { %v1722_v33 = vld [vmem:[%s1794_s20 + $0xf8] sm:$0xff]  }
  0x1e   : > { %1604 = vmatmul.mubr.msk.bf16.gmra.mrb[4].mxu0 %vm474_vm1, %v1697_v8  ;;  %1636 = vmatmul.mubr.msk.bf16.gmra.mrb[4].mxu1 %vm474_vm1, %v1698_v9 }
  0x1f   : > { %1607 = vmatprep.mubr.msk.bf16.mxu0 %vm474_vm1, %v1699_v10  ;;  %1639 = vmatprep.mubr.msk.bf16.mxu1 %vm474_vm1, %v1700_v11 }
  0x26   : > { %1608 = vmatmul.mubr.msk.bf16.gmra.mrb[8].mxu0 %vm474_vm1, %v1701_v12  ;;  %1640 = vmatmul.mubr.msk.bf16.gmra.mrb[8].mxu1 %vm474_vm1, %v1702_v13 }
  0x27   : > { %1611 = vmatprep.mubr.msk.bf16.mxu0 %vm474_vm1, %v1703_v14  ;;  %1643 = vmatprep.mubr.msk.bf16.mxu1 %vm474_vm1, %v1704_v15 }
  0x2e   : > { %1612 = vmatmul.mubr.msk.bf16.gmra.mrb[12].mxu0 %vm474_vm1, %v1705_v16  ;;  %1644 = vmatmul.mubr.msk.bf16.gmra.mrb[12].mxu1 %vm474_vm1, %v1706_v17 }
  0x2f   : > { %1615 = vmatprep.mubr.msk.bf16.mxu0 %vm474_vm1, %v1707_v18  ;;  %1647 = vmatprep.mubr.msk.bf16.mxu1 %vm474_vm1, %v1708_v19 }
  0x36   : > { %1616 = vmatmul.mubr.msk.bf16.gmra.mrb[16].mxu0 %vm474_vm1, %v1709_v20  ;;  %1648 = vmatmul.mubr.msk.bf16.gmra.mrb[16].mxu1 %vm474_vm1, %v1710_v21 }
  0x37   : > { %1619 = vmatprep.mubr.msk.bf16.mxu0 %vm474_vm1, %v1711_v22  ;;  %1651 = vmatprep.mubr.msk.bf16.mxu1 %vm474_vm1, %v1712_v23 }
  0x3e   : > { %1620 = vmatmul.mubr.msk.bf16.gmra.mrb[20].mxu0 %vm474_vm1, %v1713_v24  ;;  %1652 = vmatmul.mubr.msk.bf16.gmra.mrb[20].mxu1 %vm474_vm1, %v1714_v25 }
  0x3f   : > { %1623 = vmatprep.mubr.msk.bf16.mxu0 %vm474_vm1, %v1715_v26  ;;  %1655 = vmatprep.mubr.msk.bf16.mxu1 %vm474_vm1, %v1716_v27 }
  0x46   : > { %1624 = vmatmul.mubr.msk.bf16.gmra.mrb[24].mxu0 %vm474_vm1, %v1717_v28  ;;  %1656 = vmatmul.mubr.msk.bf16.gmra.mrb[24].mxu1 %vm474_vm1, %v1718_v29 }
  0x47   : > { %1627 = vmatprep.mubr.msk.bf16.mxu0 %vm474_vm1, %v1719_v30  ;;  %1659 = vmatprep.mubr.msk.bf16.mxu1 %vm474_vm1, %v1720_v31 }
  0x4e   : > { %1628 = vmatmul.mubr.msk.bf16.gmra.mrb[28].mxu0 %vm474_vm1, %v1721_v32  ;;  %1660 = vmatmul.mubr.msk.bf16.gmra.mrb[28].mxu1 %vm474_vm1, %v1722_v33 }
  0xe9   : > { %v1601_v35 = vpop.f32.mrb[0].mxu0  ;;  %v1633_v37 = vpop.f32.mrb[0].mxu1 }
  0xea   : > { %v618_v36 = vadd.f32 %v1601_v35, %v1867_v34  ;;  %v609_v38 = vpop.f32.mrb[1].mxu0  ;;  %v746_v39 = vadd.f32 %v1633_v37, %v1867_v34  ;;  %v737_v41 = vpop.f32.mrb[1].mxu1 }
  0xeb   : > { %v610_v40 = vadd.f32 %v1867_v34, %v609_v38  ;;  %v1602_v42 = vpop.f32.mrb[2].mxu0  ;;  %v738_v44 = vadd.f32 %v1867_v34, %v737_v41  ;;  %v1634_v46 = vpop.f32.mrb[2].mxu1 }
  0xec   : > { %v866_v43 = vmax.f32 %v618_v36, 0.0  ;;  %v621_v45 = vadd.f32 %v1602_v42, %v1867_v34  ;;  %v612_v47 = vpop.f32.mrb[3].mxu0  ;;  %v898_v48 = vmax.f32 %v746_v39, 0.0  ;;  %v749_v50 = vadd.f32 %v1634_v46, %v1867_v34  ;;  %v740_v52 = vpop.f32.mrb[3].mxu1 }
  0xed   : > { %v864_v49 = vmax.f32 %v610_v40, 0.0  ;;  %v613_v51 = vadd.f32 %v1867_v34, %v612_v47  ;;  %v896_v54 = vmax.f32 %v738_v44, 0.0  ;;  %v741_v56 = vadd.f32 %v1867_v34, %v740_v52 }
  0xee   : > { %v1502_v53 = vpack.c.bf16 %v866_v43, %v866_v43  ;;  %v867_v55 = vmax.f32 %v621_v45, 0.0  ;;  %v1534_v57 = vpack.c.bf16 %v898_v48, %v898_v48  ;;  %v899_v59 = vmax.f32 %v749_v50, 0.0 }
  0xef   : > { %v1500_v58 = vpack.c.bf16 %v864_v49, %v864_v49  ;;  %v865_v60 = vmax.f32 %v613_v51, 0.0  ;;  %v1532_v61 = vpack.c.bf16 %v896_v54, %v896_v54  ;;  %v897_v63 = vmax.f32 %v741_v56, 0.0 }
  0xf0   : > { %1187 = vst.msk [vmem:[%s1879_s29 + $0x8] sm:$0xf] %vm1184_vm2, %v1502_v53  ;;  %v1503_v62 = vpack.c.bf16 %v867_v55, %v867_v55  ;;  %1219 = vst.msk [vmem:[%s1879_s29 + $0x88] sm:$0xf] %vm1184_vm2, %v1534_v57  ;;  %v1535_v0 = vpack.c.bf16 %v899_v59, %v899_v59 }
  0xf1   : > { %1185 = vst.msk [vmem:[%s1879_s29] sm:$0xf] %vm1184_vm2, %v1500_v58  ;;  %v1501_v1 = vpack.c.bf16 %v865_v60, %v865_v60  ;;  %v1605_v2 = vpop.f32.mrb[4].mxu0  ;;  %1217 = vst.msk [vmem:[%s1879_s29 + $0x80] sm:$0xf] %vm1184_vm2, %v1532_v61  ;;  %v1533_v3 = vpack.c.bf16 %v897_v63, %v897_v63  ;;  %v1637_v5 = vpop.f32.mrb[4].mxu1 }
  0xf2   : > { %1188 = vst.msk [vmem:[%s1879_s29 + $0xc] sm:$0xf] %vm1184_vm2, %v1503_v62  ;;  %v634_v4 = vadd.f32 %v1605_v2, %v1867_v34  ;;  %v625_v6 = vpop.f32.mrb[5].mxu0  ;;  %1220 = vst.msk [vmem:[%s1879_s29 + $0x8c] sm:$0xf] %vm1184_vm2, %v1535_v0  ;;  %v762_v7 = vadd.f32 %v1637_v5, %v1867_v34  ;;  %v753_v9 = vpop.f32.mrb[5].mxu1 }
  0xf3   : > { %1186 = vst.msk [vmem:[%s1879_s29 + $0x4] sm:$0xf] %vm1184_vm2, %v1501_v1  ;;  %v626_v8 = vadd.f32 %v1867_v34, %v625_v6  ;;  %v1606_v10 = vpop.f32.mrb[6].mxu0  ;;  %1218 = vst.msk [vmem:[%s1879_s29 + $0x84] sm:$0xf] %vm1184_vm2, %v1533_v3  ;;  %v754_v12 = vadd.f32 %v1867_v34, %v753_v9  ;;  %v1638_v14 = vpop.f32.mrb[6].mxu1 }
  0xf4   : > { %v870_v11 = vmax.f32 %v634_v4, 0.0  ;;  %v637_v13 = vadd.f32 %v1606_v10, %v1867_v34  ;;  %v628_v15 = vpop.f32.mrb[7].mxu0  ;;  %v902_v16 = vmax.f32 %v762_v7, 0.0  ;;  %v765_v18 = vadd.f32 %v1638_v14, %v1867_v34  ;;  %v756_v20 = vpop.f32.mrb[7].mxu1 }
  0xf5   : > { %v868_v17 = vmax.f32 %v626_v8, 0.0  ;;  %v629_v19 = vadd.f32 %v1867_v34, %v628_v15  ;;  %v900_v22 = vmax.f32 %v754_v12, 0.0  ;;  %v757_v24 = vadd.f32 %v1867_v34, %v756_v20 }
  0xf6   : > { %v1506_v21 = vpack.c.bf16 %v870_v11, %v870_v11  ;;  %v871_v23 = vmax.f32 %v637_v13, 0.0  ;;  %v1538_v25 = vpack.c.bf16 %v902_v16, %v902_v16  ;;  %v903_v27 = vmax.f32 %v765_v18, 0.0 }
  0xf7   : > { %v1504_v26 = vpack.c.bf16 %v868_v17, %v868_v17  ;;  %v869_v28 = vmax.f32 %v629_v19, 0.0  ;;  %v1536_v29 = vpack.c.bf16 %v900_v22, %v900_v22  ;;  %v901_v31 = vmax.f32 %v757_v24, 0.0 }
  0xf8   : > { %1191 = vst.msk [vmem:[%s1879_s29 + $0x18] sm:$0xf] %vm1184_vm2, %v1506_v21  ;;  %v1507_v30 = vpack.c.bf16 %v871_v23, %v871_v23  ;;  %1223 = vst.msk [vmem:[%s1879_s29 + $0x98] sm:$0xf] %vm1184_vm2, %v1538_v25  ;;  %v1539_v32 = vpack.c.bf16 %v903_v27, %v903_v27 }
  0xf9   : > { %1189 = vst.msk [vmem:[%s1879_s29 + $0x10] sm:$0xf] %vm1184_vm2, %v1504_v26  ;;  %v1505_v33 = vpack.c.bf16 %v869_v28, %v869_v28  ;;  %v1609_v35 = vpop.f32.mrb[8].mxu0  ;;  %1221 = vst.msk [vmem:[%s1879_s29 + $0x90] sm:$0xf] %vm1184_vm2, %v1536_v29  ;;  %v1537_v36 = vpack.c.bf16 %v901_v31, %v901_v31  ;;  %v1641_v38 = vpop.f32.mrb[8].mxu1 }
  0xfa   : > { %1192 = vst.msk [vmem:[%s1879_s29 + $0x1c] sm:$0xf] %vm1184_vm2, %v1507_v30  ;;  %v650_v37 = vadd.f32 %v1609_v35, %v1867_v34  ;;  %v641_v39 = vpop.f32.mrb[9].mxu0  ;;  %1224 = vst.msk [vmem:[%s1879_s29 + $0x9c] sm:$0xf] %vm1184_vm2, %v1539_v32  ;;  %v778_v40 = vadd.f32 %v1641_v38, %v1867_v34  ;;  %v769_v42 = vpop.f32.mrb[9].mxu1 }
  0xfb   : > { %1190 = vst.msk [vmem:[%s1879_s29 + $0x14] sm:$0xf] %vm1184_vm2, %v1505_v33  ;;  %v642_v41 = vadd.f32 %v1867_v34, %v641_v39  ;;  %v1610_v43 = vpop.f32.mrb[10].mxu0  ;;  %1222 = vst.msk [vmem:[%s1879_s29 + $0x94] sm:$0xf] %vm1184_vm2, %v1537_v36  ;;  %v770_v45 = vadd.f32 %v1867_v34, %v769_v42  ;;  %v1642_v47 = vpop.f32.mrb[10].mxu1 }
  0xfc   : > { %v874_v44 = vmax.f32 %v650_v37, 0.0  ;;  %v653_v46 = vadd.f32 %v1610_v43, %v1867_v34  ;;  %v644_v48 = vpop.f32.mrb[11].mxu0  ;;  %v906_v49 = vmax.f32 %v778_v40, 0.0  ;;  %v781_v51 = vadd.f32 %v1642_v47, %v1867_v34  ;;  %v772_v53 = vpop.f32.mrb[11].mxu1 }
  0xfd   : > { %v872_v50 = vmax.f32 %v642_v41, 0.0  ;;  %v645_v52 = vadd.f32 %v1867_v34, %v644_v48  ;;  %v904_v55 = vmax.f32 %v770_v45, 0.0  ;;  %v773_v57 = vadd.f32 %v1867_v34, %v772_v53 }
  0xfe   : > { %v1510_v54 = vpack.c.bf16 %v874_v44, %v874_v44  ;;  %v875_v56 = vmax.f32 %v653_v46, 0.0  ;;  %v1542_v58 = vpack.c.bf16 %v906_v49, %v906_v49  ;;  %v907_v60 = vmax.f32 %v781_v51, 0.0 }
  0xff   : > { %v1508_v59 = vpack.c.bf16 %v872_v50, %v872_v50  ;;  %v873_v61 = vmax.f32 %v645_v52, 0.0  ;;  %v1540_v62 = vpack.c.bf16 %v904_v55, %v904_v55  ;;  %v905_v0 = vmax.f32 %v773_v57, 0.0 }
 0x100   : > { %1195 = vst.msk [vmem:[%s1879_s29 + $0x28] sm:$0xf] %vm1184_vm2, %v1510_v54  ;;  %v1511_v63 = vpack.c.bf16 %v875_v56, %v875_v56  ;;  %1227 = vst.msk [vmem:[%s1879_s29 + $0xa8] sm:$0xf] %vm1184_vm2, %v1542_v58  ;;  %v1543_v1 = vpack.c.bf16 %v907_v60, %v907_v60 }
 0x101   : > { %1193 = vst.msk [vmem:[%s1879_s29 + $0x20] sm:$0xf] %vm1184_vm2, %v1508_v59  ;;  %v1509_v2 = vpack.c.bf16 %v873_v61, %v873_v61  ;;  %v1613_v3 = vpop.f32.mrb[12].mxu0  ;;  %1225 = vst.msk [vmem:[%s1879_s29 + $0xa0] sm:$0xf] %vm1184_vm2, %v1540_v62  ;;  %v1541_v4 = vpack.c.bf16 %v905_v0, %v905_v0  ;;  %v1645_v6 = vpop.f32.mrb[12].mxu1 }
 0x102   : > { %1196 = vst.msk [vmem:[%s1879_s29 + $0x2c] sm:$0xf] %vm1184_vm2, %v1511_v63  ;;  %v666_v5 = vadd.f32 %v1613_v3, %v1867_v34  ;;  %v657_v7 = vpop.f32.mrb[13].mxu0  ;;  %1228 = vst.msk [vmem:[%s1879_s29 + $0xac] sm:$0xf] %vm1184_vm2, %v1543_v1  ;;  %v794_v8 = vadd.f32 %v1645_v6, %v1867_v34  ;;  %v785_v10 = vpop.f32.mrb[13].mxu1 }
 0x103   : > { %1194 = vst.msk [vmem:[%s1879_s29 + $0x24] sm:$0xf] %vm1184_vm2, %v1509_v2  ;;  %v658_v9 = vadd.f32 %v1867_v34, %v657_v7  ;;  %v1614_v11 = vpop.f32.mrb[14].mxu0  ;;  %1226 = vst.msk [vmem:[%s1879_s29 + $0xa4] sm:$0xf] %vm1184_vm2, %v1541_v4  ;;  %v786_v13 = vadd.f32 %v1867_v34, %v785_v10  ;;  %v1646_v15 = vpop.f32.mrb[14].mxu1 }
 0x104   : > { %v878_v12 = vmax.f32 %v666_v5, 0.0  ;;  %v669_v14 = vadd.f32 %v1614_v11, %v1867_v34  ;;  %v660_v16 = vpop.f32.mrb[15].mxu0  ;;  %v910_v17 = vmax.f32 %v794_v8, 0.0  ;;  %v797_v19 = vadd.f32 %v1646_v15, %v1867_v34  ;;  %v788_v21 = vpop.f32.mrb[15].mxu1 }
 0x105   : > { %v876_v18 = vmax.f32 %v658_v9, 0.0  ;;  %v661_v20 = vadd.f32 %v1867_v34, %v660_v16  ;;  %v908_v23 = vmax.f32 %v786_v13, 0.0  ;;  %v789_v25 = vadd.f32 %v1867_v34, %v788_v21 }
 0x106   : > { %v1514_v22 = vpack.c.bf16 %v878_v12, %v878_v12  ;;  %v879_v24 = vmax.f32 %v669_v14, 0.0  ;;  %v1546_v26 = vpack.c.bf16 %v910_v17, %v910_v17  ;;  %v911_v28 = vmax.f32 %v797_v19, 0.0 }
 0x107   : > { %v1512_v27 = vpack.c.bf16 %v876_v18, %v876_v18  ;;  %v877_v29 = vmax.f32 %v661_v20, 0.0  ;;  %v1544_v30 = vpack.c.bf16 %v908_v23, %v908_v23  ;;  %v909_v32 = vmax.f32 %v789_v25, 0.0 }
 0x108   : > { %1199 = vst.msk [vmem:[%s1879_s29 + $0x38] sm:$0xf] %vm1184_vm2, %v1514_v22  ;;  %v1515_v31 = vpack.c.bf16 %v879_v24, %v879_v24  ;;  %1231 = vst.msk [vmem:[%s1879_s29 + $0xb8] sm:$0xf] %vm1184_vm2, %v1546_v26  ;;  %v1547_v33 = vpack.c.bf16 %v911_v28, %v911_v28 }
 0x109   : > { %1197 = vst.msk [vmem:[%s1879_s29 + $0x30] sm:$0xf] %vm1184_vm2, %v1512_v27  ;;  %v1513_v35 = vpack.c.bf16 %v877_v29, %v877_v29  ;;  %v1617_v36 = vpop.f32.mrb[16].mxu0  ;;  %1229 = vst.msk [vmem:[%s1879_s29 + $0xb0] sm:$0xf] %vm1184_vm2, %v1544_v30  ;;  %v1545_v37 = vpack.c.bf16 %v909_v32, %v909_v32  ;;  %v1649_v39 = vpop.f32.mrb[16].mxu1 }
 0x10a   : > { %1200 = vst.msk [vmem:[%s1879_s29 + $0x3c] sm:$0xf] %vm1184_vm2, %v1515_v31  ;;  %v682_v38 = vadd.f32 %v1617_v36, %v1867_v34  ;;  %v673_v40 = vpop.f32.mrb[17].mxu0  ;;  %1232 = vst.msk [vmem:[%s1879_s29 + $0xbc] sm:$0xf] %vm1184_vm2, %v1547_v33  ;;  %v810_v41 = vadd.f32 %v1649_v39, %v1867_v34  ;;  %v801_v43 = vpop.f32.mrb[17].mxu1 }
 0x10b   : > { %1198 = vst.msk [vmem:[%s1879_s29 + $0x34] sm:$0xf] %vm1184_vm2, %v1513_v35  ;;  %v674_v42 = vadd.f32 %v1867_v34, %v673_v40  ;;  %v1618_v44 = vpop.f32.mrb[18].mxu0  ;;  %1230 = vst.msk [vmem:[%s1879_s29 + $0xb4] sm:$0xf] %vm1184_vm2, %v1545_v37  ;;  %v802_v46 = vadd.f32 %v1867_v34, %v801_v43  ;;  %v1650_v48 = vpop.f32.mrb[18].mxu1 }
 0x10c   : > { %v882_v45 = vmax.f32 %v682_v38, 0.0  ;;  %v685_v47 = vadd.f32 %v1618_v44, %v1867_v34  ;;  %v676_v49 = vpop.f32.mrb[19].mxu0  ;;  %v914_v50 = vmax.f32 %v810_v41, 0.0  ;;  %v813_v52 = vadd.f32 %v1650_v48, %v1867_v34  ;;  %v804_v54 = vpop.f32.mrb[19].mxu1 }
 0x10d   : > { %v880_v51 = vmax.f32 %v674_v42, 0.0  ;;  %v677_v53 = vadd.f32 %v1867_v34, %v676_v49  ;;  %v912_v56 = vmax.f32 %v802_v46, 0.0  ;;  %v805_v58 = vadd.f32 %v1867_v34, %v804_v54 }
 0x10e   : > { %v1518_v55 = vpack.c.bf16 %v882_v45, %v882_v45  ;;  %v883_v57 = vmax.f32 %v685_v47, 0.0  ;;  %v1550_v59 = vpack.c.bf16 %v914_v50, %v914_v50  ;;  %v915_v61 = vmax.f32 %v813_v52, 0.0 }
 0x10f   : > { %v1516_v60 = vpack.c.bf16 %v880_v51, %v880_v51  ;;  %v881_v62 = vmax.f32 %v677_v53, 0.0  ;;  %v1548_v63 = vpack.c.bf16 %v912_v56, %v912_v56  ;;  %v913_v1 = vmax.f32 %v805_v58, 0.0 }
 0x110   : > { %1203 = vst.msk [vmem:[%s1879_s29 + $0x48] sm:$0xf] %vm1184_vm2, %v1518_v55  ;;  %v1519_v0 = vpack.c.bf16 %v883_v57, %v883_v57  ;;  %1235 = vst.msk [vmem:[%s1879_s29 + $0xc8] sm:$0xf] %vm1184_vm2, %v1550_v59  ;;  %v1551_v2 = vpack.c.bf16 %v915_v61, %v915_v61 }
 0x111   : > { %1201 = vst.msk [vmem:[%s1879_s29 + $0x40] sm:$0xf] %vm1184_vm2, %v1516_v60  ;;  %v1517_v3 = vpack.c.bf16 %v881_v62, %v881_v62  ;;  %v1621_v4 = vpop.f32.mrb[20].mxu0  ;;  %1233 = vst.msk [vmem:[%s1879_s29 + $0xc0] sm:$0xf] %vm1184_vm2, %v1548_v63  ;;  %v1549_v5 = vpack.c.bf16 %v913_v1, %v913_v1  ;;  %v1653_v7 = vpop.f32.mrb[20].mxu1 }
 0x112   : > { %1204 = vst.msk [vmem:[%s1879_s29 + $0x4c] sm:$0xf] %vm1184_vm2, %v1519_v0  ;;  %v698_v6 = vadd.f32 %v1621_v4, %v1867_v34  ;;  %v689_v8 = vpop.f32.mrb[21].mxu0  ;;  %1236 = vst.msk [vmem:[%s1879_s29 + $0xcc] sm:$0xf] %vm1184_vm2, %v1551_v2  ;;  %v826_v9 = vadd.f32 %v1653_v7, %v1867_v34  ;;  %v817_v11 = vpop.f32.mrb[21].mxu1 }
 0x113   : > { %1202 = vst.msk [vmem:[%s1879_s29 + $0x44] sm:$0xf] %vm1184_vm2, %v1517_v3  ;;  %v690_v10 = vadd.f32 %v1867_v34, %v689_v8  ;;  %v1622_v12 = vpop.f32.mrb[22].mxu0  ;;  %1234 = vst.msk [vmem:[%s1879_s29 + $0xc4] sm:$0xf] %vm1184_vm2, %v1549_v5  ;;  %v818_v14 = vadd.f32 %v1867_v34, %v817_v11  ;;  %v1654_v16 = vpop.f32.mrb[22].mxu1 }
 0x114   : > { %v886_v13 = vmax.f32 %v698_v6, 0.0  ;;  %v701_v15 = vadd.f32 %v1622_v12, %v1867_v34  ;;  %v692_v17 = vpop.f32.mrb[23].mxu0  ;;  %v918_v18 = vmax.f32 %v826_v9, 0.0  ;;  %v829_v20 = vadd.f32 %v1654_v16, %v1867_v34  ;;  %v820_v22 = vpop.f32.mrb[23].mxu1 }
 0x115   : > { %v884_v19 = vmax.f32 %v690_v10, 0.0  ;;  %v693_v21 = vadd.f32 %v1867_v34, %v692_v17  ;;  %v916_v24 = vmax.f32 %v818_v14, 0.0  ;;  %v821_v26 = vadd.f32 %v1867_v34, %v820_v22 }
 0x116   : > { %v1522_v23 = vpack.c.bf16 %v886_v13, %v886_v13  ;;  %v887_v25 = vmax.f32 %v701_v15, 0.0  ;;  %v1554_v27 = vpack.c.bf16 %v918_v18, %v918_v18  ;;  %v919_v29 = vmax.f32 %v829_v20, 0.0 }
 0x117   : > { %v1520_v28 = vpack.c.bf16 %v884_v19, %v884_v19  ;;  %v885_v30 = vmax.f32 %v693_v21, 0.0  ;;  %v1552_v31 = vpack.c.bf16 %v916_v24, %v916_v24  ;;  %v917_v33 = vmax.f32 %v821_v26, 0.0 }
 0x118   : > { %1207 = vst.msk [vmem:[%s1879_s29 + $0x58] sm:$0xf] %vm1184_vm2, %v1522_v23  ;;  %v1523_v32 = vpack.c.bf16 %v887_v25, %v887_v25  ;;  %1239 = vst.msk [vmem:[%s1879_s29 + $0xd8] sm:$0xf] %vm1184_vm2, %v1554_v27  ;;  %v1555_v35 = vpack.c.bf16 %v919_v29, %v919_v29 }
 0x119   : > { %1205 = vst.msk [vmem:[%s1879_s29 + $0x50] sm:$0xf] %vm1184_vm2, %v1520_v28  ;;  %v1521_v36 = vpack.c.bf16 %v885_v30, %v885_v30  ;;  %v1625_v37 = vpop.f32.mrb[24].mxu0  ;;  %1237 = vst.msk [vmem:[%s1879_s29 + $0xd0] sm:$0xf] %vm1184_vm2, %v1552_v31  ;;  %v1553_v38 = vpack.c.bf16 %v917_v33, %v917_v33  ;;  %v1657_v40 = vpop.f32.mrb[24].mxu1 }
 0x11a   : > { %1208 = vst.msk [vmem:[%s1879_s29 + $0x5c] sm:$0xf] %vm1184_vm2, %v1523_v32  ;;  %v714_v39 = vadd.f32 %v1625_v37, %v1867_v34  ;;  %v705_v41 = vpop.f32.mrb[25].mxu0  ;;  %1240 = vst.msk [vmem:[%s1879_s29 + $0xdc] sm:$0xf] %vm1184_vm2, %v1555_v35  ;;  %v842_v42 = vadd.f32 %v1657_v40, %v1867_v34  ;;  %v833_v44 = vpop.f32.mrb[25].mxu1 }
 0x11b   : > { %1206 = vst.msk [vmem:[%s1879_s29 + $0x54] sm:$0xf] %vm1184_vm2, %v1521_v36  ;;  %v706_v43 = vadd.f32 %v1867_v34, %v705_v41  ;;  %v1626_v45 = vpop.f32.mrb[26].mxu0  ;;  %1238 = vst.msk [vmem:[%s1879_s29 + $0xd4] sm:$0xf] %vm1184_vm2, %v1553_v38  ;;  %v834_v47 = vadd.f32 %v1867_v34, %v833_v44  ;;  %v1658_v49 = vpop.f32.mrb[26].mxu1 }
 0x11c   : > { %v890_v46 = vmax.f32 %v714_v39, 0.0  ;;  %v717_v48 = vadd.f32 %v1626_v45, %v1867_v34  ;;  %v708_v50 = vpop.f32.mrb[27].mxu0  ;;  %v922_v51 = vmax.f32 %v842_v42, 0.0  ;;  %v845_v53 = vadd.f32 %v1658_v49, %v1867_v34  ;;  %v836_v55 = vpop.f32.mrb[27].mxu1 }
 0x11d   : > { %v888_v52 = vmax.f32 %v706_v43, 0.0  ;;  %v709_v54 = vadd.f32 %v1867_v34, %v708_v50  ;;  %v920_v57 = vmax.f32 %v834_v47, 0.0  ;;  %v837_v59 = vadd.f32 %v1867_v34, %v836_v55 }
 0x11e   : > { %v1526_v56 = vpack.c.bf16 %v890_v46, %v890_v46  ;;  %v891_v58 = vmax.f32 %v717_v48, 0.0  ;;  %v1558_v60 = vpack.c.bf16 %v922_v51, %v922_v51  ;;  %v923_v62 = vmax.f32 %v845_v53, 0.0 }
 0x11f   : > { %v1524_v61 = vpack.c.bf16 %v888_v52, %v888_v52  ;;  %v889_v63 = vmax.f32 %v709_v54, 0.0  ;;  %v1556_v0 = vpack.c.bf16 %v920_v57, %v920_v57  ;;  %v921_v2 = vmax.f32 %v837_v59, 0.0 }
 0x120   : > { %1211 = vst.msk [vmem:[%s1879_s29 + $0x68] sm:$0xf] %vm1184_vm2, %v1526_v56  ;;  %v1527_v1 = vpack.c.bf16 %v891_v58, %v891_v58  ;;  %1243 = vst.msk [vmem:[%s1879_s29 + $0xe8] sm:$0xf] %vm1184_vm2, %v1558_v60  ;;  %v1559_v3 = vpack.c.bf16 %v923_v62, %v923_v62 }
 0x121   : > { %1209 = vst.msk [vmem:[%s1879_s29 + $0x60] sm:$0xf] %vm1184_vm2, %v1524_v61  ;;  %v1525_v4 = vpack.c.bf16 %v889_v63, %v889_v63  ;;  %v1629_v5 = vpop.f32.mrb[28].mxu0  ;;  %1241 = vst.msk [vmem:[%s1879_s29 + $0xe0] sm:$0xf] %vm1184_vm2, %v1556_v0  ;;  %v1557_v6 = vpack.c.bf16 %v921_v2, %v921_v2  ;;  %v1661_v8 = vpop.f32.mrb[28].mxu1 }
 0x122   : > { %1212 = vst.msk [vmem:[%s1879_s29 + $0x6c] sm:$0xf] %vm1184_vm2, %v1527_v1  ;;  %v730_v7 = vadd.f32 %v1629_v5, %v1867_v34  ;;  %v721_v9 = vpop.f32.mrb[29].mxu0  ;;  %1244 = vst.msk [vmem:[%s1879_s29 + $0xec] sm:$0xf] %vm1184_vm2, %v1559_v3  ;;  %v858_v10 = vadd.f32 %v1661_v8, %v1867_v34  ;;  %v849_v12 = vpop.f32.mrb[29].mxu1 }
 0x123   : > { %1210 = vst.msk [vmem:[%s1879_s29 + $0x64] sm:$0xf] %vm1184_vm2, %v1525_v4  ;;  %v722_v11 = vadd.f32 %v1867_v34, %v721_v9  ;;  %v1630_v13 = vpop.f32.mrb[30].mxu0  ;;  %1242 = vst.msk [vmem:[%s1879_s29 + $0xe4] sm:$0xf] %vm1184_vm2, %v1557_v6  ;;  %v850_v15 = vadd.f32 %v1867_v34, %v849_v12  ;;  %v1662_v17 = vpop.f32.mrb[30].mxu1 }
 0x124   : > { %v894_v14 = vmax.f32 %v730_v7, 0.0  ;;  %v733_v16 = vadd.f32 %v1630_v13, %v1867_v34  ;;  %v724_v18 = vpop.f32.mrb[31].mxu0  ;;  %v926_v19 = vmax.f32 %v858_v10, 0.0  ;;  %v861_v21 = vadd.f32 %v1662_v17, %v1867_v34  ;;  %v852_v23 = vpop.f32.mrb[31].mxu1 }
 0x125   : > { %v892_v20 = vmax.f32 %v722_v11, 0.0  ;;  %v725_v22 = vadd.f32 %v1867_v34, %v724_v18  ;;  %v924_v25 = vmax.f32 %v850_v15, 0.0  ;;  %v853_v27 = vadd.f32 %v1867_v34, %v852_v23 }
 0x126   : > { %v1530_v24 = vpack.c.bf16 %v894_v14, %v894_v14  ;;  %v895_v26 = vmax.f32 %v733_v16, 0.0  ;;  %v1562_v28 = vpack.c.bf16 %v926_v19, %v926_v19  ;;  %v927_v30 = vmax.f32 %v861_v21, 0.0 }
 0x127   : > { %v1528_v29 = vpack.c.bf16 %v892_v20, %v892_v20  ;;  %v893_v31 = vmax.f32 %v725_v22, 0.0  ;;  %v1560_v32 = vpack.c.bf16 %v924_v25, %v924_v25  ;;  %v925_v35 = vmax.f32 %v853_v27, 0.0 }
 0x128   : > { %1215 = vst.msk [vmem:[%s1879_s29 + $0x78] sm:$0xf] %vm1184_vm2, %v1530_v24  ;;  %v1531_v33 = vpack.c.bf16 %v895_v26, %v895_v26  ;;  %1247 = vst.msk [vmem:[%s1879_s29 + $0xf8] sm:$0xf] %vm1184_vm2, %v1562_v28  ;;  %v1563_v36 = vpack.c.bf16 %v927_v30, %v927_v30 }
 0x129   : > { %1213 = vst.msk [vmem:[%s1879_s29 + $0x70] sm:$0xf] %vm1184_vm2, %v1528_v29  ;;  %v1529_v37 = vpack.c.bf16 %v893_v31, %v893_v31  ;;  %1245 = vst.msk [vmem:[%s1879_s29 + $0xf0] sm:$0xf] %vm1184_vm2, %v1560_v32  ;;  %v1561_v34 = vpack.c.bf16 %v925_v35, %v925_v35 }
 0x12a   : > { %1216 = vst.msk [vmem:[%s1879_s29 + $0x7c] sm:$0xf] %vm1184_vm2, %v1531_v33  ;;  %1248 = vst.msk [vmem:[%s1879_s29 + $0xfc] sm:$0xf] %vm1184_vm2, %v1563_v36 }
 0x12b   : > { %1214 = vst.msk [vmem:[%s1879_s29 + $0x74] sm:$0xf] %vm1184_vm2, %v1529_v37  ;;  %1246 = vst.msk [vmem:[%s1879_s29 + $0xf4] sm:$0xf] %vm1184_vm2, %v1561_v34 }
 0x12c PF: > { %s13_s14 = sadd.s32 1, %s1745_s14   ;;  %s2081_s12 = smov %s1741_s13 }
 0x12d   : > { %p10_p5 = scmp.ge.s32.totalorder %s13_s14, 10   ;;  %s2082_s13 = smov %s2084_s15 }
 0x12f   :  { %12 = sbr.rel (!%p10_p5) target bundleno = 2 (0x2), region = 68 }

// kernel: forward.47
= control target key start
LH: loop header
LB: loop body
LE: loop exit
PB: predicated region body
PF: predicated region fallthrough
CT: control target
= control target key end

     0   :  { %s876_s12 = smov 0   ;;  %s878_s13 = smov 0   ;;  %s976_s0 = inlined_call_operand.vmem [shape: bf16[8,128,72], index: 0, kind: input, shape index: {}]   ;;  %s977_s1 = inlined_call_operand.vmem [shape: bf16[8,72,8], index: 1, kind: input, shape index: {}]   ;;  %s978_s2 = inlined_call_operand.vmem [shape: f32[8,1,8], index: 2, kind: input, shape index: {}]   ;;  %s979_s3 = inlined_call_operand.vmem [shape: bf16[8,128,8], index: 3, kind: output, shape index: {}]  }
   0x1   :  { %s880_s14 = smov 0  }
   0x2 LB: > { %s25_s15 = sadd.s32 1, %s850_s13  ;;  %p679_p0 = scmp.ge.s32.totalorder %s854_s14, 1  ;;  %s854_s14 = sphi %s880_s14, %s13_s14   ;;  %s850_s13 = sphi %s878_s13, %s981_s13   ;;  %s846_s12 = sphi %s876_s12, %s980_s12  }
   0x3   : > { %p27_p1 = scmp.ge.s32.totalorder %s25_s15, 8  ;;  %p176_p2 = scmp.lt.s32.totalorder %s854_s14, 9 }
   0x5   : > { %s983_s15 = smov (%p27_p1, %s25_s15), 0  ;;  %p177_p3 = pnand %p679_p0, %p176_p2 }
   0x6   : > { %p217_p4 = scmp.lt.s32.totalorder (!%p177_p3), %s846_s12, 7  ;;  %vm344_vm0 = vcmask (!%p177_p3), 588800   ;;  %vm369_vm1 = vcmask (!%p177_p3), 1043456   ;;  %vm550_vm2 = vcmask (!%p177_p3), 60416  }
   0x7   : > { %180 = sbr.rel (%p177_p3) target bundleno = 269 (0x10d), region = 32 }
   0xe   : > { %s985_s12 = smov (!%p217_p4, %s846_s12), 7 }
   0xf   : > { %s725_s16 = sshll.u32 %s985_s12, 6  ;;  %s794_s17 = smul.u32 36, %s985_s12 }
  0x10   : > { %s903_s20 = scalar_lea.vmem %s976_s0, %s725_s16  ;;  %s233_s26 = scalar_lea.vmem %s978_s2, %s985_s12 }
  0x11   : > { %s230_s23 = scalar_lea.vmem %s977_s1, %s794_s17  ;;  %v824_v3 = vld [vmem:[%s903_s20] sm:$0xff]   ;;  %v826_v8 = vld [vmem:[%s903_s20 + $0x8] sm:$0xff]   ;;  %v828_v10 = vld [vmem:[%s903_s20 + $0x10] sm:$0xff]   ;;  %s933_s29 = scalar_lea.vmem %s979_s3, %s725_s16 }
  0x12   : > { %v819_v0 = vld [vmem:[%s230_s23] sm:$0xff]   ;;  %v820_v1 = vld [vmem:[%s230_s23 + $0x8] sm:$0xff]   ;;  %v821_v2 = vld [vmem:[%s230_s23 + $0x10] sm:$0xff]   ;;  %766 = vmatprep.mubr.msk.bf16.mxu0 %vm344_vm0, %v824_v3 }
  0x13   : > { %756 = vmatprep.subr.bf16.mxu0 %v819_v0  ;;  %782 = vmatprep.subr.bf16.mxu1 %v819_v0  ;;  %v825_v4 = vld [vmem:[%s903_s20 + $0x20] sm:$0xff]   ;;  %v822_v5 = vld [vmem:[%s230_s23 + $0x18] sm:$0xff]   ;;  %v827_v9 = vld [vmem:[%s903_s20 + $0x28] sm:$0xff]  }
  0x14   : > { %757 = vmatpush3.bf16.msra.mxu0 %v819_v0  ;;  %787 = vmatpush3.bf16.msra.mxu1 %v819_v0  ;;  %v823_v6 = vld [vmem:[%s230_s23 + $0x20] ss:$0 sps:$4 sm:$0xff]   ;;  %v829_v11 = vld [vmem:[%s903_s20 + $0x30] sm:$0xff]   ;;  %v830_v12 = vld [vmem:[%s903_s20 + $0x18] sm:$0xff]  }
  0x15   : > { %758 = vmatprep.subr.bf16.mxu0 %v820_v1  ;;  %783 = vmatprep.subr.bf16.mxu1 %v820_v1  ;;  %v371_v7 = vsel %vm369_vm1, %v823_v6, 0  ;;  %v831_v13 = vld [vmem:[%s903_s20 + $0x38] sm:$0xff]   ;;  %v685_v14 = vld [vmem:[%s233_s26] ss:$0 sm:$0xff] }
  0x16   : > { %774 = vmatprep.mubr.msk.bf16.mxu1 %vm344_vm0, %v825_v4 }
  0x18   : > { %759 = vmatpush3.bf16.msra.mxu0 %v820_v1  ;;  %788 = vmatpush3.bf16.msra.mxu1 %v820_v1 }
  0x19   : > { %760 = vmatprep.subr.bf16.mxu0 %v821_v2  ;;  %784 = vmatprep.subr.bf16.mxu1 %v821_v2 }
  0x1c   : > { %761 = vmatpush3.bf16.msra.mxu0 %v821_v2  ;;  %789 = vmatpush3.bf16.msra.mxu1 %v821_v2 }
  0x1d   : > { %762 = vmatprep.subr.bf16.mxu0 %v822_v5  ;;  %785 = vmatprep.subr.bf16.mxu1 %v822_v5 }
  0x20   : > { %763 = vmatpush3.bf16.msra.mxu0 %v822_v5  ;;  %790 = vmatpush3.bf16.msra.mxu1 %v822_v5 }
  0x21   : > { %792 = vmatprep.subr.msk.bf16.mxu0 %vm369_vm1, %v823_v6  ;;  %793 = vmatprep.subr.msk.bf16.mxu1 %vm369_vm1, %v823_v6 }
  0x24   : > { %765 = vmatpush3.bf16.msra.mxu0 %v371_v7  ;;  %791 = vmatpush3.bf16.msra.mxu1 %v371_v7 }
  0x27   : > { %767 = vmatmul.mubr.msk.bf16.vlgmr.msra.gmra.mrb[0].mxu0 %vm344_vm0, %v826_v8  ;;  %775 = vmatmul.mubr.msk.bf16.vlgmr.msra.gmra.mrb[0].mxu1 %vm344_vm0, %v827_v9 }
  0x28   : > { %770 = vmatprep.mubr.msk.bf16.mxu0 %vm344_vm0, %v828_v10  ;;  %778 = vmatprep.mubr.msk.bf16.mxu1 %vm344_vm0, %v829_v11 }
  0x2f   : > { %771 = vmatmul.mubr.msk.bf16.gmra.mrb[4].mxu0 %vm344_vm0, %v830_v12  ;;  %779 = vmatmul.mubr.msk.bf16.gmra.mrb[4].mxu1 %vm344_vm0, %v831_v13 }
  0xfa   : > { %v768_v15 = vpop.f32.mrb[0].mxu0  ;;  %v776_v16 = vpop.f32.mrb[0].mxu1 }
  0xfb   : > { %v416_v17 = vadd.f32 %v768_v15, %v685_v14  ;;  %v448_v18 = vadd.f32 %v776_v16, %v685_v14  ;;  %v407_v19 = vpop.f32.mrb[1].mxu0  ;;  %v439_v20 = vpop.f32.mrb[1].mxu1 }
  0xfc   : > { %v408_v21 = vadd.f32 %v685_v14, %v407_v19  ;;  %v440_v22 = vadd.f32 %v685_v14, %v439_v20  ;;  %v769_v23 = vpop.f32.mrb[2].mxu0  ;;  %v777_v24 = vpop.f32.mrb[2].mxu1 }
  0xfd   : > { %v472_v25 = vmax.f32 %v416_v17, 0.0  ;;  %v480_v26 = vmax.f32 %v448_v18, 0.0  ;;  %v419_v27 = vadd.f32 %v769_v23, %v685_v14  ;;  %v451_v28 = vadd.f32 %v777_v24, %v685_v14  ;;  %v410_v29 = vpop.f32.mrb[3].mxu0  ;;  %v442_v30 = vpop.f32.mrb[3].mxu1 }
  0xfe   : > { %v470_v31 = vmax.f32 %v408_v21, 0.0  ;;  %v478_v32 = vmax.f32 %v440_v22, 0.0  ;;  %v411_v33 = vadd.f32 %v685_v14, %v410_v29  ;;  %v443_v34 = vadd.f32 %v685_v14, %v442_v30 }
  0xff   : > { %v729_v35 = vpack.c.bf16 %v472_v25, %v472_v25  ;;  %v737_v36 = vpack.c.bf16 %v480_v26, %v480_v26  ;;  %v473_v37 = vmax.f32 %v419_v27, 0.0  ;;  %v481_v38 = vmax.f32 %v451_v28, 0.0 }
 0x100   : > { %v727_v39 = vpack.c.bf16 %v470_v31, %v470_v31  ;;  %v735_v40 = vpack.c.bf16 %v478_v32, %v478_v32  ;;  %v471_v41 = vmax.f32 %v411_v33, 0.0  ;;  %v479_v42 = vmax.f32 %v443_v34, 0.0 }
 0x101   : > { %553 = vst.msk [vmem:[%s933_s29 + $0x8] sm:$0xf] %vm550_vm2, %v729_v35  ;;  %561 = vst.msk [vmem:[%s933_s29 + $0x28] sm:$0xf] %vm550_vm2, %v737_v36  ;;  %v730_v43 = vpack.c.bf16 %v473_v37, %v473_v37  ;;  %v738_v44 = vpack.c.bf16 %v481_v38, %v481_v38 }
 0x102   : > { %551 = vst.msk [vmem:[%s933_s29] sm:$0xf] %vm550_vm2, %v727_v39  ;;  %559 = vst.msk [vmem:[%s933_s29 + $0x20] sm:$0xf] %vm550_vm2, %v735_v40  ;;  %v728_v45 = vpack.c.bf16 %v471_v41, %v471_v41  ;;  %v736_v46 = vpack.c.bf16 %v479_v42, %v479_v42  ;;  %v772_v47 = vpop.f32.mrb[4].mxu0  ;;  %v780_v48 = vpop.f32.mrb[4].mxu1 }
 0x103   : > { %554 = vst.msk [vmem:[%s933_s29 + $0xc] sm:$0xf] %vm550_vm2, %v730_v43  ;;  %562 = vst.msk [vmem:[%s933_s29 + $0x2c] sm:$0xf] %vm550_vm2, %v738_v44  ;;  %v432_v49 = vadd.f32 %v772_v47, %v685_v14  ;;  %v464_v50 = vadd.f32 %v780_v48, %v685_v14  ;;  %v423_v51 = vpop.f32.mrb[5].mxu0  ;;  %v455_v52 = vpop.f32.mrb[5].mxu1 }
 0x104   : > { %552 = vst.msk [vmem:[%s933_s29 + $0x4] sm:$0xf] %vm550_vm2, %v728_v45  ;;  %560 = vst.msk [vmem:[%s933_s29 + $0x24] sm:$0xf] %vm550_vm2, %v736_v46  ;;  %v424_v53 = vadd.f32 %v685_v14, %v423_v51  ;;  %v456_v54 = vadd.f32 %v685_v14, %v455_v52  ;;  %v773_v55 = vpop.f32.mrb[6].mxu0  ;;  %v781_v56 = vpop.f32.mrb[6].mxu1 }
 0x105   : > { %v476_v57 = vmax.f32 %v432_v49, 0.0  ;;  %v484_v58 = vmax.f32 %v464_v50, 0.0  ;;  %v435_v59 = vadd.f32 %v773_v55, %v685_v14  ;;  %v467_v60 = vadd.f32 %v781_v56, %v685_v14  ;;  %v426_v61 = vpop.f32.mrb[7].mxu0  ;;  %v458_v62 = vpop.f32.mrb[7].mxu1 }
 0x106   : > { %v474_v63 = vmax.f32 %v424_v53, 0.0  ;;  %v482_v0 = vmax.f32 %v456_v54, 0.0  ;;  %v427_v1 = vadd.f32 %v685_v14, %v426_v61  ;;  %v459_v2 = vadd.f32 %v685_v14, %v458_v62 }
 0x107   : > { %v733_v3 = vpack.c.bf16 %v476_v57, %v476_v57  ;;  %v741_v4 = vpack.c.bf16 %v484_v58, %v484_v58  ;;  %v477_v5 = vmax.f32 %v435_v59, 0.0  ;;  %v485_v6 = vmax.f32 %v467_v60, 0.0 }
 0x108   : > { %v731_v7 = vpack.c.bf16 %v474_v63, %v474_v63  ;;  %v739_v8 = vpack.c.bf16 %v482_v0, %v482_v0  ;;  %v475_v9 = vmax.f32 %v427_v1, 0.0  ;;  %v483_v10 = vmax.f32 %v459_v2, 0.0 }
 0x109   : > { %557 = vst.msk [vmem:[%s933_s29 + $0x18] sm:$0xf] %vm550_vm2, %v733_v3  ;;  %565 = vst.msk [vmem:[%s933_s29 + $0x38] sm:$0xf] %vm550_vm2, %v741_v4  ;;  %v734_v11 = vpack.c.bf16 %v477_v5, %v477_v5  ;;  %v742_v12 = vpack.c.bf16 %v485_v6, %v485_v6 }
 0x10a   : > { %555 = vst.msk [vmem:[%s933_s29 + $0x10] sm:$0xf] %vm550_vm2, %v731_v7  ;;  %563 = vst.msk [vmem:[%s933_s29 + $0x30] sm:$0xf] %vm550_vm2, %v739_v8  ;;  %v732_v13 = vpack.c.bf16 %v475_v9, %v475_v9  ;;  %v740_v14 = vpack.c.bf16 %v483_v10, %v483_v10 }
 0x10b   : > { %558 = vst.msk [vmem:[%s933_s29 + $0x1c] sm:$0xf] %vm550_vm2, %v734_v11  ;;  %566 = vst.msk [vmem:[%s933_s29 + $0x3c] sm:$0xf] %vm550_vm2, %v742_v12 }
 0x10c   : > { %556 = vst.msk [vmem:[%s933_s29 + $0x14] sm:$0xf] %vm550_vm2, %v732_v13  ;;  %564 = vst.msk [vmem:[%s933_s29 + $0x34] sm:$0xf] %vm550_vm2, %v740_v14 }
 0x10d PF: > { %s13_s14 = sadd.s32 1, %s854_s14   ;;  %s980_s12 = smov %s850_s13 }
 0x10e   : > { %p10_p5 = scmp.ge.s32.totalorder %s13_s14, 10   ;;  %s981_s13 = smov %s983_s15 }
 0x110   :  { %12 = sbr.rel (!%p10_p5) target bundleno = 2 (0x2), region = 68 }

// kernel: forward.48
= control target key start
LH: loop header
LB: loop body
LE: loop exit
PB: predicated region body
PF: predicated region fallthrough
CT: control target
= control target key end

     0   :  { %s807_s12 = smov 0   ;;  %s809_s13 = smov 0   ;;  %s915_s0 = inlined_call_operand.vmem [shape: bf16[8,128,8], index: 0, kind: input, shape index: {}]   ;;  %s916_s1 = inlined_call_operand.vmem [shape: bf16[8,8,16], index: 1, kind: input, shape index: {}]   ;;  %s917_s2 = inlined_call_operand.vmem [shape: f32[8,1,16], index: 2, kind: input, shape index: {}]   ;;  %s918_s3 = inlined_call_operand.vmem [shape: bf16[8,128,16], index: 3, kind: output, shape index: {}]  }
   0x1   :  { %s811_s14 = smov 0  }
   0x2 LB: > { %s25_s15 = sadd.s32 1, %s781_s13  ;;  %p641_p0 = scmp.ge.s32.totalorder %s785_s14, 1  ;;  %s785_s14 = sphi %s811_s14, %s13_s14   ;;  %s781_s13 = sphi %s809_s13, %s920_s13   ;;  %s777_s12 = sphi %s807_s12, %s919_s12  }
   0x3   : > { %p27_p1 = scmp.ge.s32.totalorder %s25_s15, 8  ;;  %p175_p2 = scmp.lt.s32.totalorder %s785_s14, 9 }
   0x5   : > { %s922_s15 = smov (%p27_p1, %s25_s15), 0  ;;  %p176_p3 = pnand %p641_p0, %p175_p2 }
   0x6   : > { %p215_p4 = scmp.lt.s32.totalorder (!%p176_p3), %s777_s12, 7  ;;  %vm331_vm0 = vcmask (!%p176_p3), 1043456   ;;  %vm306_vm1 = vcmask (!%p176_p3), 64512   ;;  %vm512_vm2 = vcmask (!%p176_p3), 125952  }
   0x7   : > { %179 = sbr.rel (%p176_p3) target bundleno = 252 (0xfc), region = 32 }
   0xe   : > { %s924_s12 = smov (!%p215_p4, %s777_s12), 7 }
   0xf   : > { %s682_s16 = sshll.u32 %s924_s12, 6  ;;  %s644_s17 = sshll.u32 %s924_s12, 2 }
  0x10   : > { %s222_s20 = scalar_lea.vmem %s915_s0, %s682_s16  ;;  %s227_s23 = scalar_lea.vmem %s916_s1, %s644_s17 }
  0x11   : > { %v258_v0 = vld [vmem:[%s227_s23] sm:$0xf]  ;;  %v757_v4 = vld [vmem:[%s222_s20 + $0x8] sm:$0xff]   ;;  %v759_v6 = vld [vmem:[%s222_s20 + $0x10] sm:$0xff]   ;;  %s230_s26 = scalar_lea.vmem %s917_s2, %s924_s12  ;;  %s861_s29 = scalar_lea.vmem %s918_s3, %s682_s16 }
  0x12   : > { %729 = vmatprep.subr.msk.bf16.mxu0 %vm331_vm0, %v258_v0  ;;  %730 = vmatprep.subr.msk.bf16.mxu1 %vm331_vm0, %v258_v0  ;;  %v333_v1 = vsel %vm331_vm0, %v258_v0, 0  ;;  %v755_v2 = vld [vmem:[%s222_s20] sm:$0xff]   ;;  %v758_v5 = vld [vmem:[%s222_s20 + $0x28] sm:$0xff]   ;;  %v760_v7 = vld [vmem:[%s222_s20 + $0x30] sm:$0xff]  }
  0x13   : > { %710 = vmatpush3.bf16.msra.mxu0 %v333_v1  ;;  %728 = vmatpush3.bf16.msra.mxu1 %v333_v1  ;;  %v756_v3 = vld [vmem:[%s222_s20 + $0x20] sm:$0xff]   ;;  %v761_v8 = vld [vmem:[%s222_s20 + $0x18] sm:$0xff]  }
  0x14   : > { %711 = vmatprep.mubr.msk.bf16.mxu0 %vm306_vm1, %v755_v2  ;;  %719 = vmatprep.mubr.msk.bf16.mxu1 %vm306_vm1, %v756_v3  ;;  %v762_v9 = vld [vmem:[%s222_s20 + $0x38] sm:$0xff]   ;;  %v849_v10 = vld [vmem:[%s230_s26] ss:$0 sm:$0xff] }
  0x16   : > { %712 = vmatmul.mubr.msk.bf16.vlgmr.msra.gmra.mrb[0].mxu0 %vm306_vm1, %v757_v4  ;;  %720 = vmatmul.mubr.msk.bf16.vlgmr.msra.gmra.mrb[0].mxu1 %vm306_vm1, %v758_v5 }
  0x17   : > { %715 = vmatprep.mubr.msk.bf16.mxu0 %vm306_vm1, %v759_v6  ;;  %723 = vmatprep.mubr.msk.bf16.mxu1 %vm306_vm1, %v760_v7 }
  0x1e   : > { %716 = vmatmul.mubr.msk.bf16.gmra.mrb[4].mxu0 %vm306_vm1, %v761_v8  ;;  %724 = vmatmul.mubr.msk.bf16.gmra.mrb[4].mxu1 %vm306_vm1, %v762_v9 }
  0xe9   : > { %v713_v11 = vpop.f32.mrb[0].mxu0  ;;  %v721_v13 = vpop.f32.mrb[0].mxu1 }
  0xea   : > { %v378_v12 = vadd.f32 %v713_v11, %v849_v10  ;;  %v369_v14 = vpop.f32.mrb[1].mxu0  ;;  %v410_v15 = vadd.f32 %v721_v13, %v849_v10  ;;  %v401_v17 = vpop.f32.mrb[1].mxu1 }
  0xeb   : > { %v370_v16 = vadd.f32 %v849_v10, %v369_v14  ;;  %v714_v18 = vpop.f32.mrb[2].mxu0  ;;  %v402_v20 = vadd.f32 %v849_v10, %v401_v17  ;;  %v722_v22 = vpop.f32.mrb[2].mxu1 }
  0xec   : > { %v434_v19 = vmax.f32 %v378_v12, 0.0  ;;  %v381_v21 = vadd.f32 %v714_v18, %v849_v10  ;;  %v372_v23 = vpop.f32.mrb[3].mxu0  ;;  %v442_v24 = vmax.f32 %v410_v15, 0.0  ;;  %v413_v26 = vadd.f32 %v722_v22, %v849_v10  ;;  %v404_v28 = vpop.f32.mrb[3].mxu1 }
  0xed   : > { %v432_v25 = vmax.f32 %v370_v16, 0.0  ;;  %v373_v27 = vadd.f32 %v849_v10, %v372_v23  ;;  %v440_v30 = vmax.f32 %v402_v20, 0.0  ;;  %v405_v32 = vadd.f32 %v849_v10, %v404_v28 }
  0xee   : > { %v686_v29 = vpack.c.bf16 %v434_v19, %v434_v19  ;;  %v435_v31 = vmax.f32 %v381_v21, 0.0  ;;  %v694_v33 = vpack.c.bf16 %v442_v24, %v442_v24  ;;  %v443_v35 = vmax.f32 %v413_v26, 0.0 }
  0xef   : > { %v684_v34 = vpack.c.bf16 %v432_v25, %v432_v25  ;;  %v433_v36 = vmax.f32 %v373_v27, 0.0  ;;  %v692_v37 = vpack.c.bf16 %v440_v30, %v440_v30  ;;  %v441_v39 = vmax.f32 %v405_v32, 0.0 }
  0xf0   : > { %515 = vst.msk [vmem:[%s861_s29 + $0x8] sm:$0xf] %vm512_vm2, %v686_v29  ;;  %v687_v38 = vpack.c.bf16 %v435_v31, %v435_v31  ;;  %523 = vst.msk [vmem:[%s861_s29 + $0x28] sm:$0xf] %vm512_vm2, %v694_v33  ;;  %v695_v40 = vpack.c.bf16 %v443_v35, %v443_v35 }
  0xf1   : > { %513 = vst.msk [vmem:[%s861_s29] sm:$0xf] %vm512_vm2, %v684_v34  ;;  %v685_v41 = vpack.c.bf16 %v433_v36, %v433_v36  ;;  %v717_v42 = vpop.f32.mrb[4].mxu0  ;;  %521 = vst.msk [vmem:[%s861_s29 + $0x20] sm:$0xf] %vm512_vm2, %v692_v37  ;;  %v693_v43 = vpack.c.bf16 %v441_v39, %v441_v39  ;;  %v725_v45 = vpop.f32.mrb[4].mxu1 }
  0xf2   : > { %516 = vst.msk [vmem:[%s861_s29 + $0xc] sm:$0xf] %vm512_vm2, %v687_v38  ;;  %v394_v44 = vadd.f32 %v717_v42, %v849_v10  ;;  %v385_v46 = vpop.f32.mrb[5].mxu0  ;;  %524 = vst.msk [vmem:[%s861_s29 + $0x2c] sm:$0xf] %vm512_vm2, %v695_v40  ;;  %v426_v47 = vadd.f32 %v725_v45, %v849_v10  ;;  %v417_v49 = vpop.f32.mrb[5].mxu1 }
  0xf3   : > { %514 = vst.msk [vmem:[%s861_s29 + $0x4] sm:$0xf] %vm512_vm2, %v685_v41  ;;  %v386_v48 = vadd.f32 %v849_v10, %v385_v46  ;;  %v718_v50 = vpop.f32.mrb[6].mxu0  ;;  %522 = vst.msk [vmem:[%s861_s29 + $0x24] sm:$0xf] %vm512_vm2, %v693_v43  ;;  %v418_v52 = vadd.f32 %v849_v10, %v417_v49  ;;  %v726_v54 = vpop.f32.mrb[6].mxu1 }
  0xf4   : > { %v438_v51 = vmax.f32 %v394_v44, 0.0  ;;  %v397_v53 = vadd.f32 %v718_v50, %v849_v10  ;;  %v388_v55 = vpop.f32.mrb[7].mxu0  ;;  %v446_v56 = vmax.f32 %v426_v47, 0.0  ;;  %v429_v58 = vadd.f32 %v726_v54, %v849_v10  ;;  %v420_v60 = vpop.f32.mrb[7].mxu1 }
  0xf5   : > { %v436_v57 = vmax.f32 %v386_v48, 0.0  ;;  %v389_v59 = vadd.f32 %v849_v10, %v388_v55  ;;  %v444_v62 = vmax.f32 %v418_v52, 0.0  ;;  %v421_v0 = vadd.f32 %v849_v10, %v420_v60 }
  0xf6   : > { %v690_v61 = vpack.c.bf16 %v438_v51, %v438_v51  ;;  %v439_v63 = vmax.f32 %v397_v53, 0.0  ;;  %v698_v1 = vpack.c.bf16 %v446_v56, %v446_v56  ;;  %v447_v3 = vmax.f32 %v429_v58, 0.0 }
  0xf7   : > { %v688_v2 = vpack.c.bf16 %v436_v57, %v436_v57  ;;  %v437_v4 = vmax.f32 %v389_v59, 0.0  ;;  %v696_v5 = vpack.c.bf16 %v444_v62, %v444_v62  ;;  %v445_v7 = vmax.f32 %v421_v0, 0.0 }
  0xf8   : > { %519 = vst.msk [vmem:[%s861_s29 + $0x18] sm:$0xf] %vm512_vm2, %v690_v61  ;;  %v691_v6 = vpack.c.bf16 %v439_v63, %v439_v63  ;;  %527 = vst.msk [vmem:[%s861_s29 + $0x38] sm:$0xf] %vm512_vm2, %v698_v1  ;;  %v699_v8 = vpack.c.bf16 %v447_v3, %v447_v3 }
  0xf9   : > { %517 = vst.msk [vmem:[%s861_s29 + $0x10] sm:$0xf] %vm512_vm2, %v688_v2  ;;  %v689_v9 = vpack.c.bf16 %v437_v4, %v437_v4  ;;  %525 = vst.msk [vmem:[%s861_s29 + $0x30] sm:$0xf] %vm512_vm2, %v696_v5  ;;  %v697_v10 = vpack.c.bf16 %v445_v7, %v445_v7 }
  0xfa   : > { %520 = vst.msk [vmem:[%s861_s29 + $0x1c] sm:$0xf] %vm512_vm2, %v691_v6  ;;  %528 = vst.msk [vmem:[%s861_s29 + $0x3c] sm:$0xf] %vm512_vm2, %v699_v8 }
  0xfb   : > { %518 = vst.msk [vmem:[%s861_s29 + $0x14] sm:$0xf] %vm512_vm2, %v689_v9  ;;  %526 = vst.msk [vmem:[%s861_s29 + $0x34] sm:$0xf] %vm512_vm2, %v697_v10 }
  0xfc PF: > { %s13_s14 = sadd.s32 1, %s785_s14   ;;  %s919_s12 = smov %s781_s13 }
  0xfd   : > { %p10_p5 = scmp.ge.s32.totalorder %s13_s14, 10   ;;  %s920_s13 = smov %s922_s15 }
  0xff   :  { %12 = sbr.rel (!%p10_p5) target bundleno = 2 (0x2), region = 68 }

// kernel: forward.49
= control target key start
LH: loop header
LB: loop body
LE: loop exit
PB: predicated region body
PF: predicated region fallthrough
CT: control target
= control target key end

     0   :  { %s876_s12 = smov 0   ;;  %s878_s13 = smov 0   ;;  %s976_s0 = inlined_call_operand.vmem [shape: bf16[16,128,72], index: 0, kind: input, shape index: {}]   ;;  %s977_s1 = inlined_call_operand.vmem [shape: bf16[16,72,8], index: 1, kind: input, shape index: {}]   ;;  %s978_s2 = inlined_call_operand.vmem [shape: f32[16,1,8], index: 2, kind: input, shape index: {}]   ;;  %s979_s3 = inlined_call_operand.vmem [shape: bf16[16,128,8], index: 3, kind: output, shape index: {}]  }
   0x1   :  { %s880_s14 = smov 0  }
   0x2 LB: > { %s25_s15 = sadd.s32 1, %s850_s13  ;;  %p679_p0 = scmp.ge.s32.totalorder %s854_s14, 1  ;;  %s854_s14 = sphi %s880_s14, %s13_s14   ;;  %s850_s13 = sphi %s878_s13, %s981_s13   ;;  %s846_s12 = sphi %s876_s12, %s980_s12  }
   0x3   : > { %p27_p1 = scmp.ge.s32.totalorder %s25_s15, 16  ;;  %p176_p2 = scmp.lt.s32.totalorder %s854_s14, 17 }
   0x5   : > { %s983_s15 = smov (%p27_p1, %s25_s15), 0  ;;  %p177_p3 = pnand %p679_p0, %p176_p2 }
   0x6   : > { %p217_p4 = scmp.lt.s32.totalorder (!%p177_p3), %s846_s12, 15  ;;  %vm344_vm0 = vcmask (!%p177_p3), 588800   ;;  %vm369_vm1 = vcmask (!%p177_p3), 1043456   ;;  %vm550_vm2 = vcmask (!%p177_p3), 60416  }
   0x7   : > { %180 = sbr.rel (%p177_p3) target bundleno = 269 (0x10d), region = 32 }
   0xe   : > { %s985_s12 = smov (!%p217_p4, %s846_s12), 15 }
   0xf   : > { %s725_s16 = sshll.u32 %s985_s12, 6  ;;  %s794_s17 = smul.u32 36, %s985_s12 }
  0x10   : > { %s903_s20 = scalar_lea.vmem %s976_s0, %s725_s16  ;;  %s233_s26 = scalar_lea.vmem %s978_s2, %s985_s12 }
  0x11   : > { %s230_s23 = scalar_lea.vmem %s977_s1, %s794_s17  ;;  %v824_v3 = vld [vmem:[%s903_s20] sm:$0xff]   ;;  %v826_v8 = vld [vmem:[%s903_s20 + $0x8] sm:$0xff]   ;;  %v828_v10 = vld [vmem:[%s903_s20 + $0x10] sm:$0xff]   ;;  %s933_s29 = scalar_lea.vmem %s979_s3, %s725_s16 }
  0x12   : > { %v819_v0 = vld [vmem:[%s230_s23] sm:$0xff]   ;;  %v820_v1 = vld [vmem:[%s230_s23 + $0x8] sm:$0xff]   ;;  %v821_v2 = vld [vmem:[%s230_s23 + $0x10] sm:$0xff]   ;;  %766 = vmatprep.mubr.msk.bf16.mxu0 %vm344_vm0, %v824_v3 }
  0x13   : > { %756 = vmatprep.subr.bf16.mxu0 %v819_v0  ;;  %782 = vmatprep.subr.bf16.mxu1 %v819_v0  ;;  %v825_v4 = vld [vmem:[%s903_s20 + $0x20] sm:$0xff]   ;;  %v822_v5 = vld [vmem:[%s230_s23 + $0x18] sm:$0xff]   ;;  %v827_v9 = vld [vmem:[%s903_s20 + $0x28] sm:$0xff]  }
  0x14   : > { %757 = vmatpush3.bf16.msra.mxu0 %v819_v0  ;;  %787 = vmatpush3.bf16.msra.mxu1 %v819_v0  ;;  %v823_v6 = vld [vmem:[%s230_s23 + $0x20] ss:$0 sps:$4 sm:$0xff]   ;;  %v829_v11 = vld [vmem:[%s903_s20 + $0x30] sm:$0xff]   ;;  %v830_v12 = vld [vmem:[%s903_s20 + $0x18] sm:$0xff]  }
  0x15   : > { %758 = vmatprep.subr.bf16.mxu0 %v820_v1  ;;  %783 = vmatprep.subr.bf16.mxu1 %v820_v1  ;;  %v371_v7 = vsel %vm369_vm1, %v823_v6, 0  ;;  %v831_v13 = vld [vmem:[%s903_s20 + $0x38] sm:$0xff]   ;;  %v685_v14 = vld [vmem:[%s233_s26] ss:$0 sm:$0xff] }
  0x16   : > { %774 = vmatprep.mubr.msk.bf16.mxu1 %vm344_vm0, %v825_v4 }
  0x18   : > { %759 = vmatpush3.bf16.msra.mxu0 %v820_v1  ;;  %788 = vmatpush3.bf16.msra.mxu1 %v820_v1 }
  0x19   : > { %760 = vmatprep.subr.bf16.mxu0 %v821_v2  ;;  %784 = vmatprep.subr.bf16.mxu1 %v821_v2 }
  0x1c   : > { %761 = vmatpush3.bf16.msra.mxu0 %v821_v2  ;;  %789 = vmatpush3.bf16.msra.mxu1 %v821_v2 }
  0x1d   : > { %762 = vmatprep.subr.bf16.mxu0 %v822_v5  ;;  %785 = vmatprep.subr.bf16.mxu1 %v822_v5 }
  0x20   : > { %763 = vmatpush3.bf16.msra.mxu0 %v822_v5  ;;  %790 = vmatpush3.bf16.msra.mxu1 %v822_v5 }
  0x21   : > { %792 = vmatprep.subr.msk.bf16.mxu0 %vm369_vm1, %v823_v6  ;;  %793 = vmatprep.subr.msk.bf16.mxu1 %vm369_vm1, %v823_v6 }
  0x24   : > { %765 = vmatpush3.bf16.msra.mxu0 %v371_v7  ;;  %791 = vmatpush3.bf16.msra.mxu1 %v371_v7 }
  0x27   : > { %767 = vmatmul.mubr.msk.bf16.vlgmr.msra.gmra.mrb[0].mxu0 %vm344_vm0, %v826_v8  ;;  %775 = vmatmul.mubr.msk.bf16.vlgmr.msra.gmra.mrb[0].mxu1 %vm344_vm0, %v827_v9 }
  0x28   : > { %770 = vmatprep.mubr.msk.bf16.mxu0 %vm344_vm0, %v828_v10  ;;  %778 = vmatprep.mubr.msk.bf16.mxu1 %vm344_vm0, %v829_v11 }
  0x2f   : > { %771 = vmatmul.mubr.msk.bf16.gmra.mrb[4].mxu0 %vm344_vm0, %v830_v12  ;;  %779 = vmatmul.mubr.msk.bf16.gmra.mrb[4].mxu1 %vm344_vm0, %v831_v13 }
  0xfa   : > { %v768_v15 = vpop.f32.mrb[0].mxu0  ;;  %v776_v16 = vpop.f32.mrb[0].mxu1 }
  0xfb   : > { %v416_v17 = vadd.f32 %v768_v15, %v685_v14  ;;  %v448_v18 = vadd.f32 %v776_v16, %v685_v14  ;;  %v407_v19 = vpop.f32.mrb[1].mxu0  ;;  %v439_v20 = vpop.f32.mrb[1].mxu1 }
  0xfc   : > { %v408_v21 = vadd.f32 %v685_v14, %v407_v19  ;;  %v440_v22 = vadd.f32 %v685_v14, %v439_v20  ;;  %v769_v23 = vpop.f32.mrb[2].mxu0  ;;  %v777_v24 = vpop.f32.mrb[2].mxu1 }
  0xfd   : > { %v472_v25 = vmax.f32 %v416_v17, 0.0  ;;  %v480_v26 = vmax.f32 %v448_v18, 0.0  ;;  %v419_v27 = vadd.f32 %v769_v23, %v685_v14  ;;  %v451_v28 = vadd.f32 %v777_v24, %v685_v14  ;;  %v410_v29 = vpop.f32.mrb[3].mxu0  ;;  %v442_v30 = vpop.f32.mrb[3].mxu1 }
  0xfe   : > { %v470_v31 = vmax.f32 %v408_v21, 0.0  ;;  %v478_v32 = vmax.f32 %v440_v22, 0.0  ;;  %v411_v33 = vadd.f32 %v685_v14, %v410_v29  ;;  %v443_v34 = vadd.f32 %v685_v14, %v442_v30 }
  0xff   : > { %v729_v35 = vpack.c.bf16 %v472_v25, %v472_v25  ;;  %v737_v36 = vpack.c.bf16 %v480_v26, %v480_v26  ;;  %v473_v37 = vmax.f32 %v419_v27, 0.0  ;;  %v481_v38 = vmax.f32 %v451_v28, 0.0 }
 0x100   : > { %v727_v39 = vpack.c.bf16 %v470_v31, %v470_v31  ;;  %v735_v40 = vpack.c.bf16 %v478_v32, %v478_v32  ;;  %v471_v41 = vmax.f32 %v411_v33, 0.0  ;;  %v479_v42 = vmax.f32 %v443_v34, 0.0 }
 0x101   : > { %553 = vst.msk [vmem:[%s933_s29 + $0x8] sm:$0xf] %vm550_vm2, %v729_v35  ;;  %561 = vst.msk [vmem:[%s933_s29 + $0x28] sm:$0xf] %vm550_vm2, %v737_v36  ;;  %v730_v43 = vpack.c.bf16 %v473_v37, %v473_v37  ;;  %v738_v44 = vpack.c.bf16 %v481_v38, %v481_v38 }
 0x102   : > { %551 = vst.msk [vmem:[%s933_s29] sm:$0xf] %vm550_vm2, %v727_v39  ;;  %559 = vst.msk [vmem:[%s933_s29 + $0x20] sm:$0xf] %vm550_vm2, %v735_v40  ;;  %v728_v45 = vpack.c.bf16 %v471_v41, %v471_v41  ;;  %v736_v46 = vpack.c.bf16 %v479_v42, %v479_v42  ;;  %v772_v47 = vpop.f32.mrb[4].mxu0  ;;  %v780_v48 = vpop.f32.mrb[4].mxu1 }
 0x103   : > { %554 = vst.msk [vmem:[%s933_s29 + $0xc] sm:$0xf] %vm550_vm2, %v730_v43  ;;  %562 = vst.msk [vmem:[%s933_s29 + $0x2c] sm:$0xf] %vm550_vm2, %v738_v44  ;;  %v432_v49 = vadd.f32 %v772_v47, %v685_v14  ;;  %v464_v50 = vadd.f32 %v780_v48, %v685_v14  ;;  %v423_v51 = vpop.f32.mrb[5].mxu0  ;;  %v455_v52 = vpop.f32.mrb[5].mxu1 }
 0x104   : > { %552 = vst.msk [vmem:[%s933_s29 + $0x4] sm:$0xf] %vm550_vm2, %v728_v45  ;;  %560 = vst.msk [vmem:[%s933_s29 + $0x24] sm:$0xf] %vm550_vm2, %v736_v46  ;;  %v424_v53 = vadd.f32 %v685_v14, %v423_v51  ;;  %v456_v54 = vadd.f32 %v685_v14, %v455_v52  ;;  %v773_v55 = vpop.f32.mrb[6].mxu0  ;;  %v781_v56 = vpop.f32.mrb[6].mxu1 }
 0x105   : > { %v476_v57 = vmax.f32 %v432_v49, 0.0  ;;  %v484_v58 = vmax.f32 %v464_v50, 0.0  ;;  %v435_v59 = vadd.f32 %v773_v55, %v685_v14  ;;  %v467_v60 = vadd.f32 %v781_v56, %v685_v14  ;;  %v426_v61 = vpop.f32.mrb[7].mxu0  ;;  %v458_v62 = vpop.f32.mrb[7].mxu1 }
 0x106   : > { %v474_v63 = vmax.f32 %v424_v53, 0.0  ;;  %v482_v0 = vmax.f32 %v456_v54, 0.0  ;;  %v427_v1 = vadd.f32 %v685_v14, %v426_v61  ;;  %v459_v2 = vadd.f32 %v685_v14, %v458_v62 }
 0x107   : > { %v733_v3 = vpack.c.bf16 %v476_v57, %v476_v57  ;;  %v741_v4 = vpack.c.bf16 %v484_v58, %v484_v58  ;;  %v477_v5 = vmax.f32 %v435_v59, 0.0  ;;  %v485_v6 = vmax.f32 %v467_v60, 0.0 }
 0x108   : > { %v731_v7 = vpack.c.bf16 %v474_v63, %v474_v63  ;;  %v739_v8 = vpack.c.bf16 %v482_v0, %v482_v0  ;;  %v475_v9 = vmax.f32 %v427_v1, 0.0  ;;  %v483_v10 = vmax.f32 %v459_v2, 0.0 }
 0x109   : > { %557 = vst.msk [vmem:[%s933_s29 + $0x18] sm:$0xf] %vm550_vm2, %v733_v3  ;;  %565 = vst.msk [vmem:[%s933_s29 + $0x38] sm:$0xf] %vm550_vm2, %v741_v4  ;;  %v734_v11 = vpack.c.bf16 %v477_v5, %v477_v5  ;;  %v742_v12 = vpack.c.bf16 %v485_v6, %v485_v6 }
 0x10a   : > { %555 = vst.msk [vmem:[%s933_s29 + $0x10] sm:$0xf] %vm550_vm2, %v731_v7  ;;  %563 = vst.msk [vmem:[%s933_s29 + $0x30] sm:$0xf] %vm550_vm2, %v739_v8  ;;  %v732_v13 = vpack.c.bf16 %v475_v9, %v475_v9  ;;  %v740_v14 = vpack.c.bf16 %v483_v10, %v483_v10 }
 0x10b   : > { %558 = vst.msk [vmem:[%s933_s29 + $0x1c] sm:$0xf] %vm550_vm2, %v734_v11  ;;  %566 = vst.msk [vmem:[%s933_s29 + $0x3c] sm:$0xf] %vm550_vm2, %v742_v12 }
 0x10c   : > { %556 = vst.msk [vmem:[%s933_s29 + $0x14] sm:$0xf] %vm550_vm2, %v732_v13  ;;  %564 = vst.msk [vmem:[%s933_s29 + $0x34] sm:$0xf] %vm550_vm2, %v740_v14 }
 0x10d PF: > { %s13_s14 = sadd.s32 1, %s854_s14   ;;  %s980_s12 = smov %s850_s13 }
 0x10e   : > { %p10_p5 = scmp.ge.s32.totalorder %s13_s14, 18   ;;  %s981_s13 = smov %s983_s15 }
 0x110   :  { %12 = sbr.rel (!%p10_p5) target bundleno = 2 (0x2), region = 68 }

// kernel: forward.50
= control target key start
LH: loop header
LB: loop body
LE: loop exit
PB: predicated region body
PF: predicated region fallthrough
CT: control target
= control target key end

     0   :  { %s815_s12 = smov 0   ;;  %s817_s13 = smov 0   ;;  %s923_s0 = inlined_call_operand.vmem [shape: bf16[8,128,16], index: 0, kind: input, shape index: {}]   ;;  %s924_s1 = inlined_call_operand.vmem [shape: bf16[8,16,16], index: 1, kind: input, shape index: {}]   ;;  %s925_s2 = inlined_call_operand.vmem [shape: f32[8,1,16], index: 2, kind: input, shape index: {}]   ;;  %s926_s3 = inlined_call_operand.vmem [shape: bf16[8,128,16], index: 3, kind: output, shape index: {}]  }
   0x1   :  { %s819_s14 = smov 0  }
   0x2 LB: > { %s25_s15 = sadd.s32 1, %s789_s13  ;;  %p647_p0 = scmp.ge.s32.totalorder %s793_s14, 1  ;;  %s793_s14 = sphi %s819_s14, %s13_s14   ;;  %s789_s13 = sphi %s817_s13, %s928_s13   ;;  %s785_s12 = sphi %s815_s12, %s927_s12  }
   0x3   : > { %p27_p1 = scmp.ge.s32.totalorder %s25_s15, 8  ;;  %p176_p2 = scmp.lt.s32.totalorder %s793_s14, 9 }
   0x5   : > { %s930_s15 = smov (%p27_p1, %s25_s15), 0  ;;  %p177_p3 = pnand %p647_p0, %p176_p2 }
   0x6   : > { %p217_p4 = scmp.lt.s32.totalorder (!%p177_p3), %s785_s12, 7  ;;  %vm316_vm0 = vcmask (!%p177_p3), 130048   ;;  %vm518_vm1 = vcmask (!%p177_p3), 125952  }
   0x7   : > { %180 = sbr.rel (%p177_p3) target bundleno = 252 (0xfc), region = 32 }
   0xe   : > { %s932_s12 = smov (!%p217_p4, %s785_s12), 7 }
   0xf   : > { %s690_s16 = sshll.u32 %s932_s12, 6  ;;  %s691_s17 = sshll.u32 %s932_s12, 3 }
  0x10   : > { %s224_s20 = scalar_lea.vmem %s923_s0, %s690_s16  ;;  %s230_s23 = scalar_lea.vmem %s924_s1, %s691_s17 }
  0x11   : > { %v762_v0 = vld [vmem:[%s230_s23] sm:$0xff]   ;;  %v765_v3 = vld [vmem:[%s224_s20 + $0x8] sm:$0xff]   ;;  %v767_v5 = vld [vmem:[%s224_s20 + $0x10] sm:$0xff]   ;;  %s233_s26 = scalar_lea.vmem %s925_s2, %s932_s12  ;;  %s869_s29 = scalar_lea.vmem %s926_s3, %s690_s16 }
  0x12   : > { %718 = vmatprep.subr.bf16.mxu0 %v762_v0  ;;  %736 = vmatprep.subr.bf16.mxu1 %v762_v0  ;;  %v763_v1 = vld [vmem:[%s224_s20] sm:$0xff]   ;;  %v766_v4 = vld [vmem:[%s224_s20 + $0x28] sm:$0xff]   ;;  %v768_v6 = vld [vmem:[%s224_s20 + $0x30] sm:$0xff]  }
  0x13   : > { %719 = vmatpush3.bf16.msra.mxu0 %v762_v0  ;;  %737 = vmatpush3.bf16.msra.mxu1 %v762_v0  ;;  %v764_v2 = vld [vmem:[%s224_s20 + $0x20] sm:$0xff]   ;;  %v769_v7 = vld [vmem:[%s224_s20 + $0x18] sm:$0xff]  }
  0x14   : > { %720 = vmatprep.mubr.msk.bf16.mxu0 %vm316_vm0, %v763_v1  ;;  %728 = vmatprep.mubr.msk.bf16.mxu1 %vm316_vm0, %v764_v2  ;;  %v770_v8 = vld [vmem:[%s224_s20 + $0x38] sm:$0xff]   ;;  %v857_v9 = vld [vmem:[%s233_s26] ss:$0 sm:$0xff] }
  0x16   : > { %721 = vmatmul.mubr.msk.bf16.vlgmr.msra.gmra.mrb[0].mxu0 %vm316_vm0, %v765_v3  ;;  %729 = vmatmul.mubr.msk.bf16.vlgmr.msra.gmra.mrb[0].mxu1 %vm316_vm0, %v766_v4 }
  0x17   : > { %724 = vmatprep.mubr.msk.bf16.mxu0 %vm316_vm0, %v767_v5  ;;  %732 = vmatprep.mubr.msk.bf16.mxu1 %vm316_vm0, %v768_v6 }
  0x1e   : > { %725 = vmatmul.mubr.msk.bf16.gmra.mrb[4].mxu0 %vm316_vm0, %v769_v7  ;;  %733 = vmatmul.mubr.msk.bf16.gmra.mrb[4].mxu1 %vm316_vm0, %v770_v8 }
  0xe9   : > { %v722_v10 = vpop.f32.mrb[0].mxu0  ;;  %v730_v12 = vpop.f32.mrb[0].mxu1 }
  0xea   : > { %v384_v11 = vadd.f32 %v722_v10, %v857_v9  ;;  %v375_v13 = vpop.f32.mrb[1].mxu0  ;;  %v416_v14 = vadd.f32 %v730_v12, %v857_v9  ;;  %v407_v16 = vpop.f32.mrb[1].mxu1 }
  0xeb   : > { %v376_v15 = vadd.f32 %v857_v9, %v375_v13  ;;  %v723_v17 = vpop.f32.mrb[2].mxu0  ;;  %v408_v19 = vadd.f32 %v857_v9, %v407_v16  ;;  %v731_v21 = vpop.f32.mrb[2].mxu1 }
  0xec   : > { %v440_v18 = vmax.f32 %v384_v11, 0.0  ;;  %v387_v20 = vadd.f32 %v723_v17, %v857_v9  ;;  %v378_v22 = vpop.f32.mrb[3].mxu0  ;;  %v448_v23 = vmax.f32 %v416_v14, 0.0  ;;  %v419_v25 = vadd.f32 %v731_v21, %v857_v9  ;;  %v410_v27 = vpop.f32.mrb[3].mxu1 }
  0xed   : > { %v438_v24 = vmax.f32 %v376_v15, 0.0  ;;  %v379_v26 = vadd.f32 %v857_v9, %v378_v22  ;;  %v446_v29 = vmax.f32 %v408_v19, 0.0  ;;  %v411_v31 = vadd.f32 %v857_v9, %v410_v27 }
  0xee   : > { %v695_v28 = vpack.c.bf16 %v440_v18, %v440_v18  ;;  %v441_v30 = vmax.f32 %v387_v20, 0.0  ;;  %v703_v32 = vpack.c.bf16 %v448_v23, %v448_v23  ;;  %v449_v34 = vmax.f32 %v419_v25, 0.0 }
  0xef   : > { %v693_v33 = vpack.c.bf16 %v438_v24, %v438_v24  ;;  %v439_v35 = vmax.f32 %v379_v26, 0.0  ;;  %v701_v36 = vpack.c.bf16 %v446_v29, %v446_v29  ;;  %v447_v38 = vmax.f32 %v411_v31, 0.0 }
  0xf0   : > { %521 = vst.msk [vmem:[%s869_s29 + $0x8] sm:$0xf] %vm518_vm1, %v695_v28  ;;  %v696_v37 = vpack.c.bf16 %v441_v30, %v441_v30  ;;  %529 = vst.msk [vmem:[%s869_s29 + $0x28] sm:$0xf] %vm518_vm1, %v703_v32  ;;  %v704_v39 = vpack.c.bf16 %v449_v34, %v449_v34 }
  0xf1   : > { %519 = vst.msk [vmem:[%s869_s29] sm:$0xf] %vm518_vm1, %v693_v33  ;;  %v694_v40 = vpack.c.bf16 %v439_v35, %v439_v35  ;;  %v726_v41 = vpop.f32.mrb[4].mxu0  ;;  %527 = vst.msk [vmem:[%s869_s29 + $0x20] sm:$0xf] %vm518_vm1, %v701_v36  ;;  %v702_v42 = vpack.c.bf16 %v447_v38, %v447_v38  ;;  %v734_v44 = vpop.f32.mrb[4].mxu1 }
  0xf2   : > { %522 = vst.msk [vmem:[%s869_s29 + $0xc] sm:$0xf] %vm518_vm1, %v696_v37  ;;  %v400_v43 = vadd.f32 %v726_v41, %v857_v9  ;;  %v391_v45 = vpop.f32.mrb[5].mxu0  ;;  %530 = vst.msk [vmem:[%s869_s29 + $0x2c] sm:$0xf] %vm518_vm1, %v704_v39  ;;  %v432_v46 = vadd.f32 %v734_v44, %v857_v9  ;;  %v423_v48 = vpop.f32.mrb[5].mxu1 }
  0xf3   : > { %520 = vst.msk [vmem:[%s869_s29 + $0x4] sm:$0xf] %vm518_vm1, %v694_v40  ;;  %v392_v47 = vadd.f32 %v857_v9, %v391_v45  ;;  %v727_v49 = vpop.f32.mrb[6].mxu0  ;;  %528 = vst.msk [vmem:[%s869_s29 + $0x24] sm:$0xf] %vm518_vm1, %v702_v42  ;;  %v424_v51 = vadd.f32 %v857_v9, %v423_v48  ;;  %v735_v53 = vpop.f32.mrb[6].mxu1 }
  0xf4   : > { %v444_v50 = vmax.f32 %v400_v43, 0.0  ;;  %v403_v52 = vadd.f32 %v727_v49, %v857_v9  ;;  %v394_v54 = vpop.f32.mrb[7].mxu0  ;;  %v452_v55 = vmax.f32 %v432_v46, 0.0  ;;  %v435_v57 = vadd.f32 %v735_v53, %v857_v9  ;;  %v426_v59 = vpop.f32.mrb[7].mxu1 }
  0xf5   : > { %v442_v56 = vmax.f32 %v392_v47, 0.0  ;;  %v395_v58 = vadd.f32 %v857_v9, %v394_v54  ;;  %v450_v61 = vmax.f32 %v424_v51, 0.0  ;;  %v427_v63 = vadd.f32 %v857_v9, %v426_v59 }
  0xf6   : > { %v699_v60 = vpack.c.bf16 %v444_v50, %v444_v50  ;;  %v445_v62 = vmax.f32 %v403_v52, 0.0  ;;  %v707_v0 = vpack.c.bf16 %v452_v55, %v452_v55  ;;  %v453_v2 = vmax.f32 %v435_v57, 0.0 }
  0xf7   : > { %v697_v1 = vpack.c.bf16 %v442_v56, %v442_v56  ;;  %v443_v3 = vmax.f32 %v395_v58, 0.0  ;;  %v705_v4 = vpack.c.bf16 %v450_v61, %v450_v61  ;;  %v451_v6 = vmax.f32 %v427_v63, 0.0 }
  0xf8   : > { %525 = vst.msk [vmem:[%s869_s29 + $0x18] sm:$0xf] %vm518_vm1, %v699_v60  ;;  %v700_v5 = vpack.c.bf16 %v445_v62, %v445_v62  ;;  %533 = vst.msk [vmem:[%s869_s29 + $0x38] sm:$0xf] %vm518_vm1, %v707_v0  ;;  %v708_v7 = vpack.c.bf16 %v453_v2, %v453_v2 }
  0xf9   : > { %523 = vst.msk [vmem:[%s869_s29 + $0x10] sm:$0xf] %vm518_vm1, %v697_v1  ;;  %v698_v8 = vpack.c.bf16 %v443_v3, %v443_v3  ;;  %531 = vst.msk [vmem:[%s869_s29 + $0x30] sm:$0xf] %vm518_vm1, %v705_v4  ;;  %v706_v9 = vpack.c.bf16 %v451_v6, %v451_v6 }
  0xfa   : > { %526 = vst.msk [vmem:[%s869_s29 + $0x1c] sm:$0xf] %vm518_vm1, %v700_v5  ;;  %534 = vst.msk [vmem:[%s869_s29 + $0x3c] sm:$0xf] %vm518_vm1, %v708_v7 }
  0xfb   : > { %524 = vst.msk [vmem:[%s869_s29 + $0x14] sm:$0xf] %vm518_vm1, %v698_v8  ;;  %532 = vst.msk [vmem:[%s869_s29 + $0x34] sm:$0xf] %vm518_vm1, %v706_v9 }
  0xfc PF: > { %s13_s14 = sadd.s32 1, %s793_s14   ;;  %s927_s12 = smov %s789_s13 }
  0xfd   : > { %p10_p5 = scmp.ge.s32.totalorder %s13_s14, 10   ;;  %s928_s13 = smov %s930_s15 }
  0xff   :  { %12 = sbr.rel (!%p10_p5) target bundleno = 2 (0x2), region = 68 }

// kernel: forward.51
= control target key start
LH: loop header
LB: loop body
LE: loop exit
PB: predicated region body
PF: predicated region fallthrough
CT: control target
= control target key end

     0   :  { %s683_s12 = smov 0   ;;  %s685_s13 = smov 0   ;;  %s745_s0 = inlined_call_operand.vmem [shape: bf16[8,32,144], index: 0, kind: input, shape index: {}]   ;;  %s746_s1 = inlined_call_operand.vmem [shape: bf16[8,144,16], index: 1, kind: input, shape index: {}]   ;;  %s747_s2 = inlined_call_operand.vmem [shape: f32[8,1,16], index: 2, kind: input, shape index: {}]   ;;  %s748_s3 = inlined_call_operand.vmem [shape: bf16[8,32,16], index: 3, kind: output, shape index: {}]  }
   0x1   :  { %s687_s14 = smov 0  }
   0x2 LB: > { %s25_s15 = sadd.s32 1, %s656_s13  ;;  %p545_p0 = scmp.ge.s32.totalorder %s660_s14, 1  ;;  %s660_s14 = sphi %s687_s14, %s13_s14   ;;  %s656_s13 = sphi %s685_s13, %s750_s13   ;;  %s652_s12 = sphi %s683_s12, %s749_s12  }
   0x3   : > { %p27_p1 = scmp.ge.s32.totalorder %s25_s15, 8  ;;  %p177_p2 = scmp.lt.s32.totalorder %s660_s14, 9 }
   0x5   : > { %s752_s15 = smov (%p27_p1, %s25_s15), 0  ;;  %p178_p3 = pnand %p545_p0, %p177_p2 }
   0x6   : > { %p219_p4 = scmp.lt.s32.totalorder (!%p178_p3), %s652_s12, 7  ;;  %v662_v0 = vmov (!%p178_p3), 0   ;;  %vm349_vm0 = vcmask (!%p178_p3), 130048   ;;  %vm425_vm1 = vcmask (!%p178_p3), 125952  }
   0x7   : > { %181 = sbr.rel (%p178_p3) target bundleno = 275 (0x113), region = 32  ;;  %356 = vmatprep.subr.bf16.mxu0 (!%p178_p3), %v662_v0  ;;  %579 = vmatprep.subr.bf16.mxu1 (!%p178_p3), %v662_v0 }
   0xe   : > { %s754_s12 = smov (!%p219_p4, %s652_s12), 7 }
   0xf   : > { %s597_s16 = smul.u32 72, %s754_s12  ;;  %s573_s17 = sshll.u32 %s754_s12, 5 }
  0x10   : > { %s708_s20 = scalar_lea.vmem %s745_s0, %s573_s17  ;;  %s236_s26 = scalar_lea.vmem %s747_s2, %s754_s12 }
  0x11   : > { %s713_s23 = scalar_lea.vmem %s746_s1, %s597_s16  ;;  %v634_v4 = vld [vmem:[%s708_s20 + $0x4] ss:$8 sps:$4 sm:$0xff]   ;;  %v637_v6 = vld [vmem:[%s708_s20 + $0x14] ss:$8 sps:$4 sm:$0xff]   ;;  %v632_v12 = vld [vmem:[%s708_s20] ss:$8 sps:$4 sm:$0xff]  }
  0x12   : > { %v623_v1 = vld [vmem:[%s713_s23] sm:$0xff]   ;;  %v624_v2 = vld [vmem:[%s713_s23 + $0x8] sm:$0xff]   ;;  %v625_v3 = vld [vmem:[%s713_s23 + $0x10] sm:$0xff]   ;;  %565 = vmatprep.mubr.msk.bf16.mxu0 %vm349_vm0, %v634_v4  ;;  %566 = vmatprep.mubr.msk.bf16.mxu1 %vm349_vm0, %v637_v6  ;;  %s574_s27 = sshll.u32 %s754_s12, 4 }
  0x13   : > { %357 = vmatpush1.bf16.msra.mxu0 %v623_v1  ;;  %588 = vmatpush1.bf16.msra.mxu1 %v623_v1  ;;  %v626_v5 = vld [vmem:[%s713_s23 + $0x18] sm:$0xff]   ;;  %v627_v7 = vld [vmem:[%s713_s23 + $0x20] sm:$0xff]   ;;  %v628_v8 = vld [vmem:[%s713_s23 + $0x28] sm:$0xff]   ;;  %s245_s30 = scalar_lea.vmem %s748_s3, %s574_s27 }
  0x14   : > { %358 = vmatprep.subr.bf16.mxu0 %v662_v0  ;;  %580 = vmatprep.subr.bf16.mxu1 %v662_v0  ;;  %v629_v9 = vld [vmem:[%s713_s23 + $0x30] sm:$0xff]   ;;  %v630_v10 = vld [vmem:[%s713_s23 + $0x38] sm:$0xff]   ;;  %v631_v11 = vld [vmem:[%s713_s23 + $0x40] sm:$0xff]  }
  0x15   : > { %v635_v13 = vld [vmem:[%s708_s20 + $0x10] ss:$8 sps:$4 sm:$0xff]   ;;  %v551_v14 = vld [vmem:[%s236_s26] ss:$0 sm:$0xff] }
  0x17   : > { %359 = vmatpush1.bf16.msra.mxu0 %v624_v2  ;;  %589 = vmatpush1.bf16.msra.mxu1 %v624_v2 }
  0x18   : > { %360 = vmatprep.subr.bf16.mxu0 %v662_v0  ;;  %581 = vmatprep.subr.bf16.mxu1 %v662_v0 }
  0x1b   : > { %361 = vmatpush1.bf16.msra.mxu0 %v625_v3  ;;  %590 = vmatpush1.bf16.msra.mxu1 %v625_v3 }
  0x1c   : > { %362 = vmatprep.subr.bf16.mxu0 %v662_v0  ;;  %582 = vmatprep.subr.bf16.mxu1 %v662_v0 }
  0x1f   : > { %363 = vmatpush1.bf16.msra.mxu0 %v626_v5  ;;  %591 = vmatpush1.bf16.msra.mxu1 %v626_v5 }
  0x20   : > { %364 = vmatprep.subr.bf16.mxu0 %v662_v0  ;;  %583 = vmatprep.subr.bf16.mxu1 %v662_v0 }
  0x23   : > { %365 = vmatpush1.bf16.msra.mxu0 %v627_v7  ;;  %592 = vmatpush1.bf16.msra.mxu1 %v627_v7 }
  0x24   : > { %366 = vmatprep.subr.bf16.mxu0 %v662_v0  ;;  %584 = vmatprep.subr.bf16.mxu1 %v662_v0 }
  0x27   : > { %367 = vmatpush1.bf16.msra.mxu0 %v628_v8  ;;  %593 = vmatpush1.bf16.msra.mxu1 %v628_v8 }
  0x28   : > { %368 = vmatprep.subr.bf16.mxu0 %v662_v0  ;;  %585 = vmatprep.subr.bf16.mxu1 %v662_v0 }
  0x2b   : > { %369 = vmatpush1.bf16.msra.mxu0 %v629_v9  ;;  %594 = vmatpush1.bf16.msra.mxu1 %v629_v9 }
  0x2c   : > { %370 = vmatprep.subr.bf16.mxu0 %v662_v0  ;;  %586 = vmatprep.subr.bf16.mxu1 %v662_v0 }
  0x2f   : > { %371 = vmatpush1.bf16.msra.mxu0 %v630_v10  ;;  %595 = vmatpush1.bf16.msra.mxu1 %v630_v10 }
  0x30   : > { %372 = vmatprep.subr.bf16.mxu0 %v662_v0  ;;  %587 = vmatprep.subr.bf16.mxu1 %v662_v0 }
  0x33   : > { %373 = vmatpush1.bf16.msra.mxu0 %v631_v11  ;;  %596 = vmatpush1.bf16.msra.mxu1 %v631_v11 }
  0x36   : > { %389 = vmatmul.mubr.bf16.vlgmr.msra.gmra.mrb[0].mxu0 %v632_v12  ;;  %397 = vmatmul.mubr.bf16.vlgmr.msra.gmra.mrb[0].mxu1 %v635_v13 }
 0x109   : > { %v390_v15 = vpop.f32.mrb[0].mxu0  ;;  %v398_v16 = vpop.f32.mrb[0].mxu1 }
 0x10a   : > { %v391_v17 = vadd.f32 %v551_v14, %v390_v15  ;;  %v399_v18 = vadd.f32 %v551_v14, %v398_v16  ;;  %v392_v19 = vpop.f32.mrb[1].mxu0  ;;  %v400_v20 = vpop.f32.mrb[1].mxu1 }
 0x10b   : > { %v393_v21 = vpop.f32.mrb[2].mxu0  ;;  %v401_v22 = vpop.f32.mrb[2].mxu1 }
 0x10c   : > { %v405_v23 = vmax.f32 %v391_v17, 0.0  ;;  %v407_v24 = vmax.f32 %v399_v18, 0.0  ;;  %v394_v25 = vadd.f32 %v551_v14, %v393_v21  ;;  %v402_v26 = vadd.f32 %v551_v14, %v401_v22  ;;  %v395_v27 = vpop.f32.mrb[3].mxu0  ;;  %v403_v28 = vpop.f32.mrb[3].mxu1 }
 0x10e   : > { %v575_v29 = vpack.c.bf16 %v405_v23, %v405_v23  ;;  %v577_v30 = vpack.c.bf16 %v407_v24, %v407_v24  ;;  %v406_v31 = vmax.f32 %v394_v25, 0.0  ;;  %v408_v32 = vmax.f32 %v402_v26, 0.0 }
 0x110   : > { %426 = vst.msk [vmem:[%s245_s30] sm:$0xf] %vm425_vm1, %v575_v29  ;;  %428 = vst.msk [vmem:[%s245_s30 + $0x8] sm:$0xf] %vm425_vm1, %v577_v30  ;;  %v576_v33 = vpack.c.bf16 %v406_v31, %v406_v31  ;;  %v578_v34 = vpack.c.bf16 %v408_v32, %v408_v32 }
 0x112   : > { %427 = vst.msk [vmem:[%s245_s30 + $0x4] sm:$0xf] %vm425_vm1, %v576_v33  ;;  %429 = vst.msk [vmem:[%s245_s30 + $0xc] sm:$0xf] %vm425_vm1, %v578_v34 }
 0x113 PF: > { %s13_s14 = sadd.s32 1, %s660_s14   ;;  %s749_s12 = smov %s656_s13 }
 0x114   : > { %p10_p5 = scmp.ge.s32.totalorder %s13_s14, 10   ;;  %s750_s13 = smov %s752_s15 }
 0x116   :  { %12 = sbr.rel (!%p10_p5) target bundleno = 2 (0x2), region = 68 }

// kernel: forward.52
= control target key start
LH: loop header
LB: loop body
LE: loop exit
PB: predicated region body
PF: predicated region fallthrough
CT: control target
= control target key end

     0   :  { %s564_s12 = smov 0   ;;  %s566_s13 = smov 0   ;;  %s603_s0 = inlined_call_operand.vmem [shape: bf16[16,32,8], index: 0, kind: input, shape index: {}]   ;;  %s604_s1 = inlined_call_operand.vmem [shape: bf16[16,8,16], index: 1, kind: input, shape index: {}]   ;;  %s605_s2 = inlined_call_operand.vmem [shape: f32[16,1,16], index: 2, kind: input, shape index: {}]   ;;  %s606_s3 = inlined_call_operand.vmem [shape: bf16[16,32,16], index: 3, kind: output, shape index: {}]  }
   0x1   :  { %s568_s14 = smov 0  }
   0x2 LB: > { %s25_s15 = sadd.s32 1, %s538_s13  ;;  %p461_p0 = scmp.ge.s32.totalorder %s542_s14, 1  ;;  %s542_s14 = sphi %s568_s14, %s13_s14   ;;  %s538_s13 = sphi %s566_s13, %s608_s13   ;;  %s534_s12 = sphi %s564_s12, %s607_s12  }
   0x3   : > { %p27_p1 = scmp.ge.s32.totalorder %s25_s15, 16  ;;  %p175_p2 = scmp.lt.s32.totalorder %s542_s14, 17 }
   0x5   : > { %s610_s15 = smov (%p27_p1, %s25_s15), 0  ;;  %p176_p3 = pnand %p461_p0, %p175_p2 }
   0x6   : > { %p215_p4 = scmp.lt.s32.totalorder (!%p176_p3), %s534_s12, 15  ;;  %vm271_vm0 = vcmask (!%p176_p3), 1043456   ;;  %vm264_vm1 = vcmask (!%p176_p3), 64512   ;;  %vm344_vm2 = vcmask (!%p176_p3), 125952  }
   0x7   : > { %179 = sbr.rel (%p176_p3) target bundleno = 244 (0xf4), region = 32 }
   0xe   : > { %s612_s12 = smov (!%p215_p4, %s534_s12), 15 }
   0xf   : > { %s464_s16 = sshll.u32 %s612_s12, 2  ;;  %s478_s17 = sshll.u32 %s612_s12, 4 }
  0x10   : > { %s227_s20 = scalar_lea.vmem %s604_s1, %s464_s16  ;;  %s222_s23 = scalar_lea.vmem %s603_s0, %s478_s17 }
  0x11   : > { %v246_v0 = vld [vmem:[%s227_s20] sm:$0xf]  ;;  %v519_v3 = vld [vmem:[%s222_s23 + $0x8] sm:$0xff]   ;;  %s230_s26 = scalar_lea.vmem %s605_s2, %s612_s12  ;;  %s239_s29 = scalar_lea.vmem %s606_s3, %s478_s17 }
  0x12   : > { %493 = vmatprep.subr.msk.bf16.mxu0 %vm271_vm0, %v246_v0  ;;  %v273_v1 = vsel %vm271_vm0, %v246_v0, 0  ;;  %v518_v2 = vld [vmem:[%s222_s23] sm:$0xff]  }
  0x13   : > { %488 = vmatpush3.bf16.msra.mxu0 %v273_v1  ;;  %489 = vmatprep.mubr.msk.bf16.mxu0 %vm264_vm1, %v518_v2  ;;  %v467_v4 = vld [vmem:[%s230_s26] ss:$0 sm:$0xff] }
  0x16   : > { %490 = vmatmul.mubr.msk.bf16.vlgmr.msra.gmra.mrb[0].mxu0 %vm264_vm1, %v519_v3 }
  0xe9   : > { %v491_v5 = vpop.f32.mrb[0].mxu0 }
  0xea   : > { %v318_v6 = vadd.f32 %v491_v5, %v467_v4  ;;  %v309_v7 = vpop.f32.mrb[1].mxu0 }
  0xeb   : > { %v310_v8 = vadd.f32 %v467_v4, %v309_v7  ;;  %v492_v9 = vpop.f32.mrb[2].mxu0 }
  0xec   : > { %v326_v10 = vmax.f32 %v318_v6, 0.0  ;;  %v321_v11 = vadd.f32 %v492_v9, %v467_v4  ;;  %v312_v12 = vpop.f32.mrb[3].mxu0 }
  0xed   : > { %v324_v13 = vmax.f32 %v310_v8, 0.0  ;;  %v313_v14 = vadd.f32 %v467_v4, %v312_v12 }
  0xee   : > { %v482_v15 = vpack.c.bf16 %v326_v10, %v326_v10  ;;  %v327_v16 = vmax.f32 %v321_v11, 0.0 }
  0xef   : > { %v480_v17 = vpack.c.bf16 %v324_v13, %v324_v13  ;;  %v325_v18 = vmax.f32 %v313_v14, 0.0 }
  0xf0   : > { %347 = vst.msk [vmem:[%s239_s29 + $0x8] sm:$0xf] %vm344_vm2, %v482_v15  ;;  %v483_v19 = vpack.c.bf16 %v327_v16, %v327_v16 }
  0xf1   : > { %345 = vst.msk [vmem:[%s239_s29] sm:$0xf] %vm344_vm2, %v480_v17  ;;  %v481_v20 = vpack.c.bf16 %v325_v18, %v325_v18 }
  0xf2   : > { %348 = vst.msk [vmem:[%s239_s29 + $0xc] sm:$0xf] %vm344_vm2, %v483_v19 }
  0xf3   : > { %346 = vst.msk [vmem:[%s239_s29 + $0x4] sm:$0xf] %vm344_vm2, %v481_v20 }
  0xf4 PF: > { %s13_s14 = sadd.s32 1, %s542_s14   ;;  %s607_s12 = smov %s538_s13 }
  0xf5   : > { %p10_p5 = scmp.ge.s32.totalorder %s13_s14, 18   ;;  %s608_s13 = smov %s610_s15 }
  0xf7   :  { %12 = sbr.rel (!%p10_p5) target bundleno = 2 (0x2), region = 68 }

// kernel: forward.53
= control target key start
LH: loop header
LB: loop body
LE: loop exit
PB: predicated region body
PF: predicated region fallthrough
CT: control target
= control target key end

     0   :  { %s683_s12 = smov 0   ;;  %s685_s13 = smov 0   ;;  %s745_s0 = inlined_call_operand.vmem [shape: bf16[16,32,144], index: 0, kind: input, shape index: {}]   ;;  %s746_s1 = inlined_call_operand.vmem [shape: bf16[16,144,16], index: 1, kind: input, shape index: {}]   ;;  %s747_s2 = inlined_call_operand.vmem [shape: f32[16,1,16], index: 2, kind: input, shape index: {}]   ;;  %s748_s3 = inlined_call_operand.vmem [shape: bf16[16,32,16], index: 3, kind: output, shape index: {}]  }
   0x1   :  { %s687_s14 = smov 0  }
   0x2 LB: > { %s25_s15 = sadd.s32 1, %s656_s13  ;;  %p545_p0 = scmp.ge.s32.totalorder %s660_s14, 1  ;;  %s660_s14 = sphi %s687_s14, %s13_s14   ;;  %s656_s13 = sphi %s685_s13, %s750_s13   ;;  %s652_s12 = sphi %s683_s12, %s749_s12  }
   0x3   : > { %p27_p1 = scmp.ge.s32.totalorder %s25_s15, 16  ;;  %p177_p2 = scmp.lt.s32.totalorder %s660_s14, 17 }
   0x5   : > { %s752_s15 = smov (%p27_p1, %s25_s15), 0  ;;  %p178_p3 = pnand %p545_p0, %p177_p2 }
   0x6   : > { %p219_p4 = scmp.lt.s32.totalorder (!%p178_p3), %s652_s12, 15  ;;  %v662_v0 = vmov (!%p178_p3), 0   ;;  %vm349_vm0 = vcmask (!%p178_p3), 130048   ;;  %vm425_vm1 = vcmask (!%p178_p3), 125952  }
   0x7   : > { %181 = sbr.rel (%p178_p3) target bundleno = 275 (0x113), region = 32  ;;  %356 = vmatprep.subr.bf16.mxu0 (!%p178_p3), %v662_v0  ;;  %579 = vmatprep.subr.bf16.mxu1 (!%p178_p3), %v662_v0 }
   0xe   : > { %s754_s12 = smov (!%p219_p4, %s652_s12), 15 }
   0xf   : > { %s597_s16 = smul.u32 72, %s754_s12  ;;  %s573_s17 = sshll.u32 %s754_s12, 5 }
  0x10   : > { %s708_s20 = scalar_lea.vmem %s745_s0, %s573_s17  ;;  %s236_s26 = scalar_lea.vmem %s747_s2, %s754_s12 }
  0x11   : > { %s713_s23 = scalar_lea.vmem %s746_s1, %s597_s16  ;;  %v634_v4 = vld [vmem:[%s708_s20 + $0x4] ss:$8 sps:$4 sm:$0xff]   ;;  %v637_v6 = vld [vmem:[%s708_s20 + $0x14] ss:$8 sps:$4 sm:$0xff]   ;;  %v632_v12 = vld [vmem:[%s708_s20] ss:$8 sps:$4 sm:$0xff]  }
  0x12   : > { %v623_v1 = vld [vmem:[%s713_s23] sm:$0xff]   ;;  %v624_v2 = vld [vmem:[%s713_s23 + $0x8] sm:$0xff]   ;;  %v625_v3 = vld [vmem:[%s713_s23 + $0x10] sm:$0xff]   ;;  %565 = vmatprep.mubr.msk.bf16.mxu0 %vm349_vm0, %v634_v4  ;;  %566 = vmatprep.mubr.msk.bf16.mxu1 %vm349_vm0, %v637_v6  ;;  %s574_s27 = sshll.u32 %s754_s12, 4 }
  0x13   : > { %357 = vmatpush1.bf16.msra.mxu0 %v623_v1  ;;  %588 = vmatpush1.bf16.msra.mxu1 %v623_v1  ;;  %v626_v5 = vld [vmem:[%s713_s23 + $0x18] sm:$0xff]   ;;  %v627_v7 = vld [vmem:[%s713_s23 + $0x20] sm:$0xff]   ;;  %v628_v8 = vld [vmem:[%s713_s23 + $0x28] sm:$0xff]   ;;  %s245_s30 = scalar_lea.vmem %s748_s3, %s574_s27 }
  0x14   : > { %358 = vmatprep.subr.bf16.mxu0 %v662_v0  ;;  %580 = vmatprep.subr.bf16.mxu1 %v662_v0  ;;  %v629_v9 = vld [vmem:[%s713_s23 + $0x30] sm:$0xff]   ;;  %v630_v10 = vld [vmem:[%s713_s23 + $0x38] sm:$0xff]   ;;  %v631_v11 = vld [vmem:[%s713_s23 + $0x40] sm:$0xff]  }
  0x15   : > { %v635_v13 = vld [vmem:[%s708_s20 + $0x10] ss:$8 sps:$4 sm:$0xff]   ;;  %v551_v14 = vld [vmem:[%s236_s26] ss:$0 sm:$0xff] }
  0x17   : > { %359 = vmatpush1.bf16.msra.mxu0 %v624_v2  ;;  %589 = vmatpush1.bf16.msra.mxu1 %v624_v2 }
  0x18   : > { %360 = vmatprep.subr.bf16.mxu0 %v662_v0  ;;  %581 = vmatprep.subr.bf16.mxu1 %v662_v0 }
  0x1b   : > { %361 = vmatpush1.bf16.msra.mxu0 %v625_v3  ;;  %590 = vmatpush1.bf16.msra.mxu1 %v625_v3 }
  0x1c   : > { %362 = vmatprep.subr.bf16.mxu0 %v662_v0  ;;  %582 = vmatprep.subr.bf16.mxu1 %v662_v0 }
  0x1f   : > { %363 = vmatpush1.bf16.msra.mxu0 %v626_v5  ;;  %591 = vmatpush1.bf16.msra.mxu1 %v626_v5 }
  0x20   : > { %364 = vmatprep.subr.bf16.mxu0 %v662_v0  ;;  %583 = vmatprep.subr.bf16.mxu1 %v662_v0 }
  0x23   : > { %365 = vmatpush1.bf16.msra.mxu0 %v627_v7  ;;  %592 = vmatpush1.bf16.msra.mxu1 %v627_v7 }
  0x24   : > { %366 = vmatprep.subr.bf16.mxu0 %v662_v0  ;;  %584 = vmatprep.subr.bf16.mxu1 %v662_v0 }
  0x27   : > { %367 = vmatpush1.bf16.msra.mxu0 %v628_v8  ;;  %593 = vmatpush1.bf16.msra.mxu1 %v628_v8 }
  0x28   : > { %368 = vmatprep.subr.bf16.mxu0 %v662_v0  ;;  %585 = vmatprep.subr.bf16.mxu1 %v662_v0 }
  0x2b   : > { %369 = vmatpush1.bf16.msra.mxu0 %v629_v9  ;;  %594 = vmatpush1.bf16.msra.mxu1 %v629_v9 }
  0x2c   : > { %370 = vmatprep.subr.bf16.mxu0 %v662_v0  ;;  %586 = vmatprep.subr.bf16.mxu1 %v662_v0 }
  0x2f   : > { %371 = vmatpush1.bf16.msra.mxu0 %v630_v10  ;;  %595 = vmatpush1.bf16.msra.mxu1 %v630_v10 }
  0x30   : > { %372 = vmatprep.subr.bf16.mxu0 %v662_v0  ;;  %587 = vmatprep.subr.bf16.mxu1 %v662_v0 }
  0x33   : > { %373 = vmatpush1.bf16.msra.mxu0 %v631_v11  ;;  %596 = vmatpush1.bf16.msra.mxu1 %v631_v11 }
  0x36   : > { %389 = vmatmul.mubr.bf16.vlgmr.msra.gmra.mrb[0].mxu0 %v632_v12  ;;  %397 = vmatmul.mubr.bf16.vlgmr.msra.gmra.mrb[0].mxu1 %v635_v13 }
 0x109   : > { %v390_v15 = vpop.f32.mrb[0].mxu0  ;;  %v398_v16 = vpop.f32.mrb[0].mxu1 }
 0x10a   : > { %v391_v17 = vadd.f32 %v551_v14, %v390_v15  ;;  %v399_v18 = vadd.f32 %v551_v14, %v398_v16  ;;  %v392_v19 = vpop.f32.mrb[1].mxu0  ;;  %v400_v20 = vpop.f32.mrb[1].mxu1 }
 0x10b   : > { %v393_v21 = vpop.f32.mrb[2].mxu0  ;;  %v401_v22 = vpop.f32.mrb[2].mxu1 }
 0x10c   : > { %v405_v23 = vmax.f32 %v391_v17, 0.0  ;;  %v407_v24 = vmax.f32 %v399_v18, 0.0  ;;  %v394_v25 = vadd.f32 %v551_v14, %v393_v21  ;;  %v402_v26 = vadd.f32 %v551_v14, %v401_v22  ;;  %v395_v27 = vpop.f32.mrb[3].mxu0  ;;  %v403_v28 = vpop.f32.mrb[3].mxu1 }
 0x10e   : > { %v575_v29 = vpack.c.bf16 %v405_v23, %v405_v23  ;;  %v577_v30 = vpack.c.bf16 %v407_v24, %v407_v24  ;;  %v406_v31 = vmax.f32 %v394_v25, 0.0  ;;  %v408_v32 = vmax.f32 %v402_v26, 0.0 }
 0x110   : > { %426 = vst.msk [vmem:[%s245_s30] sm:$0xf] %vm425_vm1, %v575_v29  ;;  %428 = vst.msk [vmem:[%s245_s30 + $0x8] sm:$0xf] %vm425_vm1, %v577_v30  ;;  %v576_v33 = vpack.c.bf16 %v406_v31, %v406_v31  ;;  %v578_v34 = vpack.c.bf16 %v408_v32, %v408_v32 }
 0x112   : > { %427 = vst.msk [vmem:[%s245_s30 + $0x4] sm:$0xf] %vm425_vm1, %v576_v33  ;;  %429 = vst.msk [vmem:[%s245_s30 + $0xc] sm:$0xf] %vm425_vm1, %v578_v34 }
 0x113 PF: > { %s13_s14 = sadd.s32 1, %s660_s14   ;;  %s749_s12 = smov %s656_s13 }
 0x114   : > { %p10_p5 = scmp.ge.s32.totalorder %s13_s14, 18   ;;  %s750_s13 = smov %s752_s15 }
 0x116   :  { %12 = sbr.rel (!%p10_p5) target bundleno = 2 (0x2), region = 68 }

// kernel: forward.54
= control target key start
LH: loop header
LB: loop body
LE: loop exit
PB: predicated region body
PF: predicated region fallthrough
CT: control target
= control target key end

     0   :  { %s573_s12 = smov 0   ;;  %s575_s13 = smov 0   ;;  %s612_s0 = inlined_call_operand.vmem [shape: bf16[16,32,16], index: 0, kind: input, shape index: {}]   ;;  %s613_s1 = inlined_call_operand.vmem [shape: bf16[16,16,16], index: 1, kind: input, shape index: {}]   ;;  %s614_s2 = inlined_call_operand.vmem [shape: f32[16,1,16], index: 2, kind: input, shape index: {}]   ;;  %s615_s3 = inlined_call_operand.vmem [shape: bf16[16,32,16], index: 3, kind: output, shape index: {}]  }
   0x1   :  { %s577_s14 = smov 0  }
   0x2 LB: > { %s25_s15 = sadd.s32 1, %s547_s13  ;;  %p467_p0 = scmp.ge.s32.totalorder %s551_s14, 1  ;;  %s551_s14 = sphi %s577_s14, %s13_s14   ;;  %s547_s13 = sphi %s575_s13, %s617_s13   ;;  %s543_s12 = sphi %s573_s12, %s616_s12  }
   0x3   : > { %p27_p1 = scmp.ge.s32.totalorder %s25_s15, 16  ;;  %p176_p2 = scmp.lt.s32.totalorder %s551_s14, 17 }
   0x5   : > { %s619_s15 = smov (%p27_p1, %s25_s15), 0  ;;  %p177_p3 = pnand %p467_p0, %p176_p2 }
   0x6   : > { %p217_p4 = scmp.lt.s32.totalorder (!%p177_p3), %s543_s12, 15  ;;  %vm274_vm0 = vcmask (!%p177_p3), 130048   ;;  %vm350_vm1 = vcmask (!%p177_p3), 125952  }
   0x7   : > { %180 = sbr.rel (%p177_p3) target bundleno = 244 (0xf4), region = 32 }
   0xe   : > { %s621_s12 = smov (!%p217_p4, %s543_s12), 15 }
   0xf   : > { %s487_s16 = sshll.u32 %s621_s12, 3  ;;  %s486_s17 = sshll.u32 %s621_s12, 4 }
  0x10   : > { %s230_s20 = scalar_lea.vmem %s613_s1, %s487_s16  ;;  %s224_s23 = scalar_lea.vmem %s612_s0, %s486_s17 }
  0x11   : > { %v526_v0 = vld [vmem:[%s230_s20] sm:$0xff]   ;;  %v528_v2 = vld [vmem:[%s224_s23 + $0x8] sm:$0xff]   ;;  %s233_s26 = scalar_lea.vmem %s614_s2, %s621_s12  ;;  %s242_s29 = scalar_lea.vmem %s615_s3, %s486_s17 }
  0x12   : > { %v527_v1 = vld [vmem:[%s224_s23] sm:$0xff]   ;;  %496 = vmatprep.subr.bf16.mxu0 %v526_v0 }
  0x13   : > { %497 = vmatpush3.bf16.msra.mxu0 %v526_v0  ;;  %498 = vmatprep.mubr.msk.bf16.mxu0 %vm274_vm0, %v527_v1  ;;  %v474_v3 = vld [vmem:[%s233_s26] ss:$0 sm:$0xff] }
  0x16   : > { %499 = vmatmul.mubr.msk.bf16.vlgmr.msra.gmra.mrb[0].mxu0 %vm274_vm0, %v528_v2 }
  0xe9   : > { %v500_v4 = vpop.f32.mrb[0].mxu0 }
  0xea   : > { %v324_v5 = vadd.f32 %v500_v4, %v474_v3  ;;  %v315_v6 = vpop.f32.mrb[1].mxu0 }
  0xeb   : > { %v316_v7 = vadd.f32 %v474_v3, %v315_v6  ;;  %v501_v8 = vpop.f32.mrb[2].mxu0 }
  0xec   : > { %v332_v9 = vmax.f32 %v324_v5, 0.0  ;;  %v327_v10 = vadd.f32 %v501_v8, %v474_v3  ;;  %v318_v11 = vpop.f32.mrb[3].mxu0 }
  0xed   : > { %v330_v12 = vmax.f32 %v316_v7, 0.0  ;;  %v319_v13 = vadd.f32 %v474_v3, %v318_v11 }
  0xee   : > { %v491_v14 = vpack.c.bf16 %v332_v9, %v332_v9  ;;  %v333_v15 = vmax.f32 %v327_v10, 0.0 }
  0xef   : > { %v489_v16 = vpack.c.bf16 %v330_v12, %v330_v12  ;;  %v331_v17 = vmax.f32 %v319_v13, 0.0 }
  0xf0   : > { %353 = vst.msk [vmem:[%s242_s29 + $0x8] sm:$0xf] %vm350_vm1, %v491_v14  ;;  %v492_v18 = vpack.c.bf16 %v333_v15, %v333_v15 }
  0xf1   : > { %351 = vst.msk [vmem:[%s242_s29] sm:$0xf] %vm350_vm1, %v489_v16  ;;  %v490_v19 = vpack.c.bf16 %v331_v17, %v331_v17 }
  0xf2   : > { %354 = vst.msk [vmem:[%s242_s29 + $0xc] sm:$0xf] %vm350_vm1, %v492_v18 }
  0xf3   : > { %352 = vst.msk [vmem:[%s242_s29 + $0x4] sm:$0xf] %vm350_vm1, %v490_v19 }
  0xf4 PF: > { %s13_s14 = sadd.s32 1, %s551_s14   ;;  %s616_s12 = smov %s547_s13 }
  0xf5   : > { %p10_p5 = scmp.ge.s32.totalorder %s13_s14, 18   ;;  %s617_s13 = smov %s619_s15 }
  0xf7   :  { %12 = sbr.rel (!%p10_p5) target bundleno = 2 (0x2), region = 68 }

// kernel: forward.55
= control target key start
LH: loop header
LB: loop body
LE: loop exit
PB: predicated region body
PF: predicated region fallthrough
CT: control target
= control target key end

     0   :  { %s621_s12 = smov 0   ;;  %s623_s13 = smov 0   ;;  %s666_s0 = inlined_call_operand.vmem [shape: bf16[16,16,144], index: 0, kind: input, shape index: {}]   ;;  %s667_s1 = inlined_call_operand.vmem [shape: bf16[16,144,16], index: 1, kind: input, shape index: {}]   ;;  %s668_s2 = inlined_call_operand.vmem [shape: f32[16,1,16], index: 2, kind: input, shape index: {}]   ;;  %s669_s3 = inlined_call_operand.vmem [shape: bf16[16,16,16], index: 3, kind: output, shape index: {}]  }
   0x1   :  { %s625_s14 = smov 0  }
   0x2 LB: > { %s25_s15 = sadd.s32 1, %s594_s13  ;;  %p511_p0 = scmp.ge.s32.totalorder %s598_s14, 1  ;;  %s598_s14 = sphi %s625_s14, %s13_s14   ;;  %s594_s13 = sphi %s623_s13, %s671_s13   ;;  %s590_s12 = sphi %s621_s12, %s670_s12  }
   0x3   : > { %p27_p1 = scmp.ge.s32.totalorder %s25_s15, 16  ;;  %p177_p2 = scmp.lt.s32.totalorder %s598_s14, 17 }
   0x5   : > { %s673_s15 = smov (%p27_p1, %s25_s15), 0  ;;  %p178_p3 = pnand %p511_p0, %p177_p2 }
   0x6   : > { %p219_p4 = scmp.lt.s32.totalorder (!%p178_p3), %s590_s12, 15  ;;  %v600_v0 = vmov (!%p178_p3), 0   ;;  %vm338_vm0 = vcmask (!%p178_p3), 130048   ;;  %vm393_vm1 = vcmask (!%p178_p3), 125952  }
   0x7   : > { %181 = sbr.rel (%p178_p3) target bundleno = 275 (0x113), region = 32  ;;  %342 = vmatprep.subr.bf16.mxu0 (!%p178_p3), %v600_v0 }
   0xe   : > { %s675_s12 = smov (!%p219_p4, %s590_s12), 15 }
   0xf   : > { %s538_s16 = smul.u32 72, %s675_s12  ;;  %s534_s17 = sshll.u32 %s675_s12, 4 }
  0x10   : > { %s227_s20 = scalar_lea.vmem %s666_s0, %s534_s17  ;;  %s236_s26 = scalar_lea.vmem %s668_s2, %s675_s12 }
  0x11   : > { %s233_s23 = scalar_lea.vmem %s667_s1, %s538_s16  ;;  %v575_v4 = vld [vmem:[%s227_s20 + $0x4] ss:$8 sps:$4 sm:$0xff]   ;;  %v573_v11 = vld [vmem:[%s227_s20] ss:$8 sps:$4 sm:$0xff]   ;;  %s535_s27 = sshll.u32 %s675_s12, 3 }
  0x12   : > { %v564_v1 = vld [vmem:[%s233_s23] sm:$0xff]   ;;  %v565_v2 = vld [vmem:[%s233_s23 + $0x8] sm:$0xff]   ;;  %v566_v3 = vld [vmem:[%s233_s23 + $0x10] sm:$0xff]   ;;  %529 = vmatprep.mubr.msk.bf16.mxu0 %vm338_vm0, %v575_v4  ;;  %s245_s30 = scalar_lea.vmem %s669_s3, %s535_s27 }
  0x13   : > { %343 = vmatpush1.bf16.msra.mxu0 %v564_v1  ;;  %v567_v5 = vld [vmem:[%s233_s23 + $0x18] sm:$0xff]   ;;  %v568_v6 = vld [vmem:[%s233_s23 + $0x20] sm:$0xff]   ;;  %v569_v7 = vld [vmem:[%s233_s23 + $0x28] sm:$0xff]  }
  0x14   : > { %344 = vmatprep.subr.bf16.mxu0 %v600_v0  ;;  %v570_v8 = vld [vmem:[%s233_s23 + $0x30] sm:$0xff]   ;;  %v571_v9 = vld [vmem:[%s233_s23 + $0x38] sm:$0xff]   ;;  %v572_v10 = vld [vmem:[%s233_s23 + $0x40] sm:$0xff]  }
  0x15   : > { %v517_v12 = vld [vmem:[%s236_s26] ss:$0 sm:$0xff] }
  0x17   : > { %345 = vmatpush1.bf16.msra.mxu0 %v565_v2 }
  0x18   : > { %346 = vmatprep.subr.bf16.mxu0 %v600_v0 }
  0x1b   : > { %347 = vmatpush1.bf16.msra.mxu0 %v566_v3 }
  0x1c   : > { %348 = vmatprep.subr.bf16.mxu0 %v600_v0 }
  0x1f   : > { %349 = vmatpush1.bf16.msra.mxu0 %v567_v5 }
  0x20   : > { %350 = vmatprep.subr.bf16.mxu0 %v600_v0 }
  0x23   : > { %351 = vmatpush1.bf16.msra.mxu0 %v568_v6 }
  0x24   : > { %352 = vmatprep.subr.bf16.mxu0 %v600_v0 }
  0x27   : > { %353 = vmatpush1.bf16.msra.mxu0 %v569_v7 }
  0x28   : > { %354 = vmatprep.subr.bf16.mxu0 %v600_v0 }
  0x2b   : > { %355 = vmatpush1.bf16.msra.mxu0 %v570_v8 }
  0x2c   : > { %356 = vmatprep.subr.bf16.mxu0 %v600_v0 }
  0x2f   : > { %357 = vmatpush1.bf16.msra.mxu0 %v571_v9 }
  0x30   : > { %358 = vmatprep.subr.bf16.mxu0 %v600_v0 }
  0x33   : > { %359 = vmatpush1.bf16.msra.mxu0 %v572_v10 }
  0x36   : > { %375 = vmatmul.mubr.bf16.vlgmr.msra.gmra.mrb[0].mxu0 %v573_v11 }
 0x109   : > { %v376_v13 = vpop.f32.mrb[0].mxu0 }
 0x10a   : > { %v377_v14 = vadd.f32 %v517_v12, %v376_v13  ;;  %v378_v15 = vpop.f32.mrb[1].mxu0 }
 0x10b   : > { %v379_v16 = vpop.f32.mrb[2].mxu0 }
 0x10c   : > { %v383_v17 = vmax.f32 %v377_v14, 0.0  ;;  %v380_v18 = vadd.f32 %v517_v12, %v379_v16  ;;  %v381_v19 = vpop.f32.mrb[3].mxu0 }
 0x10e   : > { %v536_v20 = vpack.c.bf16 %v383_v17, %v383_v17  ;;  %v384_v21 = vmax.f32 %v380_v18, 0.0 }
 0x110   : > { %394 = vst.msk [vmem:[%s245_s30] sm:$0xf] %vm393_vm1, %v536_v20  ;;  %v537_v22 = vpack.c.bf16 %v384_v21, %v384_v21 }
 0x112   : > { %395 = vst.msk [vmem:[%s245_s30 + $0x4] sm:$0xf] %vm393_vm1, %v537_v22 }
 0x113 PF: > { %s13_s14 = sadd.s32 1, %s598_s14   ;;  %s670_s12 = smov %s594_s13 }
 0x114   : > { %p10_p5 = scmp.ge.s32.totalorder %s13_s14, 18   ;;  %s671_s13 = smov %s673_s15 }
 0x116   :  { %12 = sbr.rel (!%p10_p5) target bundleno = 2 (0x2), region = 68 }

// kernel: forward.56
= control target key start
LH: loop header
LB: loop body
LE: loop exit
PB: predicated region body
PF: predicated region fallthrough
CT: control target
= control target key end

     0   :  { %s539_s12 = smov 0   ;;  %s541_s13 = smov 0   ;;  %s578_s0 = inlined_call_operand.vmem [shape: bf16[16,16,16], index: 0, kind: input, shape index: {}]   ;;  %s579_s1 = inlined_call_operand.vmem [shape: bf16[16,16,32], index: 1, kind: input, shape index: {}]   ;;  %s580_s2 = inlined_call_operand.vmem [shape: f32[16,1,32], index: 2, kind: input, shape index: {}]   ;;  %s581_s3 = inlined_call_operand.vmem [shape: bf16[16,16,32], index: 3, kind: output, shape index: {}]  }
   0x1   :  { %s543_s14 = smov 0  }
   0x2 LB: > { %s25_s15 = sadd.s32 1, %s511_s13  ;;  %p437_p0 = scmp.ge.s32.totalorder %s515_s14, 1  ;;  %s515_s14 = sphi %s543_s14, %s13_s14   ;;  %s511_s13 = sphi %s541_s13, %s583_s13   ;;  %s507_s12 = sphi %s539_s12, %s582_s12  }
   0x3   : > { %p27_p1 = scmp.ge.s32.totalorder %s25_s15, 16  ;;  %p176_p2 = scmp.lt.s32.totalorder %s515_s14, 17 }
   0x5   : > { %s585_s15 = smov (%p27_p1, %s25_s15), 0  ;;  %p177_p3 = pnand %p437_p0, %p176_p2 }
   0x6   : > { %p217_p4 = scmp.lt.s32.totalorder (!%p177_p3), %s507_s12, 15  ;;  %v517_v0 = vmov (!%p177_p3), 0.0   ;;  %vm518_vm0 = vmmov (!%p177_p3), 0   ;;  %vm267_vm1 = vcmask (!%p177_p3), 130048   ;;  %vm322_vm2 = vcmask (!%p177_p3), 257024  }
   0x7   : > { %180 = sbr.rel (%p177_p3) target bundleno = 242 (0xf2), region = 32  ;;  %459 = vmatprep.subr.bf16.mxu0 (!%p177_p3), %v517_v0  ;;  %461 = vmatprep.mubr.msk.bf16.mxu0 (!%p177_p3), %vm518_vm0, %v517_v0 }
   0xe   : > { %s587_s12 = smov (!%p217_p4, %s507_s12), 15 }
   0xf   : > { %s452_s16 = sshll.u32 %s587_s12, 3  ;;  %s233_s25 = scalar_lea.vmem %s580_s2, %s587_s12 }
  0x10   : > { %s224_s19 = scalar_lea.vmem %s578_s0, %s452_s16  ;;  %s230_s22 = scalar_lea.vmem %s579_s1, %s452_s16  ;;  %v444_v3 = vld [vmem:[%s233_s25] ss:$0 sm:$0xff] }
  0x11   : > { %v491_v1 = vld [vmem:[%s230_s22] sm:$0xff]   ;;  %s242_s28 = scalar_lea.vmem %s581_s3, %s452_s16 }
  0x12   : > { %v492_v2 = vld [vmem:[%s224_s19] sm:$0xff]   ;;  %460 = vmatpush3.bf16.msra.mxu0 %v491_v1 }
  0x15   : > { %462 = vmatmul.mubr.msk.bf16.vlgmr.msra.gmra.mrb[0].mxu0 %vm267_vm1, %v492_v2 }
  0xe8   : > { %v305_v4 = vpop.f32.mrb[0].mxu0 }
  0xe9   : > { %v306_v5 = vadd.f32 %v444_v3, %v305_v4  ;;  %v463_v6 = vpop.f32.mrb[1].mxu0 }
  0xea   : > { %v308_v7 = vpop.f32.mrb[2].mxu0 }
  0xeb   : > { %v312_v8 = vmax.f32 %v306_v5, 0.0  ;;  %v309_v9 = vadd.f32 %v444_v3, %v308_v7  ;;  %v464_v10 = vpop.f32.mrb[3].mxu0 }
  0xed   : > { %v455_v11 = vpack.c.bf16 %v312_v8, %v312_v8  ;;  %v313_v12 = vmax.f32 %v309_v9, 0.0 }
  0xef   : > { %323 = vst.msk [vmem:[%s242_s28] sm:$0xf] %vm322_vm2, %v455_v11  ;;  %v456_v13 = vpack.c.bf16 %v313_v12, %v313_v12 }
  0xf1   : > { %324 = vst.msk [vmem:[%s242_s28 + $0x4] sm:$0xf] %vm322_vm2, %v456_v13 }
  0xf2 PF: > { %s13_s14 = sadd.s32 1, %s515_s14   ;;  %s582_s12 = smov %s511_s13 }
  0xf3   : > { %p10_p5 = scmp.ge.s32.totalorder %s13_s14, 18   ;;  %s583_s13 = smov %s585_s15 }
  0xf5   :  { %12 = sbr.rel (!%p10_p5) target bundleno = 2 (0x2), region = 68 }

// kernel: forward.57
= control target key start
LH: loop header
LB: loop body
LE: loop exit
PB: predicated region body
PF: predicated region fallthrough
CT: control target
= control target key end

     0   :  { %s621_s12 = smov 0   ;;  %s623_s13 = smov 0   ;;  %s666_s0 = inlined_call_operand.vmem [shape: bf16[32,16,144], index: 0, kind: input, shape index: {}]   ;;  %s667_s1 = inlined_call_operand.vmem [shape: bf16[32,144,16], index: 1, kind: input, shape index: {}]   ;;  %s668_s2 = inlined_call_operand.vmem [shape: f32[32,1,16], index: 2, kind: input, shape index: {}]   ;;  %s669_s3 = inlined_call_operand.vmem [shape: bf16[32,16,16], index: 3, kind: output, shape index: {}]  }
   0x1   :  { %s625_s14 = smov 0  }
   0x2 LB: > { %s25_s15 = sadd.s32 1, %s594_s13  ;;  %p511_p0 = scmp.ge.s32.totalorder %s598_s14, 1  ;;  %s598_s14 = sphi %s625_s14, %s13_s14   ;;  %s594_s13 = sphi %s623_s13, %s671_s13   ;;  %s590_s12 = sphi %s621_s12, %s670_s12  }
   0x3   : > { %p27_p1 = scmp.ge.s32.totalorder %s25_s15, 32  ;;  %p177_p2 = scmp.lt.s32.totalorder %s598_s14, 33 }
   0x5   : > { %s673_s15 = smov (%p27_p1, %s25_s15), 0  ;;  %p178_p3 = pnand %p511_p0, %p177_p2 }
   0x6   : > { %p219_p4 = scmp.lt.s32.totalorder (!%p178_p3), %s590_s12, 31  ;;  %v600_v0 = vmov (!%p178_p3), 0   ;;  %vm338_vm0 = vcmask (!%p178_p3), 130048   ;;  %vm393_vm1 = vcmask (!%p178_p3), 125952  }
   0x7   : > { %181 = sbr.rel (%p178_p3) target bundleno = 275 (0x113), region = 32  ;;  %342 = vmatprep.subr.bf16.mxu0 (!%p178_p3), %v600_v0 }
   0xe   : > { %s675_s12 = smov (!%p219_p4, %s590_s12), 31 }
   0xf   : > { %s538_s16 = smul.u32 72, %s675_s12  ;;  %s534_s17 = sshll.u32 %s675_s12, 4 }
  0x10   : > { %s227_s20 = scalar_lea.vmem %s666_s0, %s534_s17  ;;  %s236_s26 = scalar_lea.vmem %s668_s2, %s675_s12 }
  0x11   : > { %s233_s23 = scalar_lea.vmem %s667_s1, %s538_s16  ;;  %v575_v4 = vld [vmem:[%s227_s20 + $0x4] ss:$8 sps:$4 sm:$0xff]   ;;  %v573_v11 = vld [vmem:[%s227_s20] ss:$8 sps:$4 sm:$0xff]   ;;  %s535_s27 = sshll.u32 %s675_s12, 3 }
  0x12   : > { %v564_v1 = vld [vmem:[%s233_s23] sm:$0xff]   ;;  %v565_v2 = vld [vmem:[%s233_s23 + $0x8] sm:$0xff]   ;;  %v566_v3 = vld [vmem:[%s233_s23 + $0x10] sm:$0xff]   ;;  %529 = vmatprep.mubr.msk.bf16.mxu0 %vm338_vm0, %v575_v4  ;;  %s245_s30 = scalar_lea.vmem %s669_s3, %s535_s27 }
  0x13   : > { %343 = vmatpush1.bf16.msra.mxu0 %v564_v1  ;;  %v567_v5 = vld [vmem:[%s233_s23 + $0x18] sm:$0xff]   ;;  %v568_v6 = vld [vmem:[%s233_s23 + $0x20] sm:$0xff]   ;;  %v569_v7 = vld [vmem:[%s233_s23 + $0x28] sm:$0xff]  }
  0x14   : > { %344 = vmatprep.subr.bf16.mxu0 %v600_v0  ;;  %v570_v8 = vld [vmem:[%s233_s23 + $0x30] sm:$0xff]   ;;  %v571_v9 = vld [vmem:[%s233_s23 + $0x38] sm:$0xff]   ;;  %v572_v10 = vld [vmem:[%s233_s23 + $0x40] sm:$0xff]  }
  0x15   : > { %v517_v12 = vld [vmem:[%s236_s26] ss:$0 sm:$0xff] }
  0x17   : > { %345 = vmatpush1.bf16.msra.mxu0 %v565_v2 }
  0x18   : > { %346 = vmatprep.subr.bf16.mxu0 %v600_v0 }
  0x1b   : > { %347 = vmatpush1.bf16.msra.mxu0 %v566_v3 }
  0x1c   : > { %348 = vmatprep.subr.bf16.mxu0 %v600_v0 }
  0x1f   : > { %349 = vmatpush1.bf16.msra.mxu0 %v567_v5 }
  0x20   : > { %350 = vmatprep.subr.bf16.mxu0 %v600_v0 }
  0x23   : > { %351 = vmatpush1.bf16.msra.mxu0 %v568_v6 }
  0x24   : > { %352 = vmatprep.subr.bf16.mxu0 %v600_v0 }
  0x27   : > { %353 = vmatpush1.bf16.msra.mxu0 %v569_v7 }
  0x28   : > { %354 = vmatprep.subr.bf16.mxu0 %v600_v0 }
  0x2b   : > { %355 = vmatpush1.bf16.msra.mxu0 %v570_v8 }
  0x2c   : > { %356 = vmatprep.subr.bf16.mxu0 %v600_v0 }
  0x2f   : > { %357 = vmatpush1.bf16.msra.mxu0 %v571_v9 }
  0x30   : > { %358 = vmatprep.subr.bf16.mxu0 %v600_v0 }
  0x33   : > { %359 = vmatpush1.bf16.msra.mxu0 %v572_v10 }
  0x36   : > { %375 = vmatmul.mubr.bf16.vlgmr.msra.gmra.mrb[0].mxu0 %v573_v11 }
 0x109   : > { %v376_v13 = vpop.f32.mrb[0].mxu0 }
 0x10a   : > { %v377_v14 = vadd.f32 %v517_v12, %v376_v13  ;;  %v378_v15 = vpop.f32.mrb[1].mxu0 }
 0x10b   : > { %v379_v16 = vpop.f32.mrb[2].mxu0 }
 0x10c   : > { %v383_v17 = vmax.f32 %v377_v14, 0.0  ;;  %v380_v18 = vadd.f32 %v517_v12, %v379_v16  ;;  %v381_v19 = vpop.f32.mrb[3].mxu0 }
 0x10e   : > { %v536_v20 = vpack.c.bf16 %v383_v17, %v383_v17  ;;  %v384_v21 = vmax.f32 %v380_v18, 0.0 }
 0x110   : > { %394 = vst.msk [vmem:[%s245_s30] sm:$0xf] %vm393_vm1, %v536_v20  ;;  %v537_v22 = vpack.c.bf16 %v384_v21, %v384_v21 }
 0x112   : > { %395 = vst.msk [vmem:[%s245_s30 + $0x4] sm:$0xf] %vm393_vm1, %v537_v22 }
 0x113 PF: > { %s13_s14 = sadd.s32 1, %s598_s14   ;;  %s670_s12 = smov %s594_s13 }
 0x114   : > { %p10_p5 = scmp.ge.s32.totalorder %s13_s14, 34   ;;  %s671_s13 = smov %s673_s15 }
 0x116   :  { %12 = sbr.rel (!%p10_p5) target bundleno = 2 (0x2), region = 68 }

// kernel: forward.58
= control target key start
LH: loop header
LB: loop body
LE: loop exit
PB: predicated region body
PF: predicated region fallthrough
CT: control target
= control target key end

     0   :  { %s552_s12 = smov 0   ;;  %s554_s13 = smov 0   ;;  %s591_s0 = inlined_call_operand.vmem [shape: bf16[16,16,32], index: 0, kind: input, shape index: {}]   ;;  %s592_s1 = inlined_call_operand.vmem [shape: bf16[16,32,32], index: 1, kind: input, shape index: {}]   ;;  %s593_s2 = inlined_call_operand.vmem [shape: f32[16,1,32], index: 2, kind: input, shape index: {}]   ;;  %s594_s3 = inlined_call_operand.vmem [shape: bf16[16,16,32], index: 3, kind: output, shape index: {}]  }
   0x1   :  { %s556_s14 = smov 0  }
   0x2 LB: > { %s25_s15 = sadd.s32 1, %s524_s13  ;;  %p445_p0 = scmp.ge.s32.totalorder %s528_s14, 1  ;;  %s528_s14 = sphi %s556_s14, %s13_s14   ;;  %s524_s13 = sphi %s554_s13, %s596_s13   ;;  %s520_s12 = sphi %s552_s12, %s595_s12  }
   0x3   : > { %p27_p1 = scmp.ge.s32.totalorder %s25_s15, 16  ;;  %p176_p2 = scmp.lt.s32.totalorder %s528_s14, 17 }
   0x5   : > { %s598_s15 = smov (%p27_p1, %s25_s15), 0  ;;  %p177_p3 = pnand %p445_p0, %p176_p2 }
   0x6   : > { %p217_p4 = scmp.lt.s32.totalorder (!%p177_p3), %s520_s12, 15  ;;  %v530_v0 = vmov (!%p177_p3), 0.0   ;;  %vm531_vm0 = vmmov (!%p177_p3), 0   ;;  %vm275_vm1 = vcmask (!%p177_p3), 261120   ;;  %vm330_vm2 = vcmask (!%p177_p3), 257024  }
   0x7   : > { %180 = sbr.rel (%p177_p3) target bundleno = 246 (0xf6), region = 32  ;;  %469 = vmatprep.subr.bf16.mxu0 (!%p177_p3), %v530_v0  ;;  %473 = vmatprep.mubr.msk.bf16.mxu0 (!%p177_p3), %vm531_vm0, %v530_v0 }
   0xe   : > { %s600_s12 = smov (!%p217_p4, %s520_s12), 15 }
   0xf   : > { %s462_s16 = sshll.u32 %s600_s12, 4  ;;  %s461_s17 = sshll.u32 %s600_s12, 3 }
  0x10   : > { %s230_s20 = scalar_lea.vmem %s592_s1, %s462_s16  ;;  %s224_s23 = scalar_lea.vmem %s591_s0, %s461_s17 }
  0x11   : > { %v503_v1 = vld [vmem:[%s230_s20] sm:$0xff]   ;;  %v504_v2 = vld [vmem:[%s230_s20 + $0x8] sm:$0xff]   ;;  %s233_s26 = scalar_lea.vmem %s593_s2, %s600_s12  ;;  %s242_s29 = scalar_lea.vmem %s594_s3, %s461_s17 }
  0x12   : > { %470 = vmatpush3.bf16.msra.mxu0 %v503_v1  ;;  %v505_v3 = vld [vmem:[%s224_s23] sm:$0xff]  }
  0x13   : > { %471 = vmatprep.subr.bf16.mxu0 %v530_v0  ;;  %v452_v4 = vld [vmem:[%s233_s26] ss:$0 sm:$0xff] }
  0x16   : > { %472 = vmatpush3.bf16.msra.mxu0 %v504_v2 }
  0x19   : > { %474 = vmatmul.mubr.msk.bf16.vlgmr.msra.gmra.mrb[0].mxu0 %vm275_vm1, %v505_v3 }
  0xec   : > { %v313_v5 = vpop.f32.mrb[0].mxu0 }
  0xed   : > { %v314_v6 = vadd.f32 %v452_v4, %v313_v5  ;;  %v475_v7 = vpop.f32.mrb[1].mxu0 }
  0xee   : > { %v316_v8 = vpop.f32.mrb[2].mxu0 }
  0xef   : > { %v320_v9 = vmax.f32 %v314_v6, 0.0  ;;  %v317_v10 = vadd.f32 %v452_v4, %v316_v8  ;;  %v476_v11 = vpop.f32.mrb[3].mxu0 }
  0xf1   : > { %v464_v12 = vpack.c.bf16 %v320_v9, %v320_v9  ;;  %v321_v13 = vmax.f32 %v317_v10, 0.0 }
  0xf3   : > { %331 = vst.msk [vmem:[%s242_s29] sm:$0xf] %vm330_vm2, %v464_v12  ;;  %v465_v14 = vpack.c.bf16 %v321_v13, %v321_v13 }
  0xf5   : > { %332 = vst.msk [vmem:[%s242_s29 + $0x4] sm:$0xf] %vm330_vm2, %v465_v14 }
  0xf6 PF: > { %s13_s14 = sadd.s32 1, %s528_s14   ;;  %s595_s12 = smov %s524_s13 }
  0xf7   : > { %p10_p5 = scmp.ge.s32.totalorder %s13_s14, 18   ;;  %s596_s13 = smov %s598_s15 }
  0xf9   :  { %12 = sbr.rel (!%p10_p5) target bundleno = 2 (0x2), region = 68 }

// kernel: forward.59
= control target key start
LH: loop header
LB: loop body
LE: loop exit
PB: predicated region body
PF: predicated region fallthrough
CT: control target
= control target key end

     0   :  { %s796_s12 = smov 0   ;;  %s798_s13 = smov 0   ;;  %s861_s0 = inlined_call_operand.vmem [shape: bf16[16,16,288], index: 0, kind: input, shape index: {}]   ;;  %s862_s1 = inlined_call_operand.vmem [shape: bf16[16,288,32], index: 1, kind: input, shape index: {}]   ;;  %s863_s2 = inlined_call_operand.vmem [shape: f32[16,1,32], index: 2, kind: input, shape index: {}]   ;;  %s864_s3 = inlined_call_operand.vmem [shape: bf16[16,16,32], index: 3, kind: output, shape index: {}]  }
   0x1   :  { %s800_s14 = smov 0  }
   0x2 LB: > { %s25_s15 = sadd.s32 1, %s768_s13  ;;  %p632_p0 = scmp.ge.s32.totalorder %s772_s14, 1  ;;  %s772_s14 = sphi %s800_s14, %s13_s14   ;;  %s768_s13 = sphi %s798_s13, %s866_s13   ;;  %s764_s12 = sphi %s796_s12, %s865_s12  }
   0x3   : > { %p27_p1 = scmp.ge.s32.totalorder %s25_s15, 16  ;;  %p177_p2 = scmp.lt.s32.totalorder %s772_s14, 17 }
   0x5   : > { %s868_s15 = smov (%p27_p1, %s25_s15), 0  ;;  %p178_p3 = pnand %p632_p0, %p177_p2 }
   0x6   : > { %p219_p4 = scmp.lt.s32.totalorder (!%p178_p3), %s764_s12, 15  ;;  %v774_v0 = vmov (!%p178_p3), 0.0   ;;  %vm775_vm0 = vmmov (!%p178_p3), 0   ;;  %vm418_vm1 = vcmask (!%p178_p3), 261120   ;;  %vm514_vm2 = vcmask (!%p178_p3), 257024  }
   0x7   : > { %181 = sbr.rel (%p178_p3) target bundleno = 277 (0x115), region = 32  ;;  %692 = vmatprep.subr.bf16.mxu1 (!%p178_p3), %v774_v0  ;;  %696 = vmatprep.mubr.msk.bf16.mxu1 (!%p178_p3), %vm775_vm0, %v774_v0 }
   0xe   : > { %s870_s12 = smov (!%p219_p4, %s764_s12), 15 }
   0xf   : > { %s701_s16 = smul.u32 144, %s870_s12  ;;  %s236_s26 = scalar_lea.vmem %s863_s2, %s870_s12 }
  0x10   : > { %s700_s20 = smul.u32 24, %s870_s12  ;;  %v637_v28 = vld [vmem:[%s236_s26] ss:$0 sm:$0xff]  ;;  %s664_s27 = sshll.u32 %s870_s12, 3 }
  0x11   : > { %s820_s19 = scalar_lea.vmem %s862_s1, %s701_s16  ;;  %s245_s30 = scalar_lea.vmem %s864_s3, %s664_s27 }
  0x12   : > { %v728_v1 = vld [vmem:[%s820_s19 + $0x40] sm:$0xff]   ;;  %v730_v3 = vld [vmem:[%s820_s19 + $0x48] sm:$0xff]   ;;  %v732_v5 = vld [vmem:[%s820_s19 + $0x50] sm:$0xff]   ;;  %s227_s23 = scalar_lea.vmem %s861_s0, %s700_s20 }
  0x13   : > { %v729_v2 = vld [vmem:[%s820_s19] sm:$0xff]   ;;  %667 = vmatprep.subr.bf16.mxu0 %v728_v1  ;;  %v731_v4 = vld [vmem:[%s820_s19 + $0x8] sm:$0xff]   ;;  %v733_v6 = vld [vmem:[%s820_s19 + $0x10] sm:$0xff]  }
  0x14   : > { %668 = vmatpush3.bf16.msra.mxu0 %v729_v2  ;;  %v734_v7 = vld [vmem:[%s820_s19 + $0x58] sm:$0xff]   ;;  %v736_v9 = vld [vmem:[%s820_s19 + $0x60] sm:$0xff]   ;;  %v738_v12 = vld [vmem:[%s820_s19 + $0x68] sm:$0xff]  }
  0x15   : > { %669 = vmatprep.subr.bf16.mxu0 %v730_v3  ;;  %v735_v8 = vld [vmem:[%s820_s19 + $0x18] sm:$0xff]   ;;  %v742_v10 = vld [vmem:[%s820_s19 + $0x80] sm:$0xff]   ;;  %v739_v13 = vld [vmem:[%s820_s19 + $0x28] sm:$0xff]  }
  0x16   : > { %v737_v11 = vld [vmem:[%s820_s19 + $0x20] sm:$0xff]   ;;  %693 = vmatpush3.bf16.msra.mxu1 %v742_v10  ;;  %v748_v15 = vld [vmem:[%s820_s19 + $0x88] sm:$0xff]   ;;  %v740_v16 = vld [vmem:[%s820_s19 + $0x70] sm:$0xff]  }
  0x17   : > { %694 = vmatprep.subr.bf16.mxu1 %v774_v0  ;;  %v747_v14 = vld [vmem:[%s227_s23 + $0x4] ss:$12 sps:$4 sm:$0xff]   ;;  %v749_v17 = vld [vmem:[%s227_s23 + $0x8] ss:$12 sps:$4 sm:$0xff]   ;;  %v743_v19 = vld [vmem:[%s820_s19 + $0x78] sm:$0xff]  }
  0x18   : > { %670 = vmatpush3.bf16.msra.mxu0 %v731_v4  ;;  %454 = vmatprep.mubr.bf16.mxu0 %v747_v14  ;;  %v741_v18 = vld [vmem:[%s820_s19 + $0x30] sm:$0xff]   ;;  %v744_v20 = vld [vmem:[%s820_s19 + $0x38] sm:$0xff]   ;;  %v745_v21 = vld [vmem:[%s227_s23] ss:$12 sps:$4 sm:$0xff]  }
  0x19   : > { %671 = vmatprep.subr.bf16.mxu0 %v732_v5 }
  0x1a   : > { %695 = vmatpush3.bf16.msra.mxu1 %v748_v15 }
  0x1c   : > { %672 = vmatpush3.bf16.msra.mxu0 %v733_v6 }
  0x1d   : > { %673 = vmatprep.subr.bf16.mxu0 %v734_v7  ;;  %697 = vmatmul.mubr.msk.bf16.vlgmr.msra.gmra.mrb[0].mxu1 %vm418_vm1, %v749_v17 }
  0x20   : > { %674 = vmatpush3.bf16.msra.mxu0 %v735_v8 }
  0x21   : > { %675 = vmatprep.subr.bf16.mxu0 %v736_v9 }
  0x24   : > { %676 = vmatpush3.bf16.msra.mxu0 %v737_v11 }
  0x25   : > { %677 = vmatprep.subr.bf16.mxu0 %v738_v12 }
  0x28   : > { %678 = vmatpush3.bf16.msra.mxu0 %v739_v13 }
  0x29   : > { %679 = vmatprep.subr.bf16.mxu0 %v740_v16 }
  0x2c   : > { %680 = vmatpush3.bf16.msra.mxu0 %v741_v18 }
  0x2d   : > { %681 = vmatprep.subr.bf16.mxu0 %v743_v19 }
  0x30   : > { %682 = vmatpush3.bf16.msra.mxu0 %v744_v20 }
  0x33   : > { %455 = vmatmul.mubr.bf16.vlgmr.msra.gmra.mrb[0].mxu0 %v745_v21 }
  0xf0   : > { %v497_v22 = vpop.f32.mrb[0].mxu1 }
  0xf1   : > { %v698_v23 = vpop.f32.mrb[1].mxu1 }
  0xf2   : > { %v500_v24 = vpop.f32.mrb[2].mxu1 }
  0xf3   : > { %v699_v25 = vpop.f32.mrb[3].mxu1 }
 0x106   : > { %v683_v26 = vpop.f32.mrb[0].mxu0 }
 0x107   : > { %v684_v27 = vpop.f32.mrb[1].mxu0 }
 0x108   : > { %v685_v29 = vadd.f32 %v684_v27, %v683_v26  ;;  %v686_v30 = vpop.f32.mrb[2].mxu0 }
 0x109   : > { %v687_v31 = vpop.f32.mrb[3].mxu0 }
 0x10a   : > { %v457_v32 = vadd.f32 %v685_v29, %v637_v28  ;;  %v688_v33 = vadd.f32 %v687_v31, %v686_v30 }
 0x10c   : > { %v498_v34 = vadd.f32 %v497_v22, %v457_v32  ;;  %v460_v35 = vadd.f32 %v688_v33, %v637_v28 }
 0x10e   : > { %v504_v36 = vmax.f32 %v498_v34, 0.0  ;;  %v501_v37 = vadd.f32 %v500_v24, %v460_v35 }
 0x110   : > { %v665_v38 = vpack.c.bf16 %v504_v36, %v504_v36  ;;  %v505_v39 = vmax.f32 %v501_v37, 0.0 }
 0x112   : > { %515 = vst.msk [vmem:[%s245_s30] sm:$0xf] %vm514_vm2, %v665_v38  ;;  %v666_v40 = vpack.c.bf16 %v505_v39, %v505_v39 }
 0x114   : > { %516 = vst.msk [vmem:[%s245_s30 + $0x4] sm:$0xf] %vm514_vm2, %v666_v40 }
 0x115 PF: > { %s13_s14 = sadd.s32 1, %s772_s14   ;;  %s865_s12 = smov %s768_s13 }
 0x116   : > { %p10_p5 = scmp.ge.s32.totalorder %s13_s14, 18   ;;  %s866_s13 = smov %s868_s15 }
 0x118   :  { %12 = sbr.rel (!%p10_p5) target bundleno = 2 (0x2), region = 68 }

// kernel: forward.60
= control target key start
LH: loop header
LB: loop body
LE: loop exit
PB: predicated region body
PF: predicated region fallthrough
CT: control target
= control target key end

     0   :  { %s539_s12 = smov 0   ;;  %s541_s13 = smov 0   ;;  %s578_s0 = inlined_call_operand.vmem [shape: bf16[32,16,16], index: 0, kind: input, shape index: {}]   ;;  %s579_s1 = inlined_call_operand.vmem [shape: bf16[32,16,32], index: 1, kind: input, shape index: {}]   ;;  %s580_s2 = inlined_call_operand.vmem [shape: f32[32,1,32], index: 2, kind: input, shape index: {}]   ;;  %s581_s3 = inlined_call_operand.vmem [shape: bf16[32,16,32], index: 3, kind: output, shape index: {}]  }
   0x1   :  { %s543_s14 = smov 0  }
   0x2 LB: > { %s25_s15 = sadd.s32 1, %s511_s13  ;;  %p437_p0 = scmp.ge.s32.totalorder %s515_s14, 1  ;;  %s515_s14 = sphi %s543_s14, %s13_s14   ;;  %s511_s13 = sphi %s541_s13, %s583_s13   ;;  %s507_s12 = sphi %s539_s12, %s582_s12  }
   0x3   : > { %p27_p1 = scmp.ge.s32.totalorder %s25_s15, 32  ;;  %p176_p2 = scmp.lt.s32.totalorder %s515_s14, 33 }
   0x5   : > { %s585_s15 = smov (%p27_p1, %s25_s15), 0  ;;  %p177_p3 = pnand %p437_p0, %p176_p2 }
   0x6   : > { %p217_p4 = scmp.lt.s32.totalorder (!%p177_p3), %s507_s12, 31  ;;  %v517_v0 = vmov (!%p177_p3), 0.0   ;;  %vm518_vm0 = vmmov (!%p177_p3), 0   ;;  %vm267_vm1 = vcmask (!%p177_p3), 130048   ;;  %vm322_vm2 = vcmask (!%p177_p3), 257024  }
   0x7   : > { %180 = sbr.rel (%p177_p3) target bundleno = 242 (0xf2), region = 32  ;;  %459 = vmatprep.subr.bf16.mxu0 (!%p177_p3), %v517_v0  ;;  %461 = vmatprep.mubr.msk.bf16.mxu0 (!%p177_p3), %vm518_vm0, %v517_v0 }
   0xe   : > { %s587_s12 = smov (!%p217_p4, %s507_s12), 31 }
   0xf   : > { %s452_s16 = sshll.u32 %s587_s12, 3  ;;  %s233_s25 = scalar_lea.vmem %s580_s2, %s587_s12 }
  0x10   : > { %s224_s19 = scalar_lea.vmem %s578_s0, %s452_s16  ;;  %s230_s22 = scalar_lea.vmem %s579_s1, %s452_s16  ;;  %v444_v3 = vld [vmem:[%s233_s25] ss:$0 sm:$0xff] }
  0x11   : > { %v491_v1 = vld [vmem:[%s230_s22] sm:$0xff]   ;;  %s242_s28 = scalar_lea.vmem %s581_s3, %s452_s16 }
  0x12   : > { %v492_v2 = vld [vmem:[%s224_s19] sm:$0xff]   ;;  %460 = vmatpush3.bf16.msra.mxu0 %v491_v1 }
  0x15   : > { %462 = vmatmul.mubr.msk.bf16.vlgmr.msra.gmra.mrb[0].mxu0 %vm267_vm1, %v492_v2 }
  0xe8   : > { %v305_v4 = vpop.f32.mrb[0].mxu0 }
  0xe9   : > { %v306_v5 = vadd.f32 %v444_v3, %v305_v4  ;;  %v463_v6 = vpop.f32.mrb[1].mxu0 }
  0xea   : > { %v308_v7 = vpop.f32.mrb[2].mxu0 }
  0xeb   : > { %v312_v8 = vmax.f32 %v306_v5, 0.0  ;;  %v309_v9 = vadd.f32 %v444_v3, %v308_v7  ;;  %v464_v10 = vpop.f32.mrb[3].mxu0 }
  0xed   : > { %v455_v11 = vpack.c.bf16 %v312_v8, %v312_v8  ;;  %v313_v12 = vmax.f32 %v309_v9, 0.0 }
  0xef   : > { %323 = vst.msk [vmem:[%s242_s28] sm:$0xf] %vm322_vm2, %v455_v11  ;;  %v456_v13 = vpack.c.bf16 %v313_v12, %v313_v12 }
  0xf1   : > { %324 = vst.msk [vmem:[%s242_s28 + $0x4] sm:$0xf] %vm322_vm2, %v456_v13 }
  0xf2 PF: > { %s13_s14 = sadd.s32 1, %s515_s14   ;;  %s582_s12 = smov %s511_s13 }
  0xf3   : > { %p10_p5 = scmp.ge.s32.totalorder %s13_s14, 34   ;;  %s583_s13 = smov %s585_s15 }
  0xf5   :  { %12 = sbr.rel (!%p10_p5) target bundleno = 2 (0x2), region = 68 }

// kernel: forward.61
= control target key start
LH: loop header
LB: loop body
LE: loop exit
PB: predicated region body
PF: predicated region fallthrough
CT: control target
= control target key end

     0   :  { %s796_s12 = smov 0   ;;  %s798_s13 = smov 0   ;;  %s861_s0 = inlined_call_operand.vmem [shape: bf16[32,16,288], index: 0, kind: input, shape index: {}]   ;;  %s862_s1 = inlined_call_operand.vmem [shape: bf16[32,288,32], index: 1, kind: input, shape index: {}]   ;;  %s863_s2 = inlined_call_operand.vmem [shape: f32[32,1,32], index: 2, kind: input, shape index: {}]   ;;  %s864_s3 = inlined_call_operand.vmem [shape: bf16[32,16,32], index: 3, kind: output, shape index: {}]  }
   0x1   :  { %s800_s14 = smov 0  }
   0x2 LB: > { %s25_s15 = sadd.s32 1, %s768_s13  ;;  %p632_p0 = scmp.ge.s32.totalorder %s772_s14, 1  ;;  %s772_s14 = sphi %s800_s14, %s13_s14   ;;  %s768_s13 = sphi %s798_s13, %s866_s13   ;;  %s764_s12 = sphi %s796_s12, %s865_s12  }
   0x3   : > { %p27_p1 = scmp.ge.s32.totalorder %s25_s15, 32  ;;  %p177_p2 = scmp.lt.s32.totalorder %s772_s14, 33 }
   0x5   : > { %s868_s15 = smov (%p27_p1, %s25_s15), 0  ;;  %p178_p3 = pnand %p632_p0, %p177_p2 }
   0x6   : > { %p219_p4 = scmp.lt.s32.totalorder (!%p178_p3), %s764_s12, 31  ;;  %v774_v0 = vmov (!%p178_p3), 0.0   ;;  %vm775_vm0 = vmmov (!%p178_p3), 0   ;;  %vm418_vm1 = vcmask (!%p178_p3), 261120   ;;  %vm514_vm2 = vcmask (!%p178_p3), 257024  }
   0x7   : > { %181 = sbr.rel (%p178_p3) target bundleno = 277 (0x115), region = 32  ;;  %692 = vmatprep.subr.bf16.mxu1 (!%p178_p3), %v774_v0  ;;  %696 = vmatprep.mubr.msk.bf16.mxu1 (!%p178_p3), %vm775_vm0, %v774_v0 }
   0xe   : > { %s870_s12 = smov (!%p219_p4, %s764_s12), 31 }
   0xf   : > { %s701_s16 = smul.u32 144, %s870_s12  ;;  %s236_s26 = scalar_lea.vmem %s863_s2, %s870_s12 }
  0x10   : > { %s700_s20 = smul.u32 24, %s870_s12  ;;  %v637_v28 = vld [vmem:[%s236_s26] ss:$0 sm:$0xff]  ;;  %s664_s27 = sshll.u32 %s870_s12, 3 }
  0x11   : > { %s820_s19 = scalar_lea.vmem %s862_s1, %s701_s16  ;;  %s245_s30 = scalar_lea.vmem %s864_s3, %s664_s27 }
  0x12   : > { %v728_v1 = vld [vmem:[%s820_s19 + $0x40] sm:$0xff]   ;;  %v730_v3 = vld [vmem:[%s820_s19 + $0x48] sm:$0xff]   ;;  %v732_v5 = vld [vmem:[%s820_s19 + $0x50] sm:$0xff]   ;;  %s227_s23 = scalar_lea.vmem %s861_s0, %s700_s20 }
  0x13   : > { %v729_v2 = vld [vmem:[%s820_s19] sm:$0xff]   ;;  %667 = vmatprep.subr.bf16.mxu0 %v728_v1  ;;  %v731_v4 = vld [vmem:[%s820_s19 + $0x8] sm:$0xff]   ;;  %v733_v6 = vld [vmem:[%s820_s19 + $0x10] sm:$0xff]  }
  0x14   : > { %668 = vmatpush3.bf16.msra.mxu0 %v729_v2  ;;  %v734_v7 = vld [vmem:[%s820_s19 + $0x58] sm:$0xff]   ;;  %v736_v9 = vld [vmem:[%s820_s19 + $0x60] sm:$0xff]   ;;  %v738_v12 = vld [vmem:[%s820_s19 + $0x68] sm:$0xff]  }
  0x15   : > { %669 = vmatprep.subr.bf16.mxu0 %v730_v3  ;;  %v735_v8 = vld [vmem:[%s820_s19 + $0x18] sm:$0xff]   ;;  %v742_v10 = vld [vmem:[%s820_s19 + $0x80] sm:$0xff]   ;;  %v739_v13 = vld [vmem:[%s820_s19 + $0x28] sm:$0xff]  }
  0x16   : > { %v737_v11 = vld [vmem:[%s820_s19 + $0x20] sm:$0xff]   ;;  %693 = vmatpush3.bf16.msra.mxu1 %v742_v10  ;;  %v748_v15 = vld [vmem:[%s820_s19 + $0x88] sm:$0xff]   ;;  %v740_v16 = vld [vmem:[%s820_s19 + $0x70] sm:$0xff]  }
  0x17   : > { %694 = vmatprep.subr.bf16.mxu1 %v774_v0  ;;  %v747_v14 = vld [vmem:[%s227_s23 + $0x4] ss:$12 sps:$4 sm:$0xff]   ;;  %v749_v17 = vld [vmem:[%s227_s23 + $0x8] ss:$12 sps:$4 sm:$0xff]   ;;  %v743_v19 = vld [vmem:[%s820_s19 + $0x78] sm:$0xff]  }
  0x18   : > { %670 = vmatpush3.bf16.msra.mxu0 %v731_v4  ;;  %454 = vmatprep.mubr.bf16.mxu0 %v747_v14  ;;  %v741_v18 = vld [vmem:[%s820_s19 + $0x30] sm:$0xff]   ;;  %v744_v20 = vld [vmem:[%s820_s19 + $0x38] sm:$0xff]   ;;  %v745_v21 = vld [vmem:[%s227_s23] ss:$12 sps:$4 sm:$0xff]  }
  0x19   : > { %671 = vmatprep.subr.bf16.mxu0 %v732_v5 }
  0x1a   : > { %695 = vmatpush3.bf16.msra.mxu1 %v748_v15 }
  0x1c   : > { %672 = vmatpush3.bf16.msra.mxu0 %v733_v6 }
  0x1d   : > { %673 = vmatprep.subr.bf16.mxu0 %v734_v7  ;;  %697 = vmatmul.mubr.msk.bf16.vlgmr.msra.gmra.mrb[0].mxu1 %vm418_vm1, %v749_v17 }
  0x20   : > { %674 = vmatpush3.bf16.msra.mxu0 %v735_v8 }
  0x21   : > { %675 = vmatprep.subr.bf16.mxu0 %v736_v9 }
  0x24   : > { %676 = vmatpush3.bf16.msra.mxu0 %v737_v11 }
  0x25   : > { %677 = vmatprep.subr.bf16.mxu0 %v738_v12 }
  0x28   : > { %678 = vmatpush3.bf16.msra.mxu0 %v739_v13 }
  0x29   : > { %679 = vmatprep.subr.bf16.mxu0 %v740_v16 }
  0x2c   : > { %680 = vmatpush3.bf16.msra.mxu0 %v741_v18 }
  0x2d   : > { %681 = vmatprep.subr.bf16.mxu0 %v743_v19 }
  0x30   : > { %682 = vmatpush3.bf16.msra.mxu0 %v744_v20 }
  0x33   : > { %455 = vmatmul.mubr.bf16.vlgmr.msra.gmra.mrb[0].mxu0 %v745_v21 }
  0xf0   : > { %v497_v22 = vpop.f32.mrb[0].mxu1 }
  0xf1   : > { %v698_v23 = vpop.f32.mrb[1].mxu1 }
  0xf2   : > { %v500_v24 = vpop.f32.mrb[2].mxu1 }
  0xf3   : > { %v699_v25 = vpop.f32.mrb[3].mxu1 }
 0x106   : > { %v683_v26 = vpop.f32.mrb[0].mxu0 }
 0x107   : > { %v684_v27 = vpop.f32.mrb[1].mxu0 }
 0x108   : > { %v685_v29 = vadd.f32 %v684_v27, %v683_v26  ;;  %v686_v30 = vpop.f32.mrb[2].mxu0 }
 0x109   : > { %v687_v31 = vpop.f32.mrb[3].mxu0 }
 0x10a   : > { %v457_v32 = vadd.f32 %v685_v29, %v637_v28  ;;  %v688_v33 = vadd.f32 %v687_v31, %v686_v30 }
 0x10c   : > { %v498_v34 = vadd.f32 %v497_v22, %v457_v32  ;;  %v460_v35 = vadd.f32 %v688_v33, %v637_v28 }
 0x10e   : > { %v504_v36 = vmax.f32 %v498_v34, 0.0  ;;  %v501_v37 = vadd.f32 %v500_v24, %v460_v35 }
 0x110   : > { %v665_v38 = vpack.c.bf16 %v504_v36, %v504_v36  ;;  %v505_v39 = vmax.f32 %v501_v37, 0.0 }
 0x112   : > { %515 = vst.msk [vmem:[%s245_s30] sm:$0xf] %vm514_vm2, %v665_v38  ;;  %v666_v40 = vpack.c.bf16 %v505_v39, %v505_v39 }
 0x114   : > { %516 = vst.msk [vmem:[%s245_s30 + $0x4] sm:$0xf] %vm514_vm2, %v666_v40 }
 0x115 PF: > { %s13_s14 = sadd.s32 1, %s772_s14   ;;  %s865_s12 = smov %s768_s13 }
 0x116   : > { %p10_p5 = scmp.ge.s32.totalorder %s13_s14, 34   ;;  %s866_s13 = smov %s868_s15 }
 0x118   :  { %12 = sbr.rel (!%p10_p5) target bundleno = 2 (0x2), region = 68 }

// kernel: forward.62
= control target key start
LH: loop header
LB: loop body
LE: loop exit
PB: predicated region body
PF: predicated region fallthrough
CT: control target
= control target key end

     0   :  { %s552_s12 = smov 0   ;;  %s554_s13 = smov 0   ;;  %s591_s0 = inlined_call_operand.vmem [shape: bf16[32,16,32], index: 0, kind: input, shape index: {}]   ;;  %s592_s1 = inlined_call_operand.vmem [shape: bf16[32,32,32], index: 1, kind: input, shape index: {}]   ;;  %s593_s2 = inlined_call_operand.vmem [shape: f32[32,1,32], index: 2, kind: input, shape index: {}]   ;;  %s594_s3 = inlined_call_operand.vmem [shape: bf16[32,16,32], index: 3, kind: output, shape index: {}]  }
   0x1   :  { %s556_s14 = smov 0  }
   0x2 LB: > { %s25_s15 = sadd.s32 1, %s524_s13  ;;  %p445_p0 = scmp.ge.s32.totalorder %s528_s14, 1  ;;  %s528_s14 = sphi %s556_s14, %s13_s14   ;;  %s524_s13 = sphi %s554_s13, %s596_s13   ;;  %s520_s12 = sphi %s552_s12, %s595_s12  }
   0x3   : > { %p27_p1 = scmp.ge.s32.totalorder %s25_s15, 32  ;;  %p176_p2 = scmp.lt.s32.totalorder %s528_s14, 33 }
   0x5   : > { %s598_s15 = smov (%p27_p1, %s25_s15), 0  ;;  %p177_p3 = pnand %p445_p0, %p176_p2 }
   0x6   : > { %p217_p4 = scmp.lt.s32.totalorder (!%p177_p3), %s520_s12, 31  ;;  %v530_v0 = vmov (!%p177_p3), 0.0   ;;  %vm531_vm0 = vmmov (!%p177_p3), 0   ;;  %vm275_vm1 = vcmask (!%p177_p3), 261120   ;;  %vm330_vm2 = vcmask (!%p177_p3), 257024  }
   0x7   : > { %180 = sbr.rel (%p177_p3) target bundleno = 246 (0xf6), region = 32  ;;  %469 = vmatprep.subr.bf16.mxu0 (!%p177_p3), %v530_v0  ;;  %473 = vmatprep.mubr.msk.bf16.mxu0 (!%p177_p3), %vm531_vm0, %v530_v0 }
   0xe   : > { %s600_s12 = smov (!%p217_p4, %s520_s12), 31 }
   0xf   : > { %s462_s16 = sshll.u32 %s600_s12, 4  ;;  %s461_s17 = sshll.u32 %s600_s12, 3 }
  0x10   : > { %s230_s20 = scalar_lea.vmem %s592_s1, %s462_s16  ;;  %s224_s23 = scalar_lea.vmem %s591_s0, %s461_s17 }
  0x11   : > { %v503_v1 = vld [vmem:[%s230_s20] sm:$0xff]   ;;  %v504_v2 = vld [vmem:[%s230_s20 + $0x8] sm:$0xff]   ;;  %s233_s26 = scalar_lea.vmem %s593_s2, %s600_s12  ;;  %s242_s29 = scalar_lea.vmem %s594_s3, %s461_s17 }
  0x12   : > { %470 = vmatpush3.bf16.msra.mxu0 %v503_v1  ;;  %v505_v3 = vld [vmem:[%s224_s23] sm:$0xff]  }
  0x13   : > { %471 = vmatprep.subr.bf16.mxu0 %v530_v0  ;;  %v452_v4 = vld [vmem:[%s233_s26] ss:$0 sm:$0xff] }
  0x16   : > { %472 = vmatpush3.bf16.msra.mxu0 %v504_v2 }
  0x19   : > { %474 = vmatmul.mubr.msk.bf16.vlgmr.msra.gmra.mrb[0].mxu0 %vm275_vm1, %v505_v3 }
  0xec   : > { %v313_v5 = vpop.f32.mrb[0].mxu0 }
  0xed   : > { %v314_v6 = vadd.f32 %v452_v4, %v313_v5  ;;  %v475_v7 = vpop.f32.mrb[1].mxu0 }
  0xee   : > { %v316_v8 = vpop.f32.mrb[2].mxu0 }
  0xef   : > { %v320_v9 = vmax.f32 %v314_v6, 0.0  ;;  %v317_v10 = vadd.f32 %v452_v4, %v316_v8  ;;  %v476_v11 = vpop.f32.mrb[3].mxu0 }
  0xf1   : > { %v464_v12 = vpack.c.bf16 %v320_v9, %v320_v9  ;;  %v321_v13 = vmax.f32 %v317_v10, 0.0 }
  0xf3   : > { %331 = vst.msk [vmem:[%s242_s29] sm:$0xf] %vm330_vm2, %v464_v12  ;;  %v465_v14 = vpack.c.bf16 %v321_v13, %v321_v13 }
  0xf5   : > { %332 = vst.msk [vmem:[%s242_s29 + $0x4] sm:$0xf] %vm330_vm2, %v465_v14 }
  0xf6 PF: > { %s13_s14 = sadd.s32 1, %s528_s14   ;;  %s595_s12 = smov %s524_s13 }
  0xf7   : > { %p10_p5 = scmp.ge.s32.totalorder %s13_s14, 34   ;;  %s596_s13 = smov %s598_s15 }
  0xf9   :  { %12 = sbr.rel (!%p10_p5) target bundleno = 2 (0x2), region = 68 }

// kernel: forward.64
= control target key start
LH: loop header
LB: loop body
LE: loop exit
PB: predicated region body
PF: predicated region fallthrough
CT: control target
= control target key end

     0   :  { %s552_s12 = smov 0   ;;  %s554_s13 = smov 0   ;;  %s591_s0 = inlined_call_operand.vmem [shape: bf16[32,16,32], index: 0, kind: input, shape index: {}]   ;;  %s592_s1 = inlined_call_operand.vmem [shape: bf16[32,32,16], index: 1, kind: input, shape index: {}]   ;;  %s593_s2 = inlined_call_operand.vmem [shape: f32[32,1,16], index: 2, kind: input, shape index: {}]   ;;  %s594_s3 = inlined_call_operand.vmem [shape: bf16[32,16,16], index: 3, kind: output, shape index: {}]  }
   0x1   :  { %s556_s14 = smov 0  }
   0x2 LB: > { %s25_s15 = sadd.s32 1, %s524_s13  ;;  %p445_p0 = scmp.ge.s32.totalorder %s528_s14, 1  ;;  %s528_s14 = sphi %s556_s14, %s13_s14   ;;  %s524_s13 = sphi %s554_s13, %s596_s13   ;;  %s520_s12 = sphi %s552_s12, %s595_s12  }
   0x3   : > { %p27_p1 = scmp.ge.s32.totalorder %s25_s15, 32  ;;  %p176_p2 = scmp.lt.s32.totalorder %s528_s14, 33 }
   0x5   : > { %s598_s15 = smov (%p27_p1, %s25_s15), 0  ;;  %p177_p3 = pnand %p445_p0, %p176_p2 }
   0x6   : > { %p217_p4 = scmp.lt.s32.totalorder (!%p177_p3), %s520_s12, 31  ;;  %v530_v0 = vmov (!%p177_p3), 0.0   ;;  %vm531_vm0 = vmmov (!%p177_p3), 0   ;;  %vm275_vm1 = vcmask (!%p177_p3), 261120   ;;  %vm330_vm2 = vcmask (!%p177_p3), 125952  }
   0x7   : > { %180 = sbr.rel (%p177_p3) target bundleno = 246 (0xf6), region = 32  ;;  %469 = vmatprep.subr.bf16.mxu0 (!%p177_p3), %v530_v0  ;;  %473 = vmatprep.mubr.msk.bf16.mxu0 (!%p177_p3), %vm531_vm0, %v530_v0 }
   0xe   : > { %s600_s12 = smov (!%p217_p4, %s520_s12), 31 }
   0xf   : > { %s462_s16 = sshll.u32 %s600_s12, 4  ;;  %s461_s17 = sshll.u32 %s600_s12, 3 }
  0x10   : > { %s230_s20 = scalar_lea.vmem %s592_s1, %s462_s16  ;;  %s224_s23 = scalar_lea.vmem %s591_s0, %s461_s17 }
  0x11   : > { %v503_v1 = vld [vmem:[%s230_s20] sm:$0xff]   ;;  %v504_v2 = vld [vmem:[%s230_s20 + $0x8] sm:$0xff]   ;;  %s233_s26 = scalar_lea.vmem %s593_s2, %s600_s12  ;;  %s242_s29 = scalar_lea.vmem %s594_s3, %s461_s17 }
  0x12   : > { %470 = vmatpush3.bf16.msra.mxu0 %v503_v1  ;;  %v505_v3 = vld [vmem:[%s224_s23] sm:$0xff]  }
  0x13   : > { %471 = vmatprep.subr.bf16.mxu0 %v530_v0  ;;  %v452_v4 = vld [vmem:[%s233_s26] ss:$0 sm:$0xff] }
  0x16   : > { %472 = vmatpush3.bf16.msra.mxu0 %v504_v2 }
  0x19   : > { %474 = vmatmul.mubr.msk.bf16.vlgmr.msra.gmra.mrb[0].mxu0 %vm275_vm1, %v505_v3 }
  0xec   : > { %v313_v5 = vpop.f32.mrb[0].mxu0 }
  0xed   : > { %v314_v6 = vadd.f32 %v452_v4, %v313_v5  ;;  %v475_v7 = vpop.f32.mrb[1].mxu0 }
  0xee   : > { %v316_v8 = vpop.f32.mrb[2].mxu0 }
  0xef   : > { %v320_v9 = vmax.f32 %v314_v6, 0.0  ;;  %v317_v10 = vadd.f32 %v452_v4, %v316_v8  ;;  %v476_v11 = vpop.f32.mrb[3].mxu0 }
  0xf1   : > { %v464_v12 = vpack.c.bf16 %v320_v9, %v320_v9  ;;  %v321_v13 = vmax.f32 %v317_v10, 0.0 }
  0xf3   : > { %331 = vst.msk [vmem:[%s242_s29] sm:$0xf] %vm330_vm2, %v464_v12  ;;  %v465_v14 = vpack.c.bf16 %v321_v13, %v321_v13 }
  0xf5   : > { %332 = vst.msk [vmem:[%s242_s29 + $0x4] sm:$0xf] %vm330_vm2, %v465_v14 }
  0xf6 PF: > { %s13_s14 = sadd.s32 1, %s528_s14   ;;  %s595_s12 = smov %s524_s13 }
  0xf7   : > { %p10_p5 = scmp.ge.s32.totalorder %s13_s14, 34   ;;  %s596_s13 = smov %s598_s15 }
  0xf9   :  { %12 = sbr.rel (!%p10_p5) target bundleno = 2 (0x2), region = 68 }

// kernel: forward.68
= control target key start
LH: loop header
LB: loop body
LE: loop exit
PB: predicated region body
PF: predicated region fallthrough
CT: control target
= control target key end

     0   :  { %s539_s12 = smov 0   ;;  %s541_s13 = smov 0   ;;  %s578_s0 = inlined_call_operand.vmem [shape: bf16[32,16,16], index: 0, kind: input, shape index: {}]   ;;  %s579_s1 = inlined_call_operand.vmem [shape: bf16[32,16,16], index: 1, kind: input, shape index: {}]   ;;  %s580_s2 = inlined_call_operand.vmem [shape: f32[32,1,16], index: 2, kind: input, shape index: {}]   ;;  %s581_s3 = inlined_call_operand.vmem [shape: bf16[32,16,16], index: 3, kind: output, shape index: {}]  }
   0x1   :  { %s543_s14 = smov 0  }
   0x2 LB: > { %s25_s15 = sadd.s32 1, %s511_s13  ;;  %p437_p0 = scmp.ge.s32.totalorder %s515_s14, 1  ;;  %s515_s14 = sphi %s543_s14, %s13_s14   ;;  %s511_s13 = sphi %s541_s13, %s583_s13   ;;  %s507_s12 = sphi %s539_s12, %s582_s12  }
   0x3   : > { %p27_p1 = scmp.ge.s32.totalorder %s25_s15, 32  ;;  %p176_p2 = scmp.lt.s32.totalorder %s515_s14, 33 }
   0x5   : > { %s585_s15 = smov (%p27_p1, %s25_s15), 0  ;;  %p177_p3 = pnand %p437_p0, %p176_p2 }
   0x6   : > { %p217_p4 = scmp.lt.s32.totalorder (!%p177_p3), %s507_s12, 31  ;;  %v517_v0 = vmov (!%p177_p3), 0.0   ;;  %vm518_vm0 = vmmov (!%p177_p3), 0   ;;  %vm267_vm1 = vcmask (!%p177_p3), 130048   ;;  %vm322_vm2 = vcmask (!%p177_p3), 125952  }
   0x7   : > { %180 = sbr.rel (%p177_p3) target bundleno = 242 (0xf2), region = 32  ;;  %459 = vmatprep.subr.bf16.mxu0 (!%p177_p3), %v517_v0  ;;  %461 = vmatprep.mubr.msk.bf16.mxu0 (!%p177_p3), %vm518_vm0, %v517_v0 }
   0xe   : > { %s587_s12 = smov (!%p217_p4, %s507_s12), 31 }
   0xf   : > { %s452_s16 = sshll.u32 %s587_s12, 3  ;;  %s233_s25 = scalar_lea.vmem %s580_s2, %s587_s12 }
  0x10   : > { %s224_s19 = scalar_lea.vmem %s578_s0, %s452_s16  ;;  %s230_s22 = scalar_lea.vmem %s579_s1, %s452_s16  ;;  %v444_v3 = vld [vmem:[%s233_s25] ss:$0 sm:$0xff] }
  0x11   : > { %v491_v1 = vld [vmem:[%s230_s22] sm:$0xff]   ;;  %s242_s28 = scalar_lea.vmem %s581_s3, %s452_s16 }
  0x12   : > { %v492_v2 = vld [vmem:[%s224_s19] sm:$0xff]   ;;  %460 = vmatpush3.bf16.msra.mxu0 %v491_v1 }
  0x15   : > { %462 = vmatmul.mubr.msk.bf16.vlgmr.msra.gmra.mrb[0].mxu0 %vm267_vm1, %v492_v2 }
  0xe8   : > { %v305_v4 = vpop.f32.mrb[0].mxu0 }
  0xe9   : > { %v306_v5 = vadd.f32 %v444_v3, %v305_v4  ;;  %v463_v6 = vpop.f32.mrb[1].mxu0 }
  0xea   : > { %v308_v7 = vpop.f32.mrb[2].mxu0 }
  0xeb   : > { %v312_v8 = vmax.f32 %v306_v5, 0.0  ;;  %v309_v9 = vadd.f32 %v444_v3, %v308_v7  ;;  %v464_v10 = vpop.f32.mrb[3].mxu0 }
  0xed   : > { %v455_v11 = vpack.c.bf16 %v312_v8, %v312_v8  ;;  %v313_v12 = vmax.f32 %v309_v9, 0.0 }
  0xef   : > { %323 = vst.msk [vmem:[%s242_s28] sm:$0xf] %vm322_vm2, %v455_v11  ;;  %v456_v13 = vpack.c.bf16 %v313_v12, %v313_v12 }
  0xf1   : > { %324 = vst.msk [vmem:[%s242_s28 + $0x4] sm:$0xf] %vm322_vm2, %v456_v13 }
  0xf2 PF: > { %s13_s14 = sadd.s32 1, %s515_s14   ;;  %s582_s12 = smov %s511_s13 }
  0xf3   : > { %p10_p5 = scmp.ge.s32.totalorder %s13_s14, 34   ;;  %s583_s13 = smov %s585_s15 }
  0xf5   :  { %12 = sbr.rel (!%p10_p5) target bundleno = 2 (0x2), region = 68 }

// kernel: forward.69
= control target key start
LH: loop header
LB: loop body
LE: loop exit
PB: predicated region body
PF: predicated region fallthrough
CT: control target
= control target key end

     0   :  { %s683_s12 = smov 0   ;;  %s685_s13 = smov 0   ;;  %s745_s0 = inlined_call_operand.vmem [shape: bf16[32,32,144], index: 0, kind: input, shape index: {}]   ;;  %s746_s1 = inlined_call_operand.vmem [shape: bf16[32,144,16], index: 1, kind: input, shape index: {}]   ;;  %s747_s2 = inlined_call_operand.vmem [shape: f32[32,1,16], index: 2, kind: input, shape index: {}]   ;;  %s748_s3 = inlined_call_operand.vmem [shape: bf16[32,32,16], index: 3, kind: output, shape index: {}]  }
   0x1   :  { %s687_s14 = smov 0  }
   0x2 LB: > { %s25_s15 = sadd.s32 1, %s656_s13  ;;  %p545_p0 = scmp.ge.s32.totalorder %s660_s14, 1  ;;  %s660_s14 = sphi %s687_s14, %s13_s14   ;;  %s656_s13 = sphi %s685_s13, %s750_s13   ;;  %s652_s12 = sphi %s683_s12, %s749_s12  }
   0x3   : > { %p27_p1 = scmp.ge.s32.totalorder %s25_s15, 32  ;;  %p177_p2 = scmp.lt.s32.totalorder %s660_s14, 33 }
   0x5   : > { %s752_s15 = smov (%p27_p1, %s25_s15), 0  ;;  %p178_p3 = pnand %p545_p0, %p177_p2 }
   0x6   : > { %p219_p4 = scmp.lt.s32.totalorder (!%p178_p3), %s652_s12, 31  ;;  %v662_v0 = vmov (!%p178_p3), 0   ;;  %vm349_vm0 = vcmask (!%p178_p3), 130048   ;;  %vm425_vm1 = vcmask (!%p178_p3), 125952  }
   0x7   : > { %181 = sbr.rel (%p178_p3) target bundleno = 275 (0x113), region = 32  ;;  %356 = vmatprep.subr.bf16.mxu0 (!%p178_p3), %v662_v0  ;;  %579 = vmatprep.subr.bf16.mxu1 (!%p178_p3), %v662_v0 }
   0xe   : > { %s754_s12 = smov (!%p219_p4, %s652_s12), 31 }
   0xf   : > { %s597_s16 = smul.u32 72, %s754_s12  ;;  %s573_s17 = sshll.u32 %s754_s12, 5 }
  0x10   : > { %s708_s20 = scalar_lea.vmem %s745_s0, %s573_s17  ;;  %s236_s26 = scalar_lea.vmem %s747_s2, %s754_s12 }
  0x11   : > { %s713_s23 = scalar_lea.vmem %s746_s1, %s597_s16  ;;  %v634_v4 = vld [vmem:[%s708_s20 + $0x4] ss:$8 sps:$4 sm:$0xff]   ;;  %v637_v6 = vld [vmem:[%s708_s20 + $0x14] ss:$8 sps:$4 sm:$0xff]   ;;  %v632_v12 = vld [vmem:[%s708_s20] ss:$8 sps:$4 sm:$0xff]  }
  0x12   : > { %v623_v1 = vld [vmem:[%s713_s23] sm:$0xff]   ;;  %v624_v2 = vld [vmem:[%s713_s23 + $0x8] sm:$0xff]   ;;  %v625_v3 = vld [vmem:[%s713_s23 + $0x10] sm:$0xff]   ;;  %565 = vmatprep.mubr.msk.bf16.mxu0 %vm349_vm0, %v634_v4  ;;  %566 = vmatprep.mubr.msk.bf16.mxu1 %vm349_vm0, %v637_v6  ;;  %s574_s27 = sshll.u32 %s754_s12, 4 }
  0x13   : > { %357 = vmatpush1.bf16.msra.mxu0 %v623_v1  ;;  %588 = vmatpush1.bf16.msra.mxu1 %v623_v1  ;;  %v626_v5 = vld [vmem:[%s713_s23 + $0x18] sm:$0xff]   ;;  %v627_v7 = vld [vmem:[%s713_s23 + $0x20] sm:$0xff]   ;;  %v628_v8 = vld [vmem:[%s713_s23 + $0x28] sm:$0xff]   ;;  %s245_s30 = scalar_lea.vmem %s748_s3, %s574_s27 }
  0x14   : > { %358 = vmatprep.subr.bf16.mxu0 %v662_v0  ;;  %580 = vmatprep.subr.bf16.mxu1 %v662_v0  ;;  %v629_v9 = vld [vmem:[%s713_s23 + $0x30] sm:$0xff]   ;;  %v630_v10 = vld [vmem:[%s713_s23 + $0x38] sm:$0xff]   ;;  %v631_v11 = vld [vmem:[%s713_s23 + $0x40] sm:$0xff]  }
  0x15   : > { %v635_v13 = vld [vmem:[%s708_s20 + $0x10] ss:$8 sps:$4 sm:$0xff]   ;;  %v551_v14 = vld [vmem:[%s236_s26] ss:$0 sm:$0xff] }
  0x17   : > { %359 = vmatpush1.bf16.msra.mxu0 %v624_v2  ;;  %589 = vmatpush1.bf16.msra.mxu1 %v624_v2 }
  0x18   : > { %360 = vmatprep.subr.bf16.mxu0 %v662_v0  ;;  %581 = vmatprep.subr.bf16.mxu1 %v662_v0 }
  0x1b   : > { %361 = vmatpush1.bf16.msra.mxu0 %v625_v3  ;;  %590 = vmatpush1.bf16.msra.mxu1 %v625_v3 }
  0x1c   : > { %362 = vmatprep.subr.bf16.mxu0 %v662_v0  ;;  %582 = vmatprep.subr.bf16.mxu1 %v662_v0 }
  0x1f   : > { %363 = vmatpush1.bf16.msra.mxu0 %v626_v5  ;;  %591 = vmatpush1.bf16.msra.mxu1 %v626_v5 }
  0x20   : > { %364 = vmatprep.subr.bf16.mxu0 %v662_v0  ;;  %583 = vmatprep.subr.bf16.mxu1 %v662_v0 }
  0x23   : > { %365 = vmatpush1.bf16.msra.mxu0 %v627_v7  ;;  %592 = vmatpush1.bf16.msra.mxu1 %v627_v7 }
  0x24   : > { %366 = vmatprep.subr.bf16.mxu0 %v662_v0  ;;  %584 = vmatprep.subr.bf16.mxu1 %v662_v0 }
  0x27   : > { %367 = vmatpush1.bf16.msra.mxu0 %v628_v8  ;;  %593 = vmatpush1.bf16.msra.mxu1 %v628_v8 }
  0x28   : > { %368 = vmatprep.subr.bf16.mxu0 %v662_v0  ;;  %585 = vmatprep.subr.bf16.mxu1 %v662_v0 }
  0x2b   : > { %369 = vmatpush1.bf16.msra.mxu0 %v629_v9  ;;  %594 = vmatpush1.bf16.msra.mxu1 %v629_v9 }
  0x2c   : > { %370 = vmatprep.subr.bf16.mxu0 %v662_v0  ;;  %586 = vmatprep.subr.bf16.mxu1 %v662_v0 }
  0x2f   : > { %371 = vmatpush1.bf16.msra.mxu0 %v630_v10  ;;  %595 = vmatpush1.bf16.msra.mxu1 %v630_v10 }
  0x30   : > { %372 = vmatprep.subr.bf16.mxu0 %v662_v0  ;;  %587 = vmatprep.subr.bf16.mxu1 %v662_v0 }
  0x33   : > { %373 = vmatpush1.bf16.msra.mxu0 %v631_v11  ;;  %596 = vmatpush1.bf16.msra.mxu1 %v631_v11 }
  0x36   : > { %389 = vmatmul.mubr.bf16.vlgmr.msra.gmra.mrb[0].mxu0 %v632_v12  ;;  %397 = vmatmul.mubr.bf16.vlgmr.msra.gmra.mrb[0].mxu1 %v635_v13 }
 0x109   : > { %v390_v15 = vpop.f32.mrb[0].mxu0  ;;  %v398_v16 = vpop.f32.mrb[0].mxu1 }
 0x10a   : > { %v391_v17 = vadd.f32 %v551_v14, %v390_v15  ;;  %v399_v18 = vadd.f32 %v551_v14, %v398_v16  ;;  %v392_v19 = vpop.f32.mrb[1].mxu0  ;;  %v400_v20 = vpop.f32.mrb[1].mxu1 }
 0x10b   : > { %v393_v21 = vpop.f32.mrb[2].mxu0  ;;  %v401_v22 = vpop.f32.mrb[2].mxu1 }
 0x10c   : > { %v405_v23 = vmax.f32 %v391_v17, 0.0  ;;  %v407_v24 = vmax.f32 %v399_v18, 0.0  ;;  %v394_v25 = vadd.f32 %v551_v14, %v393_v21  ;;  %v402_v26 = vadd.f32 %v551_v14, %v401_v22  ;;  %v395_v27 = vpop.f32.mrb[3].mxu0  ;;  %v403_v28 = vpop.f32.mrb[3].mxu1 }
 0x10e   : > { %v575_v29 = vpack.c.bf16 %v405_v23, %v405_v23  ;;  %v577_v30 = vpack.c.bf16 %v407_v24, %v407_v24  ;;  %v406_v31 = vmax.f32 %v394_v25, 0.0  ;;  %v408_v32 = vmax.f32 %v402_v26, 0.0 }
 0x110   : > { %426 = vst.msk [vmem:[%s245_s30] sm:$0xf] %vm425_vm1, %v575_v29  ;;  %428 = vst.msk [vmem:[%s245_s30 + $0x8] sm:$0xf] %vm425_vm1, %v577_v30  ;;  %v576_v33 = vpack.c.bf16 %v406_v31, %v406_v31  ;;  %v578_v34 = vpack.c.bf16 %v408_v32, %v408_v32 }
 0x112   : > { %427 = vst.msk [vmem:[%s245_s30 + $0x4] sm:$0xf] %vm425_vm1, %v576_v33  ;;  %429 = vst.msk [vmem:[%s245_s30 + $0xc] sm:$0xf] %vm425_vm1, %v578_v34 }
 0x113 PF: > { %s13_s14 = sadd.s32 1, %s660_s14   ;;  %s749_s12 = smov %s656_s13 }
 0x114   : > { %p10_p5 = scmp.ge.s32.totalorder %s13_s14, 34   ;;  %s750_s13 = smov %s752_s15 }
 0x116   :  { %12 = sbr.rel (!%p10_p5) target bundleno = 2 (0x2), region = 68 }

// kernel: forward.70
= control target key start
LH: loop header
LB: loop body
LE: loop exit
PB: predicated region body
PF: predicated region fallthrough
CT: control target
= control target key end

     0   :  { %s586_s12 = smov 0   ;;  %s588_s13 = smov 0   ;;  %s625_s0 = inlined_call_operand.vmem [shape: bf16[16,32,32], index: 0, kind: input, shape index: {}]   ;;  %s626_s1 = inlined_call_operand.vmem [shape: bf16[16,32,16], index: 1, kind: input, shape index: {}]   ;;  %s627_s2 = inlined_call_operand.vmem [shape: f32[16,1,16], index: 2, kind: input, shape index: {}]   ;;  %s628_s3 = inlined_call_operand.vmem [shape: bf16[16,32,16], index: 3, kind: output, shape index: {}]  }
   0x1   :  { %s590_s14 = smov 0  }
   0x2 LB: > { %s25_s15 = sadd.s32 1, %s560_s13  ;;  %p475_p0 = scmp.ge.s32.totalorder %s564_s14, 1  ;;  %s564_s14 = sphi %s590_s14, %s13_s14   ;;  %s560_s13 = sphi %s588_s13, %s630_s13   ;;  %s556_s12 = sphi %s586_s12, %s629_s12  }
   0x3   : > { %p27_p1 = scmp.ge.s32.totalorder %s25_s15, 16  ;;  %p176_p2 = scmp.lt.s32.totalorder %s564_s14, 17 }
   0x5   : > { %s632_s15 = smov (%p27_p1, %s25_s15), 0  ;;  %p177_p3 = pnand %p475_p0, %p176_p2 }
   0x6   : > { %p217_p4 = scmp.lt.s32.totalorder (!%p177_p3), %s556_s12, 15  ;;  %vm282_vm0 = vcmask (!%p177_p3), 261120   ;;  %vm358_vm1 = vcmask (!%p177_p3), 125952  }
   0x7   : > { %180 = sbr.rel (%p177_p3) target bundleno = 248 (0xf8), region = 32 }
   0xe   : > { %s634_s12 = smov (!%p217_p4, %s556_s12), 15 }
   0xf   : > { %s495_s16 = sshll.u32 %s634_s12, 4  ;;  %s233_s25 = scalar_lea.vmem %s627_s2, %s634_s12 }
  0x10   : > { %s230_s19 = scalar_lea.vmem %s626_s1, %s495_s16  ;;  %s224_s22 = scalar_lea.vmem %s625_s0, %s495_s16  ;;  %v482_v4 = vld [vmem:[%s233_s25] ss:$0 sm:$0xff] }
  0x11   : > { %v538_v0 = vld [vmem:[%s230_s19] sm:$0xff]   ;;  %v539_v1 = vld [vmem:[%s230_s19 + $0x8] sm:$0xff]   ;;  %s242_s28 = scalar_lea.vmem %s628_s3, %s495_s16 }
  0x12   : > { %506 = vmatprep.subr.bf16.mxu0 %v538_v0  ;;  %v540_v2 = vld [vmem:[%s224_s22] sm:$0xff]   ;;  %v541_v3 = vld [vmem:[%s224_s22 + $0x8] sm:$0xff]  }
  0x13   : > { %507 = vmatpush3.bf16.msra.mxu0 %v538_v0  ;;  %510 = vmatprep.mubr.msk.bf16.mxu0 %vm282_vm0, %v540_v2 }
  0x14   : > { %508 = vmatprep.subr.bf16.mxu0 %v539_v1 }
  0x17   : > { %509 = vmatpush3.bf16.msra.mxu0 %v539_v1 }
  0x1a   : > { %511 = vmatmul.mubr.msk.bf16.vlgmr.msra.gmra.mrb[0].mxu0 %vm282_vm0, %v541_v3 }
  0xed   : > { %v512_v5 = vpop.f32.mrb[0].mxu0 }
  0xee   : > { %v332_v6 = vadd.f32 %v512_v5, %v482_v4  ;;  %v323_v7 = vpop.f32.mrb[1].mxu0 }
  0xef   : > { %v324_v8 = vadd.f32 %v482_v4, %v323_v7  ;;  %v513_v9 = vpop.f32.mrb[2].mxu0 }
  0xf0   : > { %v340_v10 = vmax.f32 %v332_v6, 0.0  ;;  %v335_v11 = vadd.f32 %v513_v9, %v482_v4  ;;  %v326_v12 = vpop.f32.mrb[3].mxu0 }
  0xf1   : > { %v338_v13 = vmax.f32 %v324_v8, 0.0  ;;  %v327_v14 = vadd.f32 %v482_v4, %v326_v12 }
  0xf2   : > { %v500_v15 = vpack.c.bf16 %v340_v10, %v340_v10  ;;  %v341_v16 = vmax.f32 %v335_v11, 0.0 }
  0xf3   : > { %v498_v17 = vpack.c.bf16 %v338_v13, %v338_v13  ;;  %v339_v18 = vmax.f32 %v327_v14, 0.0 }
  0xf4   : > { %361 = vst.msk [vmem:[%s242_s28 + $0x8] sm:$0xf] %vm358_vm1, %v500_v15  ;;  %v501_v19 = vpack.c.bf16 %v341_v16, %v341_v16 }
  0xf5   : > { %359 = vst.msk [vmem:[%s242_s28] sm:$0xf] %vm358_vm1, %v498_v17  ;;  %v499_v20 = vpack.c.bf16 %v339_v18, %v339_v18 }
  0xf6   : > { %362 = vst.msk [vmem:[%s242_s28 + $0xc] sm:$0xf] %vm358_vm1, %v501_v19 }
  0xf7   : > { %360 = vst.msk [vmem:[%s242_s28 + $0x4] sm:$0xf] %vm358_vm1, %v499_v20 }
  0xf8 PF: > { %s13_s14 = sadd.s32 1, %s564_s14   ;;  %s629_s12 = smov %s560_s13 }
  0xf9   : > { %p10_p5 = scmp.ge.s32.totalorder %s13_s14, 18   ;;  %s630_s13 = smov %s632_s15 }
  0xfb   :  { %12 = sbr.rel (!%p10_p5) target bundleno = 2 (0x2), region = 68 }

// kernel: forward.75
= control target key start
LH: loop header
LB: loop body
LE: loop exit
PB: predicated region body
PF: predicated region fallthrough
CT: control target
= control target key end

     0   :  { %s947_s12 = smov 0   ;;  %s949_s13 = smov 0   ;;  %s1081_s0 = inlined_call_operand.vmem [shape: bf16[16,128,144], index: 0, kind: input, shape index: {}]   ;;  %s1082_s1 = inlined_call_operand.vmem [shape: bf16[16,144,16], index: 1, kind: input, shape index: {}]   ;;  %s1083_s2 = inlined_call_operand.vmem [shape: f32[16,1,16], index: 2, kind: input, shape index: {}]   ;;  %s1084_s3 = inlined_call_operand.vmem [shape: bf16[16,128,16], index: 3, kind: output, shape index: {}]  }
   0x1   :  { %s951_s14 = smov 0  }
   0x2 LB: > { %s25_s15 = sadd.s32 1, %s920_s13  ;;  %p749_p0 = scmp.ge.s32.totalorder %s924_s14, 1  ;;  %s924_s14 = sphi %s951_s14, %s13_s14   ;;  %s920_s13 = sphi %s949_s13, %s1086_s13   ;;  %s916_s12 = sphi %s947_s12, %s1085_s12  }
   0x3   : > { %p27_p1 = scmp.ge.s32.totalorder %s25_s15, 16  ;;  %p177_p2 = scmp.lt.s32.totalorder %s924_s14, 17 }
   0x5   : > { %s1088_s15 = smov (%p27_p1, %s25_s15), 0  ;;  %p178_p3 = pnand %p749_p0, %p177_p2 }
   0x6   : > { %p219_p4 = scmp.lt.s32.totalorder (!%p178_p3), %s916_s12, 15  ;;  %v926_v0 = vmov (!%p178_p3), 0   ;;  %vm415_vm0 = vcmask (!%p178_p3), 130048   ;;  %vm617_vm1 = vcmask (!%p178_p3), 125952  }
   0x7   : > { %181 = sbr.rel (%p178_p3) target bundleno = 299 (0x12b), region = 32  ;;  %440 = vmatprep.subr.bf16.mxu0 (!%p178_p3), %v926_v0  ;;  %825 = vmatprep.subr.bf16.mxu1 (!%p178_p3), %v926_v0 }
   0xe   : > { %s1090_s12 = smov (!%p219_p4, %s916_s12), 15 }
   0xf   : > { %s843_s16 = smul.u32 72, %s1090_s12  ;;  %s807_s17 = sshll.u32 %s1090_s12, 7 }
  0x10   : > { %s972_s20 = scalar_lea.vmem %s1081_s0, %s807_s17  ;;  %s236_s26 = scalar_lea.vmem %s1083_s2, %s1090_s12 }
  0x11   : > { %s977_s23 = scalar_lea.vmem %s1082_s1, %s843_s16  ;;  %v880_v4 = vld [vmem:[%s972_s20 + $0x4] ss:$8 sps:$4 sm:$0xff]   ;;  %v878_v12 = vld [vmem:[%s972_s20] ss:$8 sps:$4 sm:$0xff]   ;;  %v884_v14 = vld [vmem:[%s972_s20 + $0x14] ss:$8 sps:$4 sm:$0xff]  }
  0x12   : > { %v869_v1 = vld [vmem:[%s977_s23] sm:$0xff]   ;;  %v870_v2 = vld [vmem:[%s977_s23 + $0x8] sm:$0xff]   ;;  %v871_v3 = vld [vmem:[%s977_s23 + $0x10] sm:$0xff]   ;;  %781 = vmatprep.mubr.msk.bf16.mxu0 %vm415_vm0, %v880_v4  ;;  %s808_s27 = sshll.u32 %s1090_s12, 6 }
  0x13   : > { %441 = vmatpush1.bf16.msra.mxu0 %v869_v1  ;;  %834 = vmatpush1.bf16.msra.mxu1 %v869_v1  ;;  %v872_v5 = vld [vmem:[%s977_s23 + $0x18] sm:$0xff]   ;;  %v883_v6 = vld [vmem:[%s972_s20 + $0x44] ss:$8 sps:$4 sm:$0xff]   ;;  %v875_v9 = vld [vmem:[%s977_s23 + $0x30] sm:$0xff]   ;;  %s1026_s30 = scalar_lea.vmem %s1084_s3, %s808_s27 }
  0x14   : > { %442 = vmatprep.subr.bf16.mxu0 %v926_v0  ;;  %826 = vmatprep.subr.bf16.mxu1 %v926_v0  ;;  %v873_v7 = vld [vmem:[%s977_s23 + $0x20] sm:$0xff]   ;;  %v874_v8 = vld [vmem:[%s977_s23 + $0x28] sm:$0xff]   ;;  %v876_v10 = vld [vmem:[%s977_s23 + $0x38] sm:$0xff]  }
  0x15   : > { %785 = vmatprep.mubr.msk.bf16.mxu1 %vm415_vm0, %v883_v6  ;;  %v877_v11 = vld [vmem:[%s977_s23 + $0x40] sm:$0xff]   ;;  %v886_v15 = vld [vmem:[%s972_s20 + $0x54] ss:$8 sps:$4 sm:$0xff]   ;;  %v888_v16 = vld [vmem:[%s972_s20 + $0x10] ss:$8 sps:$4 sm:$0xff]  }
  0x16   : > { %v881_v13 = vld [vmem:[%s972_s20 + $0x40] ss:$8 sps:$4 sm:$0xff]   ;;  %v889_v17 = vld [vmem:[%s972_s20 + $0x50] ss:$8 sps:$4 sm:$0xff]   ;;  %v890_v18 = vld [vmem:[%s972_s20 + $0x24] ss:$8 sps:$4 sm:$0xff]  }
  0x17   : > { %443 = vmatpush1.bf16.msra.mxu0 %v870_v2  ;;  %835 = vmatpush1.bf16.msra.mxu1 %v870_v2  ;;  %v892_v19 = vld [vmem:[%s972_s20 + $0x64] ss:$8 sps:$4 sm:$0xff]   ;;  %v894_v20 = vld [vmem:[%s972_s20 + $0x20] ss:$8 sps:$4 sm:$0xff]   ;;  %v896_v22 = vld [vmem:[%s972_s20 + $0x34] ss:$8 sps:$4 sm:$0xff]  }
  0x18   : > { %444 = vmatprep.subr.bf16.mxu0 %v926_v0  ;;  %827 = vmatprep.subr.bf16.mxu1 %v926_v0  ;;  %v895_v21 = vld [vmem:[%s972_s20 + $0x60] ss:$8 sps:$4 sm:$0xff]   ;;  %v898_v23 = vld [vmem:[%s972_s20 + $0x74] ss:$8 sps:$4 sm:$0xff]   ;;  %v900_v24 = vld [vmem:[%s972_s20 + $0x30] ss:$8 sps:$4 sm:$0xff]  }
  0x19   : > { %v901_v25 = vld [vmem:[%s972_s20 + $0x70] ss:$8 sps:$4 sm:$0xff]   ;;  %v1016_v26 = vld [vmem:[%s236_s26] ss:$0 sm:$0xff] }
  0x1b   : > { %445 = vmatpush1.bf16.msra.mxu0 %v871_v3  ;;  %836 = vmatpush1.bf16.msra.mxu1 %v871_v3 }
  0x1c   : > { %446 = vmatprep.subr.bf16.mxu0 %v926_v0  ;;  %828 = vmatprep.subr.bf16.mxu1 %v926_v0 }
  0x1f   : > { %447 = vmatpush1.bf16.msra.mxu0 %v872_v5  ;;  %837 = vmatpush1.bf16.msra.mxu1 %v872_v5 }
  0x20   : > { %448 = vmatprep.subr.bf16.mxu0 %v926_v0  ;;  %829 = vmatprep.subr.bf16.mxu1 %v926_v0 }
  0x23   : > { %449 = vmatpush1.bf16.msra.mxu0 %v873_v7  ;;  %838 = vmatpush1.bf16.msra.mxu1 %v873_v7 }
  0x24   : > { %450 = vmatprep.subr.bf16.mxu0 %v926_v0  ;;  %830 = vmatprep.subr.bf16.mxu1 %v926_v0 }
  0x27   : > { %451 = vmatpush1.bf16.msra.mxu0 %v874_v8  ;;  %839 = vmatpush1.bf16.msra.mxu1 %v874_v8 }
  0x28   : > { %452 = vmatprep.subr.bf16.mxu0 %v926_v0  ;;  %831 = vmatprep.subr.bf16.mxu1 %v926_v0 }
  0x2b   : > { %453 = vmatpush1.bf16.msra.mxu0 %v875_v9  ;;  %840 = vmatpush1.bf16.msra.mxu1 %v875_v9 }
  0x2c   : > { %454 = vmatprep.subr.bf16.mxu0 %v926_v0  ;;  %832 = vmatprep.subr.bf16.mxu1 %v926_v0 }
  0x2f   : > { %455 = vmatpush1.bf16.msra.mxu0 %v876_v10  ;;  %841 = vmatpush1.bf16.msra.mxu1 %v876_v10 }
  0x30   : > { %456 = vmatprep.subr.bf16.mxu0 %v926_v0  ;;  %833 = vmatprep.subr.bf16.mxu1 %v926_v0 }
  0x33   : > { %457 = vmatpush1.bf16.msra.mxu0 %v877_v11  ;;  %842 = vmatpush1.bf16.msra.mxu1 %v877_v11 }
  0x36   : > { %473 = vmatmul.mubr.bf16.vlgmr.msra.gmra.mrb[0].mxu0 %v878_v12  ;;  %505 = vmatmul.mubr.bf16.vlgmr.msra.gmra.mrb[0].mxu1 %v881_v13 }
  0x37   : > { %782 = vmatprep.mubr.msk.bf16.mxu0 %vm415_vm0, %v884_v14  ;;  %786 = vmatprep.mubr.msk.bf16.mxu1 %vm415_vm0, %v886_v15 }
  0x3e   : > { %481 = vmatmul.mubr.bf16.gmra.mrb[4].mxu0 %v888_v16  ;;  %513 = vmatmul.mubr.bf16.gmra.mrb[4].mxu1 %v889_v17 }
  0x3f   : > { %783 = vmatprep.mubr.msk.bf16.mxu0 %vm415_vm0, %v890_v18  ;;  %787 = vmatprep.mubr.msk.bf16.mxu1 %vm415_vm0, %v892_v19 }
  0x46   : > { %489 = vmatmul.mubr.bf16.gmra.mrb[8].mxu0 %v894_v20  ;;  %521 = vmatmul.mubr.bf16.gmra.mrb[8].mxu1 %v895_v21 }
  0x47   : > { %784 = vmatprep.mubr.msk.bf16.mxu0 %vm415_vm0, %v896_v22  ;;  %788 = vmatprep.mubr.msk.bf16.mxu1 %vm415_vm0, %v898_v23 }
  0x4e   : > { %497 = vmatmul.mubr.bf16.gmra.mrb[12].mxu0 %v900_v24  ;;  %529 = vmatmul.mubr.bf16.gmra.mrb[12].mxu1 %v901_v25 }
 0x109   : > { %v474_v27 = vpop.f32.mrb[0].mxu0  ;;  %v506_v28 = vpop.f32.mrb[0].mxu1 }
 0x10a   : > { %v475_v29 = vadd.f32 %v1016_v26, %v474_v27  ;;  %v507_v30 = vadd.f32 %v1016_v26, %v506_v28  ;;  %v476_v31 = vpop.f32.mrb[1].mxu0  ;;  %v508_v32 = vpop.f32.mrb[1].mxu1 }
 0x10b   : > { %v477_v33 = vpop.f32.mrb[2].mxu0  ;;  %v509_v34 = vpop.f32.mrb[2].mxu1 }
 0x10c   : > { %v537_v35 = vmax.f32 %v475_v29, 0.0  ;;  %v545_v36 = vmax.f32 %v507_v30, 0.0  ;;  %v478_v37 = vadd.f32 %v1016_v26, %v477_v33  ;;  %v510_v38 = vadd.f32 %v1016_v26, %v509_v34  ;;  %v479_v39 = vpop.f32.mrb[3].mxu0  ;;  %v511_v40 = vpop.f32.mrb[3].mxu1 }
 0x10e   : > { %v809_v41 = vpack.c.bf16 %v537_v35, %v537_v35  ;;  %v817_v42 = vpack.c.bf16 %v545_v36, %v545_v36  ;;  %v538_v43 = vmax.f32 %v478_v37, 0.0  ;;  %v546_v44 = vmax.f32 %v510_v38, 0.0 }
 0x110   : > { %618 = vst.msk [vmem:[%s1026_s30] sm:$0xf] %vm617_vm1, %v809_v41  ;;  %626 = vst.msk [vmem:[%s1026_s30 + $0x20] sm:$0xf] %vm617_vm1, %v817_v42  ;;  %v810_v45 = vpack.c.bf16 %v538_v43, %v538_v43  ;;  %v818_v46 = vpack.c.bf16 %v546_v44, %v546_v44 }
 0x111   : > { %v482_v47 = vpop.f32.mrb[4].mxu0  ;;  %v514_v48 = vpop.f32.mrb[4].mxu1 }
 0x112   : > { %619 = vst.msk [vmem:[%s1026_s30 + $0x4] sm:$0xf] %vm617_vm1, %v810_v45  ;;  %627 = vst.msk [vmem:[%s1026_s30 + $0x24] sm:$0xf] %vm617_vm1, %v818_v46  ;;  %v483_v49 = vadd.f32 %v1016_v26, %v482_v47  ;;  %v515_v50 = vadd.f32 %v1016_v26, %v514_v48  ;;  %v484_v51 = vpop.f32.mrb[5].mxu0  ;;  %v516_v52 = vpop.f32.mrb[5].mxu1 }
 0x113   : > { %v485_v53 = vpop.f32.mrb[6].mxu0  ;;  %v517_v54 = vpop.f32.mrb[6].mxu1 }
 0x114   : > { %v539_v55 = vmax.f32 %v483_v49, 0.0  ;;  %v547_v56 = vmax.f32 %v515_v50, 0.0  ;;  %v486_v57 = vadd.f32 %v1016_v26, %v485_v53  ;;  %v518_v58 = vadd.f32 %v1016_v26, %v517_v54  ;;  %v487_v59 = vpop.f32.mrb[7].mxu0  ;;  %v519_v60 = vpop.f32.mrb[7].mxu1 }
 0x116   : > { %v811_v61 = vpack.c.bf16 %v539_v55, %v539_v55  ;;  %v819_v62 = vpack.c.bf16 %v547_v56, %v547_v56  ;;  %v540_v63 = vmax.f32 %v486_v57, 0.0  ;;  %v548_v0 = vmax.f32 %v518_v58, 0.0 }
 0x118   : > { %620 = vst.msk [vmem:[%s1026_s30 + $0x8] sm:$0xf] %vm617_vm1, %v811_v61  ;;  %628 = vst.msk [vmem:[%s1026_s30 + $0x28] sm:$0xf] %vm617_vm1, %v819_v62  ;;  %v812_v1 = vpack.c.bf16 %v540_v63, %v540_v63  ;;  %v820_v2 = vpack.c.bf16 %v548_v0, %v548_v0 }
 0x119   : > { %v490_v3 = vpop.f32.mrb[8].mxu0  ;;  %v522_v4 = vpop.f32.mrb[8].mxu1 }
 0x11a   : > { %621 = vst.msk [vmem:[%s1026_s30 + $0xc] sm:$0xf] %vm617_vm1, %v812_v1  ;;  %629 = vst.msk [vmem:[%s1026_s30 + $0x2c] sm:$0xf] %vm617_vm1, %v820_v2  ;;  %v491_v5 = vadd.f32 %v1016_v26, %v490_v3  ;;  %v523_v6 = vadd.f32 %v1016_v26, %v522_v4  ;;  %v492_v7 = vpop.f32.mrb[9].mxu0  ;;  %v524_v8 = vpop.f32.mrb[9].mxu1 }
 0x11b   : > { %v493_v9 = vpop.f32.mrb[10].mxu0  ;;  %v525_v10 = vpop.f32.mrb[10].mxu1 }
 0x11c   : > { %v541_v11 = vmax.f32 %v491_v5, 0.0  ;;  %v549_v12 = vmax.f32 %v523_v6, 0.0  ;;  %v494_v13 = vadd.f32 %v1016_v26, %v493_v9  ;;  %v526_v14 = vadd.f32 %v1016_v26, %v525_v10  ;;  %v495_v15 = vpop.f32.mrb[11].mxu0  ;;  %v527_v16 = vpop.f32.mrb[11].mxu1 }
 0x11e   : > { %v813_v17 = vpack.c.bf16 %v541_v11, %v541_v11  ;;  %v821_v18 = vpack.c.bf16 %v549_v12, %v549_v12  ;;  %v542_v19 = vmax.f32 %v494_v13, 0.0  ;;  %v550_v20 = vmax.f32 %v526_v14, 0.0 }
 0x120   : > { %622 = vst.msk [vmem:[%s1026_s30 + $0x10] sm:$0xf] %vm617_vm1, %v813_v17  ;;  %630 = vst.msk [vmem:[%s1026_s30 + $0x30] sm:$0xf] %vm617_vm1, %v821_v18  ;;  %v814_v21 = vpack.c.bf16 %v542_v19, %v542_v19  ;;  %v822_v22 = vpack.c.bf16 %v550_v20, %v550_v20 }
 0x121   : > { %v498_v23 = vpop.f32.mrb[12].mxu0  ;;  %v530_v24 = vpop.f32.mrb[12].mxu1 }
 0x122   : > { %623 = vst.msk [vmem:[%s1026_s30 + $0x14] sm:$0xf] %vm617_vm1, %v814_v21  ;;  %631 = vst.msk [vmem:[%s1026_s30 + $0x34] sm:$0xf] %vm617_vm1, %v822_v22  ;;  %v499_v25 = vadd.f32 %v1016_v26, %v498_v23  ;;  %v531_v27 = vadd.f32 %v1016_v26, %v530_v24  ;;  %v500_v28 = vpop.f32.mrb[13].mxu0  ;;  %v532_v29 = vpop.f32.mrb[13].mxu1 }
 0x123   : > { %v501_v30 = vpop.f32.mrb[14].mxu0  ;;  %v533_v31 = vpop.f32.mrb[14].mxu1 }
 0x124   : > { %v543_v32 = vmax.f32 %v499_v25, 0.0  ;;  %v551_v33 = vmax.f32 %v531_v27, 0.0  ;;  %v502_v34 = vadd.f32 %v1016_v26, %v501_v30  ;;  %v534_v35 = vadd.f32 %v1016_v26, %v533_v31  ;;  %v503_v36 = vpop.f32.mrb[15].mxu0  ;;  %v535_v37 = vpop.f32.mrb[15].mxu1 }
 0x126   : > { %v815_v38 = vpack.c.bf16 %v543_v32, %v543_v32  ;;  %v823_v39 = vpack.c.bf16 %v551_v33, %v551_v33  ;;  %v544_v40 = vmax.f32 %v502_v34, 0.0  ;;  %v552_v41 = vmax.f32 %v534_v35, 0.0 }
 0x128   : > { %624 = vst.msk [vmem:[%s1026_s30 + $0x18] sm:$0xf] %vm617_vm1, %v815_v38  ;;  %632 = vst.msk [vmem:[%s1026_s30 + $0x38] sm:$0xf] %vm617_vm1, %v823_v39  ;;  %v816_v42 = vpack.c.bf16 %v544_v40, %v544_v40  ;;  %v824_v43 = vpack.c.bf16 %v552_v41, %v552_v41 }
 0x12a   : > { %625 = vst.msk [vmem:[%s1026_s30 + $0x1c] sm:$0xf] %vm617_vm1, %v816_v42  ;;  %633 = vst.msk [vmem:[%s1026_s30 + $0x3c] sm:$0xf] %vm617_vm1, %v824_v43 }
 0x12b PF: > { %s13_s14 = sadd.s32 1, %s924_s14   ;;  %s1085_s12 = smov %s920_s13 }
 0x12c   : > { %p10_p5 = scmp.ge.s32.totalorder %s13_s14, 18   ;;  %s1086_s13 = smov %s1088_s15 }
 0x12e   :  { %12 = sbr.rel (!%p10_p5) target bundleno = 2 (0x2), region = 68 }

// kernel: forward.76
= control target key start
LH: loop header
LB: loop body
LE: loop exit
PB: predicated region body
PF: predicated region fallthrough
CT: control target
= control target key end

     0   :  { %s815_s12 = smov 0   ;;  %s817_s13 = smov 0   ;;  %s923_s0 = inlined_call_operand.vmem [shape: bf16[16,128,16], index: 0, kind: input, shape index: {}]   ;;  %s924_s1 = inlined_call_operand.vmem [shape: bf16[16,16,8], index: 1, kind: input, shape index: {}]   ;;  %s925_s2 = inlined_call_operand.vmem [shape: f32[16,1,8], index: 2, kind: input, shape index: {}]   ;;  %s926_s3 = inlined_call_operand.vmem [shape: bf16[16,128,8], index: 3, kind: output, shape index: {}]  }
   0x1   :  { %s819_s14 = smov 0  }
   0x2 LB: > { %s25_s15 = sadd.s32 1, %s789_s13  ;;  %p647_p0 = scmp.ge.s32.totalorder %s793_s14, 1  ;;  %s793_s14 = sphi %s819_s14, %s13_s14   ;;  %s789_s13 = sphi %s817_s13, %s928_s13   ;;  %s785_s12 = sphi %s815_s12, %s927_s12  }
   0x3   : > { %p27_p1 = scmp.ge.s32.totalorder %s25_s15, 16  ;;  %p176_p2 = scmp.lt.s32.totalorder %s793_s14, 17 }
   0x5   : > { %s930_s15 = smov (%p27_p1, %s25_s15), 0  ;;  %p177_p3 = pnand %p647_p0, %p176_p2 }
   0x6   : > { %p217_p4 = scmp.lt.s32.totalorder (!%p177_p3), %s785_s12, 15  ;;  %vm316_vm0 = vcmask (!%p177_p3), 130048   ;;  %vm518_vm1 = vcmask (!%p177_p3), 60416  }
   0x7   : > { %180 = sbr.rel (%p177_p3) target bundleno = 252 (0xfc), region = 32 }
   0xe   : > { %s932_s12 = smov (!%p217_p4, %s785_s12), 15 }
   0xf   : > { %s690_s16 = sshll.u32 %s932_s12, 6  ;;  %s691_s17 = sshll.u32 %s932_s12, 3 }
  0x10   : > { %s224_s20 = scalar_lea.vmem %s923_s0, %s690_s16  ;;  %s230_s23 = scalar_lea.vmem %s924_s1, %s691_s17 }
  0x11   : > { %v762_v0 = vld [vmem:[%s230_s23] sm:$0xff]   ;;  %v765_v3 = vld [vmem:[%s224_s20 + $0x8] sm:$0xff]   ;;  %v767_v5 = vld [vmem:[%s224_s20 + $0x10] sm:$0xff]   ;;  %s233_s26 = scalar_lea.vmem %s925_s2, %s932_s12  ;;  %s869_s29 = scalar_lea.vmem %s926_s3, %s690_s16 }
  0x12   : > { %718 = vmatprep.subr.bf16.mxu0 %v762_v0  ;;  %736 = vmatprep.subr.bf16.mxu1 %v762_v0  ;;  %v763_v1 = vld [vmem:[%s224_s20] sm:$0xff]   ;;  %v766_v4 = vld [vmem:[%s224_s20 + $0x28] sm:$0xff]   ;;  %v768_v6 = vld [vmem:[%s224_s20 + $0x30] sm:$0xff]  }
  0x13   : > { %719 = vmatpush3.bf16.msra.mxu0 %v762_v0  ;;  %737 = vmatpush3.bf16.msra.mxu1 %v762_v0  ;;  %v764_v2 = vld [vmem:[%s224_s20 + $0x20] sm:$0xff]   ;;  %v769_v7 = vld [vmem:[%s224_s20 + $0x18] sm:$0xff]  }
  0x14   : > { %720 = vmatprep.mubr.msk.bf16.mxu0 %vm316_vm0, %v763_v1  ;;  %728 = vmatprep.mubr.msk.bf16.mxu1 %vm316_vm0, %v764_v2  ;;  %v770_v8 = vld [vmem:[%s224_s20 + $0x38] sm:$0xff]   ;;  %v857_v9 = vld [vmem:[%s233_s26] ss:$0 sm:$0xff] }
  0x16   : > { %721 = vmatmul.mubr.msk.bf16.vlgmr.msra.gmra.mrb[0].mxu0 %vm316_vm0, %v765_v3  ;;  %729 = vmatmul.mubr.msk.bf16.vlgmr.msra.gmra.mrb[0].mxu1 %vm316_vm0, %v766_v4 }
  0x17   : > { %724 = vmatprep.mubr.msk.bf16.mxu0 %vm316_vm0, %v767_v5  ;;  %732 = vmatprep.mubr.msk.bf16.mxu1 %vm316_vm0, %v768_v6 }
  0x1e   : > { %725 = vmatmul.mubr.msk.bf16.gmra.mrb[4].mxu0 %vm316_vm0, %v769_v7  ;;  %733 = vmatmul.mubr.msk.bf16.gmra.mrb[4].mxu1 %vm316_vm0, %v770_v8 }
  0xe9   : > { %v722_v10 = vpop.f32.mrb[0].mxu0  ;;  %v730_v12 = vpop.f32.mrb[0].mxu1 }
  0xea   : > { %v384_v11 = vadd.f32 %v722_v10, %v857_v9  ;;  %v375_v13 = vpop.f32.mrb[1].mxu0  ;;  %v416_v14 = vadd.f32 %v730_v12, %v857_v9  ;;  %v407_v16 = vpop.f32.mrb[1].mxu1 }
  0xeb   : > { %v376_v15 = vadd.f32 %v857_v9, %v375_v13  ;;  %v723_v17 = vpop.f32.mrb[2].mxu0  ;;  %v408_v19 = vadd.f32 %v857_v9, %v407_v16  ;;  %v731_v21 = vpop.f32.mrb[2].mxu1 }
  0xec   : > { %v440_v18 = vmax.f32 %v384_v11, 0.0  ;;  %v387_v20 = vadd.f32 %v723_v17, %v857_v9  ;;  %v378_v22 = vpop.f32.mrb[3].mxu0  ;;  %v448_v23 = vmax.f32 %v416_v14, 0.0  ;;  %v419_v25 = vadd.f32 %v731_v21, %v857_v9  ;;  %v410_v27 = vpop.f32.mrb[3].mxu1 }
  0xed   : > { %v438_v24 = vmax.f32 %v376_v15, 0.0  ;;  %v379_v26 = vadd.f32 %v857_v9, %v378_v22  ;;  %v446_v29 = vmax.f32 %v408_v19, 0.0  ;;  %v411_v31 = vadd.f32 %v857_v9, %v410_v27 }
  0xee   : > { %v695_v28 = vpack.c.bf16 %v440_v18, %v440_v18  ;;  %v441_v30 = vmax.f32 %v387_v20, 0.0  ;;  %v703_v32 = vpack.c.bf16 %v448_v23, %v448_v23  ;;  %v449_v34 = vmax.f32 %v419_v25, 0.0 }
  0xef   : > { %v693_v33 = vpack.c.bf16 %v438_v24, %v438_v24  ;;  %v439_v35 = vmax.f32 %v379_v26, 0.0  ;;  %v701_v36 = vpack.c.bf16 %v446_v29, %v446_v29  ;;  %v447_v38 = vmax.f32 %v411_v31, 0.0 }
  0xf0   : > { %521 = vst.msk [vmem:[%s869_s29 + $0x8] sm:$0xf] %vm518_vm1, %v695_v28  ;;  %v696_v37 = vpack.c.bf16 %v441_v30, %v441_v30  ;;  %529 = vst.msk [vmem:[%s869_s29 + $0x28] sm:$0xf] %vm518_vm1, %v703_v32  ;;  %v704_v39 = vpack.c.bf16 %v449_v34, %v449_v34 }
  0xf1   : > { %519 = vst.msk [vmem:[%s869_s29] sm:$0xf] %vm518_vm1, %v693_v33  ;;  %v694_v40 = vpack.c.bf16 %v439_v35, %v439_v35  ;;  %v726_v41 = vpop.f32.mrb[4].mxu0  ;;  %527 = vst.msk [vmem:[%s869_s29 + $0x20] sm:$0xf] %vm518_vm1, %v701_v36  ;;  %v702_v42 = vpack.c.bf16 %v447_v38, %v447_v38  ;;  %v734_v44 = vpop.f32.mrb[4].mxu1 }
  0xf2   : > { %522 = vst.msk [vmem:[%s869_s29 + $0xc] sm:$0xf] %vm518_vm1, %v696_v37  ;;  %v400_v43 = vadd.f32 %v726_v41, %v857_v9  ;;  %v391_v45 = vpop.f32.mrb[5].mxu0  ;;  %530 = vst.msk [vmem:[%s869_s29 + $0x2c] sm:$0xf] %vm518_vm1, %v704_v39  ;;  %v432_v46 = vadd.f32 %v734_v44, %v857_v9  ;;  %v423_v48 = vpop.f32.mrb[5].mxu1 }
  0xf3   : > { %520 = vst.msk [vmem:[%s869_s29 + $0x4] sm:$0xf] %vm518_vm1, %v694_v40  ;;  %v392_v47 = vadd.f32 %v857_v9, %v391_v45  ;;  %v727_v49 = vpop.f32.mrb[6].mxu0  ;;  %528 = vst.msk [vmem:[%s869_s29 + $0x24] sm:$0xf] %vm518_vm1, %v702_v42  ;;  %v424_v51 = vadd.f32 %v857_v9, %v423_v48  ;;  %v735_v53 = vpop.f32.mrb[6].mxu1 }
  0xf4   : > { %v444_v50 = vmax.f32 %v400_v43, 0.0  ;;  %v403_v52 = vadd.f32 %v727_v49, %v857_v9  ;;  %v394_v54 = vpop.f32.mrb[7].mxu0  ;;  %v452_v55 = vmax.f32 %v432_v46, 0.0  ;;  %v435_v57 = vadd.f32 %v735_v53, %v857_v9  ;;  %v426_v59 = vpop.f32.mrb[7].mxu1 }
  0xf5   : > { %v442_v56 = vmax.f32 %v392_v47, 0.0  ;;  %v395_v58 = vadd.f32 %v857_v9, %v394_v54  ;;  %v450_v61 = vmax.f32 %v424_v51, 0.0  ;;  %v427_v63 = vadd.f32 %v857_v9, %v426_v59 }
  0xf6   : > { %v699_v60 = vpack.c.bf16 %v444_v50, %v444_v50  ;;  %v445_v62 = vmax.f32 %v403_v52, 0.0  ;;  %v707_v0 = vpack.c.bf16 %v452_v55, %v452_v55  ;;  %v453_v2 = vmax.f32 %v435_v57, 0.0 }
  0xf7   : > { %v697_v1 = vpack.c.bf16 %v442_v56, %v442_v56  ;;  %v443_v3 = vmax.f32 %v395_v58, 0.0  ;;  %v705_v4 = vpack.c.bf16 %v450_v61, %v450_v61  ;;  %v451_v6 = vmax.f32 %v427_v63, 0.0 }
  0xf8   : > { %525 = vst.msk [vmem:[%s869_s29 + $0x18] sm:$0xf] %vm518_vm1, %v699_v60  ;;  %v700_v5 = vpack.c.bf16 %v445_v62, %v445_v62  ;;  %533 = vst.msk [vmem:[%s869_s29 + $0x38] sm:$0xf] %vm518_vm1, %v707_v0  ;;  %v708_v7 = vpack.c.bf16 %v453_v2, %v453_v2 }
  0xf9   : > { %523 = vst.msk [vmem:[%s869_s29 + $0x10] sm:$0xf] %vm518_vm1, %v697_v1  ;;  %v698_v8 = vpack.c.bf16 %v443_v3, %v443_v3  ;;  %531 = vst.msk [vmem:[%s869_s29 + $0x30] sm:$0xf] %vm518_vm1, %v705_v4  ;;  %v706_v9 = vpack.c.bf16 %v451_v6, %v451_v6 }
  0xfa   : > { %526 = vst.msk [vmem:[%s869_s29 + $0x1c] sm:$0xf] %vm518_vm1, %v700_v5  ;;  %534 = vst.msk [vmem:[%s869_s29 + $0x3c] sm:$0xf] %vm518_vm1, %v708_v7 }
  0xfb   : > { %524 = vst.msk [vmem:[%s869_s29 + $0x14] sm:$0xf] %vm518_vm1, %v698_v8  ;;  %532 = vst.msk [vmem:[%s869_s29 + $0x34] sm:$0xf] %vm518_vm1, %v706_v9 }
  0xfc PF: > { %s13_s14 = sadd.s32 1, %s793_s14   ;;  %s927_s12 = smov %s789_s13 }
  0xfd   : > { %p10_p5 = scmp.ge.s32.totalorder %s13_s14, 18   ;;  %s928_s13 = smov %s930_s15 }
  0xff   :  { %12 = sbr.rel (!%p10_p5) target bundleno = 2 (0x2), region = 68 }

// kernel: forward.79
= control target key start
LH: loop header
LB: loop body
LE: loop exit
PB: predicated region body
PF: predicated region fallthrough
CT: control target
= control target key end

     0   :  { %s947_s12 = smov 0   ;;  %s949_s13 = smov 0   ;;  %s1081_s0 = inlined_call_operand.vmem [shape: bf16[8,128,144], index: 0, kind: input, shape index: {}]   ;;  %s1082_s1 = inlined_call_operand.vmem [shape: bf16[8,144,16], index: 1, kind: input, shape index: {}]   ;;  %s1083_s2 = inlined_call_operand.vmem [shape: f32[8,1,16], index: 2, kind: input, shape index: {}]   ;;  %s1084_s3 = inlined_call_operand.vmem [shape: bf16[8,128,16], index: 3, kind: output, shape index: {}]  }
   0x1   :  { %s951_s14 = smov 0  }
   0x2 LB: > { %s25_s15 = sadd.s32 1, %s920_s13  ;;  %p749_p0 = scmp.ge.s32.totalorder %s924_s14, 1  ;;  %s924_s14 = sphi %s951_s14, %s13_s14   ;;  %s920_s13 = sphi %s949_s13, %s1086_s13   ;;  %s916_s12 = sphi %s947_s12, %s1085_s12  }
   0x3   : > { %p27_p1 = scmp.ge.s32.totalorder %s25_s15, 8  ;;  %p177_p2 = scmp.lt.s32.totalorder %s924_s14, 9 }
   0x5   : > { %s1088_s15 = smov (%p27_p1, %s25_s15), 0  ;;  %p178_p3 = pnand %p749_p0, %p177_p2 }
   0x6   : > { %p219_p4 = scmp.lt.s32.totalorder (!%p178_p3), %s916_s12, 7  ;;  %v926_v0 = vmov (!%p178_p3), 0   ;;  %vm415_vm0 = vcmask (!%p178_p3), 130048   ;;  %vm617_vm1 = vcmask (!%p178_p3), 125952  }
   0x7   : > { %181 = sbr.rel (%p178_p3) target bundleno = 299 (0x12b), region = 32  ;;  %440 = vmatprep.subr.bf16.mxu0 (!%p178_p3), %v926_v0  ;;  %825 = vmatprep.subr.bf16.mxu1 (!%p178_p3), %v926_v0 }
   0xe   : > { %s1090_s12 = smov (!%p219_p4, %s916_s12), 7 }
   0xf   : > { %s843_s16 = smul.u32 72, %s1090_s12  ;;  %s807_s17 = sshll.u32 %s1090_s12, 7 }
  0x10   : > { %s972_s20 = scalar_lea.vmem %s1081_s0, %s807_s17  ;;  %s236_s26 = scalar_lea.vmem %s1083_s2, %s1090_s12 }
  0x11   : > { %s977_s23 = scalar_lea.vmem %s1082_s1, %s843_s16  ;;  %v880_v4 = vld [vmem:[%s972_s20 + $0x4] ss:$8 sps:$4 sm:$0xff]   ;;  %v878_v12 = vld [vmem:[%s972_s20] ss:$8 sps:$4 sm:$0xff]   ;;  %v884_v14 = vld [vmem:[%s972_s20 + $0x14] ss:$8 sps:$4 sm:$0xff]  }
  0x12   : > { %v869_v1 = vld [vmem:[%s977_s23] sm:$0xff]   ;;  %v870_v2 = vld [vmem:[%s977_s23 + $0x8] sm:$0xff]   ;;  %v871_v3 = vld [vmem:[%s977_s23 + $0x10] sm:$0xff]   ;;  %781 = vmatprep.mubr.msk.bf16.mxu0 %vm415_vm0, %v880_v4  ;;  %s808_s27 = sshll.u32 %s1090_s12, 6 }
  0x13   : > { %441 = vmatpush1.bf16.msra.mxu0 %v869_v1  ;;  %834 = vmatpush1.bf16.msra.mxu1 %v869_v1  ;;  %v872_v5 = vld [vmem:[%s977_s23 + $0x18] sm:$0xff]   ;;  %v883_v6 = vld [vmem:[%s972_s20 + $0x44] ss:$8 sps:$4 sm:$0xff]   ;;  %v875_v9 = vld [vmem:[%s977_s23 + $0x30] sm:$0xff]   ;;  %s1026_s30 = scalar_lea.vmem %s1084_s3, %s808_s27 }
  0x14   : > { %442 = vmatprep.subr.bf16.mxu0 %v926_v0  ;;  %826 = vmatprep.subr.bf16.mxu1 %v926_v0  ;;  %v873_v7 = vld [vmem:[%s977_s23 + $0x20] sm:$0xff]   ;;  %v874_v8 = vld [vmem:[%s977_s23 + $0x28] sm:$0xff]   ;;  %v876_v10 = vld [vmem:[%s977_s23 + $0x38] sm:$0xff]  }
  0x15   : > { %785 = vmatprep.mubr.msk.bf16.mxu1 %vm415_vm0, %v883_v6  ;;  %v877_v11 = vld [vmem:[%s977_s23 + $0x40] sm:$0xff]   ;;  %v886_v15 = vld [vmem:[%s972_s20 + $0x54] ss:$8 sps:$4 sm:$0xff]   ;;  %v888_v16 = vld [vmem:[%s972_s20 + $0x10] ss:$8 sps:$4 sm:$0xff]  }
  0x16   : > { %v881_v13 = vld [vmem:[%s972_s20 + $0x40] ss:$8 sps:$4 sm:$0xff]   ;;  %v889_v17 = vld [vmem:[%s972_s20 + $0x50] ss:$8 sps:$4 sm:$0xff]   ;;  %v890_v18 = vld [vmem:[%s972_s20 + $0x24] ss:$8 sps:$4 sm:$0xff]  }
  0x17   : > { %443 = vmatpush1.bf16.msra.mxu0 %v870_v2  ;;  %835 = vmatpush1.bf16.msra.mxu1 %v870_v2  ;;  %v892_v19 = vld [vmem:[%s972_s20 + $0x64] ss:$8 sps:$4 sm:$0xff]   ;;  %v894_v20 = vld [vmem:[%s972_s20 + $0x20] ss:$8 sps:$4 sm:$0xff]   ;;  %v896_v22 = vld [vmem:[%s972_s20 + $0x34] ss:$8 sps:$4 sm:$0xff]  }
  0x18   : > { %444 = vmatprep.subr.bf16.mxu0 %v926_v0  ;;  %827 = vmatprep.subr.bf16.mxu1 %v926_v0  ;;  %v895_v21 = vld [vmem:[%s972_s20 + $0x60] ss:$8 sps:$4 sm:$0xff]   ;;  %v898_v23 = vld [vmem:[%s972_s20 + $0x74] ss:$8 sps:$4 sm:$0xff]   ;;  %v900_v24 = vld [vmem:[%s972_s20 + $0x30] ss:$8 sps:$4 sm:$0xff]  }
  0x19   : > { %v901_v25 = vld [vmem:[%s972_s20 + $0x70] ss:$8 sps:$4 sm:$0xff]   ;;  %v1016_v26 = vld [vmem:[%s236_s26] ss:$0 sm:$0xff] }
  0x1b   : > { %445 = vmatpush1.bf16.msra.mxu0 %v871_v3  ;;  %836 = vmatpush1.bf16.msra.mxu1 %v871_v3 }
  0x1c   : > { %446 = vmatprep.subr.bf16.mxu0 %v926_v0  ;;  %828 = vmatprep.subr.bf16.mxu1 %v926_v0 }
  0x1f   : > { %447 = vmatpush1.bf16.msra.mxu0 %v872_v5  ;;  %837 = vmatpush1.bf16.msra.mxu1 %v872_v5 }
  0x20   : > { %448 = vmatprep.subr.bf16.mxu0 %v926_v0  ;;  %829 = vmatprep.subr.bf16.mxu1 %v926_v0 }
  0x23   : > { %449 = vmatpush1.bf16.msra.mxu0 %v873_v7  ;;  %838 = vmatpush1.bf16.msra.mxu1 %v873_v7 }
  0x24   : > { %450 = vmatprep.subr.bf16.mxu0 %v926_v0  ;;  %830 = vmatprep.subr.bf16.mxu1 %v926_v0 }
  0x27   : > { %451 = vmatpush1.bf16.msra.mxu0 %v874_v8  ;;  %839 = vmatpush1.bf16.msra.mxu1 %v874_v8 }
  0x28   : > { %452 = vmatprep.subr.bf16.mxu0 %v926_v0  ;;  %831 = vmatprep.subr.bf16.mxu1 %v926_v0 }
  0x2b   : > { %453 = vmatpush1.bf16.msra.mxu0 %v875_v9  ;;  %840 = vmatpush1.bf16.msra.mxu1 %v875_v9 }
  0x2c   : > { %454 = vmatprep.subr.bf16.mxu0 %v926_v0  ;;  %832 = vmatprep.subr.bf16.mxu1 %v926_v0 }
  0x2f   : > { %455 = vmatpush1.bf16.msra.mxu0 %v876_v10  ;;  %841 = vmatpush1.bf16.msra.mxu1 %v876_v10 }
  0x30   : > { %456 = vmatprep.subr.bf16.mxu0 %v926_v0  ;;  %833 = vmatprep.subr.bf16.mxu1 %v926_v0 }
  0x33   : > { %457 = vmatpush1.bf16.msra.mxu0 %v877_v11  ;;  %842 = vmatpush1.bf16.msra.mxu1 %v877_v11 }
  0x36   : > { %473 = vmatmul.mubr.bf16.vlgmr.msra.gmra.mrb[0].mxu0 %v878_v12  ;;  %505 = vmatmul.mubr.bf16.vlgmr.msra.gmra.mrb[0].mxu1 %v881_v13 }
  0x37   : > { %782 = vmatprep.mubr.msk.bf16.mxu0 %vm415_vm0, %v884_v14  ;;  %786 = vmatprep.mubr.msk.bf16.mxu1 %vm415_vm0, %v886_v15 }
  0x3e   : > { %481 = vmatmul.mubr.bf16.gmra.mrb[4].mxu0 %v888_v16  ;;  %513 = vmatmul.mubr.bf16.gmra.mrb[4].mxu1 %v889_v17 }
  0x3f   : > { %783 = vmatprep.mubr.msk.bf16.mxu0 %vm415_vm0, %v890_v18  ;;  %787 = vmatprep.mubr.msk.bf16.mxu1 %vm415_vm0, %v892_v19 }
  0x46   : > { %489 = vmatmul.mubr.bf16.gmra.mrb[8].mxu0 %v894_v20  ;;  %521 = vmatmul.mubr.bf16.gmra.mrb[8].mxu1 %v895_v21 }
  0x47   : > { %784 = vmatprep.mubr.msk.bf16.mxu0 %vm415_vm0, %v896_v22  ;;  %788 = vmatprep.mubr.msk.bf16.mxu1 %vm415_vm0, %v898_v23 }
  0x4e   : > { %497 = vmatmul.mubr.bf16.gmra.mrb[12].mxu0 %v900_v24  ;;  %529 = vmatmul.mubr.bf16.gmra.mrb[12].mxu1 %v901_v25 }
 0x109   : > { %v474_v27 = vpop.f32.mrb[0].mxu0  ;;  %v506_v28 = vpop.f32.mrb[0].mxu1 }
 0x10a   : > { %v475_v29 = vadd.f32 %v1016_v26, %v474_v27  ;;  %v507_v30 = vadd.f32 %v1016_v26, %v506_v28  ;;  %v476_v31 = vpop.f32.mrb[1].mxu0  ;;  %v508_v32 = vpop.f32.mrb[1].mxu1 }
 0x10b   : > { %v477_v33 = vpop.f32.mrb[2].mxu0  ;;  %v509_v34 = vpop.f32.mrb[2].mxu1 }
 0x10c   : > { %v537_v35 = vmax.f32 %v475_v29, 0.0  ;;  %v545_v36 = vmax.f32 %v507_v30, 0.0  ;;  %v478_v37 = vadd.f32 %v1016_v26, %v477_v33  ;;  %v510_v38 = vadd.f32 %v1016_v26, %v509_v34  ;;  %v479_v39 = vpop.f32.mrb[3].mxu0  ;;  %v511_v40 = vpop.f32.mrb[3].mxu1 }
 0x10e   : > { %v809_v41 = vpack.c.bf16 %v537_v35, %v537_v35  ;;  %v817_v42 = vpack.c.bf16 %v545_v36, %v545_v36  ;;  %v538_v43 = vmax.f32 %v478_v37, 0.0  ;;  %v546_v44 = vmax.f32 %v510_v38, 0.0 }
 0x110   : > { %618 = vst.msk [vmem:[%s1026_s30] sm:$0xf] %vm617_vm1, %v809_v41  ;;  %626 = vst.msk [vmem:[%s1026_s30 + $0x20] sm:$0xf] %vm617_vm1, %v817_v42  ;;  %v810_v45 = vpack.c.bf16 %v538_v43, %v538_v43  ;;  %v818_v46 = vpack.c.bf16 %v546_v44, %v546_v44 }
 0x111   : > { %v482_v47 = vpop.f32.mrb[4].mxu0  ;;  %v514_v48 = vpop.f32.mrb[4].mxu1 }
 0x112   : > { %619 = vst.msk [vmem:[%s1026_s30 + $0x4] sm:$0xf] %vm617_vm1, %v810_v45  ;;  %627 = vst.msk [vmem:[%s1026_s30 + $0x24] sm:$0xf] %vm617_vm1, %v818_v46  ;;  %v483_v49 = vadd.f32 %v1016_v26, %v482_v47  ;;  %v515_v50 = vadd.f32 %v1016_v26, %v514_v48  ;;  %v484_v51 = vpop.f32.mrb[5].mxu0  ;;  %v516_v52 = vpop.f32.mrb[5].mxu1 }
 0x113   : > { %v485_v53 = vpop.f32.mrb[6].mxu0  ;;  %v517_v54 = vpop.f32.mrb[6].mxu1 }
 0x114   : > { %v539_v55 = vmax.f32 %v483_v49, 0.0  ;;  %v547_v56 = vmax.f32 %v515_v50, 0.0  ;;  %v486_v57 = vadd.f32 %v1016_v26, %v485_v53  ;;  %v518_v58 = vadd.f32 %v1016_v26, %v517_v54  ;;  %v487_v59 = vpop.f32.mrb[7].mxu0  ;;  %v519_v60 = vpop.f32.mrb[7].mxu1 }
 0x116   : > { %v811_v61 = vpack.c.bf16 %v539_v55, %v539_v55  ;;  %v819_v62 = vpack.c.bf16 %v547_v56, %v547_v56  ;;  %v540_v63 = vmax.f32 %v486_v57, 0.0  ;;  %v548_v0 = vmax.f32 %v518_v58, 0.0 }
 0x118   : > { %620 = vst.msk [vmem:[%s1026_s30 + $0x8] sm:$0xf] %vm617_vm1, %v811_v61  ;;  %628 = vst.msk [vmem:[%s1026_s30 + $0x28] sm:$0xf] %vm617_vm1, %v819_v62  ;;  %v812_v1 = vpack.c.bf16 %v540_v63, %v540_v63  ;;  %v820_v2 = vpack.c.bf16 %v548_v0, %v548_v0 }
 0x119   : > { %v490_v3 = vpop.f32.mrb[8].mxu0  ;;  %v522_v4 = vpop.f32.mrb[8].mxu1 }
 0x11a   : > { %621 = vst.msk [vmem:[%s1026_s30 + $0xc] sm:$0xf] %vm617_vm1, %v812_v1  ;;  %629 = vst.msk [vmem:[%s1026_s30 + $0x2c] sm:$0xf] %vm617_vm1, %v820_v2  ;;  %v491_v5 = vadd.f32 %v1016_v26, %v490_v3  ;;  %v523_v6 = vadd.f32 %v1016_v26, %v522_v4  ;;  %v492_v7 = vpop.f32.mrb[9].mxu0  ;;  %v524_v8 = vpop.f32.mrb[9].mxu1 }
 0x11b   : > { %v493_v9 = vpop.f32.mrb[10].mxu0  ;;  %v525_v10 = vpop.f32.mrb[10].mxu1 }
 0x11c   : > { %v541_v11 = vmax.f32 %v491_v5, 0.0  ;;  %v549_v12 = vmax.f32 %v523_v6, 0.0  ;;  %v494_v13 = vadd.f32 %v1016_v26, %v493_v9  ;;  %v526_v14 = vadd.f32 %v1016_v26, %v525_v10  ;;  %v495_v15 = vpop.f32.mrb[11].mxu0  ;;  %v527_v16 = vpop.f32.mrb[11].mxu1 }
 0x11e   : > { %v813_v17 = vpack.c.bf16 %v541_v11, %v541_v11  ;;  %v821_v18 = vpack.c.bf16 %v549_v12, %v549_v12  ;;  %v542_v19 = vmax.f32 %v494_v13, 0.0  ;;  %v550_v20 = vmax.f32 %v526_v14, 0.0 }
 0x120   : > { %622 = vst.msk [vmem:[%s1026_s30 + $0x10] sm:$0xf] %vm617_vm1, %v813_v17  ;;  %630 = vst.msk [vmem:[%s1026_s30 + $0x30] sm:$0xf] %vm617_vm1, %v821_v18  ;;  %v814_v21 = vpack.c.bf16 %v542_v19, %v542_v19  ;;  %v822_v22 = vpack.c.bf16 %v550_v20, %v550_v20 }
 0x121   : > { %v498_v23 = vpop.f32.mrb[12].mxu0  ;;  %v530_v24 = vpop.f32.mrb[12].mxu1 }
 0x122   : > { %623 = vst.msk [vmem:[%s1026_s30 + $0x14] sm:$0xf] %vm617_vm1, %v814_v21  ;;  %631 = vst.msk [vmem:[%s1026_s30 + $0x34] sm:$0xf] %vm617_vm1, %v822_v22  ;;  %v499_v25 = vadd.f32 %v1016_v26, %v498_v23  ;;  %v531_v27 = vadd.f32 %v1016_v26, %v530_v24  ;;  %v500_v28 = vpop.f32.mrb[13].mxu0  ;;  %v532_v29 = vpop.f32.mrb[13].mxu1 }
 0x123   : > { %v501_v30 = vpop.f32.mrb[14].mxu0  ;;  %v533_v31 = vpop.f32.mrb[14].mxu1 }
 0x124   : > { %v543_v32 = vmax.f32 %v499_v25, 0.0  ;;  %v551_v33 = vmax.f32 %v531_v27, 0.0  ;;  %v502_v34 = vadd.f32 %v1016_v26, %v501_v30  ;;  %v534_v35 = vadd.f32 %v1016_v26, %v533_v31  ;;  %v503_v36 = vpop.f32.mrb[15].mxu0  ;;  %v535_v37 = vpop.f32.mrb[15].mxu1 }
 0x126   : > { %v815_v38 = vpack.c.bf16 %v543_v32, %v543_v32  ;;  %v823_v39 = vpack.c.bf16 %v551_v33, %v551_v33  ;;  %v544_v40 = vmax.f32 %v502_v34, 0.0  ;;  %v552_v41 = vmax.f32 %v534_v35, 0.0 }
 0x128   : > { %624 = vst.msk [vmem:[%s1026_s30 + $0x18] sm:$0xf] %vm617_vm1, %v815_v38  ;;  %632 = vst.msk [vmem:[%s1026_s30 + $0x38] sm:$0xf] %vm617_vm1, %v823_v39  ;;  %v816_v42 = vpack.c.bf16 %v544_v40, %v544_v40  ;;  %v824_v43 = vpack.c.bf16 %v552_v41, %v552_v41 }
 0x12a   : > { %625 = vst.msk [vmem:[%s1026_s30 + $0x1c] sm:$0xf] %vm617_vm1, %v816_v42  ;;  %633 = vst.msk [vmem:[%s1026_s30 + $0x3c] sm:$0xf] %vm617_vm1, %v824_v43 }
 0x12b PF: > { %s13_s14 = sadd.s32 1, %s924_s14   ;;  %s1085_s12 = smov %s920_s13 }
 0x12c   : > { %p10_p5 = scmp.ge.s32.totalorder %s13_s14, 10   ;;  %s1086_s13 = smov %s1088_s15 }
 0x12e   :  { %12 = sbr.rel (!%p10_p5) target bundleno = 2 (0x2), region = 68 }

// kernel: forward.80
= control target key start
LH: loop header
LB: loop body
LE: loop exit
PB: predicated region body
PF: predicated region fallthrough
CT: control target
= control target key end

     0   :  { %s807_s12 = smov 0   ;;  %s809_s13 = smov 0   ;;  %s915_s0 = inlined_call_operand.vmem [shape: bf16[16,128,8], index: 0, kind: input, shape index: {}]   ;;  %s916_s1 = inlined_call_operand.vmem [shape: bf16[16,8,8], index: 1, kind: input, shape index: {}]   ;;  %s917_s2 = inlined_call_operand.vmem [shape: f32[16,1,8], index: 2, kind: input, shape index: {}]   ;;  %s918_s3 = inlined_call_operand.vmem [shape: bf16[16,128,8], index: 3, kind: output, shape index: {}]  }
   0x1   :  { %s811_s14 = smov 0  }
   0x2 LB: > { %s25_s15 = sadd.s32 1, %s781_s13  ;;  %p641_p0 = scmp.ge.s32.totalorder %s785_s14, 1  ;;  %s785_s14 = sphi %s811_s14, %s13_s14   ;;  %s781_s13 = sphi %s809_s13, %s920_s13   ;;  %s777_s12 = sphi %s807_s12, %s919_s12  }
   0x3   : > { %p27_p1 = scmp.ge.s32.totalorder %s25_s15, 16  ;;  %p175_p2 = scmp.lt.s32.totalorder %s785_s14, 17 }
   0x5   : > { %s922_s15 = smov (%p27_p1, %s25_s15), 0  ;;  %p176_p3 = pnand %p641_p0, %p175_p2 }
   0x6   : > { %p215_p4 = scmp.lt.s32.totalorder (!%p176_p3), %s777_s12, 15  ;;  %vm331_vm0 = vcmask (!%p176_p3), 1043456   ;;  %vm306_vm1 = vcmask (!%p176_p3), 64512   ;;  %vm512_vm2 = vcmask (!%p176_p3), 60416  }
   0x7   : > { %179 = sbr.rel (%p176_p3) target bundleno = 252 (0xfc), region = 32 }
   0xe   : > { %s924_s12 = smov (!%p215_p4, %s777_s12), 15 }
   0xf   : > { %s682_s16 = sshll.u32 %s924_s12, 6  ;;  %s644_s17 = sshll.u32 %s924_s12, 2 }
  0x10   : > { %s222_s20 = scalar_lea.vmem %s915_s0, %s682_s16  ;;  %s227_s23 = scalar_lea.vmem %s916_s1, %s644_s17 }
  0x11   : > { %v258_v0 = vld [vmem:[%s227_s23] sm:$0xf]  ;;  %v757_v4 = vld [vmem:[%s222_s20 + $0x8] sm:$0xff]   ;;  %v759_v6 = vld [vmem:[%s222_s20 + $0x10] sm:$0xff]   ;;  %s230_s26 = scalar_lea.vmem %s917_s2, %s924_s12  ;;  %s861_s29 = scalar_lea.vmem %s918_s3, %s682_s16 }
  0x12   : > { %729 = vmatprep.subr.msk.bf16.mxu0 %vm331_vm0, %v258_v0  ;;  %730 = vmatprep.subr.msk.bf16.mxu1 %vm331_vm0, %v258_v0  ;;  %v333_v1 = vsel %vm331_vm0, %v258_v0, 0  ;;  %v755_v2 = vld [vmem:[%s222_s20] sm:$0xff]   ;;  %v758_v5 = vld [vmem:[%s222_s20 + $0x28] sm:$0xff]   ;;  %v760_v7 = vld [vmem:[%s222_s20 + $0x30] sm:$0xff]  }
  0x13   : > { %710 = vmatpush3.bf16.msra.mxu0 %v333_v1  ;;  %728 = vmatpush3.bf16.msra.mxu1 %v333_v1  ;;  %v756_v3 = vld [vmem:[%s222_s20 + $0x20] sm:$0xff]   ;;  %v761_v8 = vld [vmem:[%s222_s20 + $0x18] sm:$0xff]  }
  0x14   : > { %711 = vmatprep.mubr.msk.bf16.mxu0 %vm306_vm1, %v755_v2  ;;  %719 = vmatprep.mubr.msk.bf16.mxu1 %vm306_vm1, %v756_v3  ;;  %v762_v9 = vld [vmem:[%s222_s20 + $0x38] sm:$0xff]   ;;  %v849_v10 = vld [vmem:[%s230_s26] ss:$0 sm:$0xff] }
  0x16   : > { %712 = vmatmul.mubr.msk.bf16.vlgmr.msra.gmra.mrb[0].mxu0 %vm306_vm1, %v757_v4  ;;  %720 = vmatmul.mubr.msk.bf16.vlgmr.msra.gmra.mrb[0].mxu1 %vm306_vm1, %v758_v5 }
  0x17   : > { %715 = vmatprep.mubr.msk.bf16.mxu0 %vm306_vm1, %v759_v6  ;;  %723 = vmatprep.mubr.msk.bf16.mxu1 %vm306_vm1, %v760_v7 }
  0x1e   : > { %716 = vmatmul.mubr.msk.bf16.gmra.mrb[4].mxu0 %vm306_vm1, %v761_v8  ;;  %724 = vmatmul.mubr.msk.bf16.gmra.mrb[4].mxu1 %vm306_vm1, %v762_v9 }
  0xe9   : > { %v713_v11 = vpop.f32.mrb[0].mxu0  ;;  %v721_v13 = vpop.f32.mrb[0].mxu1 }
  0xea   : > { %v378_v12 = vadd.f32 %v713_v11, %v849_v10  ;;  %v369_v14 = vpop.f32.mrb[1].mxu0  ;;  %v410_v15 = vadd.f32 %v721_v13, %v849_v10  ;;  %v401_v17 = vpop.f32.mrb[1].mxu1 }
  0xeb   : > { %v370_v16 = vadd.f32 %v849_v10, %v369_v14  ;;  %v714_v18 = vpop.f32.mrb[2].mxu0  ;;  %v402_v20 = vadd.f32 %v849_v10, %v401_v17  ;;  %v722_v22 = vpop.f32.mrb[2].mxu1 }
  0xec   : > { %v434_v19 = vmax.f32 %v378_v12, 0.0  ;;  %v381_v21 = vadd.f32 %v714_v18, %v849_v10  ;;  %v372_v23 = vpop.f32.mrb[3].mxu0  ;;  %v442_v24 = vmax.f32 %v410_v15, 0.0  ;;  %v413_v26 = vadd.f32 %v722_v22, %v849_v10  ;;  %v404_v28 = vpop.f32.mrb[3].mxu1 }
  0xed   : > { %v432_v25 = vmax.f32 %v370_v16, 0.0  ;;  %v373_v27 = vadd.f32 %v849_v10, %v372_v23  ;;  %v440_v30 = vmax.f32 %v402_v20, 0.0  ;;  %v405_v32 = vadd.f32 %v849_v10, %v404_v28 }
  0xee   : > { %v686_v29 = vpack.c.bf16 %v434_v19, %v434_v19  ;;  %v435_v31 = vmax.f32 %v381_v21, 0.0  ;;  %v694_v33 = vpack.c.bf16 %v442_v24, %v442_v24  ;;  %v443_v35 = vmax.f32 %v413_v26, 0.0 }
  0xef   : > { %v684_v34 = vpack.c.bf16 %v432_v25, %v432_v25  ;;  %v433_v36 = vmax.f32 %v373_v27, 0.0  ;;  %v692_v37 = vpack.c.bf16 %v440_v30, %v440_v30  ;;  %v441_v39 = vmax.f32 %v405_v32, 0.0 }
  0xf0   : > { %515 = vst.msk [vmem:[%s861_s29 + $0x8] sm:$0xf] %vm512_vm2, %v686_v29  ;;  %v687_v38 = vpack.c.bf16 %v435_v31, %v435_v31  ;;  %523 = vst.msk [vmem:[%s861_s29 + $0x28] sm:$0xf] %vm512_vm2, %v694_v33  ;;  %v695_v40 = vpack.c.bf16 %v443_v35, %v443_v35 }
  0xf1   : > { %513 = vst.msk [vmem:[%s861_s29] sm:$0xf] %vm512_vm2, %v684_v34  ;;  %v685_v41 = vpack.c.bf16 %v433_v36, %v433_v36  ;;  %v717_v42 = vpop.f32.mrb[4].mxu0  ;;  %521 = vst.msk [vmem:[%s861_s29 + $0x20] sm:$0xf] %vm512_vm2, %v692_v37  ;;  %v693_v43 = vpack.c.bf16 %v441_v39, %v441_v39  ;;  %v725_v45 = vpop.f32.mrb[4].mxu1 }
  0xf2   : > { %516 = vst.msk [vmem:[%s861_s29 + $0xc] sm:$0xf] %vm512_vm2, %v687_v38  ;;  %v394_v44 = vadd.f32 %v717_v42, %v849_v10  ;;  %v385_v46 = vpop.f32.mrb[5].mxu0  ;;  %524 = vst.msk [vmem:[%s861_s29 + $0x2c] sm:$0xf] %vm512_vm2, %v695_v40  ;;  %v426_v47 = vadd.f32 %v725_v45, %v849_v10  ;;  %v417_v49 = vpop.f32.mrb[5].mxu1 }
  0xf3   : > { %514 = vst.msk [vmem:[%s861_s29 + $0x4] sm:$0xf] %vm512_vm2, %v685_v41  ;;  %v386_v48 = vadd.f32 %v849_v10, %v385_v46  ;;  %v718_v50 = vpop.f32.mrb[6].mxu0  ;;  %522 = vst.msk [vmem:[%s861_s29 + $0x24] sm:$0xf] %vm512_vm2, %v693_v43  ;;  %v418_v52 = vadd.f32 %v849_v10, %v417_v49  ;;  %v726_v54 = vpop.f32.mrb[6].mxu1 }
  0xf4   : > { %v438_v51 = vmax.f32 %v394_v44, 0.0  ;;  %v397_v53 = vadd.f32 %v718_v50, %v849_v10  ;;  %v388_v55 = vpop.f32.mrb[7].mxu0  ;;  %v446_v56 = vmax.f32 %v426_v47, 0.0  ;;  %v429_v58 = vadd.f32 %v726_v54, %v849_v10  ;;  %v420_v60 = vpop.f32.mrb[7].mxu1 }
  0xf5   : > { %v436_v57 = vmax.f32 %v386_v48, 0.0  ;;  %v389_v59 = vadd.f32 %v849_v10, %v388_v55  ;;  %v444_v62 = vmax.f32 %v418_v52, 0.0  ;;  %v421_v0 = vadd.f32 %v849_v10, %v420_v60 }
  0xf6   : > { %v690_v61 = vpack.c.bf16 %v438_v51, %v438_v51  ;;  %v439_v63 = vmax.f32 %v397_v53, 0.0  ;;  %v698_v1 = vpack.c.bf16 %v446_v56, %v446_v56  ;;  %v447_v3 = vmax.f32 %v429_v58, 0.0 }
  0xf7   : > { %v688_v2 = vpack.c.bf16 %v436_v57, %v436_v57  ;;  %v437_v4 = vmax.f32 %v389_v59, 0.0  ;;  %v696_v5 = vpack.c.bf16 %v444_v62, %v444_v62  ;;  %v445_v7 = vmax.f32 %v421_v0, 0.0 }
  0xf8   : > { %519 = vst.msk [vmem:[%s861_s29 + $0x18] sm:$0xf] %vm512_vm2, %v690_v61  ;;  %v691_v6 = vpack.c.bf16 %v439_v63, %v439_v63  ;;  %527 = vst.msk [vmem:[%s861_s29 + $0x38] sm:$0xf] %vm512_vm2, %v698_v1  ;;  %v699_v8 = vpack.c.bf16 %v447_v3, %v447_v3 }
  0xf9   : > { %517 = vst.msk [vmem:[%s861_s29 + $0x10] sm:$0xf] %vm512_vm2, %v688_v2  ;;  %v689_v9 = vpack.c.bf16 %v437_v4, %v437_v4  ;;  %525 = vst.msk [vmem:[%s861_s29 + $0x30] sm:$0xf] %vm512_vm2, %v696_v5  ;;  %v697_v10 = vpack.c.bf16 %v445_v7, %v445_v7 }
  0xfa   : > { %520 = vst.msk [vmem:[%s861_s29 + $0x1c] sm:$0xf] %vm512_vm2, %v691_v6  ;;  %528 = vst.msk [vmem:[%s861_s29 + $0x3c] sm:$0xf] %vm512_vm2, %v699_v8 }
  0xfb   : > { %518 = vst.msk [vmem:[%s861_s29 + $0x14] sm:$0xf] %vm512_vm2, %v689_v9  ;;  %526 = vst.msk [vmem:[%s861_s29 + $0x34] sm:$0xf] %vm512_vm2, %v697_v10 }
  0xfc PF: > { %s13_s14 = sadd.s32 1, %s785_s14   ;;  %s919_s12 = smov %s781_s13 }
  0xfd   : > { %p10_p5 = scmp.ge.s32.totalorder %s13_s14, 18   ;;  %s920_s13 = smov %s922_s15 }
  0xff   :  { %12 = sbr.rel (!%p10_p5) target bundleno = 2 (0x2), region = 68 }

// kernel: forward.81
= control target key start
LH: loop header
LB: loop body
LE: loop exit
PB: predicated region body
PF: predicated region fallthrough
CT: control target
= control target key end

     0   :  { %s1836_s12 = smov 0   ;;  %s1838_s13 = smov 0   ;;  %s2146_s0 = inlined_call_operand.vmem [shape: bf16[16,512,72], index: 0, kind: input, shape index: {}]   ;;  %s2147_s1 = inlined_call_operand.vmem [shape: bf16[16,72,8], index: 1, kind: input, shape index: {}]   ;;  %s2148_s2 = inlined_call_operand.vmem [shape: f32[16,1,8], index: 2, kind: input, shape index: {}]   ;;  %s2149_s3 = inlined_call_operand.vmem [shape: bf16[16,512,8], index: 3, kind: output, shape index: {}]  }
   0x1   :  { %s1840_s14 = smov 0  }
   0x2 LB: > { %s25_s15 = sadd.s32 1, %s1810_s13  ;;  %p1399_p0 = scmp.ge.s32.totalorder %s1814_s14, 1  ;;  %s1814_s14 = sphi %s1840_s14, %s13_s14   ;;  %s1810_s13 = sphi %s1838_s13, %s2151_s13   ;;  %s1806_s12 = sphi %s1836_s12, %s2150_s12  }
   0x3   : > { %p27_p1 = scmp.ge.s32.totalorder %s25_s15, 16  ;;  %p176_p2 = scmp.lt.s32.totalorder %s1814_s14, 17 }
   0x5   : > { %s2153_s15 = smov (%p27_p1, %s25_s15), 0  ;;  %p177_p3 = pnand %p1399_p0, %p176_p2 }
   0x6   : > { %p217_p4 = scmp.lt.s32.totalorder (!%p177_p3), %s1806_s12, 15  ;;  %vm512_vm0 = vcmask (!%p177_p3), 588800   ;;  %vm609_vm1 = vcmask (!%p177_p3), 1043456   ;;  %vm1222_vm2 = vcmask (!%p177_p3), 60416  }
   0x7   : > { %180 = sbr.rel (%p177_p3) target bundleno = 317 (0x13d), region = 32 }
   0xe   : > { %s2155_s12 = smov (!%p217_p4, %s1806_s12), 15 }
   0xf   : > { %s1541_s16 = sshll.u32 %s2155_s12, 8  ;;  %s1730_s17 = smul.u32 36, %s2155_s12 }
  0x10   : > { %s1863_s20 = scalar_lea.vmem %s2146_s0, %s1541_s16  ;;  %s233_s26 = scalar_lea.vmem %s2148_s2, %s2155_s12 }
  0x11   : > { %s230_s23 = scalar_lea.vmem %s2147_s1, %s1730_s17  ;;  %v1760_v3 = vld [vmem:[%s1863_s20] sm:$0xff]   ;;  %v1762_v8 = vld [vmem:[%s1863_s20 + $0x8] sm:$0xff]   ;;  %v1764_v10 = vld [vmem:[%s1863_s20 + $0x10] sm:$0xff]   ;;  %s1949_s29 = scalar_lea.vmem %s2149_s3, %s1541_s16 }
  0x12   : > { %v1755_v0 = vld [vmem:[%s230_s23] sm:$0xff]   ;;  %v1756_v1 = vld [vmem:[%s230_s23 + $0x8] sm:$0xff]   ;;  %v1757_v2 = vld [vmem:[%s230_s23 + $0x10] sm:$0xff]   ;;  %1654 = vmatprep.mubr.msk.bf16.mxu0 %vm512_vm0, %v1760_v3 }
  0x13   : > { %1644 = vmatprep.subr.bf16.mxu0 %v1755_v0  ;;  %1718 = vmatprep.subr.bf16.mxu1 %v1755_v0  ;;  %v1761_v4 = vld [vmem:[%s1863_s20 + $0x80] sm:$0xff]   ;;  %v1758_v5 = vld [vmem:[%s230_s23 + $0x18] sm:$0xff]   ;;  %v1763_v9 = vld [vmem:[%s1863_s20 + $0x88] sm:$0xff]  }
  0x14   : > { %1645 = vmatpush3.bf16.msra.mxu0 %v1755_v0  ;;  %1723 = vmatpush3.bf16.msra.mxu1 %v1755_v0  ;;  %v1759_v6 = vld [vmem:[%s230_s23 + $0x20] ss:$0 sps:$4 sm:$0xff]   ;;  %v1765_v11 = vld [vmem:[%s1863_s20 + $0x90] sm:$0xff]   ;;  %v1766_v12 = vld [vmem:[%s1863_s20 + $0x18] sm:$0xff]  }
  0x15   : > { %1646 = vmatprep.subr.bf16.mxu0 %v1756_v1  ;;  %1719 = vmatprep.subr.bf16.mxu1 %v1756_v1  ;;  %v611_v7 = vsel %vm609_vm1, %v1759_v6, 0  ;;  %v1767_v13 = vld [vmem:[%s1863_s20 + $0x98] sm:$0xff]   ;;  %v1768_v14 = vld [vmem:[%s1863_s20 + $0x20] sm:$0xff]   ;;  %v1770_v16 = vld [vmem:[%s1863_s20 + $0x28] sm:$0xff]  }
  0x16   : > { %1686 = vmatprep.mubr.msk.bf16.mxu1 %vm512_vm0, %v1761_v4  ;;  %v1769_v15 = vld [vmem:[%s1863_s20 + $0xa0] sm:$0xff]   ;;  %v1771_v17 = vld [vmem:[%s1863_s20 + $0xa8] sm:$0xff]   ;;  %v1772_v18 = vld [vmem:[%s1863_s20 + $0x30] sm:$0xff]  }
  0x17   : > { %v1773_v19 = vld [vmem:[%s1863_s20 + $0xb0] sm:$0xff]   ;;  %v1774_v20 = vld [vmem:[%s1863_s20 + $0x38] sm:$0xff]   ;;  %v1776_v22 = vld [vmem:[%s1863_s20 + $0x40] sm:$0xff]  }
  0x18   : > { %1647 = vmatpush3.bf16.msra.mxu0 %v1756_v1  ;;  %1724 = vmatpush3.bf16.msra.mxu1 %v1756_v1  ;;  %v1775_v21 = vld [vmem:[%s1863_s20 + $0xb8] sm:$0xff]   ;;  %v1777_v23 = vld [vmem:[%s1863_s20 + $0xc0] sm:$0xff]   ;;  %v1778_v24 = vld [vmem:[%s1863_s20 + $0x48] sm:$0xff]  }
  0x19   : > { %1648 = vmatprep.subr.bf16.mxu0 %v1757_v2  ;;  %1720 = vmatprep.subr.bf16.mxu1 %v1757_v2  ;;  %v1779_v25 = vld [vmem:[%s1863_s20 + $0xc8] sm:$0xff]   ;;  %v1780_v26 = vld [vmem:[%s1863_s20 + $0x50] sm:$0xff]   ;;  %v1782_v28 = vld [vmem:[%s1863_s20 + $0x58] sm:$0xff]  }
  0x1a   : > { %v1781_v27 = vld [vmem:[%s1863_s20 + $0xd0] sm:$0xff]   ;;  %v1783_v29 = vld [vmem:[%s1863_s20 + $0xd8] sm:$0xff]   ;;  %v1784_v30 = vld [vmem:[%s1863_s20 + $0x60] sm:$0xff]  }
  0x1b   : > { %v1785_v31 = vld [vmem:[%s1863_s20 + $0xe0] sm:$0xff]   ;;  %v1786_v32 = vld [vmem:[%s1863_s20 + $0x68] sm:$0xff]   ;;  %v1788_v34 = vld [vmem:[%s1863_s20 + $0x70] sm:$0xff]  }
  0x1c   : > { %1649 = vmatpush3.bf16.msra.mxu0 %v1757_v2  ;;  %1725 = vmatpush3.bf16.msra.mxu1 %v1757_v2  ;;  %v1787_v33 = vld [vmem:[%s1863_s20 + $0xe8] sm:$0xff]   ;;  %v1789_v35 = vld [vmem:[%s1863_s20 + $0xf0] sm:$0xff]   ;;  %v1790_v36 = vld [vmem:[%s1863_s20 + $0x78] sm:$0xff]  }
  0x1d   : > { %1650 = vmatprep.subr.bf16.mxu0 %v1758_v5  ;;  %1721 = vmatprep.subr.bf16.mxu1 %v1758_v5  ;;  %v1791_v37 = vld [vmem:[%s1863_s20 + $0xf8] sm:$0xff]   ;;  %v1936_v38 = vld [vmem:[%s233_s26] ss:$0 sm:$0xff] }
  0x20   : > { %1651 = vmatpush3.bf16.msra.mxu0 %v1758_v5  ;;  %1726 = vmatpush3.bf16.msra.mxu1 %v1758_v5 }
  0x21   : > { %1728 = vmatprep.subr.msk.bf16.mxu0 %vm609_vm1, %v1759_v6  ;;  %1729 = vmatprep.subr.msk.bf16.mxu1 %vm609_vm1, %v1759_v6 }
  0x24   : > { %1653 = vmatpush3.bf16.msra.mxu0 %v611_v7  ;;  %1727 = vmatpush3.bf16.msra.mxu1 %v611_v7 }
  0x27   : > { %1655 = vmatmul.mubr.msk.bf16.vlgmr.msra.gmra.mrb[0].mxu0 %vm512_vm0, %v1762_v8  ;;  %1687 = vmatmul.mubr.msk.bf16.vlgmr.msra.gmra.mrb[0].mxu1 %vm512_vm0, %v1763_v9 }
  0x28   : > { %1658 = vmatprep.mubr.msk.bf16.mxu0 %vm512_vm0, %v1764_v10  ;;  %1690 = vmatprep.mubr.msk.bf16.mxu1 %vm512_vm0, %v1765_v11 }
  0x2f   : > { %1659 = vmatmul.mubr.msk.bf16.gmra.mrb[4].mxu0 %vm512_vm0, %v1766_v12  ;;  %1691 = vmatmul.mubr.msk.bf16.gmra.mrb[4].mxu1 %vm512_vm0, %v1767_v13 }
  0x30   : > { %1662 = vmatprep.mubr.msk.bf16.mxu0 %vm512_vm0, %v1768_v14  ;;  %1694 = vmatprep.mubr.msk.bf16.mxu1 %vm512_vm0, %v1769_v15 }
  0x37   : > { %1663 = vmatmul.mubr.msk.bf16.gmra.mrb[8].mxu0 %vm512_vm0, %v1770_v16  ;;  %1695 = vmatmul.mubr.msk.bf16.gmra.mrb[8].mxu1 %vm512_vm0, %v1771_v17 }
  0x38   : > { %1666 = vmatprep.mubr.msk.bf16.mxu0 %vm512_vm0, %v1772_v18  ;;  %1698 = vmatprep.mubr.msk.bf16.mxu1 %vm512_vm0, %v1773_v19 }
  0x3f   : > { %1667 = vmatmul.mubr.msk.bf16.gmra.mrb[12].mxu0 %vm512_vm0, %v1774_v20  ;;  %1699 = vmatmul.mubr.msk.bf16.gmra.mrb[12].mxu1 %vm512_vm0, %v1775_v21 }
  0x40   : > { %1670 = vmatprep.mubr.msk.bf16.mxu0 %vm512_vm0, %v1776_v22  ;;  %1702 = vmatprep.mubr.msk.bf16.mxu1 %vm512_vm0, %v1777_v23 }
  0x47   : > { %1671 = vmatmul.mubr.msk.bf16.gmra.mrb[16].mxu0 %vm512_vm0, %v1778_v24  ;;  %1703 = vmatmul.mubr.msk.bf16.gmra.mrb[16].mxu1 %vm512_vm0, %v1779_v25 }
  0x48   : > { %1674 = vmatprep.mubr.msk.bf16.mxu0 %vm512_vm0, %v1780_v26  ;;  %1706 = vmatprep.mubr.msk.bf16.mxu1 %vm512_vm0, %v1781_v27 }
  0x4f   : > { %1675 = vmatmul.mubr.msk.bf16.gmra.mrb[20].mxu0 %vm512_vm0, %v1782_v28  ;;  %1707 = vmatmul.mubr.msk.bf16.gmra.mrb[20].mxu1 %vm512_vm0, %v1783_v29 }
  0x50   : > { %1678 = vmatprep.mubr.msk.bf16.mxu0 %vm512_vm0, %v1784_v30  ;;  %1710 = vmatprep.mubr.msk.bf16.mxu1 %vm512_vm0, %v1785_v31 }
  0x57   : > { %1679 = vmatmul.mubr.msk.bf16.gmra.mrb[24].mxu0 %vm512_vm0, %v1786_v32  ;;  %1711 = vmatmul.mubr.msk.bf16.gmra.mrb[24].mxu1 %vm512_vm0, %v1787_v33 }
  0x58   : > { %1682 = vmatprep.mubr.msk.bf16.mxu0 %vm512_vm0, %v1788_v34  ;;  %1714 = vmatprep.mubr.msk.bf16.mxu1 %vm512_vm0, %v1789_v35 }
  0x5f   : > { %1683 = vmatmul.mubr.msk.bf16.gmra.mrb[28].mxu0 %vm512_vm0, %v1790_v36  ;;  %1715 = vmatmul.mubr.msk.bf16.gmra.mrb[28].mxu1 %vm512_vm0, %v1791_v37 }
  0xfa   : > { %v1656_v39 = vpop.f32.mrb[0].mxu0  ;;  %v1688_v40 = vpop.f32.mrb[0].mxu1 }
  0xfb   : > { %v656_v41 = vadd.f32 %v1656_v39, %v1936_v38  ;;  %v784_v42 = vadd.f32 %v1688_v40, %v1936_v38  ;;  %v647_v43 = vpop.f32.mrb[1].mxu0  ;;  %v775_v44 = vpop.f32.mrb[1].mxu1 }
  0xfc   : > { %v648_v45 = vadd.f32 %v1936_v38, %v647_v43  ;;  %v776_v46 = vadd.f32 %v1936_v38, %v775_v44  ;;  %v1657_v47 = vpop.f32.mrb[2].mxu0  ;;  %v1689_v48 = vpop.f32.mrb[2].mxu1 }
  0xfd   : > { %v904_v49 = vmax.f32 %v656_v41, 0.0  ;;  %v936_v50 = vmax.f32 %v784_v42, 0.0  ;;  %v659_v51 = vadd.f32 %v1657_v47, %v1936_v38  ;;  %v787_v52 = vadd.f32 %v1689_v48, %v1936_v38  ;;  %v650_v53 = vpop.f32.mrb[3].mxu0  ;;  %v778_v54 = vpop.f32.mrb[3].mxu1 }
  0xfe   : > { %v902_v55 = vmax.f32 %v648_v45, 0.0  ;;  %v934_v56 = vmax.f32 %v776_v46, 0.0  ;;  %v651_v57 = vadd.f32 %v1936_v38, %v650_v53  ;;  %v779_v58 = vadd.f32 %v1936_v38, %v778_v54 }
  0xff   : > { %v1545_v59 = vpack.c.bf16 %v904_v49, %v904_v49  ;;  %v1577_v60 = vpack.c.bf16 %v936_v50, %v936_v50  ;;  %v905_v61 = vmax.f32 %v659_v51, 0.0  ;;  %v937_v62 = vmax.f32 %v787_v52, 0.0 }
 0x100   : > { %v1543_v63 = vpack.c.bf16 %v902_v55, %v902_v55  ;;  %v1575_v0 = vpack.c.bf16 %v934_v56, %v934_v56  ;;  %v903_v1 = vmax.f32 %v651_v57, 0.0  ;;  %v935_v2 = vmax.f32 %v779_v58, 0.0 }
 0x101   : > { %1225 = vst.msk [vmem:[%s1949_s29 + $0x8] sm:$0xf] %vm1222_vm2, %v1545_v59  ;;  %1257 = vst.msk [vmem:[%s1949_s29 + $0x88] sm:$0xf] %vm1222_vm2, %v1577_v60  ;;  %v1546_v3 = vpack.c.bf16 %v905_v61, %v905_v61  ;;  %v1578_v4 = vpack.c.bf16 %v937_v62, %v937_v62 }
 0x102   : > { %1223 = vst.msk [vmem:[%s1949_s29] sm:$0xf] %vm1222_vm2, %v1543_v63  ;;  %1255 = vst.msk [vmem:[%s1949_s29 + $0x80] sm:$0xf] %vm1222_vm2, %v1575_v0  ;;  %v1544_v5 = vpack.c.bf16 %v903_v1, %v903_v1  ;;  %v1576_v6 = vpack.c.bf16 %v935_v2, %v935_v2  ;;  %v1660_v7 = vpop.f32.mrb[4].mxu0  ;;  %v1692_v8 = vpop.f32.mrb[4].mxu1 }
 0x103   : > { %1226 = vst.msk [vmem:[%s1949_s29 + $0xc] sm:$0xf] %vm1222_vm2, %v1546_v3  ;;  %1258 = vst.msk [vmem:[%s1949_s29 + $0x8c] sm:$0xf] %vm1222_vm2, %v1578_v4  ;;  %v672_v9 = vadd.f32 %v1660_v7, %v1936_v38  ;;  %v800_v10 = vadd.f32 %v1692_v8, %v1936_v38  ;;  %v663_v11 = vpop.f32.mrb[5].mxu0  ;;  %v791_v12 = vpop.f32.mrb[5].mxu1 }
 0x104   : > { %1224 = vst.msk [vmem:[%s1949_s29 + $0x4] sm:$0xf] %vm1222_vm2, %v1544_v5  ;;  %1256 = vst.msk [vmem:[%s1949_s29 + $0x84] sm:$0xf] %vm1222_vm2, %v1576_v6  ;;  %v664_v13 = vadd.f32 %v1936_v38, %v663_v11  ;;  %v792_v14 = vadd.f32 %v1936_v38, %v791_v12  ;;  %v1661_v15 = vpop.f32.mrb[6].mxu0  ;;  %v1693_v16 = vpop.f32.mrb[6].mxu1 }
 0x105   : > { %v908_v17 = vmax.f32 %v672_v9, 0.0  ;;  %v940_v18 = vmax.f32 %v800_v10, 0.0  ;;  %v675_v19 = vadd.f32 %v1661_v15, %v1936_v38  ;;  %v803_v20 = vadd.f32 %v1693_v16, %v1936_v38  ;;  %v666_v21 = vpop.f32.mrb[7].mxu0  ;;  %v794_v22 = vpop.f32.mrb[7].mxu1 }
 0x106   : > { %v906_v23 = vmax.f32 %v664_v13, 0.0  ;;  %v938_v24 = vmax.f32 %v792_v14, 0.0  ;;  %v667_v25 = vadd.f32 %v1936_v38, %v666_v21  ;;  %v795_v26 = vadd.f32 %v1936_v38, %v794_v22 }
 0x107   : > { %v1549_v27 = vpack.c.bf16 %v908_v17, %v908_v17  ;;  %v1581_v28 = vpack.c.bf16 %v940_v18, %v940_v18  ;;  %v909_v29 = vmax.f32 %v675_v19, 0.0  ;;  %v941_v30 = vmax.f32 %v803_v20, 0.0 }
 0x108   : > { %v1547_v31 = vpack.c.bf16 %v906_v23, %v906_v23  ;;  %v1579_v32 = vpack.c.bf16 %v938_v24, %v938_v24  ;;  %v907_v33 = vmax.f32 %v667_v25, 0.0  ;;  %v939_v34 = vmax.f32 %v795_v26, 0.0 }
 0x109   : > { %1229 = vst.msk [vmem:[%s1949_s29 + $0x18] sm:$0xf] %vm1222_vm2, %v1549_v27  ;;  %1261 = vst.msk [vmem:[%s1949_s29 + $0x98] sm:$0xf] %vm1222_vm2, %v1581_v28  ;;  %v1550_v35 = vpack.c.bf16 %v909_v29, %v909_v29  ;;  %v1582_v36 = vpack.c.bf16 %v941_v30, %v941_v30 }
 0x10a   : > { %1227 = vst.msk [vmem:[%s1949_s29 + $0x10] sm:$0xf] %vm1222_vm2, %v1547_v31  ;;  %1259 = vst.msk [vmem:[%s1949_s29 + $0x90] sm:$0xf] %vm1222_vm2, %v1579_v32  ;;  %v1548_v37 = vpack.c.bf16 %v907_v33, %v907_v33  ;;  %v1580_v39 = vpack.c.bf16 %v939_v34, %v939_v34  ;;  %v1664_v40 = vpop.f32.mrb[8].mxu0  ;;  %v1696_v41 = vpop.f32.mrb[8].mxu1 }
 0x10b   : > { %1230 = vst.msk [vmem:[%s1949_s29 + $0x1c] sm:$0xf] %vm1222_vm2, %v1550_v35  ;;  %1262 = vst.msk [vmem:[%s1949_s29 + $0x9c] sm:$0xf] %vm1222_vm2, %v1582_v36  ;;  %v688_v42 = vadd.f32 %v1664_v40, %v1936_v38  ;;  %v816_v43 = vadd.f32 %v1696_v41, %v1936_v38  ;;  %v679_v44 = vpop.f32.mrb[9].mxu0  ;;  %v807_v45 = vpop.f32.mrb[9].mxu1 }
 0x10c   : > { %1228 = vst.msk [vmem:[%s1949_s29 + $0x14] sm:$0xf] %vm1222_vm2, %v1548_v37  ;;  %1260 = vst.msk [vmem:[%s1949_s29 + $0x94] sm:$0xf] %vm1222_vm2, %v1580_v39  ;;  %v680_v46 = vadd.f32 %v1936_v38, %v679_v44  ;;  %v808_v47 = vadd.f32 %v1936_v38, %v807_v45  ;;  %v1665_v48 = vpop.f32.mrb[10].mxu0  ;;  %v1697_v49 = vpop.f32.mrb[10].mxu1 }
 0x10d   : > { %v912_v50 = vmax.f32 %v688_v42, 0.0  ;;  %v944_v51 = vmax.f32 %v816_v43, 0.0  ;;  %v691_v52 = vadd.f32 %v1665_v48, %v1936_v38  ;;  %v819_v53 = vadd.f32 %v1697_v49, %v1936_v38  ;;  %v682_v54 = vpop.f32.mrb[11].mxu0  ;;  %v810_v55 = vpop.f32.mrb[11].mxu1 }
 0x10e   : > { %v910_v56 = vmax.f32 %v680_v46, 0.0  ;;  %v942_v57 = vmax.f32 %v808_v47, 0.0  ;;  %v683_v58 = vadd.f32 %v1936_v38, %v682_v54  ;;  %v811_v59 = vadd.f32 %v1936_v38, %v810_v55 }
 0x10f   : > { %v1553_v60 = vpack.c.bf16 %v912_v50, %v912_v50  ;;  %v1585_v61 = vpack.c.bf16 %v944_v51, %v944_v51  ;;  %v913_v62 = vmax.f32 %v691_v52, 0.0  ;;  %v945_v63 = vmax.f32 %v819_v53, 0.0 }
 0x110   : > { %v1551_v0 = vpack.c.bf16 %v910_v56, %v910_v56  ;;  %v1583_v1 = vpack.c.bf16 %v942_v57, %v942_v57  ;;  %v911_v2 = vmax.f32 %v683_v58, 0.0  ;;  %v943_v3 = vmax.f32 %v811_v59, 0.0 }
 0x111   : > { %1233 = vst.msk [vmem:[%s1949_s29 + $0x28] sm:$0xf] %vm1222_vm2, %v1553_v60  ;;  %1265 = vst.msk [vmem:[%s1949_s29 + $0xa8] sm:$0xf] %vm1222_vm2, %v1585_v61  ;;  %v1554_v4 = vpack.c.bf16 %v913_v62, %v913_v62  ;;  %v1586_v5 = vpack.c.bf16 %v945_v63, %v945_v63 }
 0x112   : > { %1231 = vst.msk [vmem:[%s1949_s29 + $0x20] sm:$0xf] %vm1222_vm2, %v1551_v0  ;;  %1263 = vst.msk [vmem:[%s1949_s29 + $0xa0] sm:$0xf] %vm1222_vm2, %v1583_v1  ;;  %v1552_v6 = vpack.c.bf16 %v911_v2, %v911_v2  ;;  %v1584_v7 = vpack.c.bf16 %v943_v3, %v943_v3  ;;  %v1668_v8 = vpop.f32.mrb[12].mxu0  ;;  %v1700_v9 = vpop.f32.mrb[12].mxu1 }
 0x113   : > { %1234 = vst.msk [vmem:[%s1949_s29 + $0x2c] sm:$0xf] %vm1222_vm2, %v1554_v4  ;;  %1266 = vst.msk [vmem:[%s1949_s29 + $0xac] sm:$0xf] %vm1222_vm2, %v1586_v5  ;;  %v704_v10 = vadd.f32 %v1668_v8, %v1936_v38  ;;  %v832_v11 = vadd.f32 %v1700_v9, %v1936_v38  ;;  %v695_v12 = vpop.f32.mrb[13].mxu0  ;;  %v823_v13 = vpop.f32.mrb[13].mxu1 }
 0x114   : > { %1232 = vst.msk [vmem:[%s1949_s29 + $0x24] sm:$0xf] %vm1222_vm2, %v1552_v6  ;;  %1264 = vst.msk [vmem:[%s1949_s29 + $0xa4] sm:$0xf] %vm1222_vm2, %v1584_v7  ;;  %v696_v14 = vadd.f32 %v1936_v38, %v695_v12  ;;  %v824_v15 = vadd.f32 %v1936_v38, %v823_v13  ;;  %v1669_v16 = vpop.f32.mrb[14].mxu0  ;;  %v1701_v17 = vpop.f32.mrb[14].mxu1 }
 0x115   : > { %v916_v18 = vmax.f32 %v704_v10, 0.0  ;;  %v948_v19 = vmax.f32 %v832_v11, 0.0  ;;  %v707_v20 = vadd.f32 %v1669_v16, %v1936_v38  ;;  %v835_v21 = vadd.f32 %v1701_v17, %v1936_v38  ;;  %v698_v22 = vpop.f32.mrb[15].mxu0  ;;  %v826_v23 = vpop.f32.mrb[15].mxu1 }
 0x116   : > { %v914_v24 = vmax.f32 %v696_v14, 0.0  ;;  %v946_v25 = vmax.f32 %v824_v15, 0.0  ;;  %v699_v26 = vadd.f32 %v1936_v38, %v698_v22  ;;  %v827_v27 = vadd.f32 %v1936_v38, %v826_v23 }
 0x117   : > { %v1557_v28 = vpack.c.bf16 %v916_v18, %v916_v18  ;;  %v1589_v29 = vpack.c.bf16 %v948_v19, %v948_v19  ;;  %v917_v30 = vmax.f32 %v707_v20, 0.0  ;;  %v949_v31 = vmax.f32 %v835_v21, 0.0 }
 0x118   : > { %v1555_v32 = vpack.c.bf16 %v914_v24, %v914_v24  ;;  %v1587_v33 = vpack.c.bf16 %v946_v25, %v946_v25  ;;  %v915_v34 = vmax.f32 %v699_v26, 0.0  ;;  %v947_v35 = vmax.f32 %v827_v27, 0.0 }
 0x119   : > { %1237 = vst.msk [vmem:[%s1949_s29 + $0x38] sm:$0xf] %vm1222_vm2, %v1557_v28  ;;  %1269 = vst.msk [vmem:[%s1949_s29 + $0xb8] sm:$0xf] %vm1222_vm2, %v1589_v29  ;;  %v1558_v36 = vpack.c.bf16 %v917_v30, %v917_v30  ;;  %v1590_v37 = vpack.c.bf16 %v949_v31, %v949_v31 }
 0x11a   : > { %1235 = vst.msk [vmem:[%s1949_s29 + $0x30] sm:$0xf] %vm1222_vm2, %v1555_v32  ;;  %1267 = vst.msk [vmem:[%s1949_s29 + $0xb0] sm:$0xf] %vm1222_vm2, %v1587_v33  ;;  %v1556_v39 = vpack.c.bf16 %v915_v34, %v915_v34  ;;  %v1588_v40 = vpack.c.bf16 %v947_v35, %v947_v35  ;;  %v1672_v41 = vpop.f32.mrb[16].mxu0  ;;  %v1704_v42 = vpop.f32.mrb[16].mxu1 }
 0x11b   : > { %1238 = vst.msk [vmem:[%s1949_s29 + $0x3c] sm:$0xf] %vm1222_vm2, %v1558_v36  ;;  %1270 = vst.msk [vmem:[%s1949_s29 + $0xbc] sm:$0xf] %vm1222_vm2, %v1590_v37  ;;  %v720_v43 = vadd.f32 %v1672_v41, %v1936_v38  ;;  %v848_v44 = vadd.f32 %v1704_v42, %v1936_v38  ;;  %v711_v45 = vpop.f32.mrb[17].mxu0  ;;  %v839_v46 = vpop.f32.mrb[17].mxu1 }
 0x11c   : > { %1236 = vst.msk [vmem:[%s1949_s29 + $0x34] sm:$0xf] %vm1222_vm2, %v1556_v39  ;;  %1268 = vst.msk [vmem:[%s1949_s29 + $0xb4] sm:$0xf] %vm1222_vm2, %v1588_v40  ;;  %v712_v47 = vadd.f32 %v1936_v38, %v711_v45  ;;  %v840_v48 = vadd.f32 %v1936_v38, %v839_v46  ;;  %v1673_v49 = vpop.f32.mrb[18].mxu0  ;;  %v1705_v50 = vpop.f32.mrb[18].mxu1 }
 0x11d   : > { %v920_v51 = vmax.f32 %v720_v43, 0.0  ;;  %v952_v52 = vmax.f32 %v848_v44, 0.0  ;;  %v723_v53 = vadd.f32 %v1673_v49, %v1936_v38  ;;  %v851_v54 = vadd.f32 %v1705_v50, %v1936_v38  ;;  %v714_v55 = vpop.f32.mrb[19].mxu0  ;;  %v842_v56 = vpop.f32.mrb[19].mxu1 }
 0x11e   : > { %v918_v57 = vmax.f32 %v712_v47, 0.0  ;;  %v950_v58 = vmax.f32 %v840_v48, 0.0  ;;  %v715_v59 = vadd.f32 %v1936_v38, %v714_v55  ;;  %v843_v60 = vadd.f32 %v1936_v38, %v842_v56 }
 0x11f   : > { %v1561_v61 = vpack.c.bf16 %v920_v51, %v920_v51  ;;  %v1593_v62 = vpack.c.bf16 %v952_v52, %v952_v52  ;;  %v921_v63 = vmax.f32 %v723_v53, 0.0  ;;  %v953_v0 = vmax.f32 %v851_v54, 0.0 }
 0x120   : > { %v1559_v1 = vpack.c.bf16 %v918_v57, %v918_v57  ;;  %v1591_v2 = vpack.c.bf16 %v950_v58, %v950_v58  ;;  %v919_v3 = vmax.f32 %v715_v59, 0.0  ;;  %v951_v4 = vmax.f32 %v843_v60, 0.0 }
 0x121   : > { %1241 = vst.msk [vmem:[%s1949_s29 + $0x48] sm:$0xf] %vm1222_vm2, %v1561_v61  ;;  %1273 = vst.msk [vmem:[%s1949_s29 + $0xc8] sm:$0xf] %vm1222_vm2, %v1593_v62  ;;  %v1562_v5 = vpack.c.bf16 %v921_v63, %v921_v63  ;;  %v1594_v6 = vpack.c.bf16 %v953_v0, %v953_v0 }
 0x122   : > { %1239 = vst.msk [vmem:[%s1949_s29 + $0x40] sm:$0xf] %vm1222_vm2, %v1559_v1  ;;  %1271 = vst.msk [vmem:[%s1949_s29 + $0xc0] sm:$0xf] %vm1222_vm2, %v1591_v2  ;;  %v1560_v7 = vpack.c.bf16 %v919_v3, %v919_v3  ;;  %v1592_v8 = vpack.c.bf16 %v951_v4, %v951_v4  ;;  %v1676_v9 = vpop.f32.mrb[20].mxu0  ;;  %v1708_v10 = vpop.f32.mrb[20].mxu1 }
 0x123   : > { %1242 = vst.msk [vmem:[%s1949_s29 + $0x4c] sm:$0xf] %vm1222_vm2, %v1562_v5  ;;  %1274 = vst.msk [vmem:[%s1949_s29 + $0xcc] sm:$0xf] %vm1222_vm2, %v1594_v6  ;;  %v736_v11 = vadd.f32 %v1676_v9, %v1936_v38  ;;  %v864_v12 = vadd.f32 %v1708_v10, %v1936_v38  ;;  %v727_v13 = vpop.f32.mrb[21].mxu0  ;;  %v855_v14 = vpop.f32.mrb[21].mxu1 }
 0x124   : > { %1240 = vst.msk [vmem:[%s1949_s29 + $0x44] sm:$0xf] %vm1222_vm2, %v1560_v7  ;;  %1272 = vst.msk [vmem:[%s1949_s29 + $0xc4] sm:$0xf] %vm1222_vm2, %v1592_v8  ;;  %v728_v15 = vadd.f32 %v1936_v38, %v727_v13  ;;  %v856_v16 = vadd.f32 %v1936_v38, %v855_v14  ;;  %v1677_v17 = vpop.f32.mrb[22].mxu0  ;;  %v1709_v18 = vpop.f32.mrb[22].mxu1 }
 0x125   : > { %v924_v19 = vmax.f32 %v736_v11, 0.0  ;;  %v956_v20 = vmax.f32 %v864_v12, 0.0  ;;  %v739_v21 = vadd.f32 %v1677_v17, %v1936_v38  ;;  %v867_v22 = vadd.f32 %v1709_v18, %v1936_v38  ;;  %v730_v23 = vpop.f32.mrb[23].mxu0  ;;  %v858_v24 = vpop.f32.mrb[23].mxu1 }
 0x126   : > { %v922_v25 = vmax.f32 %v728_v15, 0.0  ;;  %v954_v26 = vmax.f32 %v856_v16, 0.0  ;;  %v731_v27 = vadd.f32 %v1936_v38, %v730_v23  ;;  %v859_v28 = vadd.f32 %v1936_v38, %v858_v24 }
 0x127   : > { %v1565_v29 = vpack.c.bf16 %v924_v19, %v924_v19  ;;  %v1597_v30 = vpack.c.bf16 %v956_v20, %v956_v20  ;;  %v925_v31 = vmax.f32 %v739_v21, 0.0  ;;  %v957_v32 = vmax.f32 %v867_v22, 0.0 }
 0x128   : > { %v1563_v33 = vpack.c.bf16 %v922_v25, %v922_v25  ;;  %v1595_v34 = vpack.c.bf16 %v954_v26, %v954_v26  ;;  %v923_v35 = vmax.f32 %v731_v27, 0.0  ;;  %v955_v36 = vmax.f32 %v859_v28, 0.0 }
 0x129   : > { %1245 = vst.msk [vmem:[%s1949_s29 + $0x58] sm:$0xf] %vm1222_vm2, %v1565_v29  ;;  %1277 = vst.msk [vmem:[%s1949_s29 + $0xd8] sm:$0xf] %vm1222_vm2, %v1597_v30  ;;  %v1566_v37 = vpack.c.bf16 %v925_v31, %v925_v31  ;;  %v1598_v39 = vpack.c.bf16 %v957_v32, %v957_v32 }
 0x12a   : > { %1243 = vst.msk [vmem:[%s1949_s29 + $0x50] sm:$0xf] %vm1222_vm2, %v1563_v33  ;;  %1275 = vst.msk [vmem:[%s1949_s29 + $0xd0] sm:$0xf] %vm1222_vm2, %v1595_v34  ;;  %v1564_v40 = vpack.c.bf16 %v923_v35, %v923_v35  ;;  %v1596_v41 = vpack.c.bf16 %v955_v36, %v955_v36  ;;  %v1680_v42 = vpop.f32.mrb[24].mxu0  ;;  %v1712_v43 = vpop.f32.mrb[24].mxu1 }
 0x12b   : > { %1246 = vst.msk [vmem:[%s1949_s29 + $0x5c] sm:$0xf] %vm1222_vm2, %v1566_v37  ;;  %1278 = vst.msk [vmem:[%s1949_s29 + $0xdc] sm:$0xf] %vm1222_vm2, %v1598_v39  ;;  %v752_v44 = vadd.f32 %v1680_v42, %v1936_v38  ;;  %v880_v45 = vadd.f32 %v1712_v43, %v1936_v38  ;;  %v743_v46 = vpop.f32.mrb[25].mxu0  ;;  %v871_v47 = vpop.f32.mrb[25].mxu1 }
 0x12c   : > { %1244 = vst.msk [vmem:[%s1949_s29 + $0x54] sm:$0xf] %vm1222_vm2, %v1564_v40  ;;  %1276 = vst.msk [vmem:[%s1949_s29 + $0xd4] sm:$0xf] %vm1222_vm2, %v1596_v41  ;;  %v744_v48 = vadd.f32 %v1936_v38, %v743_v46  ;;  %v872_v49 = vadd.f32 %v1936_v38, %v871_v47  ;;  %v1681_v50 = vpop.f32.mrb[26].mxu0  ;;  %v1713_v51 = vpop.f32.mrb[26].mxu1 }
 0x12d   : > { %v928_v52 = vmax.f32 %v752_v44, 0.0  ;;  %v960_v53 = vmax.f32 %v880_v45, 0.0  ;;  %v755_v54 = vadd.f32 %v1681_v50, %v1936_v38  ;;  %v883_v55 = vadd.f32 %v1713_v51, %v1936_v38  ;;  %v746_v56 = vpop.f32.mrb[27].mxu0  ;;  %v874_v57 = vpop.f32.mrb[27].mxu1 }
 0x12e   : > { %v926_v58 = vmax.f32 %v744_v48, 0.0  ;;  %v958_v59 = vmax.f32 %v872_v49, 0.0  ;;  %v747_v60 = vadd.f32 %v1936_v38, %v746_v56  ;;  %v875_v61 = vadd.f32 %v1936_v38, %v874_v57 }
 0x12f   : > { %v1569_v62 = vpack.c.bf16 %v928_v52, %v928_v52  ;;  %v1601_v63 = vpack.c.bf16 %v960_v53, %v960_v53  ;;  %v929_v0 = vmax.f32 %v755_v54, 0.0  ;;  %v961_v1 = vmax.f32 %v883_v55, 0.0 }
 0x130   : > { %v1567_v2 = vpack.c.bf16 %v926_v58, %v926_v58  ;;  %v1599_v3 = vpack.c.bf16 %v958_v59, %v958_v59  ;;  %v927_v4 = vmax.f32 %v747_v60, 0.0  ;;  %v959_v5 = vmax.f32 %v875_v61, 0.0 }
 0x131   : > { %1249 = vst.msk [vmem:[%s1949_s29 + $0x68] sm:$0xf] %vm1222_vm2, %v1569_v62  ;;  %1281 = vst.msk [vmem:[%s1949_s29 + $0xe8] sm:$0xf] %vm1222_vm2, %v1601_v63  ;;  %v1570_v6 = vpack.c.bf16 %v929_v0, %v929_v0  ;;  %v1602_v7 = vpack.c.bf16 %v961_v1, %v961_v1 }
 0x132   : > { %1247 = vst.msk [vmem:[%s1949_s29 + $0x60] sm:$0xf] %vm1222_vm2, %v1567_v2  ;;  %1279 = vst.msk [vmem:[%s1949_s29 + $0xe0] sm:$0xf] %vm1222_vm2, %v1599_v3  ;;  %v1568_v8 = vpack.c.bf16 %v927_v4, %v927_v4  ;;  %v1600_v9 = vpack.c.bf16 %v959_v5, %v959_v5  ;;  %v1684_v10 = vpop.f32.mrb[28].mxu0  ;;  %v1716_v11 = vpop.f32.mrb[28].mxu1 }
 0x133   : > { %1250 = vst.msk [vmem:[%s1949_s29 + $0x6c] sm:$0xf] %vm1222_vm2, %v1570_v6  ;;  %1282 = vst.msk [vmem:[%s1949_s29 + $0xec] sm:$0xf] %vm1222_vm2, %v1602_v7  ;;  %v768_v12 = vadd.f32 %v1684_v10, %v1936_v38  ;;  %v896_v13 = vadd.f32 %v1716_v11, %v1936_v38  ;;  %v759_v14 = vpop.f32.mrb[29].mxu0  ;;  %v887_v15 = vpop.f32.mrb[29].mxu1 }
 0x134   : > { %1248 = vst.msk [vmem:[%s1949_s29 + $0x64] sm:$0xf] %vm1222_vm2, %v1568_v8  ;;  %1280 = vst.msk [vmem:[%s1949_s29 + $0xe4] sm:$0xf] %vm1222_vm2, %v1600_v9  ;;  %v760_v16 = vadd.f32 %v1936_v38, %v759_v14  ;;  %v888_v17 = vadd.f32 %v1936_v38, %v887_v15  ;;  %v1685_v18 = vpop.f32.mrb[30].mxu0  ;;  %v1717_v19 = vpop.f32.mrb[30].mxu1 }
 0x135   : > { %v932_v20 = vmax.f32 %v768_v12, 0.0  ;;  %v964_v21 = vmax.f32 %v896_v13, 0.0  ;;  %v771_v22 = vadd.f32 %v1685_v18, %v1936_v38  ;;  %v899_v23 = vadd.f32 %v1717_v19, %v1936_v38  ;;  %v762_v24 = vpop.f32.mrb[31].mxu0  ;;  %v890_v25 = vpop.f32.mrb[31].mxu1 }
 0x136   : > { %v930_v26 = vmax.f32 %v760_v16, 0.0  ;;  %v962_v27 = vmax.f32 %v888_v17, 0.0  ;;  %v763_v28 = vadd.f32 %v1936_v38, %v762_v24  ;;  %v891_v29 = vadd.f32 %v1936_v38, %v890_v25 }
 0x137   : > { %v1573_v30 = vpack.c.bf16 %v932_v20, %v932_v20  ;;  %v1605_v31 = vpack.c.bf16 %v964_v21, %v964_v21  ;;  %v933_v32 = vmax.f32 %v771_v22, 0.0  ;;  %v965_v33 = vmax.f32 %v899_v23, 0.0 }
 0x138   : > { %v1571_v34 = vpack.c.bf16 %v930_v26, %v930_v26  ;;  %v1603_v35 = vpack.c.bf16 %v962_v27, %v962_v27  ;;  %v931_v36 = vmax.f32 %v763_v28, 0.0  ;;  %v963_v37 = vmax.f32 %v891_v29, 0.0 }
 0x139   : > { %1253 = vst.msk [vmem:[%s1949_s29 + $0x78] sm:$0xf] %vm1222_vm2, %v1573_v30  ;;  %1285 = vst.msk [vmem:[%s1949_s29 + $0xf8] sm:$0xf] %vm1222_vm2, %v1605_v31  ;;  %v1574_v39 = vpack.c.bf16 %v933_v32, %v933_v32  ;;  %v1606_v40 = vpack.c.bf16 %v965_v33, %v965_v33 }
 0x13a   : > { %1251 = vst.msk [vmem:[%s1949_s29 + $0x70] sm:$0xf] %vm1222_vm2, %v1571_v34  ;;  %1283 = vst.msk [vmem:[%s1949_s29 + $0xf0] sm:$0xf] %vm1222_vm2, %v1603_v35  ;;  %v1572_v38 = vpack.c.bf16 %v931_v36, %v931_v36  ;;  %v1604_v41 = vpack.c.bf16 %v963_v37, %v963_v37 }
 0x13b   : > { %1254 = vst.msk [vmem:[%s1949_s29 + $0x7c] sm:$0xf] %vm1222_vm2, %v1574_v39  ;;  %1286 = vst.msk [vmem:[%s1949_s29 + $0xfc] sm:$0xf] %vm1222_vm2, %v1606_v40 }
 0x13c   : > { %1252 = vst.msk [vmem:[%s1949_s29 + $0x74] sm:$0xf] %vm1222_vm2, %v1572_v38  ;;  %1284 = vst.msk [vmem:[%s1949_s29 + $0xf4] sm:$0xf] %vm1222_vm2, %v1604_v41 }
 0x13d PF: > { %s13_s14 = sadd.s32 1, %s1814_s14   ;;  %s2150_s12 = smov %s1810_s13 }
 0x13e   : > { %p10_p5 = scmp.ge.s32.totalorder %s13_s14, 18   ;;  %s2151_s13 = smov %s2153_s15 }
 0x140   :  { %12 = sbr.rel (!%p10_p5) target bundleno = 2 (0x2), region = 68 }

// kernel: forward.82
= control target key start
LH: loop header
LB: loop body
LE: loop exit
PB: predicated region body
PF: predicated region fallthrough
CT: control target
= control target key end

     0   :  { %s1775_s12 = smov 0   ;;  %s1777_s13 = smov 0   ;;  %s2085_s0 = inlined_call_operand.vmem [shape: bf16[8,512,16], index: 0, kind: input, shape index: {}]   ;;  %s2086_s1 = inlined_call_operand.vmem [shape: bf16[8,16,8], index: 1, kind: input, shape index: {}]   ;;  %s2087_s2 = inlined_call_operand.vmem [shape: f32[8,1,8], index: 2, kind: input, shape index: {}]   ;;  %s2088_s3 = inlined_call_operand.vmem [shape: bf16[8,512,8], index: 3, kind: output, shape index: {}]  }
   0x1   :  { %s1779_s14 = smov 0  }
   0x2 LB: > { %s25_s15 = sadd.s32 1, %s1749_s13  ;;  %p1367_p0 = scmp.ge.s32.totalorder %s1753_s14, 1  ;;  %s1753_s14 = sphi %s1779_s14, %s13_s14   ;;  %s1749_s13 = sphi %s1777_s13, %s2090_s13   ;;  %s1745_s12 = sphi %s1775_s12, %s2089_s12  }
   0x3   : > { %p27_p1 = scmp.ge.s32.totalorder %s25_s15, 8  ;;  %p176_p2 = scmp.lt.s32.totalorder %s1753_s14, 9 }
   0x5   : > { %s2092_s15 = smov (%p27_p1, %s25_s15), 0  ;;  %p177_p3 = pnand %p1367_p0, %p176_p2 }
   0x6   : > { %p217_p4 = scmp.lt.s32.totalorder (!%p177_p3), %s1745_s12, 7  ;;  %vm484_vm0 = vcmask (!%p177_p3), 130048   ;;  %vm1190_vm1 = vcmask (!%p177_p3), 60416  }
   0x7   : > { %180 = sbr.rel (%p177_p3) target bundleno = 300 (0x12c), region = 32 }
   0xe   : > { %s2094_s12 = smov (!%p217_p4, %s1745_s12), 7 }
   0xf   : > { %s1506_s16 = sshll.u32 %s2094_s12, 8  ;;  %s1507_s17 = sshll.u32 %s2094_s12, 3 }
  0x10   : > { %s1802_s20 = scalar_lea.vmem %s2085_s0, %s1506_s16  ;;  %s230_s23 = scalar_lea.vmem %s2086_s1, %s1507_s17 }
  0x11   : > { %v1698_v0 = vld [vmem:[%s230_s23] sm:$0xff]   ;;  %v1701_v3 = vld [vmem:[%s1802_s20 + $0x8] sm:$0xff]   ;;  %v1703_v5 = vld [vmem:[%s1802_s20 + $0x10] sm:$0xff]   ;;  %s233_s26 = scalar_lea.vmem %s2087_s2, %s2094_s12  ;;  %s1887_s29 = scalar_lea.vmem %s2088_s3, %s1506_s16 }
  0x12   : > { %1606 = vmatprep.subr.bf16.mxu0 %v1698_v0  ;;  %1672 = vmatprep.subr.bf16.mxu1 %v1698_v0  ;;  %v1699_v1 = vld [vmem:[%s1802_s20] sm:$0xff]   ;;  %v1702_v4 = vld [vmem:[%s1802_s20 + $0x88] sm:$0xff]   ;;  %v1704_v6 = vld [vmem:[%s1802_s20 + $0x90] sm:$0xff]  }
  0x13   : > { %1607 = vmatpush3.bf16.msra.mxu0 %v1698_v0  ;;  %1673 = vmatpush3.bf16.msra.mxu1 %v1698_v0  ;;  %v1700_v2 = vld [vmem:[%s1802_s20 + $0x80] sm:$0xff]   ;;  %v1705_v7 = vld [vmem:[%s1802_s20 + $0x18] sm:$0xff]   ;;  %v1709_v11 = vld [vmem:[%s1802_s20 + $0x28] sm:$0xff]  }
  0x14   : > { %1608 = vmatprep.mubr.msk.bf16.mxu0 %vm484_vm0, %v1699_v1  ;;  %1640 = vmatprep.mubr.msk.bf16.mxu1 %vm484_vm0, %v1700_v2  ;;  %v1706_v8 = vld [vmem:[%s1802_s20 + $0x98] sm:$0xff]   ;;  %v1707_v9 = vld [vmem:[%s1802_s20 + $0x20] sm:$0xff]   ;;  %v1710_v12 = vld [vmem:[%s1802_s20 + $0xa8] sm:$0xff]  }
  0x15   : > { %v1708_v10 = vld [vmem:[%s1802_s20 + $0xa0] sm:$0xff]   ;;  %v1711_v13 = vld [vmem:[%s1802_s20 + $0x30] sm:$0xff]   ;;  %v1713_v15 = vld [vmem:[%s1802_s20 + $0x38] sm:$0xff]  }
  0x16   : > { %1609 = vmatmul.mubr.msk.bf16.vlgmr.msra.gmra.mrb[0].mxu0 %vm484_vm0, %v1701_v3  ;;  %1641 = vmatmul.mubr.msk.bf16.vlgmr.msra.gmra.mrb[0].mxu1 %vm484_vm0, %v1702_v4  ;;  %v1712_v14 = vld [vmem:[%s1802_s20 + $0xb0] sm:$0xff]   ;;  %v1714_v16 = vld [vmem:[%s1802_s20 + $0xb8] sm:$0xff]   ;;  %v1715_v17 = vld [vmem:[%s1802_s20 + $0x40] sm:$0xff]  }
  0x17   : > { %1612 = vmatprep.mubr.msk.bf16.mxu0 %vm484_vm0, %v1703_v5  ;;  %1644 = vmatprep.mubr.msk.bf16.mxu1 %vm484_vm0, %v1704_v6  ;;  %v1716_v18 = vld [vmem:[%s1802_s20 + $0xc0] sm:$0xff]   ;;  %v1717_v19 = vld [vmem:[%s1802_s20 + $0x48] sm:$0xff]   ;;  %v1719_v21 = vld [vmem:[%s1802_s20 + $0x50] sm:$0xff]  }
  0x18   : > { %v1718_v20 = vld [vmem:[%s1802_s20 + $0xc8] sm:$0xff]   ;;  %v1720_v22 = vld [vmem:[%s1802_s20 + $0xd0] sm:$0xff]   ;;  %v1721_v23 = vld [vmem:[%s1802_s20 + $0x58] sm:$0xff]  }
  0x19   : > { %v1722_v24 = vld [vmem:[%s1802_s20 + $0xd8] sm:$0xff]   ;;  %v1723_v25 = vld [vmem:[%s1802_s20 + $0x60] sm:$0xff]   ;;  %v1725_v27 = vld [vmem:[%s1802_s20 + $0x68] sm:$0xff]  }
  0x1a   : > { %v1724_v26 = vld [vmem:[%s1802_s20 + $0xe0] sm:$0xff]   ;;  %v1726_v28 = vld [vmem:[%s1802_s20 + $0xe8] sm:$0xff]   ;;  %v1727_v29 = vld [vmem:[%s1802_s20 + $0x70] sm:$0xff]  }
  0x1b   : > { %v1728_v30 = vld [vmem:[%s1802_s20 + $0xf0] sm:$0xff]   ;;  %v1729_v31 = vld [vmem:[%s1802_s20 + $0x78] sm:$0xff]   ;;  %v1875_v33 = vld [vmem:[%s233_s26] ss:$0 sm:$0xff] }
  0x1c   : > { %v1730_v32 = vld [vmem:[%s1802_s20 + $0xf8] sm:$0xff]  }
  0x1e   : > { %1613 = vmatmul.mubr.msk.bf16.gmra.mrb[4].mxu0 %vm484_vm0, %v1705_v7  ;;  %1645 = vmatmul.mubr.msk.bf16.gmra.mrb[4].mxu1 %vm484_vm0, %v1706_v8 }
  0x1f   : > { %1616 = vmatprep.mubr.msk.bf16.mxu0 %vm484_vm0, %v1707_v9  ;;  %1648 = vmatprep.mubr.msk.bf16.mxu1 %vm484_vm0, %v1708_v10 }
  0x26   : > { %1617 = vmatmul.mubr.msk.bf16.gmra.mrb[8].mxu0 %vm484_vm0, %v1709_v11  ;;  %1649 = vmatmul.mubr.msk.bf16.gmra.mrb[8].mxu1 %vm484_vm0, %v1710_v12 }
  0x27   : > { %1620 = vmatprep.mubr.msk.bf16.mxu0 %vm484_vm0, %v1711_v13  ;;  %1652 = vmatprep.mubr.msk.bf16.mxu1 %vm484_vm0, %v1712_v14 }
  0x2e   : > { %1621 = vmatmul.mubr.msk.bf16.gmra.mrb[12].mxu0 %vm484_vm0, %v1713_v15  ;;  %1653 = vmatmul.mubr.msk.bf16.gmra.mrb[12].mxu1 %vm484_vm0, %v1714_v16 }
  0x2f   : > { %1624 = vmatprep.mubr.msk.bf16.mxu0 %vm484_vm0, %v1715_v17  ;;  %1656 = vmatprep.mubr.msk.bf16.mxu1 %vm484_vm0, %v1716_v18 }
  0x36   : > { %1625 = vmatmul.mubr.msk.bf16.gmra.mrb[16].mxu0 %vm484_vm0, %v1717_v19  ;;  %1657 = vmatmul.mubr.msk.bf16.gmra.mrb[16].mxu1 %vm484_vm0, %v1718_v20 }
  0x37   : > { %1628 = vmatprep.mubr.msk.bf16.mxu0 %vm484_vm0, %v1719_v21  ;;  %1660 = vmatprep.mubr.msk.bf16.mxu1 %vm484_vm0, %v1720_v22 }
  0x3e   : > { %1629 = vmatmul.mubr.msk.bf16.gmra.mrb[20].mxu0 %vm484_vm0, %v1721_v23  ;;  %1661 = vmatmul.mubr.msk.bf16.gmra.mrb[20].mxu1 %vm484_vm0, %v1722_v24 }
  0x3f   : > { %1632 = vmatprep.mubr.msk.bf16.mxu0 %vm484_vm0, %v1723_v25  ;;  %1664 = vmatprep.mubr.msk.bf16.mxu1 %vm484_vm0, %v1724_v26 }
  0x46   : > { %1633 = vmatmul.mubr.msk.bf16.gmra.mrb[24].mxu0 %vm484_vm0, %v1725_v27  ;;  %1665 = vmatmul.mubr.msk.bf16.gmra.mrb[24].mxu1 %vm484_vm0, %v1726_v28 }
  0x47   : > { %1636 = vmatprep.mubr.msk.bf16.mxu0 %vm484_vm0, %v1727_v29  ;;  %1668 = vmatprep.mubr.msk.bf16.mxu1 %vm484_vm0, %v1728_v30 }
  0x4e   : > { %1637 = vmatmul.mubr.msk.bf16.gmra.mrb[28].mxu0 %vm484_vm0, %v1729_v31  ;;  %1669 = vmatmul.mubr.msk.bf16.gmra.mrb[28].mxu1 %vm484_vm0, %v1730_v32 }
  0xe9   : > { %v1610_v34 = vpop.f32.mrb[0].mxu0  ;;  %v1642_v36 = vpop.f32.mrb[0].mxu1 }
  0xea   : > { %v624_v35 = vadd.f32 %v1610_v34, %v1875_v33  ;;  %v615_v37 = vpop.f32.mrb[1].mxu0  ;;  %v752_v38 = vadd.f32 %v1642_v36, %v1875_v33  ;;  %v743_v40 = vpop.f32.mrb[1].mxu1 }
  0xeb   : > { %v616_v39 = vadd.f32 %v1875_v33, %v615_v37  ;;  %v1611_v41 = vpop.f32.mrb[2].mxu0  ;;  %v744_v43 = vadd.f32 %v1875_v33, %v743_v40  ;;  %v1643_v45 = vpop.f32.mrb[2].mxu1 }
  0xec   : > { %v872_v42 = vmax.f32 %v624_v35, 0.0  ;;  %v627_v44 = vadd.f32 %v1611_v41, %v1875_v33  ;;  %v618_v46 = vpop.f32.mrb[3].mxu0  ;;  %v904_v47 = vmax.f32 %v752_v38, 0.0  ;;  %v755_v49 = vadd.f32 %v1643_v45, %v1875_v33  ;;  %v746_v51 = vpop.f32.mrb[3].mxu1 }
  0xed   : > { %v870_v48 = vmax.f32 %v616_v39, 0.0  ;;  %v619_v50 = vadd.f32 %v1875_v33, %v618_v46  ;;  %v902_v53 = vmax.f32 %v744_v43, 0.0  ;;  %v747_v55 = vadd.f32 %v1875_v33, %v746_v51 }
  0xee   : > { %v1511_v52 = vpack.c.bf16 %v872_v42, %v872_v42  ;;  %v873_v54 = vmax.f32 %v627_v44, 0.0  ;;  %v1543_v56 = vpack.c.bf16 %v904_v47, %v904_v47  ;;  %v905_v58 = vmax.f32 %v755_v49, 0.0 }
  0xef   : > { %v1509_v57 = vpack.c.bf16 %v870_v48, %v870_v48  ;;  %v871_v59 = vmax.f32 %v619_v50, 0.0  ;;  %v1541_v60 = vpack.c.bf16 %v902_v53, %v902_v53  ;;  %v903_v62 = vmax.f32 %v747_v55, 0.0 }
  0xf0   : > { %1193 = vst.msk [vmem:[%s1887_s29 + $0x8] sm:$0xf] %vm1190_vm1, %v1511_v52  ;;  %v1512_v61 = vpack.c.bf16 %v873_v54, %v873_v54  ;;  %1225 = vst.msk [vmem:[%s1887_s29 + $0x88] sm:$0xf] %vm1190_vm1, %v1543_v56  ;;  %v1544_v63 = vpack.c.bf16 %v905_v58, %v905_v58 }
  0xf1   : > { %1191 = vst.msk [vmem:[%s1887_s29] sm:$0xf] %vm1190_vm1, %v1509_v57  ;;  %v1510_v0 = vpack.c.bf16 %v871_v59, %v871_v59  ;;  %v1614_v1 = vpop.f32.mrb[4].mxu0  ;;  %1223 = vst.msk [vmem:[%s1887_s29 + $0x80] sm:$0xf] %vm1190_vm1, %v1541_v60  ;;  %v1542_v2 = vpack.c.bf16 %v903_v62, %v903_v62  ;;  %v1646_v4 = vpop.f32.mrb[4].mxu1 }
  0xf2   : > { %1194 = vst.msk [vmem:[%s1887_s29 + $0xc] sm:$0xf] %vm1190_vm1, %v1512_v61  ;;  %v640_v3 = vadd.f32 %v1614_v1, %v1875_v33  ;;  %v631_v5 = vpop.f32.mrb[5].mxu0  ;;  %1226 = vst.msk [vmem:[%s1887_s29 + $0x8c] sm:$0xf] %vm1190_vm1, %v1544_v63  ;;  %v768_v6 = vadd.f32 %v1646_v4, %v1875_v33  ;;  %v759_v8 = vpop.f32.mrb[5].mxu1 }
  0xf3   : > { %1192 = vst.msk [vmem:[%s1887_s29 + $0x4] sm:$0xf] %vm1190_vm1, %v1510_v0  ;;  %v632_v7 = vadd.f32 %v1875_v33, %v631_v5  ;;  %v1615_v9 = vpop.f32.mrb[6].mxu0  ;;  %1224 = vst.msk [vmem:[%s1887_s29 + $0x84] sm:$0xf] %vm1190_vm1, %v1542_v2  ;;  %v760_v11 = vadd.f32 %v1875_v33, %v759_v8  ;;  %v1647_v13 = vpop.f32.mrb[6].mxu1 }
  0xf4   : > { %v876_v10 = vmax.f32 %v640_v3, 0.0  ;;  %v643_v12 = vadd.f32 %v1615_v9, %v1875_v33  ;;  %v634_v14 = vpop.f32.mrb[7].mxu0  ;;  %v908_v15 = vmax.f32 %v768_v6, 0.0  ;;  %v771_v17 = vadd.f32 %v1647_v13, %v1875_v33  ;;  %v762_v19 = vpop.f32.mrb[7].mxu1 }
  0xf5   : > { %v874_v16 = vmax.f32 %v632_v7, 0.0  ;;  %v635_v18 = vadd.f32 %v1875_v33, %v634_v14  ;;  %v906_v21 = vmax.f32 %v760_v11, 0.0  ;;  %v763_v23 = vadd.f32 %v1875_v33, %v762_v19 }
  0xf6   : > { %v1515_v20 = vpack.c.bf16 %v876_v10, %v876_v10  ;;  %v877_v22 = vmax.f32 %v643_v12, 0.0  ;;  %v1547_v24 = vpack.c.bf16 %v908_v15, %v908_v15  ;;  %v909_v26 = vmax.f32 %v771_v17, 0.0 }
  0xf7   : > { %v1513_v25 = vpack.c.bf16 %v874_v16, %v874_v16  ;;  %v875_v27 = vmax.f32 %v635_v18, 0.0  ;;  %v1545_v28 = vpack.c.bf16 %v906_v21, %v906_v21  ;;  %v907_v30 = vmax.f32 %v763_v23, 0.0 }
  0xf8   : > { %1197 = vst.msk [vmem:[%s1887_s29 + $0x18] sm:$0xf] %vm1190_vm1, %v1515_v20  ;;  %v1516_v29 = vpack.c.bf16 %v877_v22, %v877_v22  ;;  %1229 = vst.msk [vmem:[%s1887_s29 + $0x98] sm:$0xf] %vm1190_vm1, %v1547_v24  ;;  %v1548_v31 = vpack.c.bf16 %v909_v26, %v909_v26 }
  0xf9   : > { %1195 = vst.msk [vmem:[%s1887_s29 + $0x10] sm:$0xf] %vm1190_vm1, %v1513_v25  ;;  %v1514_v32 = vpack.c.bf16 %v875_v27, %v875_v27  ;;  %v1618_v34 = vpop.f32.mrb[8].mxu0  ;;  %1227 = vst.msk [vmem:[%s1887_s29 + $0x90] sm:$0xf] %vm1190_vm1, %v1545_v28  ;;  %v1546_v35 = vpack.c.bf16 %v907_v30, %v907_v30  ;;  %v1650_v37 = vpop.f32.mrb[8].mxu1 }
  0xfa   : > { %1198 = vst.msk [vmem:[%s1887_s29 + $0x1c] sm:$0xf] %vm1190_vm1, %v1516_v29  ;;  %v656_v36 = vadd.f32 %v1618_v34, %v1875_v33  ;;  %v647_v38 = vpop.f32.mrb[9].mxu0  ;;  %1230 = vst.msk [vmem:[%s1887_s29 + $0x9c] sm:$0xf] %vm1190_vm1, %v1548_v31  ;;  %v784_v39 = vadd.f32 %v1650_v37, %v1875_v33  ;;  %v775_v41 = vpop.f32.mrb[9].mxu1 }
  0xfb   : > { %1196 = vst.msk [vmem:[%s1887_s29 + $0x14] sm:$0xf] %vm1190_vm1, %v1514_v32  ;;  %v648_v40 = vadd.f32 %v1875_v33, %v647_v38  ;;  %v1619_v42 = vpop.f32.mrb[10].mxu0  ;;  %1228 = vst.msk [vmem:[%s1887_s29 + $0x94] sm:$0xf] %vm1190_vm1, %v1546_v35  ;;  %v776_v44 = vadd.f32 %v1875_v33, %v775_v41  ;;  %v1651_v46 = vpop.f32.mrb[10].mxu1 }
  0xfc   : > { %v880_v43 = vmax.f32 %v656_v36, 0.0  ;;  %v659_v45 = vadd.f32 %v1619_v42, %v1875_v33  ;;  %v650_v47 = vpop.f32.mrb[11].mxu0  ;;  %v912_v48 = vmax.f32 %v784_v39, 0.0  ;;  %v787_v50 = vadd.f32 %v1651_v46, %v1875_v33  ;;  %v778_v52 = vpop.f32.mrb[11].mxu1 }
  0xfd   : > { %v878_v49 = vmax.f32 %v648_v40, 0.0  ;;  %v651_v51 = vadd.f32 %v1875_v33, %v650_v47  ;;  %v910_v54 = vmax.f32 %v776_v44, 0.0  ;;  %v779_v56 = vadd.f32 %v1875_v33, %v778_v52 }
  0xfe   : > { %v1519_v53 = vpack.c.bf16 %v880_v43, %v880_v43  ;;  %v881_v55 = vmax.f32 %v659_v45, 0.0  ;;  %v1551_v57 = vpack.c.bf16 %v912_v48, %v912_v48  ;;  %v913_v59 = vmax.f32 %v787_v50, 0.0 }
  0xff   : > { %v1517_v58 = vpack.c.bf16 %v878_v49, %v878_v49  ;;  %v879_v60 = vmax.f32 %v651_v51, 0.0  ;;  %v1549_v61 = vpack.c.bf16 %v910_v54, %v910_v54  ;;  %v911_v63 = vmax.f32 %v779_v56, 0.0 }
 0x100   : > { %1201 = vst.msk [vmem:[%s1887_s29 + $0x28] sm:$0xf] %vm1190_vm1, %v1519_v53  ;;  %v1520_v62 = vpack.c.bf16 %v881_v55, %v881_v55  ;;  %1233 = vst.msk [vmem:[%s1887_s29 + $0xa8] sm:$0xf] %vm1190_vm1, %v1551_v57  ;;  %v1552_v0 = vpack.c.bf16 %v913_v59, %v913_v59 }
 0x101   : > { %1199 = vst.msk [vmem:[%s1887_s29 + $0x20] sm:$0xf] %vm1190_vm1, %v1517_v58  ;;  %v1518_v1 = vpack.c.bf16 %v879_v60, %v879_v60  ;;  %v1622_v2 = vpop.f32.mrb[12].mxu0  ;;  %1231 = vst.msk [vmem:[%s1887_s29 + $0xa0] sm:$0xf] %vm1190_vm1, %v1549_v61  ;;  %v1550_v3 = vpack.c.bf16 %v911_v63, %v911_v63  ;;  %v1654_v5 = vpop.f32.mrb[12].mxu1 }
 0x102   : > { %1202 = vst.msk [vmem:[%s1887_s29 + $0x2c] sm:$0xf] %vm1190_vm1, %v1520_v62  ;;  %v672_v4 = vadd.f32 %v1622_v2, %v1875_v33  ;;  %v663_v6 = vpop.f32.mrb[13].mxu0  ;;  %1234 = vst.msk [vmem:[%s1887_s29 + $0xac] sm:$0xf] %vm1190_vm1, %v1552_v0  ;;  %v800_v7 = vadd.f32 %v1654_v5, %v1875_v33  ;;  %v791_v9 = vpop.f32.mrb[13].mxu1 }
 0x103   : > { %1200 = vst.msk [vmem:[%s1887_s29 + $0x24] sm:$0xf] %vm1190_vm1, %v1518_v1  ;;  %v664_v8 = vadd.f32 %v1875_v33, %v663_v6  ;;  %v1623_v10 = vpop.f32.mrb[14].mxu0  ;;  %1232 = vst.msk [vmem:[%s1887_s29 + $0xa4] sm:$0xf] %vm1190_vm1, %v1550_v3  ;;  %v792_v12 = vadd.f32 %v1875_v33, %v791_v9  ;;  %v1655_v14 = vpop.f32.mrb[14].mxu1 }
 0x104   : > { %v884_v11 = vmax.f32 %v672_v4, 0.0  ;;  %v675_v13 = vadd.f32 %v1623_v10, %v1875_v33  ;;  %v666_v15 = vpop.f32.mrb[15].mxu0  ;;  %v916_v16 = vmax.f32 %v800_v7, 0.0  ;;  %v803_v18 = vadd.f32 %v1655_v14, %v1875_v33  ;;  %v794_v20 = vpop.f32.mrb[15].mxu1 }
 0x105   : > { %v882_v17 = vmax.f32 %v664_v8, 0.0  ;;  %v667_v19 = vadd.f32 %v1875_v33, %v666_v15  ;;  %v914_v22 = vmax.f32 %v792_v12, 0.0  ;;  %v795_v24 = vadd.f32 %v1875_v33, %v794_v20 }
 0x106   : > { %v1523_v21 = vpack.c.bf16 %v884_v11, %v884_v11  ;;  %v885_v23 = vmax.f32 %v675_v13, 0.0  ;;  %v1555_v25 = vpack.c.bf16 %v916_v16, %v916_v16  ;;  %v917_v27 = vmax.f32 %v803_v18, 0.0 }
 0x107   : > { %v1521_v26 = vpack.c.bf16 %v882_v17, %v882_v17  ;;  %v883_v28 = vmax.f32 %v667_v19, 0.0  ;;  %v1553_v29 = vpack.c.bf16 %v914_v22, %v914_v22  ;;  %v915_v31 = vmax.f32 %v795_v24, 0.0 }
 0x108   : > { %1205 = vst.msk [vmem:[%s1887_s29 + $0x38] sm:$0xf] %vm1190_vm1, %v1523_v21  ;;  %v1524_v30 = vpack.c.bf16 %v885_v23, %v885_v23  ;;  %1237 = vst.msk [vmem:[%s1887_s29 + $0xb8] sm:$0xf] %vm1190_vm1, %v1555_v25  ;;  %v1556_v32 = vpack.c.bf16 %v917_v27, %v917_v27 }
 0x109   : > { %1203 = vst.msk [vmem:[%s1887_s29 + $0x30] sm:$0xf] %vm1190_vm1, %v1521_v26  ;;  %v1522_v34 = vpack.c.bf16 %v883_v28, %v883_v28  ;;  %v1626_v35 = vpop.f32.mrb[16].mxu0  ;;  %1235 = vst.msk [vmem:[%s1887_s29 + $0xb0] sm:$0xf] %vm1190_vm1, %v1553_v29  ;;  %v1554_v36 = vpack.c.bf16 %v915_v31, %v915_v31  ;;  %v1658_v38 = vpop.f32.mrb[16].mxu1 }
 0x10a   : > { %1206 = vst.msk [vmem:[%s1887_s29 + $0x3c] sm:$0xf] %vm1190_vm1, %v1524_v30  ;;  %v688_v37 = vadd.f32 %v1626_v35, %v1875_v33  ;;  %v679_v39 = vpop.f32.mrb[17].mxu0  ;;  %1238 = vst.msk [vmem:[%s1887_s29 + $0xbc] sm:$0xf] %vm1190_vm1, %v1556_v32  ;;  %v816_v40 = vadd.f32 %v1658_v38, %v1875_v33  ;;  %v807_v42 = vpop.f32.mrb[17].mxu1 }
 0x10b   : > { %1204 = vst.msk [vmem:[%s1887_s29 + $0x34] sm:$0xf] %vm1190_vm1, %v1522_v34  ;;  %v680_v41 = vadd.f32 %v1875_v33, %v679_v39  ;;  %v1627_v43 = vpop.f32.mrb[18].mxu0  ;;  %1236 = vst.msk [vmem:[%s1887_s29 + $0xb4] sm:$0xf] %vm1190_vm1, %v1554_v36  ;;  %v808_v45 = vadd.f32 %v1875_v33, %v807_v42  ;;  %v1659_v47 = vpop.f32.mrb[18].mxu1 }
 0x10c   : > { %v888_v44 = vmax.f32 %v688_v37, 0.0  ;;  %v691_v46 = vadd.f32 %v1627_v43, %v1875_v33  ;;  %v682_v48 = vpop.f32.mrb[19].mxu0  ;;  %v920_v49 = vmax.f32 %v816_v40, 0.0  ;;  %v819_v51 = vadd.f32 %v1659_v47, %v1875_v33  ;;  %v810_v53 = vpop.f32.mrb[19].mxu1 }
 0x10d   : > { %v886_v50 = vmax.f32 %v680_v41, 0.0  ;;  %v683_v52 = vadd.f32 %v1875_v33, %v682_v48  ;;  %v918_v55 = vmax.f32 %v808_v45, 0.0  ;;  %v811_v57 = vadd.f32 %v1875_v33, %v810_v53 }
 0x10e   : > { %v1527_v54 = vpack.c.bf16 %v888_v44, %v888_v44  ;;  %v889_v56 = vmax.f32 %v691_v46, 0.0  ;;  %v1559_v58 = vpack.c.bf16 %v920_v49, %v920_v49  ;;  %v921_v60 = vmax.f32 %v819_v51, 0.0 }
 0x10f   : > { %v1525_v59 = vpack.c.bf16 %v886_v50, %v886_v50  ;;  %v887_v61 = vmax.f32 %v683_v52, 0.0  ;;  %v1557_v62 = vpack.c.bf16 %v918_v55, %v918_v55  ;;  %v919_v0 = vmax.f32 %v811_v57, 0.0 }
 0x110   : > { %1209 = vst.msk [vmem:[%s1887_s29 + $0x48] sm:$0xf] %vm1190_vm1, %v1527_v54  ;;  %v1528_v63 = vpack.c.bf16 %v889_v56, %v889_v56  ;;  %1241 = vst.msk [vmem:[%s1887_s29 + $0xc8] sm:$0xf] %vm1190_vm1, %v1559_v58  ;;  %v1560_v1 = vpack.c.bf16 %v921_v60, %v921_v60 }
 0x111   : > { %1207 = vst.msk [vmem:[%s1887_s29 + $0x40] sm:$0xf] %vm1190_vm1, %v1525_v59  ;;  %v1526_v2 = vpack.c.bf16 %v887_v61, %v887_v61  ;;  %v1630_v3 = vpop.f32.mrb[20].mxu0  ;;  %1239 = vst.msk [vmem:[%s1887_s29 + $0xc0] sm:$0xf] %vm1190_vm1, %v1557_v62  ;;  %v1558_v4 = vpack.c.bf16 %v919_v0, %v919_v0  ;;  %v1662_v6 = vpop.f32.mrb[20].mxu1 }
 0x112   : > { %1210 = vst.msk [vmem:[%s1887_s29 + $0x4c] sm:$0xf] %vm1190_vm1, %v1528_v63  ;;  %v704_v5 = vadd.f32 %v1630_v3, %v1875_v33  ;;  %v695_v7 = vpop.f32.mrb[21].mxu0  ;;  %1242 = vst.msk [vmem:[%s1887_s29 + $0xcc] sm:$0xf] %vm1190_vm1, %v1560_v1  ;;  %v832_v8 = vadd.f32 %v1662_v6, %v1875_v33  ;;  %v823_v10 = vpop.f32.mrb[21].mxu1 }
 0x113   : > { %1208 = vst.msk [vmem:[%s1887_s29 + $0x44] sm:$0xf] %vm1190_vm1, %v1526_v2  ;;  %v696_v9 = vadd.f32 %v1875_v33, %v695_v7  ;;  %v1631_v11 = vpop.f32.mrb[22].mxu0  ;;  %1240 = vst.msk [vmem:[%s1887_s29 + $0xc4] sm:$0xf] %vm1190_vm1, %v1558_v4  ;;  %v824_v13 = vadd.f32 %v1875_v33, %v823_v10  ;;  %v1663_v15 = vpop.f32.mrb[22].mxu1 }
 0x114   : > { %v892_v12 = vmax.f32 %v704_v5, 0.0  ;;  %v707_v14 = vadd.f32 %v1631_v11, %v1875_v33  ;;  %v698_v16 = vpop.f32.mrb[23].mxu0  ;;  %v924_v17 = vmax.f32 %v832_v8, 0.0  ;;  %v835_v19 = vadd.f32 %v1663_v15, %v1875_v33  ;;  %v826_v21 = vpop.f32.mrb[23].mxu1 }
 0x115   : > { %v890_v18 = vmax.f32 %v696_v9, 0.0  ;;  %v699_v20 = vadd.f32 %v1875_v33, %v698_v16  ;;  %v922_v23 = vmax.f32 %v824_v13, 0.0  ;;  %v827_v25 = vadd.f32 %v1875_v33, %v826_v21 }
 0x116   : > { %v1531_v22 = vpack.c.bf16 %v892_v12, %v892_v12  ;;  %v893_v24 = vmax.f32 %v707_v14, 0.0  ;;  %v1563_v26 = vpack.c.bf16 %v924_v17, %v924_v17  ;;  %v925_v28 = vmax.f32 %v835_v19, 0.0 }
 0x117   : > { %v1529_v27 = vpack.c.bf16 %v890_v18, %v890_v18  ;;  %v891_v29 = vmax.f32 %v699_v20, 0.0  ;;  %v1561_v30 = vpack.c.bf16 %v922_v23, %v922_v23  ;;  %v923_v32 = vmax.f32 %v827_v25, 0.0 }
 0x118   : > { %1213 = vst.msk [vmem:[%s1887_s29 + $0x58] sm:$0xf] %vm1190_vm1, %v1531_v22  ;;  %v1532_v31 = vpack.c.bf16 %v893_v24, %v893_v24  ;;  %1245 = vst.msk [vmem:[%s1887_s29 + $0xd8] sm:$0xf] %vm1190_vm1, %v1563_v26  ;;  %v1564_v34 = vpack.c.bf16 %v925_v28, %v925_v28 }
 0x119   : > { %1211 = vst.msk [vmem:[%s1887_s29 + $0x50] sm:$0xf] %vm1190_vm1, %v1529_v27  ;;  %v1530_v35 = vpack.c.bf16 %v891_v29, %v891_v29  ;;  %v1634_v36 = vpop.f32.mrb[24].mxu0  ;;  %1243 = vst.msk [vmem:[%s1887_s29 + $0xd0] sm:$0xf] %vm1190_vm1, %v1561_v30  ;;  %v1562_v37 = vpack.c.bf16 %v923_v32, %v923_v32  ;;  %v1666_v39 = vpop.f32.mrb[24].mxu1 }
 0x11a   : > { %1214 = vst.msk [vmem:[%s1887_s29 + $0x5c] sm:$0xf] %vm1190_vm1, %v1532_v31  ;;  %v720_v38 = vadd.f32 %v1634_v36, %v1875_v33  ;;  %v711_v40 = vpop.f32.mrb[25].mxu0  ;;  %1246 = vst.msk [vmem:[%s1887_s29 + $0xdc] sm:$0xf] %vm1190_vm1, %v1564_v34  ;;  %v848_v41 = vadd.f32 %v1666_v39, %v1875_v33  ;;  %v839_v43 = vpop.f32.mrb[25].mxu1 }
 0x11b   : > { %1212 = vst.msk [vmem:[%s1887_s29 + $0x54] sm:$0xf] %vm1190_vm1, %v1530_v35  ;;  %v712_v42 = vadd.f32 %v1875_v33, %v711_v40  ;;  %v1635_v44 = vpop.f32.mrb[26].mxu0  ;;  %1244 = vst.msk [vmem:[%s1887_s29 + $0xd4] sm:$0xf] %vm1190_vm1, %v1562_v37  ;;  %v840_v46 = vadd.f32 %v1875_v33, %v839_v43  ;;  %v1667_v48 = vpop.f32.mrb[26].mxu1 }
 0x11c   : > { %v896_v45 = vmax.f32 %v720_v38, 0.0  ;;  %v723_v47 = vadd.f32 %v1635_v44, %v1875_v33  ;;  %v714_v49 = vpop.f32.mrb[27].mxu0  ;;  %v928_v50 = vmax.f32 %v848_v41, 0.0  ;;  %v851_v52 = vadd.f32 %v1667_v48, %v1875_v33  ;;  %v842_v54 = vpop.f32.mrb[27].mxu1 }
 0x11d   : > { %v894_v51 = vmax.f32 %v712_v42, 0.0  ;;  %v715_v53 = vadd.f32 %v1875_v33, %v714_v49  ;;  %v926_v56 = vmax.f32 %v840_v46, 0.0  ;;  %v843_v58 = vadd.f32 %v1875_v33, %v842_v54 }
 0x11e   : > { %v1535_v55 = vpack.c.bf16 %v896_v45, %v896_v45  ;;  %v897_v57 = vmax.f32 %v723_v47, 0.0  ;;  %v1567_v59 = vpack.c.bf16 %v928_v50, %v928_v50  ;;  %v929_v61 = vmax.f32 %v851_v52, 0.0 }
 0x11f   : > { %v1533_v60 = vpack.c.bf16 %v894_v51, %v894_v51  ;;  %v895_v62 = vmax.f32 %v715_v53, 0.0  ;;  %v1565_v63 = vpack.c.bf16 %v926_v56, %v926_v56  ;;  %v927_v1 = vmax.f32 %v843_v58, 0.0 }
 0x120   : > { %1217 = vst.msk [vmem:[%s1887_s29 + $0x68] sm:$0xf] %vm1190_vm1, %v1535_v55  ;;  %v1536_v0 = vpack.c.bf16 %v897_v57, %v897_v57  ;;  %1249 = vst.msk [vmem:[%s1887_s29 + $0xe8] sm:$0xf] %vm1190_vm1, %v1567_v59  ;;  %v1568_v2 = vpack.c.bf16 %v929_v61, %v929_v61 }
 0x121   : > { %1215 = vst.msk [vmem:[%s1887_s29 + $0x60] sm:$0xf] %vm1190_vm1, %v1533_v60  ;;  %v1534_v3 = vpack.c.bf16 %v895_v62, %v895_v62  ;;  %v1638_v4 = vpop.f32.mrb[28].mxu0  ;;  %1247 = vst.msk [vmem:[%s1887_s29 + $0xe0] sm:$0xf] %vm1190_vm1, %v1565_v63  ;;  %v1566_v5 = vpack.c.bf16 %v927_v1, %v927_v1  ;;  %v1670_v7 = vpop.f32.mrb[28].mxu1 }
 0x122   : > { %1218 = vst.msk [vmem:[%s1887_s29 + $0x6c] sm:$0xf] %vm1190_vm1, %v1536_v0  ;;  %v736_v6 = vadd.f32 %v1638_v4, %v1875_v33  ;;  %v727_v8 = vpop.f32.mrb[29].mxu0  ;;  %1250 = vst.msk [vmem:[%s1887_s29 + $0xec] sm:$0xf] %vm1190_vm1, %v1568_v2  ;;  %v864_v9 = vadd.f32 %v1670_v7, %v1875_v33  ;;  %v855_v11 = vpop.f32.mrb[29].mxu1 }
 0x123   : > { %1216 = vst.msk [vmem:[%s1887_s29 + $0x64] sm:$0xf] %vm1190_vm1, %v1534_v3  ;;  %v728_v10 = vadd.f32 %v1875_v33, %v727_v8  ;;  %v1639_v12 = vpop.f32.mrb[30].mxu0  ;;  %1248 = vst.msk [vmem:[%s1887_s29 + $0xe4] sm:$0xf] %vm1190_vm1, %v1566_v5  ;;  %v856_v14 = vadd.f32 %v1875_v33, %v855_v11  ;;  %v1671_v16 = vpop.f32.mrb[30].mxu1 }
 0x124   : > { %v900_v13 = vmax.f32 %v736_v6, 0.0  ;;  %v739_v15 = vadd.f32 %v1639_v12, %v1875_v33  ;;  %v730_v17 = vpop.f32.mrb[31].mxu0  ;;  %v932_v18 = vmax.f32 %v864_v9, 0.0  ;;  %v867_v20 = vadd.f32 %v1671_v16, %v1875_v33  ;;  %v858_v22 = vpop.f32.mrb[31].mxu1 }
 0x125   : > { %v898_v19 = vmax.f32 %v728_v10, 0.0  ;;  %v731_v21 = vadd.f32 %v1875_v33, %v730_v17  ;;  %v930_v24 = vmax.f32 %v856_v14, 0.0  ;;  %v859_v26 = vadd.f32 %v1875_v33, %v858_v22 }
 0x126   : > { %v1539_v23 = vpack.c.bf16 %v900_v13, %v900_v13  ;;  %v901_v25 = vmax.f32 %v739_v15, 0.0  ;;  %v1571_v27 = vpack.c.bf16 %v932_v18, %v932_v18  ;;  %v933_v29 = vmax.f32 %v867_v20, 0.0 }
 0x127   : > { %v1537_v28 = vpack.c.bf16 %v898_v19, %v898_v19  ;;  %v899_v30 = vmax.f32 %v731_v21, 0.0  ;;  %v1569_v31 = vpack.c.bf16 %v930_v24, %v930_v24  ;;  %v931_v34 = vmax.f32 %v859_v26, 0.0 }
 0x128   : > { %1221 = vst.msk [vmem:[%s1887_s29 + $0x78] sm:$0xf] %vm1190_vm1, %v1539_v23  ;;  %v1540_v32 = vpack.c.bf16 %v901_v25, %v901_v25  ;;  %1253 = vst.msk [vmem:[%s1887_s29 + $0xf8] sm:$0xf] %vm1190_vm1, %v1571_v27  ;;  %v1572_v35 = vpack.c.bf16 %v933_v29, %v933_v29 }
 0x129   : > { %1219 = vst.msk [vmem:[%s1887_s29 + $0x70] sm:$0xf] %vm1190_vm1, %v1537_v28  ;;  %v1538_v36 = vpack.c.bf16 %v899_v30, %v899_v30  ;;  %1251 = vst.msk [vmem:[%s1887_s29 + $0xf0] sm:$0xf] %vm1190_vm1, %v1569_v31  ;;  %v1570_v33 = vpack.c.bf16 %v931_v34, %v931_v34 }
 0x12a   : > { %1222 = vst.msk [vmem:[%s1887_s29 + $0x7c] sm:$0xf] %vm1190_vm1, %v1540_v32  ;;  %1254 = vst.msk [vmem:[%s1887_s29 + $0xfc] sm:$0xf] %vm1190_vm1, %v1572_v35 }
 0x12b   : > { %1220 = vst.msk [vmem:[%s1887_s29 + $0x74] sm:$0xf] %vm1190_vm1, %v1538_v36  ;;  %1252 = vst.msk [vmem:[%s1887_s29 + $0xf4] sm:$0xf] %vm1190_vm1, %v1570_v33 }
 0x12c PF: > { %s13_s14 = sadd.s32 1, %s1753_s14   ;;  %s2089_s12 = smov %s1749_s13 }
 0x12d   : > { %p10_p5 = scmp.ge.s32.totalorder %s13_s14, 10   ;;  %s2090_s13 = smov %s2092_s15 }
 0x12f   :  { %12 = sbr.rel (!%p10_p5) target bundleno = 2 (0x2), region = 68 }

// kernel: forward.87
= control target key start
LH: loop header
LB: loop body
LE: loop exit
PB: predicated region body
PF: predicated region fallthrough
CT: control target
= control target key end

     0   :  { %vm280_vm0 = vcmask 523264   ;;  %vm922_vm1 = vcmask 3072   ;;  %s1825_s1 = inlined_call_operand.vmem [shape: bf16[1,64,1], index: 1, kind: input, shape index: {}]   ;;  %s1826_s2 = inlined_call_operand.<no memory space> [shape: f32[1,1,1], index: 2, kind: input, shape index: {}]   ;;  %s1827_s0 = inlined_call_operand.vmem [shape: bf16[1,512,64], index: 0, kind: input, shape index: {}]   ;;  %s1828_s3 = inlined_call_operand.vmem [shape: bf16[1,512,1], index: 3, kind: output, shape index: {}]  }
   0x1   :  { %v1304_v0 = vld [vmem:[%s1825_s1] sm:$0xff]   ;;  %v8_v1 = vstv %s1826_s2  ;;  %v1305_v2 = vld [vmem:[%s1825_s1 + $0x8] sm:$0xff]   ;;  %v1306_v3 = vld [vmem:[%s1825_s1 + $0x10] sm:$0xff]  }
   0x2   :  { %9 = vst [vmem:[#allocation2] sm:$0x1] %v8_v1  ;;  %1224 = vmatprep.subr.bf16.mxu0 %v1304_v0  ;;  %1296 = vmatprep.subr.bf16.mxu1 %v1304_v0  ;;  %v1308_v4 = vld [vmem:[%s1827_s0] sm:$0xff]   ;;  %v1307_v6 = vld [vmem:[%s1825_s1 + $0x18] sm:$0xff]   ;;  %v1310_v7 = vld [vmem:[%s1827_s0 + $0x8] sm:$0xff]  }
   0x3   :  { %1225 = vmatpush3.bf16.msra.mxu0 %v1304_v0  ;;  %1300 = vmatpush3.bf16.msra.mxu1 %v1304_v0  ;;  %v1309_v5 = vld [vmem:[%s1827_s0 + $0x80] sm:$0xff]   ;;  %v1311_v8 = vld [vmem:[%s1827_s0 + $0x88] sm:$0xff]   ;;  %v1312_v9 = vld [vmem:[%s1827_s0 + $0x10] sm:$0xff]  }
   0x4   :  { %1226 = vmatprep.subr.bf16.mxu0 %v1305_v2  ;;  %1297 = vmatprep.subr.bf16.mxu1 %v1305_v2  ;;  %v1313_v10 = vld [vmem:[%s1827_s0 + $0x90] sm:$0xff]   ;;  %v1314_v11 = vld [vmem:[%s1827_s0 + $0x18] sm:$0xff]   ;;  %v1316_v13 = vld [vmem:[%s1827_s0 + $0x20] sm:$0xff]  }
   0x5   :  { %1232 = vmatprep.mubr.msk.bf16.mxu0 %vm280_vm0, %v1308_v4  ;;  %1264 = vmatprep.mubr.msk.bf16.mxu1 %vm280_vm0, %v1309_v5  ;;  %v1315_v12 = vld [vmem:[%s1827_s0 + $0x98] sm:$0xff]   ;;  %v1317_v14 = vld [vmem:[%s1827_s0 + $0xa0] sm:$0xff]   ;;  %v1318_v15 = vld [vmem:[%s1827_s0 + $0x28] sm:$0xff]  }
   0x6   :  { %v1319_v16 = vld [vmem:[%s1827_s0 + $0xa8] sm:$0xff]   ;;  %v1320_v17 = vld [vmem:[%s1827_s0 + $0x30] sm:$0xff]   ;;  %v1322_v19 = vld [vmem:[%s1827_s0 + $0x38] sm:$0xff]  }
   0x7   :  { %1227 = vmatpush3.bf16.msra.mxu0 %v1305_v2  ;;  %1301 = vmatpush3.bf16.msra.mxu1 %v1305_v2  ;;  %v1321_v18 = vld [vmem:[%s1827_s0 + $0xb0] sm:$0xff]   ;;  %v1323_v20 = vld [vmem:[%s1827_s0 + $0xb8] sm:$0xff]   ;;  %v1324_v21 = vld [vmem:[%s1827_s0 + $0x40] sm:$0xff]  }
   0x8   :  { %1228 = vmatprep.subr.bf16.mxu0 %v1306_v3  ;;  %1298 = vmatprep.subr.bf16.mxu1 %v1306_v3  ;;  %v1325_v22 = vld [vmem:[%s1827_s0 + $0xc0] sm:$0xff]   ;;  %v1326_v23 = vld [vmem:[%s1827_s0 + $0x48] sm:$0xff]   ;;  %v1328_v25 = vld [vmem:[%s1827_s0 + $0x50] sm:$0xff]  }
   0x9   :  { %v1327_v24 = vld [vmem:[%s1827_s0 + $0xc8] sm:$0xff]   ;;  %v1329_v26 = vld [vmem:[%s1827_s0 + $0xd0] sm:$0xff]   ;;  %v1330_v27 = vld [vmem:[%s1827_s0 + $0x58] sm:$0xff]  }
   0xa   :  { %v1331_v28 = vld [vmem:[%s1827_s0 + $0xd8] sm:$0xff]   ;;  %v1332_v29 = vld [vmem:[%s1827_s0 + $0x60] sm:$0xff]   ;;  %v1334_v31 = vld [vmem:[%s1827_s0 + $0x68] sm:$0xff]  }
   0xb   :  { %1229 = vmatpush3.bf16.msra.mxu0 %v1306_v3  ;;  %1302 = vmatpush3.bf16.msra.mxu1 %v1306_v3  ;;  %v1333_v30 = vld [vmem:[%s1827_s0 + $0xe0] sm:$0xff]   ;;  %v1335_v32 = vld [vmem:[%s1827_s0 + $0xe8] sm:$0xff]   ;;  %v1336_v33 = vld [vmem:[%s1827_s0 + $0x70] sm:$0xff]  }
   0xc   :  { %1230 = vmatprep.subr.bf16.mxu0 %v1307_v6  ;;  %1299 = vmatprep.subr.bf16.mxu1 %v1307_v6  ;;  %v1337_v34 = vld [vmem:[%s1827_s0 + $0xf0] sm:$0xff]   ;;  %v1338_v35 = vld [vmem:[%s1827_s0 + $0x78] sm:$0xff]   ;;  %v1503_v37 = vld [vmem:[#allocation2] ss:$0 sm:$0xff] }
   0xd   :  { %v1339_v36 = vld [vmem:[%s1827_s0 + $0xf8] sm:$0xff]  }
   0xf   :  { %1231 = vmatpush3.bf16.msra.mxu0 %v1307_v6  ;;  %1303 = vmatpush3.bf16.msra.mxu1 %v1307_v6 }
  0x12   :  { %1233 = vmatmul.mubr.msk.bf16.vlgmr.msra.gmra.mrb[0].mxu0 %vm280_vm0, %v1310_v7  ;;  %1265 = vmatmul.mubr.msk.bf16.vlgmr.msra.gmra.mrb[0].mxu1 %vm280_vm0, %v1311_v8 }
  0x13   :  { %1236 = vmatprep.mubr.msk.bf16.mxu0 %vm280_vm0, %v1312_v9  ;;  %1268 = vmatprep.mubr.msk.bf16.mxu1 %vm280_vm0, %v1313_v10 }
  0x1a   :  { %1237 = vmatmul.mubr.msk.bf16.gmra.mrb[4].mxu0 %vm280_vm0, %v1314_v11  ;;  %1269 = vmatmul.mubr.msk.bf16.gmra.mrb[4].mxu1 %vm280_vm0, %v1315_v12 }
  0x1b   :  { %1240 = vmatprep.mubr.msk.bf16.mxu0 %vm280_vm0, %v1316_v13  ;;  %1272 = vmatprep.mubr.msk.bf16.mxu1 %vm280_vm0, %v1317_v14 }
  0x22   :  { %1241 = vmatmul.mubr.msk.bf16.gmra.mrb[8].mxu0 %vm280_vm0, %v1318_v15  ;;  %1273 = vmatmul.mubr.msk.bf16.gmra.mrb[8].mxu1 %vm280_vm0, %v1319_v16 }
  0x23   :  { %1244 = vmatprep.mubr.msk.bf16.mxu0 %vm280_vm0, %v1320_v17  ;;  %1276 = vmatprep.mubr.msk.bf16.mxu1 %vm280_vm0, %v1321_v18 }
  0x2a   :  { %1245 = vmatmul.mubr.msk.bf16.gmra.mrb[12].mxu0 %vm280_vm0, %v1322_v19  ;;  %1277 = vmatmul.mubr.msk.bf16.gmra.mrb[12].mxu1 %vm280_vm0, %v1323_v20 }
  0x2b   :  { %1248 = vmatprep.mubr.msk.bf16.mxu0 %vm280_vm0, %v1324_v21  ;;  %1280 = vmatprep.mubr.msk.bf16.mxu1 %vm280_vm0, %v1325_v22 }
  0x32   :  { %1249 = vmatmul.mubr.msk.bf16.gmra.mrb[16].mxu0 %vm280_vm0, %v1326_v23  ;;  %1281 = vmatmul.mubr.msk.bf16.gmra.mrb[16].mxu1 %vm280_vm0, %v1327_v24 }
  0x33   :  { %1252 = vmatprep.mubr.msk.bf16.mxu0 %vm280_vm0, %v1328_v25  ;;  %1284 = vmatprep.mubr.msk.bf16.mxu1 %vm280_vm0, %v1329_v26 }
  0x3a   :  { %1253 = vmatmul.mubr.msk.bf16.gmra.mrb[20].mxu0 %vm280_vm0, %v1330_v27  ;;  %1285 = vmatmul.mubr.msk.bf16.gmra.mrb[20].mxu1 %vm280_vm0, %v1331_v28 }
  0x3b   :  { %1256 = vmatprep.mubr.msk.bf16.mxu0 %vm280_vm0, %v1332_v29  ;;  %1288 = vmatprep.mubr.msk.bf16.mxu1 %vm280_vm0, %v1333_v30 }
  0x42   :  { %1257 = vmatmul.mubr.msk.bf16.gmra.mrb[24].mxu0 %vm280_vm0, %v1334_v31  ;;  %1289 = vmatmul.mubr.msk.bf16.gmra.mrb[24].mxu1 %vm280_vm0, %v1335_v32 }
  0x43   :  { %1260 = vmatprep.mubr.msk.bf16.mxu0 %vm280_vm0, %v1336_v33  ;;  %1292 = vmatprep.mubr.msk.bf16.mxu1 %vm280_vm0, %v1337_v34 }
  0x4a   :  { %1261 = vmatmul.mubr.msk.bf16.gmra.mrb[28].mxu0 %vm280_vm0, %v1338_v35  ;;  %1293 = vmatmul.mubr.msk.bf16.gmra.mrb[28].mxu1 %vm280_vm0, %v1339_v36 }
  0xe5   :  { %v1234_v38 = vpop.f32.mrb[0].mxu0  ;;  %v1266_v39 = vpop.f32.mrb[0].mxu1 }
  0xe6   :  { %v420_v40 = vadd.f32 %v1234_v38, %v1503_v37  ;;  %v548_v41 = vadd.f32 %v1266_v39, %v1503_v37  ;;  %v411_v42 = vpop.f32.mrb[1].mxu0  ;;  %v539_v43 = vpop.f32.mrb[1].mxu1 }
  0xe7   :  { %v412_v44 = vadd.f32 %v1503_v37, %v411_v42  ;;  %v540_v45 = vadd.f32 %v1503_v37, %v539_v43  ;;  %v1235_v46 = vpop.f32.mrb[2].mxu0  ;;  %v1267_v47 = vpop.f32.mrb[2].mxu1 }
  0xe8   :  { %v1126_v48 = vpack.c.bf16 %v420_v40, %v420_v40  ;;  %v1158_v49 = vpack.c.bf16 %v548_v41, %v548_v41  ;;  %v423_v50 = vadd.f32 %v1235_v46, %v1503_v37  ;;  %v551_v51 = vadd.f32 %v1267_v47, %v1503_v37  ;;  %v414_v52 = vpop.f32.mrb[3].mxu0  ;;  %v542_v53 = vpop.f32.mrb[3].mxu1 }
  0xe9   :  { %v1124_v54 = vpack.c.bf16 %v412_v44, %v412_v44  ;;  %v1156_v55 = vpack.c.bf16 %v540_v45, %v540_v45  ;;  %v415_v56 = vadd.f32 %v1503_v37, %v414_v52  ;;  %v543_v57 = vadd.f32 %v1503_v37, %v542_v53 }
  0xea   :  { %925 = vst.msk [vmem:[%s1828_s3 + $0x8] sm:$0xf] %vm922_vm1, %v1126_v48  ;;  %957 = vst.msk [vmem:[%s1828_s3 + $0x88] sm:$0xf] %vm922_vm1, %v1158_v49  ;;  %v1127_v58 = vpack.c.bf16 %v423_v50, %v423_v50  ;;  %v1159_v59 = vpack.c.bf16 %v551_v51, %v551_v51 }
  0xeb   :  { %923 = vst.msk [vmem:[%s1828_s3] sm:$0xf] %vm922_vm1, %v1124_v54  ;;  %955 = vst.msk [vmem:[%s1828_s3 + $0x80] sm:$0xf] %vm922_vm1, %v1156_v55  ;;  %v1125_v60 = vpack.c.bf16 %v415_v56, %v415_v56  ;;  %v1157_v61 = vpack.c.bf16 %v543_v57, %v543_v57 }
  0xec   :  { %926 = vst.msk [vmem:[%s1828_s3 + $0xc] sm:$0xf] %vm922_vm1, %v1127_v58  ;;  %958 = vst.msk [vmem:[%s1828_s3 + $0x8c] sm:$0xf] %vm922_vm1, %v1159_v59 }
  0xed   :  { %924 = vst.msk [vmem:[%s1828_s3 + $0x4] sm:$0xf] %vm922_vm1, %v1125_v60  ;;  %956 = vst.msk [vmem:[%s1828_s3 + $0x84] sm:$0xf] %vm922_vm1, %v1157_v61  ;;  %v1238_v62 = vpop.f32.mrb[4].mxu0  ;;  %v1270_v63 = vpop.f32.mrb[4].mxu1 }
  0xee   :  { %v436_v0 = vadd.f32 %v1238_v62, %v1503_v37  ;;  %v564_v1 = vadd.f32 %v1270_v63, %v1503_v37  ;;  %v427_v2 = vpop.f32.mrb[5].mxu0  ;;  %v555_v3 = vpop.f32.mrb[5].mxu1 }
  0xef   :  { %v428_v4 = vadd.f32 %v1503_v37, %v427_v2  ;;  %v556_v5 = vadd.f32 %v1503_v37, %v555_v3  ;;  %v1239_v6 = vpop.f32.mrb[6].mxu0  ;;  %v1271_v7 = vpop.f32.mrb[6].mxu1 }
  0xf0   :  { %v1130_v8 = vpack.c.bf16 %v436_v0, %v436_v0  ;;  %v1162_v9 = vpack.c.bf16 %v564_v1, %v564_v1  ;;  %v439_v10 = vadd.f32 %v1239_v6, %v1503_v37  ;;  %v567_v11 = vadd.f32 %v1271_v7, %v1503_v37  ;;  %v430_v12 = vpop.f32.mrb[7].mxu0  ;;  %v558_v13 = vpop.f32.mrb[7].mxu1 }
  0xf1   :  { %v1128_v14 = vpack.c.bf16 %v428_v4, %v428_v4  ;;  %v1160_v15 = vpack.c.bf16 %v556_v5, %v556_v5  ;;  %v431_v16 = vadd.f32 %v1503_v37, %v430_v12  ;;  %v559_v17 = vadd.f32 %v1503_v37, %v558_v13 }
  0xf2   :  { %929 = vst.msk [vmem:[%s1828_s3 + $0x18] sm:$0xf] %vm922_vm1, %v1130_v8  ;;  %961 = vst.msk [vmem:[%s1828_s3 + $0x98] sm:$0xf] %vm922_vm1, %v1162_v9  ;;  %v1131_v18 = vpack.c.bf16 %v439_v10, %v439_v10  ;;  %v1163_v19 = vpack.c.bf16 %v567_v11, %v567_v11 }
  0xf3   :  { %927 = vst.msk [vmem:[%s1828_s3 + $0x10] sm:$0xf] %vm922_vm1, %v1128_v14  ;;  %959 = vst.msk [vmem:[%s1828_s3 + $0x90] sm:$0xf] %vm922_vm1, %v1160_v15  ;;  %v1129_v20 = vpack.c.bf16 %v431_v16, %v431_v16  ;;  %v1161_v21 = vpack.c.bf16 %v559_v17, %v559_v17 }
  0xf4   :  { %930 = vst.msk [vmem:[%s1828_s3 + $0x1c] sm:$0xf] %vm922_vm1, %v1131_v18  ;;  %962 = vst.msk [vmem:[%s1828_s3 + $0x9c] sm:$0xf] %vm922_vm1, %v1163_v19 }
  0xf5   :  { %928 = vst.msk [vmem:[%s1828_s3 + $0x14] sm:$0xf] %vm922_vm1, %v1129_v20  ;;  %960 = vst.msk [vmem:[%s1828_s3 + $0x94] sm:$0xf] %vm922_vm1, %v1161_v21  ;;  %v1242_v22 = vpop.f32.mrb[8].mxu0  ;;  %v1274_v23 = vpop.f32.mrb[8].mxu1 }
  0xf6   :  { %v452_v24 = vadd.f32 %v1242_v22, %v1503_v37  ;;  %v580_v25 = vadd.f32 %v1274_v23, %v1503_v37  ;;  %v443_v26 = vpop.f32.mrb[9].mxu0  ;;  %v571_v27 = vpop.f32.mrb[9].mxu1 }
  0xf7   :  { %v444_v28 = vadd.f32 %v1503_v37, %v443_v26  ;;  %v572_v29 = vadd.f32 %v1503_v37, %v571_v27  ;;  %v1243_v30 = vpop.f32.mrb[10].mxu0  ;;  %v1275_v31 = vpop.f32.mrb[10].mxu1 }
  0xf8   :  { %v1134_v32 = vpack.c.bf16 %v452_v24, %v452_v24  ;;  %v1166_v33 = vpack.c.bf16 %v580_v25, %v580_v25  ;;  %v455_v34 = vadd.f32 %v1243_v30, %v1503_v37  ;;  %v583_v35 = vadd.f32 %v1275_v31, %v1503_v37  ;;  %v446_v36 = vpop.f32.mrb[11].mxu0  ;;  %v574_v38 = vpop.f32.mrb[11].mxu1 }
  0xf9   :  { %v1132_v39 = vpack.c.bf16 %v444_v28, %v444_v28  ;;  %v1164_v40 = vpack.c.bf16 %v572_v29, %v572_v29  ;;  %v447_v41 = vadd.f32 %v1503_v37, %v446_v36  ;;  %v575_v42 = vadd.f32 %v1503_v37, %v574_v38 }
  0xfa   :  { %933 = vst.msk [vmem:[%s1828_s3 + $0x28] sm:$0xf] %vm922_vm1, %v1134_v32  ;;  %965 = vst.msk [vmem:[%s1828_s3 + $0xa8] sm:$0xf] %vm922_vm1, %v1166_v33  ;;  %v1135_v43 = vpack.c.bf16 %v455_v34, %v455_v34  ;;  %v1167_v44 = vpack.c.bf16 %v583_v35, %v583_v35 }
  0xfb   :  { %931 = vst.msk [vmem:[%s1828_s3 + $0x20] sm:$0xf] %vm922_vm1, %v1132_v39  ;;  %963 = vst.msk [vmem:[%s1828_s3 + $0xa0] sm:$0xf] %vm922_vm1, %v1164_v40  ;;  %v1133_v45 = vpack.c.bf16 %v447_v41, %v447_v41  ;;  %v1165_v46 = vpack.c.bf16 %v575_v42, %v575_v42 }
  0xfc   :  { %934 = vst.msk [vmem:[%s1828_s3 + $0x2c] sm:$0xf] %vm922_vm1, %v1135_v43  ;;  %966 = vst.msk [vmem:[%s1828_s3 + $0xac] sm:$0xf] %vm922_vm1, %v1167_v44 }
  0xfd   :  { %932 = vst.msk [vmem:[%s1828_s3 + $0x24] sm:$0xf] %vm922_vm1, %v1133_v45  ;;  %964 = vst.msk [vmem:[%s1828_s3 + $0xa4] sm:$0xf] %vm922_vm1, %v1165_v46  ;;  %v1246_v47 = vpop.f32.mrb[12].mxu0  ;;  %v1278_v48 = vpop.f32.mrb[12].mxu1 }
  0xfe   :  { %v468_v49 = vadd.f32 %v1246_v47, %v1503_v37  ;;  %v596_v50 = vadd.f32 %v1278_v48, %v1503_v37  ;;  %v459_v51 = vpop.f32.mrb[13].mxu0  ;;  %v587_v52 = vpop.f32.mrb[13].mxu1 }
  0xff   :  { %v460_v53 = vadd.f32 %v1503_v37, %v459_v51  ;;  %v588_v54 = vadd.f32 %v1503_v37, %v587_v52  ;;  %v1247_v55 = vpop.f32.mrb[14].mxu0  ;;  %v1279_v56 = vpop.f32.mrb[14].mxu1 }
 0x100   :  { %v1138_v57 = vpack.c.bf16 %v468_v49, %v468_v49  ;;  %v1170_v58 = vpack.c.bf16 %v596_v50, %v596_v50  ;;  %v471_v59 = vadd.f32 %v1247_v55, %v1503_v37  ;;  %v599_v60 = vadd.f32 %v1279_v56, %v1503_v37  ;;  %v462_v61 = vpop.f32.mrb[15].mxu0  ;;  %v590_v62 = vpop.f32.mrb[15].mxu1 }
 0x101   :  { %v1136_v63 = vpack.c.bf16 %v460_v53, %v460_v53  ;;  %v1168_v0 = vpack.c.bf16 %v588_v54, %v588_v54  ;;  %v463_v1 = vadd.f32 %v1503_v37, %v462_v61  ;;  %v591_v2 = vadd.f32 %v1503_v37, %v590_v62 }
 0x102   :  { %937 = vst.msk [vmem:[%s1828_s3 + $0x38] sm:$0xf] %vm922_vm1, %v1138_v57  ;;  %969 = vst.msk [vmem:[%s1828_s3 + $0xb8] sm:$0xf] %vm922_vm1, %v1170_v58  ;;  %v1139_v3 = vpack.c.bf16 %v471_v59, %v471_v59  ;;  %v1171_v4 = vpack.c.bf16 %v599_v60, %v599_v60 }
 0x103   :  { %935 = vst.msk [vmem:[%s1828_s3 + $0x30] sm:$0xf] %vm922_vm1, %v1136_v63  ;;  %967 = vst.msk [vmem:[%s1828_s3 + $0xb0] sm:$0xf] %vm922_vm1, %v1168_v0  ;;  %v1137_v5 = vpack.c.bf16 %v463_v1, %v463_v1  ;;  %v1169_v6 = vpack.c.bf16 %v591_v2, %v591_v2 }
 0x104   :  { %938 = vst.msk [vmem:[%s1828_s3 + $0x3c] sm:$0xf] %vm922_vm1, %v1139_v3  ;;  %970 = vst.msk [vmem:[%s1828_s3 + $0xbc] sm:$0xf] %vm922_vm1, %v1171_v4 }
 0x105   :  { %936 = vst.msk [vmem:[%s1828_s3 + $0x34] sm:$0xf] %vm922_vm1, %v1137_v5  ;;  %968 = vst.msk [vmem:[%s1828_s3 + $0xb4] sm:$0xf] %vm922_vm1, %v1169_v6  ;;  %v1250_v7 = vpop.f32.mrb[16].mxu0  ;;  %v1282_v8 = vpop.f32.mrb[16].mxu1 }
 0x106   :  { %v484_v9 = vadd.f32 %v1250_v7, %v1503_v37  ;;  %v612_v10 = vadd.f32 %v1282_v8, %v1503_v37  ;;  %v475_v11 = vpop.f32.mrb[17].mxu0  ;;  %v603_v12 = vpop.f32.mrb[17].mxu1 }
 0x107   :  { %v476_v13 = vadd.f32 %v1503_v37, %v475_v11  ;;  %v604_v14 = vadd.f32 %v1503_v37, %v603_v12  ;;  %v1251_v15 = vpop.f32.mrb[18].mxu0  ;;  %v1283_v16 = vpop.f32.mrb[18].mxu1 }
 0x108   :  { %v1142_v17 = vpack.c.bf16 %v484_v9, %v484_v9  ;;  %v1174_v18 = vpack.c.bf16 %v612_v10, %v612_v10  ;;  %v487_v19 = vadd.f32 %v1251_v15, %v1503_v37  ;;  %v615_v20 = vadd.f32 %v1283_v16, %v1503_v37  ;;  %v478_v21 = vpop.f32.mrb[19].mxu0  ;;  %v606_v22 = vpop.f32.mrb[19].mxu1 }
 0x109   :  { %v1140_v23 = vpack.c.bf16 %v476_v13, %v476_v13  ;;  %v1172_v24 = vpack.c.bf16 %v604_v14, %v604_v14  ;;  %v479_v25 = vadd.f32 %v1503_v37, %v478_v21  ;;  %v607_v26 = vadd.f32 %v1503_v37, %v606_v22 }
 0x10a   :  { %941 = vst.msk [vmem:[%s1828_s3 + $0x48] sm:$0xf] %vm922_vm1, %v1142_v17  ;;  %973 = vst.msk [vmem:[%s1828_s3 + $0xc8] sm:$0xf] %vm922_vm1, %v1174_v18  ;;  %v1143_v27 = vpack.c.bf16 %v487_v19, %v487_v19  ;;  %v1175_v28 = vpack.c.bf16 %v615_v20, %v615_v20 }
 0x10b   :  { %939 = vst.msk [vmem:[%s1828_s3 + $0x40] sm:$0xf] %vm922_vm1, %v1140_v23  ;;  %971 = vst.msk [vmem:[%s1828_s3 + $0xc0] sm:$0xf] %vm922_vm1, %v1172_v24  ;;  %v1141_v29 = vpack.c.bf16 %v479_v25, %v479_v25  ;;  %v1173_v30 = vpack.c.bf16 %v607_v26, %v607_v26 }
 0x10c   :  { %942 = vst.msk [vmem:[%s1828_s3 + $0x4c] sm:$0xf] %vm922_vm1, %v1143_v27  ;;  %974 = vst.msk [vmem:[%s1828_s3 + $0xcc] sm:$0xf] %vm922_vm1, %v1175_v28 }
 0x10d   :  { %940 = vst.msk [vmem:[%s1828_s3 + $0x44] sm:$0xf] %vm922_vm1, %v1141_v29  ;;  %972 = vst.msk [vmem:[%s1828_s3 + $0xc4] sm:$0xf] %vm922_vm1, %v1173_v30  ;;  %v1254_v31 = vpop.f32.mrb[20].mxu0  ;;  %v1286_v32 = vpop.f32.mrb[20].mxu1 }
 0x10e   :  { %v500_v33 = vadd.f32 %v1254_v31, %v1503_v37  ;;  %v628_v34 = vadd.f32 %v1286_v32, %v1503_v37  ;;  %v491_v35 = vpop.f32.mrb[21].mxu0  ;;  %v619_v36 = vpop.f32.mrb[21].mxu1 }
 0x10f   :  { %v492_v38 = vadd.f32 %v1503_v37, %v491_v35  ;;  %v620_v39 = vadd.f32 %v1503_v37, %v619_v36  ;;  %v1255_v40 = vpop.f32.mrb[22].mxu0  ;;  %v1287_v41 = vpop.f32.mrb[22].mxu1 }
 0x110   :  { %v1146_v42 = vpack.c.bf16 %v500_v33, %v500_v33  ;;  %v1178_v43 = vpack.c.bf16 %v628_v34, %v628_v34  ;;  %v503_v44 = vadd.f32 %v1255_v40, %v1503_v37  ;;  %v631_v45 = vadd.f32 %v1287_v41, %v1503_v37  ;;  %v494_v46 = vpop.f32.mrb[23].mxu0  ;;  %v622_v47 = vpop.f32.mrb[23].mxu1 }
 0x111   :  { %v1144_v48 = vpack.c.bf16 %v492_v38, %v492_v38  ;;  %v1176_v49 = vpack.c.bf16 %v620_v39, %v620_v39  ;;  %v495_v50 = vadd.f32 %v1503_v37, %v494_v46  ;;  %v623_v51 = vadd.f32 %v1503_v37, %v622_v47 }
 0x112   :  { %945 = vst.msk [vmem:[%s1828_s3 + $0x58] sm:$0xf] %vm922_vm1, %v1146_v42  ;;  %977 = vst.msk [vmem:[%s1828_s3 + $0xd8] sm:$0xf] %vm922_vm1, %v1178_v43  ;;  %v1147_v52 = vpack.c.bf16 %v503_v44, %v503_v44  ;;  %v1179_v53 = vpack.c.bf16 %v631_v45, %v631_v45 }
 0x113   :  { %943 = vst.msk [vmem:[%s1828_s3 + $0x50] sm:$0xf] %vm922_vm1, %v1144_v48  ;;  %975 = vst.msk [vmem:[%s1828_s3 + $0xd0] sm:$0xf] %vm922_vm1, %v1176_v49  ;;  %v1145_v54 = vpack.c.bf16 %v495_v50, %v495_v50  ;;  %v1177_v55 = vpack.c.bf16 %v623_v51, %v623_v51 }
 0x114   :  { %946 = vst.msk [vmem:[%s1828_s3 + $0x5c] sm:$0xf] %vm922_vm1, %v1147_v52  ;;  %978 = vst.msk [vmem:[%s1828_s3 + $0xdc] sm:$0xf] %vm922_vm1, %v1179_v53 }
 0x115   :  { %944 = vst.msk [vmem:[%s1828_s3 + $0x54] sm:$0xf] %vm922_vm1, %v1145_v54  ;;  %976 = vst.msk [vmem:[%s1828_s3 + $0xd4] sm:$0xf] %vm922_vm1, %v1177_v55  ;;  %v1258_v56 = vpop.f32.mrb[24].mxu0  ;;  %v1290_v57 = vpop.f32.mrb[24].mxu1 }
 0x116   :  { %v516_v58 = vadd.f32 %v1258_v56, %v1503_v37  ;;  %v644_v59 = vadd.f32 %v1290_v57, %v1503_v37  ;;  %v507_v60 = vpop.f32.mrb[25].mxu0  ;;  %v635_v61 = vpop.f32.mrb[25].mxu1 }
 0x117   :  { %v508_v62 = vadd.f32 %v1503_v37, %v507_v60  ;;  %v636_v63 = vadd.f32 %v1503_v37, %v635_v61  ;;  %v1259_v0 = vpop.f32.mrb[26].mxu0  ;;  %v1291_v1 = vpop.f32.mrb[26].mxu1 }
 0x118   :  { %v1150_v2 = vpack.c.bf16 %v516_v58, %v516_v58  ;;  %v1182_v3 = vpack.c.bf16 %v644_v59, %v644_v59  ;;  %v519_v4 = vadd.f32 %v1259_v0, %v1503_v37  ;;  %v647_v5 = vadd.f32 %v1291_v1, %v1503_v37  ;;  %v510_v6 = vpop.f32.mrb[27].mxu0  ;;  %v638_v7 = vpop.f32.mrb[27].mxu1 }
 0x119   :  { %v1148_v8 = vpack.c.bf16 %v508_v62, %v508_v62  ;;  %v1180_v9 = vpack.c.bf16 %v636_v63, %v636_v63  ;;  %v511_v10 = vadd.f32 %v1503_v37, %v510_v6  ;;  %v639_v11 = vadd.f32 %v1503_v37, %v638_v7 }
 0x11a   :  { %949 = vst.msk [vmem:[%s1828_s3 + $0x68] sm:$0xf] %vm922_vm1, %v1150_v2  ;;  %981 = vst.msk [vmem:[%s1828_s3 + $0xe8] sm:$0xf] %vm922_vm1, %v1182_v3  ;;  %v1151_v12 = vpack.c.bf16 %v519_v4, %v519_v4  ;;  %v1183_v13 = vpack.c.bf16 %v647_v5, %v647_v5 }
 0x11b   :  { %947 = vst.msk [vmem:[%s1828_s3 + $0x60] sm:$0xf] %vm922_vm1, %v1148_v8  ;;  %979 = vst.msk [vmem:[%s1828_s3 + $0xe0] sm:$0xf] %vm922_vm1, %v1180_v9  ;;  %v1149_v14 = vpack.c.bf16 %v511_v10, %v511_v10  ;;  %v1181_v15 = vpack.c.bf16 %v639_v11, %v639_v11 }
 0x11c   :  { %950 = vst.msk [vmem:[%s1828_s3 + $0x6c] sm:$0xf] %vm922_vm1, %v1151_v12  ;;  %982 = vst.msk [vmem:[%s1828_s3 + $0xec] sm:$0xf] %vm922_vm1, %v1183_v13 }
 0x11d   :  { %948 = vst.msk [vmem:[%s1828_s3 + $0x64] sm:$0xf] %vm922_vm1, %v1149_v14  ;;  %980 = vst.msk [vmem:[%s1828_s3 + $0xe4] sm:$0xf] %vm922_vm1, %v1181_v15  ;;  %v1262_v16 = vpop.f32.mrb[28].mxu0  ;;  %v1294_v17 = vpop.f32.mrb[28].mxu1 }
 0x11e   :  { %v532_v18 = vadd.f32 %v1262_v16, %v1503_v37  ;;  %v660_v19 = vadd.f32 %v1294_v17, %v1503_v37  ;;  %v523_v20 = vpop.f32.mrb[29].mxu0  ;;  %v651_v21 = vpop.f32.mrb[29].mxu1 }
 0x11f   :  { %v524_v22 = vadd.f32 %v1503_v37, %v523_v20  ;;  %v652_v23 = vadd.f32 %v1503_v37, %v651_v21  ;;  %v1263_v24 = vpop.f32.mrb[30].mxu0  ;;  %v1295_v25 = vpop.f32.mrb[30].mxu1 }
 0x120   :  { %v1154_v26 = vpack.c.bf16 %v532_v18, %v532_v18  ;;  %v1186_v27 = vpack.c.bf16 %v660_v19, %v660_v19  ;;  %v535_v28 = vadd.f32 %v1263_v24, %v1503_v37  ;;  %v663_v29 = vadd.f32 %v1295_v25, %v1503_v37  ;;  %v526_v30 = vpop.f32.mrb[31].mxu0  ;;  %v654_v31 = vpop.f32.mrb[31].mxu1 }
 0x121   :  { %v1152_v32 = vpack.c.bf16 %v524_v22, %v524_v22  ;;  %v1184_v33 = vpack.c.bf16 %v652_v23, %v652_v23  ;;  %v527_v34 = vadd.f32 %v1503_v37, %v526_v30  ;;  %v655_v35 = vadd.f32 %v1503_v37, %v654_v31 }
 0x122   :  { %953 = vst.msk [vmem:[%s1828_s3 + $0x78] sm:$0xf] %vm922_vm1, %v1154_v26  ;;  %985 = vst.msk [vmem:[%s1828_s3 + $0xf8] sm:$0xf] %vm922_vm1, %v1186_v27  ;;  %v1155_v36 = vpack.c.bf16 %v535_v28, %v535_v28  ;;  %v1187_v38 = vpack.c.bf16 %v663_v29, %v663_v29 }
 0x123   :  { %951 = vst.msk [vmem:[%s1828_s3 + $0x70] sm:$0xf] %vm922_vm1, %v1152_v32  ;;  %983 = vst.msk [vmem:[%s1828_s3 + $0xf0] sm:$0xf] %vm922_vm1, %v1184_v33  ;;  %v1153_v37 = vpack.c.bf16 %v527_v34, %v527_v34  ;;  %v1185_v39 = vpack.c.bf16 %v655_v35, %v655_v35 }
 0x124   :  { %954 = vst.msk [vmem:[%s1828_s3 + $0x7c] sm:$0xf] %vm922_vm1, %v1155_v36  ;;  %986 = vst.msk [vmem:[%s1828_s3 + $0xfc] sm:$0xf] %vm922_vm1, %v1187_v38 }
 0x125   :  { %952 = vst.msk [vmem:[%s1828_s3 + $0x74] sm:$0xf] %vm922_vm1, %v1153_v37  ;;  %984 = vst.msk [vmem:[%s1828_s3 + $0xf4] sm:$0xf] %vm922_vm1, %v1185_v39 }

</bundles_post_ra>
